<compile_context>
chip_gen: v6e
topology: v6e:2x2x1
jax: 0.10.0
libtpu: 0.0.40
codegen_flags: <defaults>
</compile_context>

<pallas_src>
import functools
import math

import jax
import jax.numpy as jnp
from jax.experimental import pallas as pl
from jax.experimental.pallas import tpu as pltpu

# ---- synthetic WavLM-ish config (small, deterministic; no checkpoint) ------
CONV_KERNELS = (10, 3, 3, 3, 3, 2, 2)   # total downsampling factor = 320
CONV_STRIDES = (5, 2, 2, 2, 2, 2, 2)
CONV_DIM = 32
HIDDEN = 32
N_HEADS = 2
HEAD_DIM = HIDDEN // N_HEADS
N_LAYERS = 2
INTERMEDIATE = 64
POS_KERNEL = 3   # TODO(synk): real WavLM uses weight-normed Conv1d(kernel=128, groups=16)
LN_EPS = 1e-5
DTYPE = jnp.float32          # interface / LN / softmax precision
ACT_DTYPE = jnp.bfloat16     # inter-kernel activations (halves HBM + VMEM blocks)
W_DTYPE = jnp.bfloat16       # matmul weights, pre-cast once at init
NEG_INF = -1e9

_PAR1 = pltpu.CompilerParams(dimension_semantics=("parallel",))


# ============================ small helpers =================================
def _gelu(x):
    # TODO(synk): HF WavLM uses erf-GELU; tanh approximation keeps the EUP path.
    return 0.5 * x * (1.0 + jnp.tanh(0.7978845608028654 * (x + 0.044715 * x * x * x)))


def _ln(x, g, b, eps=LN_EPS):
    mean = jnp.mean(x, axis=-1, keepdims=True)
    xc = x - mean
    var = jnp.mean(xc * xc, axis=-1, keepdims=True)
    return xc * jax.lax.rsqrt(var + eps) * g + b


def _mm(a, b):
    # bf16 MXU matmul, f32 accumulation
    return jnp.dot(a.astype(jnp.bfloat16), b.astype(jnp.bfloat16),
                   preferred_element_type=jnp.float32)


def _mm_nt(a, b):
    # a @ b.T, bf16 operands, f32 accumulation (no explicit transpose op)
    return jax.lax.dot_general(
        a.astype(jnp.bfloat16), b.astype(jnp.bfloat16),
        dimension_numbers=(((1,), (1,)), ((), ())),
        preferred_element_type=jnp.float32)


def _wspec(shape):
    """Full-array BlockSpec whose index_map ignores grid + prefetch args."""
    nd = len(shape)
    return pl.BlockSpec(shape, lambda *_, _nd=nd: (0,) * _nd)


def _conv_plan(length):
    plan = []
    lin = length
    for k, s in zip(CONV_KERNELS, CONV_STRIDES):
        lout = (lin - k) // s + 1
        plan.append((k, s, lin, lout))
        lin = lout
    return tuple(plan)


# ============================ Pallas kernels ================================
def _frontend_kernel(lens_ref, x_ref, *refs, plan):
    """Whole feature extractor for one batch element, VMEM-resident:
       conv0 (space-to-depth'd input) -> conv1..6 (strided taps from scratch)
       -> feature-projection LN + linear + pad-frame zeroing
       -> positional conv + GELU + residual."""
    nconv = len(plan)
    n = 4 * nconv
    cw = refs[:n]
    fpg, fpb, fpw, fpbw, posw, posb = refs[n:n + 6]
    o_ref, scr, pscr = refs[n + 6], refs[n + 7], refs[n + 8]

    b = pl.program_id(0)
    tp = plan[-1][3]

    def conv_ln_gelu(xcat, idx):
        w, bias, g, beta = cw[4 * idx:4 * idx + 4]
        y = _mm(xcat, w[...]) + bias[...]
        return _gelu(_ln(y, g[...], beta[...]))

    # --- conv layer 0: stride removed by wrapper space-to-depth; one matmul ---
    k0, s0, _, lout0 = plan[0]
    kr0 = -(-k0 // s0)
    x0 = x_ref[0]                                          # (rows0, s0*Cin) bf16
    xcat = jnp.concatenate([x0[r:r + lout0] for r in range(kr0)], axis=-1)
    y = conv_ln_gelu(xcat, 0)
    scr[pl.ds(0, lout0), :] = y

    # --- conv layers 1..n-1: strided tap reads from VMEM scratch, one K=k*C matmul
    for idx in range(1, nconv):
        k, s, _, lout = plan[idx]
        taps = [scr[pl.ds(j, lout, stride=s), :] for j in range(k)]
        xcat = jnp.concatenate(taps, axis=-1)              # (lout, k*CONV_DIM)
        y = conv_ln_gelu(xcat, idx)
        if idx < nconv - 1:
            scr[pl.ds(0, lout), :] = y

    # --- feature projection: LN -> linear -> zero padded frames (mask from SMEM len)
    h = _ln(y, fpg[...], fpb[...])
    h = _mm(h, fpw[...]) + fpbw[...]
    frame = jax.lax.broadcasted_iota(jnp.int32, (tp, 1), 0)
    h = jnp.where(frame < lens_ref[b], h, 0.0)

    # --- positional conv (same-pad) + GELU + residual, taps via padded scratch ---
    pad = POS_KERNEL // 2
    pscr[...] = jnp.zeros(pscr.shape, pscr.dtype)
    pscr[pl.ds(pad, tp), :] = h
    taps = [pscr[pl.ds(j, tp), :] for j in range(POS_KERNEL)]
    pos = _mm(jnp.concatenate(taps, axis=-1), posw[...]) + posb[...]
    h = h + _gelu(pos)
    o_ref[0] = h.astype(o_ref.dtype)


def _encoder_layer_kernel(lens_ref, h_ref, ln1g, ln1b, wqkv, bqkv, wo, bo,
                          ln2g, ln2b, w1, b1, w2, b2, o_ref):
    """One fused encoder layer (pre-LN variant used with feat_extract_norm='layer'):
       LN1 + fused QKV + MHA + out-proj + residual + LN2 + FFN + residual."""
    b = pl.program_id(0)
    tp, hdim = h_ref.shape[1], h_ref.shape[2]
    hd = hdim // N_HEADS
    x = h_ref[0].astype(jnp.float32)                       # (Tp, H) residual

    # LN1 + fused QKV (attention scale pre-baked into the Q columns at init)
    qkv = _mm(_ln(x, ln1g[...], ln1b[...]), wqkv[...]) + bqkv[...]

    # additive key mask from the SMEM length, built ONCE outside the head loop
    kpos = jax.lax.broadcasted_iota(jnp.int32, (tp, tp), 1)
    bias = jnp.where(kpos < lens_ref[b], 0.0, NEG_INF).astype(jnp.float32)

    # TODO(synk): flash-style KV tiling with online softmax for long sequences;
    #             the full (Tp, Tp) scores do not fit VMEM at realistic audio lengths.
    # TODO(synk): WavLM gated relative position bias not implemented; plain MHA used.
    ctx = []
    for hh in range(N_HEADS):                              # static head loop
        q = qkv[:, hh * hd:(hh + 1) * hd]
        k = qkv[:, hdim + hh * hd:hdim + (hh + 1) * hd]
        v = qkv[:, 2 * hdim + hh * hd:2 * hdim + (hh + 1) * hd]
        s = _mm_nt(q, k) + bias
        p = jnp.exp(s - jnp.max(s, axis=-1, keepdims=True))
        p = p * pl.reciprocal(jnp.sum(p, axis=-1, keepdims=True), approx=True)
        ctx.append(_mm(p, v))                              # (Tp, hd)

    # single output projection over concatenated heads + residual
    x = x + _mm(jnp.concatenate(ctx, axis=-1), wo[...]) + bo[...]

    # LN2 + FFN (w1 -> GELU -> w2) + residual
    mid = _gelu(_mm(_ln(x, ln2g[...], ln2b[...]), w1[...]) + b1[...])
    x = x + _mm(mid, w2[...]) + b2[...]
    o_ref[0] = x.astype(o_ref.dtype)


def _final_ln_t_kernel(h_ref, g_ref, b_ref, o_ref):
    """Final encoder LayerNorm fused with the (0, 2, 1) output transpose."""
    y = _ln(h_ref[0].astype(jnp.float32), g_ref[...], b_ref[...])   # (Tp, H)
    hdim = y.shape[1]
    # MXU identity-transpose (guaranteed lowering, keeps stores lane-dense in Tp)
    row = jax.lax.broadcasted_iota(jnp.int32, (hdim, hdim), 0)
    col = jax.lax.broadcasted_iota(jnp.int32, (hdim, hdim), 1)
    eye = (row == col).astype(jnp.float32)
    yt = jax.lax.dot_general(eye, y, (((1,), (1,)), ((), ())),
                             preferred_element_type=jnp.float32)    # (H, Tp)
    o_ref[0] = yt.astype(o_ref.dtype)


# ============================ kernel wrappers ===============================
def frontend(params, x, feat_len):
    B, T = x.shape
    plan = _conv_plan(T)
    k0, s0, _, lout0 = plan[0]
    kr0 = -(-k0 // s0)
    rows0 = lout0 + kr0 - 1
    lpad = rows0 * s0
    if lpad > T:
        x = jnp.pad(x, ((0, 0), (0, lpad - T)))
    else:
        x = x[:, :lpad]                     # trailing samples never reach an output
    xr = x.reshape(B, rows0, s0).astype(ACT_DTYPE)          # space-to-depth (Cin=1)
    tp = plan[-1][3]

    conv_args = []
    for i, p in enumerate(params["conv"]):
        w = p["w"]
        if i == 0 and kr0 * s0 > w.shape[0]:                 # zero-pad taps when s does not divide k
            w = jnp.pad(w, ((0, kr0 * s0 - w.shape[0]), (0, 0)))
        conv_args += [w, p["b"], p["ln_g"], p["ln_b"]]
    full_args = conv_args + [params["fp_ln_g"], params["fp_ln_b"],
                             params["fp_w"], params["fp_b"],
                             params["pos_w"], params["pos_b"]]

    scr_rows = -(-lout0 // 8) * 8
    grid_spec = pltpu.PrefetchScalarGridSpec(
        num_scalar_prefetch=1,
        grid=(B,),
        in_specs=[pl.BlockSpec((1, rows0, s0), lambda b, lens: (b, 0, 0))]
                 + [_wspec(a.shape) for a in full_args],
        out_specs=pl.BlockSpec((1, tp, HIDDEN), lambda b, lens: (b, 0, 0)),
        scratch_shapes=[
            pltpu.VMEM((scr_rows, CONV_DIM), jnp.float32),                     # conv intermediates
            pltpu.VMEM((tp + 2 * (POS_KERNEL // 2), HIDDEN), jnp.float32),     # pos-conv padding
        ])
    return pl.pallas_call(
        functools.partial(_frontend_kernel, plan=plan),
        grid_spec=grid_spec,
        out_shape=jax.ShapeDtypeStruct((B, tp, HIDDEN), ACT_DTYPE),
        compiler_params=_PAR1,
    )(feat_len, xr, *full_args)


def encoder_layer(h, feat_len, lp):
    B, tp, hdim = h.shape
    full_args = [lp["ln1_g"], lp["ln1_b"], lp["wqkv"], lp["bqkv"],
                 lp["wo"], lp["bo"], lp["ln2_g"], lp["ln2_b"],
                 lp["w1"], lp["b1"], lp["w2"], lp["b2"]]
    grid_spec = pltpu.PrefetchScalarGridSpec(
        num_scalar_prefetch=1,
        grid=(B,),
        in_specs=[pl.BlockSpec((1, tp, hdim), lambda b, lens: (b, 0, 0))]
                 + [_wspec(a.shape) for a in full_args],
        out_specs=pl.BlockSpec((1, tp, hdim), lambda b, lens: (b, 0, 0)))
    return pl.pallas_call(
        _encoder_layer_kernel,
        grid_spec=grid_spec,
        out_shape=jax.ShapeDtypeStruct((B, tp, hdim), ACT_DTYPE),
        compiler_params=_PAR1,
    )(feat_len, h, *full_args)


def final_ln_transposed(h, g, b):
    B, tp, hdim = h.shape
    return pl.pallas_call(
        _final_ln_t_kernel,
        grid=(B,),
        in_specs=[pl.BlockSpec((1, tp, hdim), lambda i: (i, 0, 0)),
                  _wspec(g.shape), _wspec(b.shape)],
        out_specs=pl.BlockSpec((1, hdim, tp), lambda i: (i, 0, 0)),
        out_shape=jax.ShapeDtypeStruct((B, hdim, tp), DTYPE),
        compiler_params=_PAR1,
    )(h, g, b)


# ============================ model pieces ==================================
def _feat_lengths(lengths):
    # same formula HF uses to downsample the sample-level mask to feature mask
    for k, s in zip(CONV_KERNELS, CONV_STRIDES):
        lengths = (lengths - k) // s + 1
    return lengths


def _init_params(key):
    def dense(shape, scale=0.02):
        nonlocal key
        key, sub = jax.random.split(key)
        return scale * jax.random.normal(sub, shape, dtype=jnp.float32)

    wmat = lambda shape: dense(shape).astype(W_DTYPE)
    vec0 = lambda n: jnp.zeros((1, n), DTYPE)
    vec1 = lambda n: jnp.ones((1, n), DTYPE)

    params = {"conv": [], "layers": []}
    cin = 1
    for k in CONV_KERNELS:
        params["conv"].append({
            "w": wmat((k * cin, CONV_DIM)), "b": vec0(CONV_DIM),
            "ln_g": vec1(CONV_DIM), "ln_b": vec0(CONV_DIM)})
        cin = CONV_DIM
    params["fp_ln_g"], params["fp_ln_b"] = vec1(CONV_DIM), vec0(CONV_DIM)
    params["fp_w"], params["fp_b"] = wmat((CONV_DIM, HIDDEN)), vec0(HIDDEN)
    params["pos_w"], params["pos_b"] = wmat((POS_KERNEL * HIDDEN, HIDDEN)), vec0(HIDDEN)

    scale = 1.0 / math.sqrt(HEAD_DIM)
    for _ in range(N_LAYERS):
        wq, wk, wv = (dense((HIDDEN, HIDDEN)) for _ in range(3))
        bq = jnp.zeros((HIDDEN,), DTYPE)
        # QKV fusion + attention-scale bake done ONCE here, not per jitted call.
        wqkv = jnp.concatenate([wq * scale, wk, wv], axis=1).astype(W_DTYPE)
        bqkv = jnp.concatenate([bq * scale, jnp.zeros((2 * HIDDEN,), DTYPE)]).reshape(1, -1)
        params["layers"].append({
            "ln1_g": vec1(HIDDEN), "ln1_b": vec0(HIDDEN),
            "wqkv": wqkv, "bqkv": bqkv,
            "wo": wmat((HIDDEN, HIDDEN)), "bo": vec0(HIDDEN),
            "ln2_g": vec1(HIDDEN), "ln2_b": vec0(HIDDEN),
            "w1": wmat((HIDDEN, INTERMEDIATE)), "b1": vec0(INTERMEDIATE),
            "w2": wmat((INTERMEDIATE, HIDDEN)), "b2": vec0(HIDDEN)})
    params["enc_ln_g"], params["enc_ln_b"] = vec1(HIDDEN), vec0(HIDDEN)
    return params


def ssl_forward(params, x, x_len, layer=-1):
    assert x.ndim == 2

    feat_len = _feat_lengths(x_len).astype(jnp.int32)

    # --- fused feature extractor + feature projection + positional conv -------
    h = frontend(params, x, feat_len)                  # (B, Tp, H) bf16
    tp = h.shape[1]

    # --- transformer encoder (pre-LN "stable layer norm" variant) -------------
    hidden_states = []
    for lp in params["layers"]:
        hidden_states.append(h)                        # input to each layer
        h = encoder_layer(h, feat_len, lp)

    # --- SSL.forward tail: pick hidden state, transpose, rescale lengths ------
    n_states = len(params["layers"]) + 1               # + final LayerNorm output
    idx = layer if layer >= 0 else n_states + layer
    if idx == n_states - 1:
        # final LN fused with the (0, 2, 1) transpose
        out = final_ln_transposed(h, params["enc_ln_g"], params["enc_ln_b"])
    else:
        out = jnp.transpose(hidden_states[idx], (0, 2, 1)).astype(DTYPE)

    out_len = jnp.minimum(x_len // 320, out.shape[2])
    return out, out_len


# ================================ main ======================================
if __name__ == "__main__":
    key = jax.random.PRNGKey(0)
    pkey, xkey = jax.random.split(key)
    params = _init_params(pkey)

    B, T = 2, 2000                     # 2000 samples -> 6 feature frames
    x = jax.random.normal(xkey, (B, T), dtype=DTYPE)
    x_len = jnp.array([2000, 1600], dtype=jnp.int32)

    fwd = jax.jit(lambda a, b: ssl_forward(params, a, b, layer=-1))
    out, out_len = fwd(x, x_len)
    jax.block_until_ready(out)
    jax.block_until_ready(out_len)

    assert out.shape == (B, HIDDEN, 6), out.shape
    assert out_len.shape == (B,), out_len.shape
    print("KERNEL_OK")
</pallas_src>

<mosaic_0001>
module attributes {stable_mosaic.version = 11 : i64} {
  func.func @_final_ln_t_kernel(%arg0: i32, %arg1: memref<1x6x32xbf16, #tpu.memory_space<vmem>>, %arg2: memref<1x32xf32, #tpu.memory_space<vmem>>, %arg3: memref<1x32xf32, #tpu.memory_space<vmem>>, %arg4: memref<1x32x6xf32, #tpu.memory_space<vmem>>) attributes {dimension_semantics = [#tpu.dimension_semantics<parallel>], iteration_bounds = array<i64: 2>, scalar_prefetch = 0 : i64, scratch_operands = 0 : i64, tpu.core_type = #tpu.core_type<tc>, window_params = [{transform_indices = @transform_0, window_bounds = array<i64: 1, 6, 32>}, {pipeline_mode = #tpu.pipeline_mode<synchronous>, transform_indices = @transform_1, window_bounds = array<i64: 1, 32>}, {pipeline_mode = #tpu.pipeline_mode<synchronous>, transform_indices = @transform_2, window_bounds = array<i64: 1, 32>}, {transform_indices = @transform_3, window_bounds = array<i64: 1, 32, 6>}]} {
    %c0 = arith.constant 0 : index
    %c0_0 = arith.constant 0 : index
    %c0_1 = arith.constant 0 : index
    %0 = vector.load %arg1[%c0, %c0_0, %c0_1] : memref<1x6x32xbf16, #tpu.memory_space<vmem>>, vector<1x6x32xbf16>
    %1 = vector.shape_cast %0 : vector<1x6x32xbf16> to vector<6x32xbf16>
    %2 = arith.extf %1 : vector<6x32xbf16> to vector<6x32xf32>
    %c0_2 = arith.constant 0 : index
    %c0_3 = arith.constant 0 : index
    %3 = vector.load %arg2[%c0_2, %c0_3] : memref<1x32xf32, #tpu.memory_space<vmem>>, vector<1x32xf32>
    %c0_4 = arith.constant 0 : index
    %c0_5 = arith.constant 0 : index
    %4 = vector.load %arg3[%c0_4, %c0_5] : memref<1x32xf32, #tpu.memory_space<vmem>>, vector<1x32xf32>
    %cst = arith.constant dense<0.000000e+00> : vector<6xf32>
    %5 = vector.multi_reduction <add>, %2, %cst [1] : vector<6x32xf32> to vector<6xf32>
    %6 = vector.shape_cast %5 : vector<6xf32> to vector<6x1xf32>
    %cst_6 = arith.constant 3.200000e+01 : f32
    %7 = vector.broadcast %cst_6 : f32 to vector<6x1xf32>
    %8 = arith.divf %6, %7 : vector<6x1xf32>
    %9 = vector.broadcast %8 : vector<6x1xf32> to vector<6x32xf32>
    %10 = arith.subf %2, %9 : vector<6x32xf32>
    %11 = arith.mulf %10, %10 : vector<6x32xf32>
    %cst_7 = arith.constant dense<0.000000e+00> : vector<6xf32>
    %12 = vector.multi_reduction <add>, %11, %cst_7 [1] : vector<6x32xf32> to vector<6xf32>
    %13 = vector.shape_cast %12 : vector<6xf32> to vector<6x1xf32>
    %cst_8 = arith.constant 3.200000e+01 : f32
    %14 = vector.broadcast %cst_8 : f32 to vector<6x1xf32>
    %15 = arith.divf %13, %14 : vector<6x1xf32>
    %cst_9 = arith.constant 9.99999974E-6 : f32
    %16 = vector.broadcast %cst_9 : f32 to vector<6x1xf32>
    %17 = arith.addf %15, %16 : vector<6x1xf32>
    %18 = math.rsqrt %17 : vector<6x1xf32>
    %19 = vector.broadcast %18 : vector<6x1xf32> to vector<6x32xf32>
    %20 = arith.mulf %10, %19 : vector<6x32xf32>
    %21 = vector.broadcast %3 : vector<1x32xf32> to vector<6x32xf32>
    %22 = arith.mulf %20, %21 : vector<6x32xf32>
    %23 = vector.broadcast %4 : vector<1x32xf32> to vector<6x32xf32>
    %24 = arith.addf %22, %23 : vector<6x32xf32>
    %25 = tpu.iota {dimensions = array<i32: 0>} : vector<32x32xi32>
    %26 = tpu.iota {dimensions = array<i32: 1>} : vector<32x32xi32>
    %27 = arith.cmpi eq, %25, %26 : vector<32x32xi32>
    %28 = arith.extui %27 : vector<32x32xi1> to vector<32x32xi32>
    %29 = arith.sitofp %28 : vector<32x32xi32> to vector<32x32xf32>
    %cst_10 = arith.constant dense<0.000000e+00> : vector<32x6xf32>
    %30 = tpu.matmul %29, %24, %cst_10 {dimension_numbers = #tpu.dot_dimension_numbers<[1], [1], [0], [0], [0, 0, 1, 0], [], []>} : vector<32x32xf32>, vector<6x32xf32>, vector<32x6xf32> -> vector<32x6xf32>
    %c0_11 = arith.constant 0 : index
    %c0_12 = arith.constant 0 : index
    %c0_13 = arith.constant 0 : index
    %31 = vector.load %arg4[%c0_11, %c0_12, %c0_13] : memref<1x32x6xf32, #tpu.memory_space<vmem>>, vector<1x32x6xf32>
    %32 = vector.shape_cast %31 : vector<1x32x6xf32> to vector<32x6xf32>
    %33 = vector.shape_cast %30 : vector<32x6xf32> to vector<1x32x6xf32>
    tpu.vector_store %arg4[%c0_11, %c0_12, %c0_13], %33 {strides = array<i32>} : memref<1x32x6xf32, #tpu.memory_space<vmem>>, vector<1x32x6xf32>,
    return
  }
  func.func @transform_0(%arg0: i32) -> (i32, i32, i32) {
    %c0_i32 = arith.constant 0 : i32
    %c0_i32_0 = arith.constant 0 : i32
    %c0_i32_1 = arith.constant 0 : i32
    return %arg0, %c0_i32, %c0_i32_0 : i32, i32, i32
  }
  func.func @transform_1(%arg0: i32) -> (i32, i32) {
    %c0_i32 = arith.constant 0 : i32
    %c0_i32_0 = arith.constant 0 : i32
    %c0_i32_1 = arith.constant 0 : i32
    return %c0_i32, %c0_i32_0 : i32, i32
  }
  func.func @transform_2(%arg0: i32) -> (i32, i32) {
    %c0_i32 = arith.constant 0 : i32
    %c0_i32_0 = arith.constant 0 : i32
    %c0_i32_1 = arith.constant 0 : i32
    return %c0_i32, %c0_i32_0 : i32, i32
  }
  func.func @transform_3(%arg0: i32) -> (i32, i32, i32) {
    %c0_i32 = arith.constant 0 : i32
    %c0_i32_0 = arith.constant 0 : i32
    %c0_i32_1 = arith.constant 0 : i32
    return %arg0, %c0_i32, %c0_i32_0 : i32, i32, i32
  }
}

module attributes {stable_mosaic.version = 11 : i64} {
  func.func @_frontend_kernel(%arg0: i32, %arg1: memref<2xi32, #tpu.memory_space<smem>>, %arg2: memref<1x400x5xbf16, #tpu.memory_space<vmem>>, %arg3: memref<10x32xbf16, #tpu.memory_space<vmem>>, %arg4: memref<1x32xf32, #tpu.memory_space<vmem>>, %arg5: memref<1x32xf32, #tpu.memory_space<vmem>>, %arg6: memref<1x32xf32, #tpu.memory_space<vmem>>, %arg7: memref<96x32xbf16, #tpu.memory_space<vmem>>, %arg8: memref<1x32xf32, #tpu.memory_space<vmem>>, %arg9: memref<1x32xf32, #tpu.memory_space<vmem>>, %arg10: memref<1x32xf32, #tpu.memory_space<vmem>>, %arg11: memref<96x32xbf16, #tpu.memory_space<vmem>>, %arg12: memref<1x32xf32, #tpu.memory_space<vmem>>, %arg13: memref<1x32xf32, #tpu.memory_space<vmem>>, %arg14: memref<1x32xf32, #tpu.memory_space<vmem>>, %arg15: memref<96x32xbf16, #tpu.memory_space<vmem>>, %arg16: memref<1x32xf32, #tpu.memory_space<vmem>>, %arg17: memref<1x32xf32, #tpu.memory_space<vmem>>, %arg18: memref<1x32xf32, #tpu.memory_space<vmem>>, %arg19: memref<96x32xbf16, #tpu.memory_space<vmem>>, %arg20: memref<1x32xf32, #tpu.memory_space<vmem>>, %arg21: memref<1x32xf32, #tpu.memory_space<vmem>>, %arg22: memref<1x32xf32, #tpu.memory_space<vmem>>, %arg23: memref<64x32xbf16, #tpu.memory_space<vmem>>, %arg24: memref<1x32xf32, #tpu.memory_space<vmem>>, %arg25: memref<1x32xf32, #tpu.memory_space<vmem>>, %arg26: memref<1x32xf32, #tpu.memory_space<vmem>>, %arg27: memref<64x32xbf16, #tpu.memory_space<vmem>>, %arg28: memref<1x32xf32, #tpu.memory_space<vmem>>, %arg29: memref<1x32xf32, #tpu.memory_space<vmem>>, %arg30: memref<1x32xf32, #tpu.memory_space<vmem>>, %arg31: memref<1x32xf32, #tpu.memory_space<vmem>>, %arg32: memref<1x32xf32, #tpu.memory_space<vmem>>, %arg33: memref<32x32xbf16, #tpu.memory_space<vmem>>, %arg34: memref<1x32xf32, #tpu.memory_space<vmem>>, %arg35: memref<96x32xbf16, #tpu.memory_space<vmem>>, %arg36: memref<1x32xf32, #tpu.memory_space<vmem>>, %arg37: memref<1x6x32xbf16, #tpu.memory_space<vmem>>, %arg38: memref<400x32xf32, #tpu.memory_space<vmem>>, %arg39: memref<8x32xf32, #tpu.memory_space<vmem>>) attributes {dimension_semantics = [#tpu.dimension_semantics<parallel>], iteration_bounds = array<i64: 2>, scalar_prefetch = 1 : i64, scratch_operands = 2 : i64, tpu.core_type = #tpu.core_type<tc>, window_params = [{transform_indices = @transform_0, window_bounds = array<i64: 1, 400, 5>}, {pipeline_mode = #tpu.pipeline_mode<synchronous>, transform_indices = @transform_1, window_bounds = array<i64: 10, 32>}, {pipeline_mode = #tpu.pipeline_mode<synchronous>, transform_indices = @transform_2, window_bounds = array<i64: 1, 32>}, {pipeline_mode = #tpu.pipeline_mode<synchronous>, transform_indices = @transform_3, window_bounds = array<i64: 1, 32>}, {pipeline_mode = #tpu.pipeline_mode<synchronous>, transform_indices = @transform_4, window_bounds = array<i64: 1, 32>}, {pipeline_mode = #tpu.pipeline_mode<synchronous>, transform_indices = @transform_5, window_bounds = array<i64: 96, 32>}, {pipeline_mode = #tpu.pipeline_mode<synchronous>, transform_indices = @transform_6, window_bounds = array<i64: 1, 32>}, {pipeline_mode = #tpu.pipeline_mode<synchronous>, transform_indices = @transform_7, window_bounds = array<i64: 1, 32>}, {pipeline_mode = #tpu.pipeline_mode<synchronous>, transform_indices = @transform_8, window_bounds = array<i64: 1, 32>}, {pipeline_mode = #tpu.pipeline_mode<synchronous>, transform_indices = @transform_9, window_bounds = array<i64: 96, 32>}, {pipeline_mode = #tpu.pipeline_mode<synchronous>, transform_indices = @transform_10, window_bounds = array<i64: 1, 32>}, {pipeline_mode = #tpu.pipeline_mode<synchronous>, transform_indices = @transform_11, window_bounds = array<i64: 1, 32>}, {pipeline_mode = #tpu.pipeline_mode<synchronous>, transform_indices = @transform_12, window_bounds = array<i64: 1, 32>}, {pipeline_mode = #tpu.pipeline_mode<synchronous>, transform_indices = @transform_13, window_bounds = array<i64: 96, 32>}, {pipeline_mode = #tpu.pipeline_mode<synchronous>, transform_indices = @transform_14, window_bounds = array<i64: 1, 32>}, {pipeline_mode = #tpu.pipeline_mode<synchronous>, transform_indices = @transform_15, window_bounds = array<i64: 1, 32>}, {pipeline_mode = #tpu.pipeline_mode<synchronous>, transform_indices = @transform_16, window_bounds = array<i64: 1, 32>}, {pipeline_mode = #tpu.pipeline_mode<synchronous>, transform_indices = @transform_17, window_bounds = array<i64: 96, 32>}, {pipeline_mode = #tpu.pipeline_mode<synchronous>, transform_indices = @transform_18, window_bounds = array<i64: 1, 32>}, {pipeline_mode = #tpu.pipeline_mode<synchronous>, transform_indices = @transform_19, window_bounds = array<i64: 1, 32>}, {pipeline_mode = #tpu.pipeline_mode<synchronous>, transform_indices = @transform_20, window_bounds = array<i64: 1, 32>}, {pipeline_mode = #tpu.pipeline_mode<synchronous>, transform_indices = @transform_21, window_bounds = array<i64: 64, 32>}, {pipeline_mode = #tpu.pipeline_mode<synchronous>, transform_indices = @transform_22, window_bounds = array<i64: 1, 32>}, {pipeline_mode = #tpu.pipeline_mode<synchronous>, transform_indices = @transform_23, window_bounds = array<i64: 1, 32>}, {pipeline_mode = #tpu.pipeline_mode<synchronous>, transform_indices = @transform_24, window_bounds = array<i64: 1, 32>}, {pipeline_mode = #tpu.pipeline_mode<synchronous>, transform_indices = @transform_25, window_bounds = array<i64: 64, 32>}, {pipeline_mode = #tpu.pipeline_mode<synchronous>, transform_indices = @transform_26, window_bounds = array<i64: 1, 32>}, {pipeline_mode = #tpu.pipeline_mode<synchronous>, transform_indices = @transform_27, window_bounds = array<i64: 1, 32>}, {pipeline_mode = #tpu.pipeline_mode<synchronous>, transform_indices = @transform_28, window_bounds = array<i64: 1, 32>}, {pipeline_mode = #tpu.pipeline_mode<synchronous>, transform_indices = @transform_29, window_bounds = array<i64: 1, 32>}, {pipeline_mode = #tpu.pipeline_mode<synchronous>, transform_indices = @transform_30, window_bounds = array<i64: 1, 32>}, {pipeline_mode = #tpu.pipeline_mode<synchronous>, transform_indices = @transform_31, window_bounds = array<i64: 32, 32>}, {pipeline_mode = #tpu.pipeline_mode<synchronous>, transform_indices = @transform_32, window_bounds = array<i64: 1, 32>}, {pipeline_mode = #tpu.pipeline_mode<synchronous>, transform_indices = @transform_33, window_bounds = array<i64: 96, 32>}, {pipeline_mode = #tpu.pipeline_mode<synchronous>, transform_indices = @transform_34, window_bounds = array<i64: 1, 32>}, {transform_indices = @transform_35, window_bounds = array<i64: 1, 6, 32>}]} {
    %c0 = arith.constant 0 : index
    %c0_0 = arith.constant 0 : index
    %c0_1 = arith.constant 0 : index
    %0 = vector.load %arg2[%c0, %c0_0, %c0_1] : memref<1x400x5xbf16, #tpu.memory_space<vmem>>, vector<1x400x5xbf16>
    %1 = vector.shape_cast %0 : vector<1x400x5xbf16> to vector<400x5xbf16>
    %2 = vector.extract_strided_slice %1 {offsets = [0, 0], sizes = [399, 5], strides = [1, 1]} : vector<400x5xbf16> to vector<399x5xbf16>
    %3 = vector.extract_strided_slice %1 {offsets = [1, 0], sizes = [399, 5], strides = [1, 1]} : vector<400x5xbf16> to vector<399x5xbf16>
    %4 = tpu.concatenate %2, %3 in 1 : vector<399x5xbf16>, vector<399x5xbf16> -> vector<399x10xbf16>
    %c0_2 = arith.constant 0 : index
    %c0_3 = arith.constant 0 : index
    %5 = vector.load %arg3[%c0_2, %c0_3] : memref<10x32xbf16, #tpu.memory_space<vmem>>, vector<10x32xbf16>
    %cst = arith.constant dense<0.000000e+00> : vector<399x32xf32>
    %6 = tpu.matmul %4, %5, %cst {dimension_numbers = #tpu.dot_dimension_numbers<[1], [0], [0], [1], [0, 0, 1, 1], [], []>} : vector<399x10xbf16>, vector<10x32xbf16>, vector<399x32xf32> -> vector<399x32xf32>
    %c0_4 = arith.constant 0 : index
    %c0_5 = arith.constant 0 : index
    %7 = vector.load %arg4[%c0_4, %c0_5] : memref<1x32xf32, #tpu.memory_space<vmem>>, vector<1x32xf32>
    %8 = vector.broadcast %7 : vector<1x32xf32> to vector<399x32xf32>
    %9 = arith.addf %6, %8 : vector<399x32xf32>
    %c0_6 = arith.constant 0 : index
    %c0_7 = arith.constant 0 : index
    %10 = vector.load %arg5[%c0_6, %c0_7] : memref<1x32xf32, #tpu.memory_space<vmem>>, vector<1x32xf32>
    %c0_8 = arith.constant 0 : index
    %c0_9 = arith.constant 0 : index
    %11 = vector.load %arg6[%c0_8, %c0_9] : memref<1x32xf32, #tpu.memory_space<vmem>>, vector<1x32xf32>
    %cst_10 = arith.constant dense<0.000000e+00> : vector<399xf32>
    %12 = vector.multi_reduction <add>, %9, %cst_10 [1] : vector<399x32xf32> to vector<399xf32>
    %13 = vector.shape_cast %12 : vector<399xf32> to vector<399x1xf32>
    %cst_11 = arith.constant 3.200000e+01 : f32
    %14 = vector.broadcast %cst_11 : f32 to vector<399x1xf32>
    %15 = arith.divf %13, %14 : vector<399x1xf32>
    %16 = vector.broadcast %15 : vector<399x1xf32> to vector<399x32xf32>
    %17 = arith.subf %9, %16 : vector<399x32xf32>
    %18 = arith.mulf %17, %17 : vector<399x32xf32>
    %cst_12 = arith.constant dense<0.000000e+00> : vector<399xf32>
    %19 = vector.multi_reduction <add>, %18, %cst_12 [1] : vector<399x32xf32> to vector<399xf32>
    %20 = vector.shape_cast %19 : vector<399xf32> to vector<399x1xf32>
    %cst_13 = arith.constant 3.200000e+01 : f32
    %21 = vector.broadcast %cst_13 : f32 to vector<399x1xf32>
    %22 = arith.divf %20, %21 : vector<399x1xf32>
    %cst_14 = arith.constant 9.99999974E-6 : f32
    %23 = vector.broadcast %cst_14 : f32 to vector<399x1xf32>
    %24 = arith.addf %22, %23 : vector<399x1xf32>
    %25 = math.rsqrt %24 : vector<399x1xf32>
    %26 = vector.broadcast %25 : vector<399x1xf32> to vector<399x32xf32>
    %27 = arith.mulf %17, %26 : vector<399x32xf32>
    %28 = vector.broadcast %10 : vector<1x32xf32> to vector<399x32xf32>
    %29 = arith.mulf %27, %28 : vector<399x32xf32>
    %30 = vector.broadcast %11 : vector<1x32xf32> to vector<399x32xf32>
    %31 = arith.addf %29, %30 : vector<399x32xf32>
    %cst_15 = arith.constant 5.000000e-01 : f32
    %32 = vector.broadcast %cst_15 : f32 to vector<399x32xf32>
    %33 = arith.mulf %32, %31 : vector<399x32xf32>
    %cst_16 = arith.constant 4.471500e-02 : f32
    %34 = vector.broadcast %cst_16 : f32 to vector<399x32xf32>
    %35 = arith.mulf %34, %31 : vector<399x32xf32>
    %36 = arith.mulf %35, %31 : vector<399x32xf32>
    %37 = arith.mulf %36, %31 : vector<399x32xf32>
    %38 = arith.addf %31, %37 : vector<399x32xf32>
    %cst_17 = arith.constant 0.797884583 : f32
    %39 = vector.broadcast %cst_17 : f32 to vector<399x32xf32>
    %40 = arith.mulf %39, %38 : vector<399x32xf32>
    %41 = math.tanh %40 : vector<399x32xf32>
    %cst_18 = arith.constant 1.000000e+00 : f32
    %42 = vector.broadcast %cst_18 : f32 to vector<399x32xf32>
    %43 = arith.addf %42, %41 : vector<399x32xf32>
    %44 = arith.mulf %33, %43 : vector<399x32xf32>
    %c0_19 = arith.constant 0 : index
    %c0_20 = arith.constant 0 : index
    %45 = vector.load %arg38[%c0_19, %c0_20] : memref<400x32xf32, #tpu.memory_space<vmem>>, vector<399x32xf32>
    tpu.vector_store %arg38[%c0_19, %c0_20], %44 {strides = array<i32>} : memref<400x32xf32, #tpu.memory_space<vmem>>, vector<399x32xf32>,
    %c0_21 = arith.constant 0 : index
    %c0_22 = arith.constant 0 : index
    %46 = tpu.strided_load %arg38[%c0_21, %c0_22] {strides = array<i32: 2, 1>} : memref<400x32xf32, #tpu.memory_space<vmem>>, vector<199x32xf32>
    %c1 = arith.constant 1 : index
    %c0_23 = arith.constant 0 : index
    %47 = tpu.strided_load %arg38[%c1, %c0_23] {strides = array<i32: 2, 1>} : memref<400x32xf32, #tpu.memory_space<vmem>>, vector<199x32xf32>
    %c2 = arith.constant 2 : index
    %c0_24 = arith.constant 0 : index
    %48 = tpu.strided_load %arg38[%c2, %c0_24] {strides = array<i32: 2, 1>} : memref<400x32xf32, #tpu.memory_space<vmem>>, vector<199x32xf32>
    %49 = tpu.concatenate %46, %47, %48 in 1 : vector<199x32xf32>, vector<199x32xf32>, vector<199x32xf32> -> vector<199x96xf32>
    %c0_25 = arith.constant 0 : index
    %c0_26 = arith.constant 0 : index
    %50 = vector.load %arg7[%c0_25, %c0_26] : memref<96x32xbf16, #tpu.memory_space<vmem>>, vector<96x32xbf16>
    %51 = arith.truncf %49 : vector<199x96xf32> to vector<199x96xbf16>
    %cst_27 = arith.constant dense<0.000000e+00> : vector<199x32xf32>
    %52 = tpu.matmul %51, %50, %cst_27 {dimension_numbers = #tpu.dot_dimension_numbers<[1], [0], [0], [1], [0, 0, 1, 1], [], []>} : vector<199x96xbf16>, vector<96x32xbf16>, vector<199x32xf32> -> vector<199x32xf32>
    %c0_28 = arith.constant 0 : index
    %c0_29 = arith.constant 0 : index
    %53 = vector.load %arg8[%c0_28, %c0_29] : memref<1x32xf32, #tpu.memory_space<vmem>>, vector<1x32xf32>
    %54 = vector.broadcast %53 : vector<1x32xf32> to vector<199x32xf32>
    %55 = arith.addf %52, %54 : vector<199x32xf32>
    %c0_30 = arith.constant 0 : index
    %c0_31 = arith.constant 0 : index
    %56 = vector.load %arg9[%c0_30, %c0_31] : memref<1x32xf32, #tpu.memory_space<vmem>>, vector<1x32xf32>
    %c0_32 = arith.constant 0 : index
    %c0_33 = arith.constant 0 : index
    %57 = vector.load %arg10[%c0_32, %c0_33] : memref<1x32xf32, #tpu.memory_space<vmem>>, vector<1x32xf32>
    %cst_34 = arith.constant dense<0.000000e+00> : vector<199xf32>
    %58 = vector.multi_reduction <add>, %55, %cst_34 [1] : vector<199x32xf32> to vector<199xf32>
    %59 = vector.shape_cast %58 : vector<199xf32> to vector<199x1xf32>
    %cst_35 = arith.constant 3.200000e+01 : f32
    %60 = vector.broadcast %cst_35 : f32 to vector<199x1xf32>
    %61 = arith.divf %59, %60 : vector<199x1xf32>
    %62 = vector.broadcast %61 : vector<199x1xf32> to vector<199x32xf32>
    %63 = arith.subf %55, %62 : vector<199x32xf32>
    %64 = arith.mulf %63, %63 : vector<199x32xf32>
    %cst_36 = arith.constant dense<0.000000e+00> : vector<199xf32>
    %65 = vector.multi_reduction <add>, %64, %cst_36 [1] : vector<199x32xf32> to vector<199xf32>
    %66 = vector.shape_cast %65 : vector<199xf32> to vector<199x1xf32>
    %cst_37 = arith.constant 3.200000e+01 : f32
    %67 = vector.broadcast %cst_37 : f32 to vector<199x1xf32>
    %68 = arith.divf %66, %67 : vector<199x1xf32>
    %cst_38 = arith.constant 9.99999974E-6 : f32
    %69 = vector.broadcast %cst_38 : f32 to vector<199x1xf32>
    %70 = arith.addf %68, %69 : vector<199x1xf32>
    %71 = math.rsqrt %70 : vector<199x1xf32>
    %72 = vector.broadcast %71 : vector<199x1xf32> to vector<199x32xf32>
    %73 = arith.mulf %63, %72 : vector<199x32xf32>
    %74 = vector.broadcast %56 : vector<1x32xf32> to vector<199x32xf32>
    %75 = arith.mulf %73, %74 : vector<199x32xf32>
    %76 = vector.broadcast %57 : vector<1x32xf32> to vector<199x32xf32>
    %77 = arith.addf %75, %76 : vector<199x32xf32>
    %cst_39 = arith.constant 5.000000e-01 : f32
    %78 = vector.broadcast %cst_39 : f32 to vector<199x32xf32>
    %79 = arith.mulf %78, %77 : vector<199x32xf32>
    %cst_40 = arith.constant 4.471500e-02 : f32
    %80 = vector.broadcast %cst_40 : f32 to vector<199x32xf32>
    %81 = arith.mulf %80, %77 : vector<199x32xf32>
    %82 = arith.mulf %81, %77 : vector<199x32xf32>
    %83 = arith.mulf %82, %77 : vector<199x32xf32>
    %84 = arith.addf %77, %83 : vector<199x32xf32>
    %cst_41 = arith.constant 0.797884583 : f32
    %85 = vector.broadcast %cst_41 : f32 to vector<199x32xf32>
    %86 = arith.mulf %85, %84 : vector<199x32xf32>
    %87 = math.tanh %86 : vector<199x32xf32>
    %cst_42 = arith.constant 1.000000e+00 : f32
    %88 = vector.broadcast %cst_42 : f32 to vector<199x32xf32>
    %89 = arith.addf %88, %87 : vector<199x32xf32>
    %90 = arith.mulf %79, %89 : vector<199x32xf32>
    %c0_43 = arith.constant 0 : index
    %c0_44 = arith.constant 0 : index
    %91 = vector.load %arg38[%c0_43, %c0_44] : memref<400x32xf32, #tpu.memory_space<vmem>>, vector<199x32xf32>
    tpu.vector_store %arg38[%c0_43, %c0_44], %90 {strides = array<i32>} : memref<400x32xf32, #tpu.memory_space<vmem>>, vector<199x32xf32>,
    %c0_45 = arith.constant 0 : index
    %c0_46 = arith.constant 0 : index
    %92 = tpu.strided_load %arg38[%c0_45, %c0_46] {strides = array<i32: 2, 1>} : memref<400x32xf32, #tpu.memory_space<vmem>>, vector<99x32xf32>
    %c1_47 = arith.constant 1 : index
    %c0_48 = arith.constant 0 : index
    %93 = tpu.strided_load %arg38[%c1_47, %c0_48] {strides = array<i32: 2, 1>} : memref<400x32xf32, #tpu.memory_space<vmem>>, vector<99x32xf32>
    %c2_49 = arith.constant 2 : index
    %c0_50 = arith.constant 0 : index
    %94 = tpu.strided_load %arg38[%c2_49, %c0_50] {strides = array<i32: 2, 1>} : memref<400x32xf32, #tpu.memory_space<vmem>>, vector<99x32xf32>
    %95 = tpu.concatenate %92, %93, %94 in 1 : vector<99x32xf32>, vector<99x32xf32>, vector<99x32xf32> -> vector<99x96xf32>
    %c0_51 = arith.constant 0 : index
    %c0_52 = arith.constant 0 : index
    %96 = vector.load %arg11[%c0_51, %c0_52] : memref<96x32xbf16, #tpu.memory_space<vmem>>, vector<96x32xbf16>
    %97 = arith.truncf %95 : vector<99x96xf32> to vector<99x96xbf16>
    %cst_53 = arith.constant dense<0.000000e+00> : vector<99x32xf32>
    %98 = tpu.matmul %97, %96, %cst_53 {dimension_numbers = #tpu.dot_dimension_numbers<[1], [0], [0], [1], [0, 0, 1, 1], [], []>} : vector<99x96xbf16>, vector<96x32xbf16>, vector<99x32xf32> -> vector<99x32xf32>
    %c0_54 = arith.constant 0 : index
    %c0_55 = arith.constant 0 : index
    %99 = vector.load %arg12[%c0_54, %c0_55] : memref<1x32xf32, #tpu.memory_space<vmem>>, vector<1x32xf32>
    %100 = vector.broadcast %99 : vector<1x32xf32> to vector<99x32xf32>
    %101 = arith.addf %98, %100 : vector<99x32xf32>
    %c0_56 = arith.constant 0 : index
    %c0_57 = arith.constant 0 : index
    %102 = vector.load %arg13[%c0_56, %c0_57] : memref<1x32xf32, #tpu.memory_space<vmem>>, vector<1x32xf32>
    %c0_58 = arith.constant 0 : index
    %c0_59 = arith.constant 0 : index
    %103 = vector.load %arg14[%c0_58, %c0_59] : memref<1x32xf32, #tpu.memory_space<vmem>>, vector<1x32xf32>
    %cst_60 = arith.constant dense<0.000000e+00> : vector<99xf32>
    %104 = vector.multi_reduction <add>, %101, %cst_60 [1] : vector<99x32xf32> to vector<99xf32>
    %105 = vector.shape_cast %104 : vector<99xf32> to vector<99x1xf32>
    %cst_61 = arith.constant 3.200000e+01 : f32
    %106 = vector.broadcast %cst_61 : f32 to vector<99x1xf32>
    %107 = arith.divf %105, %106 : vector<99x1xf32>
    %108 = vector.broadcast %107 : vector<99x1xf32> to vector<99x32xf32>
    %109 = arith.subf %101, %108 : vector<99x32xf32>
    %110 = arith.mulf %109, %109 : vector<99x32xf32>
    %cst_62 = arith.constant dense<0.000000e+00> : vector<99xf32>
    %111 = vector.multi_reduction <add>, %110, %cst_62 [1] : vector<99x32xf32> to vector<99xf32>
    %112 = vector.shape_cast %111 : vector<99xf32> to vector<99x1xf32>
    %cst_63 = arith.constant 3.200000e+01 : f32
    %113 = vector.broadcast %cst_63 : f32 to vector<99x1xf32>
    %114 = arith.divf %112, %113 : vector<99x1xf32>
    %cst_64 = arith.constant 9.99999974E-6 : f32
    %115 = vector.broadcast %cst_64 : f32 to vector<99x1xf32>
    %116 = arith.addf %114, %115 : vector<99x1xf32>
    %117 = math.rsqrt %116 : vector<99x1xf32>
    %118 = vector.broadcast %117 : vector<99x1xf32> to vector<99x32xf32>
    %119 = arith.mulf %109, %118 : vector<99x32xf32>
    %120 = vector.broadcast %102 : vector<1x32xf32> to vector<99x32xf32>
    %121 = arith.mulf %119, %120 : vector<99x32xf32>
    %122 = vector.broadcast %103 : vector<1x32xf32> to vector<99x32xf32>
    %123 = arith.addf %121, %122 : vector<99x32xf32>
    %cst_65 = arith.constant 5.000000e-01 : f32
    %124 = vector.broadcast %cst_65 : f32 to vector<99x32xf32>
    %125 = arith.mulf %124, %123 : vector<99x32xf32>
    %cst_66 = arith.constant 4.471500e-02 : f32
    %126 = vector.broadcast %cst_66 : f32 to vector<99x32xf32>
    %127 = arith.mulf %126, %123 : vector<99x32xf32>
    %128 = arith.mulf %127, %123 : vector<99x32xf32>
    %129 = arith.mulf %128, %123 : vector<99x32xf32>
    %130 = arith.addf %123, %129 : vector<99x32xf32>
    %cst_67 = arith.constant 0.797884583 : f32
    %131 = vector.broadcast %cst_67 : f32 to vector<99x32xf32>
    %132 = arith.mulf %131, %130 : vector<99x32xf32>
    %133 = math.tanh %132 : vector<99x32xf32>
    %cst_68 = arith.constant 1.000000e+00 : f32
    %134 = vector.broadcast %cst_68 : f32 to vector<99x32xf32>
    %135 = arith.addf %134, %133 : vector<99x32xf32>
    %136 = arith.mulf %125, %135 : vector<99x32xf32>
    %c0_69 = arith.constant 0 : index
    %c0_70 = arith.constant 0 : index
    %137 = vector.load %arg38[%c0_69, %c0_70] : memref<400x32xf32, #tpu.memory_space<vmem>>, vector<99x32xf32>
    tpu.vector_store %arg38[%c0_69, %c0_70], %136 {strides = array<i32>} : memref<400x32xf32, #tpu.memory_space<vmem>>, vector<99x32xf32>,
    %c0_71 = arith.constant 0 : index
    %c0_72 = arith.constant 0 : index
    %138 = tpu.strided_load %arg38[%c0_71, %c0_72] {strides = array<i32: 2, 1>} : memref<400x32xf32, #tpu.memory_space<vmem>>, vector<49x32xf32>
    %c1_73 = arith.constant 1 : index
    %c0_74 = arith.constant 0 : index
    %139 = tpu.strided_load %arg38[%c1_73, %c0_74] {strides = array<i32: 2, 1>} : memref<400x32xf32, #tpu.memory_space<vmem>>, vector<49x32xf32>
    %c2_75 = arith.constant 2 : index
    %c0_76 = arith.constant 0 : index
    %140 = tpu.strided_load %arg38[%c2_75, %c0_76] {strides = array<i32: 2, 1>} : memref<400x32xf32, #tpu.memory_space<vmem>>, vector<49x32xf32>
    %141 = tpu.concatenate %138, %139, %140 in 1 : vector<49x32xf32>, vector<49x32xf32>, vector<49x32xf32> -> vector<49x96xf32>
    %c0_77 = arith.constant 0 : index
    %c0_78 = arith.constant 0 : index
    %142 = vector.load %arg15[%c0_77, %c0_78] : memref<96x32xbf16, #tpu.memory_space<vmem>>, vector<96x32xbf16>
    %143 = arith.truncf %141 : vector<49x96xf32> to vector<49x96xbf16>
    %cst_79 = arith.constant dense<0.000000e+00> : vector<49x32xf32>
    %144 = tpu.matmul %143, %142, %cst_79 {dimension_numbers = #tpu.dot_dimension_numbers<[1], [0], [0], [1], [0, 0, 1, 1], [], []>} : vector<49x96xbf16>, vector<96x32xbf16>, vector<49x32xf32> -> vector<49x32xf32>
    %c0_80 = arith.constant 0 : index
    %c0_81 = arith.constant 0 : index
    %145 = vector.load %arg16[%c0_80, %c0_81] : memref<1x32xf32, #tpu.memory_space<vmem>>, vector<1x32xf32>
    %146 = vector.broadcast %145 : vector<1x32xf32> to vector<49x32xf32>
    %147 = arith.addf %144, %146 : vector<49x32xf32>
    %c0_82 = arith.constant 0 : index
    %c0_83 = arith.constant 0 : index
    %148 = vector.load %arg17[%c0_82, %c0_83] : memref<1x32xf32, #tpu.memory_space<vmem>>, vector<1x32xf32>
    %c0_84 = arith.constant 0 : index
    %c0_85 = arith.constant 0 : index
    %149 = vector.load %arg18[%c0_84, %c0_85] : memref<1x32xf32, #tpu.memory_space<vmem>>, vector<1x32xf32>
    %cst_86 = arith.constant dense<0.000000e+00> : vector<49xf32>
    %150 = vector.multi_reduction <add>, %147, %cst_86 [1] : vector<49x32xf32> to vector<49xf32>
    %151 = vector.shape_cast %150 : vector<49xf32> to vector<49x1xf32>
    %cst_87 = arith.constant 3.200000e+01 : f32
    %152 = vector.broadcast %cst_87 : f32 to vector<49x1xf32>
    %153 = arith.divf %151, %152 : vector<49x1xf32>
    %154 = vector.broadcast %153 : vector<49x1xf32> to vector<49x32xf32>
    %155 = arith.subf %147, %154 : vector<49x32xf32>
    %156 = arith.mulf %155, %155 : vector<49x32xf32>
    %cst_88 = arith.constant dense<0.000000e+00> : vector<49xf32>
    %157 = vector.multi_reduction <add>, %156, %cst_88 [1] : vector<49x32xf32> to vector<49xf32>
    %158 = vector.shape_cast %157 : vector<49xf32> to vector<49x1xf32>
    %cst_89 = arith.constant 3.200000e+01 : f32
    %159 = vector.broadcast %cst_89 : f32 to vector<49x1xf32>
    %160 = arith.divf %158, %159 : vector<49x1xf32>
    %cst_90 = arith.constant 9.99999974E-6 : f32
    %161 = vector.broadcast %cst_90 : f32 to vector<49x1xf32>
    %162 = arith.addf %160, %161 : vector<49x1xf32>
    %163 = math.rsqrt %162 : vector<49x1xf32>
    %164 = vector.broadcast %163 : vector<49x1xf32> to vector<49x32xf32>
    %165 = arith.mulf %155, %164 : vector<49x32xf32>
    %166 = vector.broadcast %148 : vector<1x32xf32> to vector<49x32xf32>
    %167 = arith.mulf %165, %166 : vector<49x32xf32>
    %168 = vector.broadcast %149 : vector<1x32xf32> to vector<49x32xf32>
    %169 = arith.addf %167, %168 : vector<49x32xf32>
    %cst_91 = arith.constant 5.000000e-01 : f32
    %170 = vector.broadcast %cst_91 : f32 to vector<49x32xf32>
    %171 = arith.mulf %170, %169 : vector<49x32xf32>
    %cst_92 = arith.constant 4.471500e-02 : f32
    %172 = vector.broadcast %cst_92 : f32 to vector<49x32xf32>
    %173 = arith.mulf %172, %169 : vector<49x32xf32>
    %174 = arith.mulf %173, %169 : vector<49x32xf32>
    %175 = arith.mulf %174, %169 : vector<49x32xf32>
    %176 = arith.addf %169, %175 : vector<49x32xf32>
    %cst_93 = arith.constant 0.797884583 : f32
    %177 = vector.broadcast %cst_93 : f32 to vector<49x32xf32>
    %178 = arith.mulf %177, %176 : vector<49x32xf32>
    %179 = math.tanh %178 : vector<49x32xf32>
    %cst_94 = arith.constant 1.000000e+00 : f32
    %180 = vector.broadcast %cst_94 : f32 to vector<49x32xf32>
    %181 = arith.addf %180, %179 : vector<49x32xf32>
    %182 = arith.mulf %171, %181 : vector<49x32xf32>
    %c0_95 = arith.constant 0 : index
    %c0_96 = arith.constant 0 : index
    %183 = vector.load %arg38[%c0_95, %c0_96] : memref<400x32xf32, #tpu.memory_space<vmem>>, vector<49x32xf32>
    tpu.vector_store %arg38[%c0_95, %c0_96], %182 {strides = array<i32>} : memref<400x32xf32, #tpu.memory_space<vmem>>, vector<49x32xf32>,
    %c0_97 = arith.constant 0 : index
    %c0_98 = arith.constant 0 : index
    %184 = tpu.strided_load %arg38[%c0_97, %c0_98] {strides = array<i32: 2, 1>} : memref<400x32xf32, #tpu.memory_space<vmem>>, vector<24x32xf32>
    %c1_99 = arith.constant 1 : index
    %c0_100 = arith.constant 0 : index
    %185 = tpu.strided_load %arg38[%c1_99, %c0_100] {strides = array<i32: 2, 1>} : memref<400x32xf32, #tpu.memory_space<vmem>>, vector<24x32xf32>
    %c2_101 = arith.constant 2 : index
    %c0_102 = arith.constant 0 : index
    %186 = tpu.strided_load %arg38[%c2_101, %c0_102] {strides = array<i32: 2, 1>} : memref<400x32xf32, #tpu.memory_space<vmem>>, vector<24x32xf32>
    %187 = tpu.concatenate %184, %185, %186 in 1 : vector<24x32xf32>, vector<24x32xf32>, vector<24x32xf32> -> vector<24x96xf32>
    %c0_103 = arith.constant 0 : index
    %c0_104 = arith.constant 0 : index
    %188 = vector.load %arg19[%c0_103, %c0_104] : memref<96x32xbf16, #tpu.memory_space<vmem>>, vector<96x32xbf16>
    %189 = arith.truncf %187 : vector<24x96xf32> to vector<24x96xbf16>
    %cst_105 = arith.constant dense<0.000000e+00> : vector<24x32xf32>
    %190 = tpu.matmul %189, %188, %cst_105 {dimension_numbers = #tpu.dot_dimension_numbers<[1], [0], [0], [1], [0, 0, 1, 1], [], []>} : vector<24x96xbf16>, vector<96x32xbf16>, vector<24x32xf32> -> vector<24x32xf32>
    %c0_106 = arith.constant 0 : index
    %c0_107 = arith.constant 0 : index
    %191 = vector.load %arg20[%c0_106, %c0_107] : memref<1x32xf32, #tpu.memory_space<vmem>>, vector<1x32xf32>
    %192 = vector.broadcast %191 : vector<1x32xf32> to vector<24x32xf32>
    %193 = arith.addf %190, %192 : vector<24x32xf32>
    %c0_108 = arith.constant 0 : index
    %c0_109 = arith.constant 0 : index
    %194 = vector.load %arg21[%c0_108, %c0_109] : memref<1x32xf32, #tpu.memory_space<vmem>>, vector<1x32xf32>
    %c0_110 = arith.constant 0 : index
    %c0_111 = arith.constant 0 : index
    %195 = vector.load %arg22[%c0_110, %c0_111] : memref<1x32xf32, #tpu.memory_space<vmem>>, vector<1x32xf32>
    %cst_112 = arith.constant dense<0.000000e+00> : vector<24xf32>
    %196 = vector.multi_reduction <add>, %193, %cst_112 [1] : vector<24x32xf32> to vector<24xf32>
    %197 = vector.shape_cast %196 : vector<24xf32> to vector<24x1xf32>
    %cst_113 = arith.constant 3.200000e+01 : f32
    %198 = vector.broadcast %cst_113 : f32 to vector<24x1xf32>
    %199 = arith.divf %197, %198 : vector<24x1xf32>
    %200 = vector.broadcast %199 : vector<24x1xf32> to vector<24x32xf32>
    %201 = arith.subf %193, %200 : vector<24x32xf32>
    %202 = arith.mulf %201, %201 : vector<24x32xf32>
    %cst_114 = arith.constant dense<0.000000e+00> : vector<24xf32>
    %203 = vector.multi_reduction <add>, %202, %cst_114 [1] : vector<24x32xf32> to vector<24xf32>
    %204 = vector.shape_cast %203 : vector<24xf32> to vector<24x1xf32>
    %cst_115 = arith.constant 3.200000e+01 : f32
    %205 = vector.broadcast %cst_115 : f32 to vector<24x1xf32>
    %206 = arith.divf %204, %205 : vector<24x1xf32>
    %cst_116 = arith.constant 9.99999974E-6 : f32
    %207 = vector.broadcast %cst_116 : f32 to vector<24x1xf32>
    %208 = arith.addf %206, %207 : vector<24x1xf32>
    %209 = math.rsqrt %208 : vector<24x1xf32>
    %210 = vector.broadcast %209 : vector<24x1xf32> to vector<24x32xf32>
    %211 = arith.mulf %201, %210 : vector<24x32xf32>
    %212 = vector.broadcast %194 : vector<1x32xf32> to vector<24x32xf32>
    %213 = arith.mulf %211, %212 : vector<24x32xf32>
    %214 = vector.broadcast %195 : vector<1x32xf32> to vector<24x32xf32>
    %215 = arith.addf %213, %214 : vector<24x32xf32>
    %cst_117 = arith.constant 5.000000e-01 : f32
    %216 = vector.broadcast %cst_117 : f32 to vector<24x32xf32>
    %217 = arith.mulf %216, %215 : vector<24x32xf32>
    %cst_118 = arith.constant 4.471500e-02 : f32
    %218 = vector.broadcast %cst_118 : f32 to vector<24x32xf32>
    %219 = arith.mulf %218, %215 : vector<24x32xf32>
    %220 = arith.mulf %219, %215 : vector<24x32xf32>
    %221 = arith.mulf %220, %215 : vector<24x32xf32>
    %222 = arith.addf %215, %221 : vector<24x32xf32>
    %cst_119 = arith.constant 0.797884583 : f32
    %223 = vector.broadcast %cst_119 : f32 to vector<24x32xf32>
    %224 = arith.mulf %223, %222 : vector<24x32xf32>
    %225 = math.tanh %224 : vector<24x32xf32>
    %cst_120 = arith.constant 1.000000e+00 : f32
    %226 = vector.broadcast %cst_120 : f32 to vector<24x32xf32>
    %227 = arith.addf %226, %225 : vector<24x32xf32>
    %228 = arith.mulf %217, %227 : vector<24x32xf32>
    %c0_121 = arith.constant 0 : index
    %c0_122 = arith.constant 0 : index
    %229 = vector.load %arg38[%c0_121, %c0_122] : memref<400x32xf32, #tpu.memory_space<vmem>>, vector<24x32xf32>
    tpu.vector_store %arg38[%c0_121, %c0_122], %228 {strides = array<i32>} : memref<400x32xf32, #tpu.memory_space<vmem>>, vector<24x32xf32>,
    %c0_123 = arith.constant 0 : index
    %c0_124 = arith.constant 0 : index
    %230 = tpu.strided_load %arg38[%c0_123, %c0_124] {strides = array<i32: 2, 1>} : memref<400x32xf32, #tpu.memory_space<vmem>>, vector<12x32xf32>
    %c1_125 = arith.constant 1 : index
    %c0_126 = arith.constant 0 : index
    %231 = tpu.strided_load %arg38[%c1_125, %c0_126] {strides = array<i32: 2, 1>} : memref<400x32xf32, #tpu.memory_space<vmem>>, vector<12x32xf32>
    %232 = tpu.concatenate %230, %231 in 1 : vector<12x32xf32>, vector<12x32xf32> -> vector<12x64xf32>
    %c0_127 = arith.constant 0 : index
    %c0_128 = arith.constant 0 : index
    %233 = vector.load %arg23[%c0_127, %c0_128] : memref<64x32xbf16, #tpu.memory_space<vmem>>, vector<64x32xbf16>
    %234 = arith.truncf %232 : vector<12x64xf32> to vector<12x64xbf16>
    %cst_129 = arith.constant dense<0.000000e+00> : vector<12x32xf32>
    %235 = tpu.matmul %234, %233, %cst_129 {dimension_numbers = #tpu.dot_dimension_numbers<[1], [0], [0], [1], [0, 0, 1, 1], [], []>} : vector<12x64xbf16>, vector<64x32xbf16>, vector<12x32xf32> -> vector<12x32xf32>
    %c0_130 = arith.constant 0 : index
    %c0_131 = arith.constant 0 : index
    %236 = vector.load %arg24[%c0_130, %c0_131] : memref<1x32xf32, #tpu.memory_space<vmem>>, vector<1x32xf32>
    %237 = vector.broadcast %236 : vector<1x32xf32> to vector<12x32xf32>
    %238 = arith.addf %235, %237 : vector<12x32xf32>
    %c0_132 = arith.constant 0 : index
    %c0_133 = arith.constant 0 : index
    %239 = vector.load %arg25[%c0_132, %c0_133] : memref<1x32xf32, #tpu.memory_space<vmem>>, vector<1x32xf32>
    %c0_134 = arith.constant 0 : index
    %c0_135 = arith.constant 0 : index
    %240 = vector.load %arg26[%c0_134, %c0_135] : memref<1x32xf32, #tpu.memory_space<vmem>>, vector<1x32xf32>
    %cst_136 = arith.constant dense<0.000000e+00> : vector<12xf32>
    %241 = vector.multi_reduction <add>, %238, %cst_136 [1] : vector<12x32xf32> to vector<12xf32>
    %242 = vector.shape_cast %241 : vector<12xf32> to vector<12x1xf32>
    %cst_137 = arith.constant 3.200000e+01 : f32
    %243 = vector.broadcast %cst_137 : f32 to vector<12x1xf32>
    %244 = arith.divf %242, %243 : vector<12x1xf32>
    %245 = vector.broadcast %244 : vector<12x1xf32> to vector<12x32xf32>
    %246 = arith.subf %238, %245 : vector<12x32xf32>
    %247 = arith.mulf %246, %246 : vector<12x32xf32>
    %cst_138 = arith.constant dense<0.000000e+00> : vector<12xf32>
    %248 = vector.multi_reduction <add>, %247, %cst_138 [1] : vector<12x32xf32> to vector<12xf32>
    %249 = vector.shape_cast %248 : vector<12xf32> to vector<12x1xf32>
    %cst_139 = arith.constant 3.200000e+01 : f32
    %250 = vector.broadcast %cst_139 : f32 to vector<12x1xf32>
    %251 = arith.divf %249, %250 : vector<12x1xf32>
    %cst_140 = arith.constant 9.99999974E-6 : f32
    %252 = vector.broadcast %cst_140 : f32 to vector<12x1xf32>
    %253 = arith.addf %251, %252 : vector<12x1xf32>
    %254 = math.rsqrt %253 : vector<12x1xf32>
    %255 = vector.broadcast %254 : vector<12x1xf32> to vector<12x32xf32>
    %256 = arith.mulf %246, %255 : vector<12x32xf32>
    %257 = vector.broadcast %239 : vector<1x32xf32> to vector<12x32xf32>
    %258 = arith.mulf %256, %257 : vector<12x32xf32>
    %259 = vector.broadcast %240 : vector<1x32xf32> to vector<12x32xf32>
    %260 = arith.addf %258, %259 : vector<12x32xf32>
    %cst_141 = arith.constant 5.000000e-01 : f32
    %261 = vector.broadcast %cst_141 : f32 to vector<12x32xf32>
    %262 = arith.mulf %261, %260 : vector<12x32xf32>
    %cst_142 = arith.constant 4.471500e-02 : f32
    %263 = vector.broadcast %cst_142 : f32 to vector<12x32xf32>
    %264 = arith.mulf %263, %260 : vector<12x32xf32>
    %265 = arith.mulf %264, %260 : vector<12x32xf32>
    %266 = arith.mulf %265, %260 : vector<12x32xf32>
    %267 = arith.addf %260, %266 : vector<12x32xf32>
    %cst_143 = arith.constant 0.797884583 : f32
    %268 = vector.broadcast %cst_143 : f32 to vector<12x32xf32>
    %269 = arith.mulf %268, %267 : vector<12x32xf32>
    %270 = math.tanh %269 : vector<12x32xf32>
    %cst_144 = arith.constant 1.000000e+00 : f32
    %271 = vector.broadcast %cst_144 : f32 to vector<12x32xf32>
    %272 = arith.addf %271, %270 : vector<12x32xf32>
    %273 = arith.mulf %262, %272 : vector<12x32xf32>
    %c0_145 = arith.constant 0 : index
    %c0_146 = arith.constant 0 : index
    %274 = vector.load %arg38[%c0_145, %c0_146] : memref<400x32xf32, #tpu.memory_space<vmem>>, vector<12x32xf32>
    tpu.vector_store %arg38[%c0_145, %c0_146], %273 {strides = array<i32>} : memref<400x32xf32, #tpu.memory_space<vmem>>, vector<12x32xf32>,
    %c0_147 = arith.constant 0 : index
    %c0_148 = arith.constant 0 : index
    %275 = tpu.strided_load %arg38[%c0_147, %c0_148] {strides = array<i32: 2, 1>} : memref<400x32xf32, #tpu.memory_space<vmem>>, vector<6x32xf32>
    %c1_149 = arith.constant 1 : index
    %c0_150 = arith.constant 0 : index
    %276 = tpu.strided_load %arg38[%c1_149, %c0_150] {strides = array<i32: 2, 1>} : memref<400x32xf32, #tpu.memory_space<vmem>>, vector<6x32xf32>
    %277 = tpu.concatenate %275, %276 in 1 : vector<6x32xf32>, vector<6x32xf32> -> vector<6x64xf32>
    %c0_151 = arith.constant 0 : index
    %c0_152 = arith.constant 0 : index
    %278 = vector.load %arg27[%c0_151, %c0_152] : memref<64x32xbf16, #tpu.memory_space<vmem>>, vector<64x32xbf16>
    %279 = arith.truncf %277 : vector<6x64xf32> to vector<6x64xbf16>
    %cst_153 = arith.constant dense<0.000000e+00> : vector<6x32xf32>
    %280 = tpu.matmul %279, %278, %cst_153 {dimension_numbers = #tpu.dot_dimension_numbers<[1], [0], [0], [1], [0, 0, 1, 1], [], []>} : vector<6x64xbf16>, vector<64x32xbf16>, vector<6x32xf32> -> vector<6x32xf32>
    %c0_154 = arith.constant 0 : index
    %c0_155 = arith.constant 0 : index
    %281 = vector.load %arg28[%c0_154, %c0_155] : memref<1x32xf32, #tpu.memory_space<vmem>>, vector<1x32xf32>
    %282 = vector.broadcast %281 : vector<1x32xf32> to vector<6x32xf32>
    %283 = arith.addf %280, %282 : vector<6x32xf32>
    %c0_156 = arith.constant 0 : index
    %c0_157 = arith.constant 0 : index
    %284 = vector.load %arg29[%c0_156, %c0_157] : memref<1x32xf32, #tpu.memory_space<vmem>>, vector<1x32xf32>
    %c0_158 = arith.constant 0 : index
    %c0_159 = arith.constant 0 : index
    %285 = vector.load %arg30[%c0_158, %c0_159] : memref<1x32xf32, #tpu.memory_space<vmem>>, vector<1x32xf32>
    %cst_160 = arith.constant dense<0.000000e+00> : vector<6xf32>
    %286 = vector.multi_reduction <add>, %283, %cst_160 [1] : vector<6x32xf32> to vector<6xf32>
    %287 = vector.shape_cast %286 : vector<6xf32> to vector<6x1xf32>
    %cst_161 = arith.constant 3.200000e+01 : f32
    %288 = vector.broadcast %cst_161 : f32 to vector<6x1xf32>
    %289 = arith.divf %287, %288 : vector<6x1xf32>
    %290 = vector.broadcast %289 : vector<6x1xf32> to vector<6x32xf32>
    %291 = arith.subf %283, %290 : vector<6x32xf32>
    %292 = arith.mulf %291, %291 : vector<6x32xf32>
    %cst_162 = arith.constant dense<0.000000e+00> : vector<6xf32>
    %293 = vector.multi_reduction <add>, %292, %cst_162 [1] : vector<6x32xf32> to vector<6xf32>
    %294 = vector.shape_cast %293 : vector<6xf32> to vector<6x1xf32>
    %cst_163 = arith.constant 3.200000e+01 : f32
    %295 = vector.broadcast %cst_163 : f32 to vector<6x1xf32>
    %296 = arith.divf %294, %295 : vector<6x1xf32>
    %cst_164 = arith.constant 9.99999974E-6 : f32
    %297 = vector.broadcast %cst_164 : f32 to vector<6x1xf32>
    %298 = arith.addf %296, %297 : vector<6x1xf32>
    %299 = math.rsqrt %298 : vector<6x1xf32>
    %300 = vector.broadcast %299 : vector<6x1xf32> to vector<6x32xf32>
    %301 = arith.mulf %291, %300 : vector<6x32xf32>
    %302 = vector.broadcast %284 : vector<1x32xf32> to vector<6x32xf32>
    %303 = arith.mulf %301, %302 : vector<6x32xf32>
    %304 = vector.broadcast %285 : vector<1x32xf32> to vector<6x32xf32>
    %305 = arith.addf %303, %304 : vector<6x32xf32>
    %cst_165 = arith.constant 5.000000e-01 : f32
    %306 = vector.broadcast %cst_165 : f32 to vector<6x32xf32>
    %307 = arith.mulf %306, %305 : vector<6x32xf32>
    %cst_166 = arith.constant 4.471500e-02 : f32
    %308 = vector.broadcast %cst_166 : f32 to vector<6x32xf32>
    %309 = arith.mulf %308, %305 : vector<6x32xf32>
    %310 = arith.mulf %309, %305 : vector<6x32xf32>
    %311 = arith.mulf %310, %305 : vector<6x32xf32>
    %312 = arith.addf %305, %311 : vector<6x32xf32>
    %cst_167 = arith.constant 0.797884583 : f32
    %313 = vector.broadcast %cst_167 : f32 to vector<6x32xf32>
    %314 = arith.mulf %313, %312 : vector<6x32xf32>
    %315 = math.tanh %314 : vector<6x32xf32>
    %cst_168 = arith.constant 1.000000e+00 : f32
    %316 = vector.broadcast %cst_168 : f32 to vector<6x32xf32>
    %317 = arith.addf %316, %315 : vector<6x32xf32>
    %318 = arith.mulf %307, %317 : vector<6x32xf32>
    %c0_169 = arith.constant 0 : index
    %c0_170 = arith.constant 0 : index
    %319 = vector.load %arg31[%c0_169, %c0_170] : memref<1x32xf32, #tpu.memory_space<vmem>>, vector<1x32xf32>
    %c0_171 = arith.constant 0 : index
    %c0_172 = arith.constant 0 : index
    %320 = vector.load %arg32[%c0_171, %c0_172] : memref<1x32xf32, #tpu.memory_space<vmem>>, vector<1x32xf32>
    %cst_173 = arith.constant dense<0.000000e+00> : vector<6xf32>
    %321 = vector.multi_reduction <add>, %318, %cst_173 [1] : vector<6x32xf32> to vector<6xf32>
    %322 = vector.shape_cast %321 : vector<6xf32> to vector<6x1xf32>
    %cst_174 = arith.constant 3.200000e+01 : f32
    %323 = vector.broadcast %cst_174 : f32 to vector<6x1xf32>
    %324 = arith.divf %322, %323 : vector<6x1xf32>
    %325 = vector.broadcast %324 : vector<6x1xf32> to vector<6x32xf32>
    %326 = arith.subf %318, %325 : vector<6x32xf32>
    %327 = arith.mulf %326, %326 : vector<6x32xf32>
    %cst_175 = arith.constant dense<0.000000e+00> : vector<6xf32>
    %328 = vector.multi_reduction <add>, %327, %cst_175 [1] : vector<6x32xf32> to vector<6xf32>
    %329 = vector.shape_cast %328 : vector<6xf32> to vector<6x1xf32>
    %cst_176 = arith.constant 3.200000e+01 : f32
    %330 = vector.broadcast %cst_176 : f32 to vector<6x1xf32>
    %331 = arith.divf %329, %330 : vector<6x1xf32>
    %cst_177 = arith.constant 9.99999974E-6 : f32
    %332 = vector.broadcast %cst_177 : f32 to vector<6x1xf32>
    %333 = arith.addf %331, %332 : vector<6x1xf32>
    %334 = math.rsqrt %333 : vector<6x1xf32>
    %335 = vector.broadcast %334 : vector<6x1xf32> to vector<6x32xf32>
    %336 = arith.mulf %326, %335 : vector<6x32xf32>
    %337 = vector.broadcast %319 : vector<1x32xf32> to vector<6x32xf32>
    %338 = arith.mulf %336, %337 : vector<6x32xf32>
    %339 = vector.broadcast %320 : vector<1x32xf32> to vector<6x32xf32>
    %340 = arith.addf %338, %339 : vector<6x32xf32>
    %c0_178 = arith.constant 0 : index
    %c0_179 = arith.constant 0 : index
    %341 = vector.load %arg33[%c0_178, %c0_179] : memref<32x32xbf16, #tpu.memory_space<vmem>>, vector<32x32xbf16>
    %342 = arith.truncf %340 : vector<6x32xf32> to vector<6x32xbf16>
    %cst_180 = arith.constant dense<0.000000e+00> : vector<6x32xf32>
    %343 = tpu.matmul %342, %341, %cst_180 {dimension_numbers = #tpu.dot_dimension_numbers<[1], [0], [0], [1], [0, 0, 1, 1], [], []>} : vector<6x32xbf16>, vector<32x32xbf16>, vector<6x32xf32> -> vector<6x32xf32>
    %c0_181 = arith.constant 0 : index
    %c0_182 = arith.constant 0 : index
    %344 = vector.load %arg34[%c0_181, %c0_182] : memref<1x32xf32, #tpu.memory_space<vmem>>, vector<1x32xf32>
    %345 = vector.broadcast %344 : vector<1x32xf32> to vector<6x32xf32>
    %346 = arith.addf %343, %345 : vector<6x32xf32>
    %347 = tpu.iota {dimensions = array<i32: 0>} : vector<6x1xi32>
    %348 = arith.index_cast %arg0 : i32 to index
    %349 = memref.load %arg1[%348] : memref<2xi32, #tpu.memory_space<smem>>
    %350 = vector.broadcast %349 : i32 to vector<6x1xi32>
    %351 = arith.cmpi slt, %347, %350 : vector<6x1xi32>
    %cst_183 = arith.constant 0.000000e+00 : f32
    %352 = vector.shape_cast %351 : vector<6x1xi1> to vector<6x1xi1>
    %353 = vector.broadcast %352 : vector<6x1xi1> to vector<6x32xi1>
    %354 = vector.broadcast %cst_183 : f32 to vector<6x32xf32>
    %355 = arith.select %353, %346, %354 : vector<6x32xi1>, vector<6x32xf32>
    %cst_184 = arith.constant 0.000000e+00 : f32
    %356 = vector.broadcast %cst_184 : f32 to vector<8x32xf32>
    %c0_185 = arith.constant 0 : index
    %c0_186 = arith.constant 0 : index
    %357 = vector.load %arg39[%c0_185, %c0_186] : memref<8x32xf32, #tpu.memory_space<vmem>>, vector<8x32xf32>
    tpu.vector_store %arg39[%c0_185, %c0_186], %356 {strides = array<i32>} : memref<8x32xf32, #tpu.memory_space<vmem>>, vector<8x32xf32>,
    %c1_187 = arith.constant 1 : index
    %c0_188 = arith.constant 0 : index
    %358 = vector.load %arg39[%c1_187, %c0_188] : memref<8x32xf32, #tpu.memory_space<vmem>>, vector<6x32xf32>
    tpu.vector_store %arg39[%c1_187, %c0_188], %355 {strides = array<i32>} : memref<8x32xf32, #tpu.memory_space<vmem>>, vector<6x32xf32>,
    %c0_189 = arith.constant 0 : index
    %c0_190 = arith.constant 0 : index
    %359 = vector.load %arg39[%c0_189, %c0_190] : memref<8x32xf32, #tpu.memory_space<vmem>>, vector<6x32xf32>
    %c1_191 = arith.constant 1 : index
    %c0_192 = arith.constant 0 : index
    %360 = vector.load %arg39[%c1_191, %c0_192] : memref<8x32xf32, #tpu.memory_space<vmem>>, vector<6x32xf32>
    %c2_193 = arith.constant 2 : index
    %c0_194 = arith.constant 0 : index
    %361 = vector.load %arg39[%c2_193, %c0_194] : memref<8x32xf32, #tpu.memory_space<vmem>>, vector<6x32xf32>
    %362 = tpu.concatenate %359, %360, %361 in 1 : vector<6x32xf32>, vector<6x32xf32>, vector<6x32xf32> -> vector<6x96xf32>
    %c0_195 = arith.constant 0 : index
    %c0_196 = arith.constant 0 : index
    %363 = vector.load %arg35[%c0_195, %c0_196] : memref<96x32xbf16, #tpu.memory_space<vmem>>, vector<96x32xbf16>
    %364 = arith.truncf %362 : vector<6x96xf32> to vector<6x96xbf16>
    %cst_197 = arith.constant dense<0.000000e+00> : vector<6x32xf32>
    %365 = tpu.matmul %364, %363, %cst_197 {dimension_numbers = #tpu.dot_dimension_numbers<[1], [0], [0], [1], [0, 0, 1, 1], [], []>} : vector<6x96xbf16>, vector<96x32xbf16>, vector<6x32xf32> -> vector<6x32xf32>
    %c0_198 = arith.constant 0 : index
    %c0_199 = arith.constant 0 : index
    %366 = vector.load %arg36[%c0_198, %c0_199] : memref<1x32xf32, #tpu.memory_space<vmem>>, vector<1x32xf32>
    %367 = vector.broadcast %366 : vector<1x32xf32> to vector<6x32xf32>
    %368 = arith.addf %365, %367 : vector<6x32xf32>
    %cst_200 = arith.constant 5.000000e-01 : f32
    %369 = vector.broadcast %cst_200 : f32 to vector<6x32xf32>
    %370 = arith.mulf %369, %368 : vector<6x32xf32>
    %cst_201 = arith.constant 4.471500e-02 : f32
    %371 = vector.broadcast %cst_201 : f32 to vector<6x32xf32>
    %372 = arith.mulf %371, %368 : vector<6x32xf32>
    %373 = arith.mulf %372, %368 : vector<6x32xf32>
    %374 = arith.mulf %373, %368 : vector<6x32xf32>
    %375 = arith.addf %368, %374 : vector<6x32xf32>
    %cst_202 = arith.constant 0.797884583 : f32
    %376 = vector.broadcast %cst_202 : f32 to vector<6x32xf32>
    %377 = arith.mulf %376, %375 : vector<6x32xf32>
    %378 = math.tanh %377 : vector<6x32xf32>
    %cst_203 = arith.constant 1.000000e+00 : f32
    %379 = vector.broadcast %cst_203 : f32 to vector<6x32xf32>
    %380 = arith.addf %379, %378 : vector<6x32xf32>
    %381 = arith.mulf %370, %380 : vector<6x32xf32>
    %382 = arith.addf %355, %381 : vector<6x32xf32>
    %383 = arith.truncf %382 : vector<6x32xf32> to vector<6x32xbf16>
    %c0_204 = arith.constant 0 : index
    %c0_205 = arith.constant 0 : index
    %c0_206 = arith.constant 0 : index
    %384 = vector.load %arg37[%c0_204, %c0_205, %c0_206] : memref<1x6x32xbf16, #tpu.memory_space<vmem>>, vector<1x6x32xbf16>
    %385 = vector.shape_cast %384 : vector<1x6x32xbf16> to vector<6x32xbf16>
    %386 = vector.shape_cast %383 : vector<6x32xbf16> to vector<1x6x32xbf16>
    tpu.vector_store %arg37[%c0_204, %c0_205, %c0_206], %386 {strides = array<i32>} : memref<1x6x32xbf16, #tpu.memory_space<vmem>>, vector<1x6x32xbf16>,
    return
  }
  func.func @transform_0(%arg0: i32, %arg1: memref<2xi32, #tpu.memory_space<smem>>) -> (i32, i32, i32) {
    %c0_i32 = arith.constant 0 : i32
    %c0_i32_0 = arith.constant 0 : i32
    %c0_i32_1 = arith.constant 0 : i32
    return %arg0, %c0_i32, %c0_i32_0 : i32, i32, i32
  }
  func.func @transform_1(%arg0: i32, %arg1: memref<2xi32, #tpu.memory_space<smem>>) -> (i32, i32) {
    %c0_i32 = arith.constant 0 : i32
    %c0_i32_0 = arith.constant 0 : i32
    %c0_i32_1 = arith.constant 0 : i32
    return %c0_i32, %c0_i32_0 : i32, i32
  }
  func.func @transform_2(%arg0: i32, %arg1: memref<2xi32, #tpu.memory_space<smem>>) -> (i32, i32) {
    %c0_i32 = arith.constant 0 : i32
    %c0_i32_0 = arith.constant 0 : i32
    %c0_i32_1 = arith.constant 0 : i32
    return %c0_i32, %c0_i32_0 : i32, i32
  }
  func.func @transform_3(%arg0: i32, %arg1: memref<2xi32, #tpu.memory_space<smem>>) -> (i32, i32) {
    %c0_i32 = arith.constant 0 : i32
    %c0_i32_0 = arith.constant 0 : i32
    %c0_i32_1 = arith.constant 0 : i32
    return %c0_i32, %c0_i32_0 : i32, i32
  }
  func.func @transform_4(%arg0: i32, %arg1: memref<2xi32, #tpu.memory_space<smem>>) -> (i32, i32) {
    %c0_i32 = arith.constant 0 : i32
    %c0_i32_0 = arith.constant 0 : i32
    %c0_i32_1 = arith.constant 0 : i32
    return %c0_i32, %c0_i32_0 : i32, i32
  }
  func.func @transform_5(%arg0: i32, %arg1: memref<2xi32, #tpu.memory_space<smem>>) -> (i32, i32) {
    %c0_i32 = arith.constant 0 : i32
    %c0_i32_0 = arith.constant 0 : i32
    %c0_i32_1 = arith.constant 0 : i32
    return %c0_i32, %c0_i32_0 : i32, i32
  }
  func.func @transform_6(%arg0: i32, %arg1: memref<2xi32, #tpu.memory_space<smem>>) -> (i32, i32) {
    %c0_i32 = arith.constant 0 : i32
    %c0_i32_0 = arith.constant 0 : i32
    %c0_i32_1 = arith.constant 0 : i32
    return %c0_i32, %c0_i32_0 : i32, i32
  }
  func.func @transform_7(%arg0: i32, %arg1: memref<2xi32, #tpu.memory_space<smem>>) -> (i32, i32) {
    %c0_i32 = arith.constant 0 : i32
    %c0_i32_0 = arith.constant 0 : i32
    %c0_i32_1 = arith.constant 0 : i32
    return %c0_i32, %c0_i32_0 : i32, i32
  }
  func.func @transform_8(%arg0: i32, %arg1: memref<2xi32, #tpu.memory_space<smem>>) -> (i32, i32) {
    %c0_i32 = arith.constant 0 : i32
    %c0_i32_0 = arith.constant 0 : i32
    %c0_i32_1 = arith.constant 0 : i32
    return %c0_i32, %c0_i32_0 : i32, i32
  }
  func.func @transform_9(%arg0: i32, %arg1: memref<2xi32, #tpu.memory_space<smem>>) -> (i32, i32) {
    %c0_i32 = arith.constant 0 : i32
    %c0_i32_0 = arith.constant 0 : i32
    %c0_i32_1 = arith.constant 0 : i32
    return %c0_i32, %c0_i32_0 : i32, i32
  }
  func.func @transform_10(%arg0: i32, %arg1: memref<2xi32, #tpu.memory_space<smem>>) -> (i32, i32) {
    %c0_i32 = arith.constant 0 : i32
    %c0_i32_0 = arith.constant 0 : i32
    %c0_i32_1 = arith.constant 0 : i32
    return %c0_i32, %c0_i32_0 : i32, i32
  }
  func.func @transform_11(%arg0: i32, %arg1: memref<2xi32, #tpu.memory_space<smem>>) -> (i32, i32) {
    %c0_i32 = arith.constant 0 : i32
    %c0_i32_0 = arith.constant 0 : i32
    %c0_i32_1 = arith.constant 0 : i32
    return %c0_i32, %c0_i32_0 : i32, i32
  }
  func.func @transform_12(%arg0: i32, %arg1: memref<2xi32, #tpu.memory_space<smem>>) -> (i32, i32) {
    %c0_i32 = arith.constant 0 : i32
    %c0_i32_0 = arith.constant 0 : i32
    %c0_i32_1 = arith.constant 0 : i32
    return %c0_i32, %c0_i32_0 : i32, i32
  }
  func.func @transform_13(%arg0: i32, %arg1: memref<2xi32, #tpu.memory_space<smem>>) -> (i32, i32) {
    %c0_i32 = arith.constant 0 : i32
    %c0_i32_0 = arith.constant 0 : i32
    %c0_i32_1 = arith.constant 0 : i32
    return %c0_i32, %c0_i32_0 : i32, i32
  }
  func.func @transform_14(%arg0: i32, %arg1: memref<2xi32, #tpu.memory_space<smem>>) -> (i32, i32) {
    %c0_i32 = arith.constant 0 : i32
    %c0_i32_0 = arith.constant 0 : i32
    %c0_i32_1 = arith.constant 0 : i32
    return %c0_i32, %c0_i32_0 : i32, i32
  }
  func.func @transform_15(%arg0: i32, %arg1: memref<2xi32, #tpu.memory_space<smem>>) -> (i32, i32) {
    %c0_i32 = arith.constant 0 : i32
    %c0_i32_0 = arith.constant 0 : i32
    %c0_i32_1 = arith.constant 0 : i32
    return %c0_i32, %c0_i32_0 : i32, i32
  }
  func.func @transform_16(%arg0: i32, %arg1: memref<2xi32, #tpu.memory_space<smem>>) -> (i32, i32) {
    %c0_i32 = arith.constant 0 : i32
    %c0_i32_0 = arith.constant 0 : i32
    %c0_i32_1 = arith.constant 0 : i32
    return %c0_i32, %c0_i32_0 : i32, i32
  }
  func.func @transform_17(%arg0: i32, %arg1: memref<2xi32, #tpu.memory_space<smem>>) -> (i32, i32) {
    %c0_i32 = arith.constant 0 : i32
    %c0_i32_0 = arith.constant 0 : i32
    %c0_i32_1 = arith.constant 0 : i32
    return %c0_i32, %c0_i32_0 : i32, i32
  }
  func.func @transform_18(%arg0: i32, %arg1: memref<2xi32, #tpu.memory_space<smem>>) -> (i32, i32) {
    %c0_i32 = arith.constant 0 : i32
    %c0_i32_0 = arith.constant 0 : i32
    %c0_i32_1 = arith.constant 0 : i32
    return %c0_i32, %c0_i32_0 : i32, i32
  }
  func.func @transform_19(%arg0: i32, %arg1: memref<2xi32, #tpu.memory_space<smem>>) -> (i32, i32) {
    %c0_i32 = arith.constant 0 : i32
    %c0_i32_0 = arith.constant 0 : i32
    %c0_i32_1 = arith.constant 0 : i32
    return %c0_i32, %c0_i32_0 : i32, i32
  }
  func.func @transform_20(%arg0: i32, %arg1: memref<2xi32, #tpu.memory_space<smem>>) -> (i32, i32) {
    %c0_i32 = arith.constant 0 : i32
    %c0_i32_0 = arith.constant 0 : i32
    %c0_i32_1 = arith.constant 0 : i32
    return %c0_i32, %c0_i32_0 : i32, i32
  }
  func.func @transform_21(%arg0: i32, %arg1: memref<2xi32, #tpu.memory_space<smem>>) -> (i32, i32) {
    %c0_i32 = arith.constant 0 : i32
    %c0_i32_0 = arith.constant 0 : i32
    %c0_i32_1 = arith.constant 0 : i32
    return %c0_i32, %c0_i32_0 : i32, i32
  }
  func.func @transform_22(%arg0: i32, %arg1: memref<2xi32, #tpu.memory_space<smem>>) -> (i32, i32) {
    %c0_i32 = arith.constant 0 : i32
    %c0_i32_0 = arith.constant 0 : i32
    %c0_i32_1 = arith.constant 0 : i32
    return %c0_i32, %c0_i32_0 : i32, i32
  }
  func.func @transform_23(%arg0: i32, %arg1: memref<2xi32, #tpu.memory_space<smem>>) -> (i32, i32) {
    %c0_i32 = arith.constant 0 : i32
    %c0_i32_0 = arith.constant 0 : i32
    %c0_i32_1 = arith.constant 0 : i32
    return %c0_i32, %c0_i32_0 : i32, i32
  }
  func.func @transform_24(%arg0: i32, %arg1: memref<2xi32, #tpu.memory_space<smem>>) -> (i32, i32) {
    %c0_i32 = arith.constant 0 : i32
    %c0_i32_0 = arith.constant 0 : i32
    %c0_i32_1 = arith.constant 0 : i32
    return %c0_i32, %c0_i32_0 : i32, i32
  }
  func.func @transform_25(%arg0: i32, %arg1: memref<2xi32, #tpu.memory_space<smem>>) -> (i32, i32) {
    %c0_i32 = arith.constant 0 : i32
    %c0_i32_0 = arith.constant 0 : i32
    %c0_i32_1 = arith.constant 0 : i32
    return %c0_i32, %c0_i32_0 : i32, i32
  }
  func.func @transform_26(%arg0: i32, %arg1: memref<2xi32, #tpu.memory_space<smem>>) -> (i32, i32) {
    %c0_i32 = arith.constant 0 : i32
    %c0_i32_0 = arith.constant 0 : i32
    %c0_i32_1 = arith.constant 0 : i32
    return %c0_i32, %c0_i32_0 : i32, i32
  }
  func.func @transform_27(%arg0: i32, %arg1: memref<2xi32, #tpu.memory_space<smem>>) -> (i32, i32) {
    %c0_i32 = arith.constant 0 : i32
    %c0_i32_0 = arith.constant 0 : i32
    %c0_i32_1 = arith.constant 0 : i32
    return %c0_i32, %c0_i32_0 : i32, i32
  }
  func.func @transform_28(%arg0: i32, %arg1: memref<2xi32, #tpu.memory_space<smem>>) -> (i32, i32) {
    %c0_i32 = arith.constant 0 : i32
    %c0_i32_0 = arith.constant 0 : i32
    %c0_i32_1 = arith.constant 0 : i32
    return %c0_i32, %c0_i32_0 : i32, i32
  }
  func.func @transform_29(%arg0: i32, %arg1: memref<2xi32, #tpu.memory_space<smem>>) -> (i32, i32) {
    %c0_i32 = arith.constant 0 : i32
    %c0_i32_0 = arith.constant 0 : i32
    %c0_i32_1 = arith.constant 0 : i32
    return %c0_i32, %c0_i32_0 : i32, i32
  }
  func.func @transform_30(%arg0: i32, %arg1: memref<2xi32, #tpu.memory_space<smem>>) -> (i32, i32) {
    %c0_i32 = arith.constant 0 : i32
    %c0_i32_0 = arith.constant 0 : i32
    %c0_i32_1 = arith.constant 0 : i32
    return %c0_i32, %c0_i32_0 : i32, i32
  }
  func.func @transform_31(%arg0: i32, %arg1: memref<2xi32, #tpu.memory_space<smem>>) -> (i32, i32) {
    %c0_i32 = arith.constant 0 : i32
    %c0_i32_0 = arith.constant 0 : i32
    %c0_i32_1 = arith.constant 0 : i32
    return %c0_i32, %c0_i32_0 : i32, i32
  }
  func.func @transform_32(%arg0: i32, %arg1: memref<2xi32, #tpu.memory_space<smem>>) -> (i32, i32) {
    %c0_i32 = arith.constant 0 : i32
    %c0_i32_0 = arith.constant 0 : i32
    %c0_i32_1 = arith.constant 0 : i32
    return %c0_i32, %c0_i32_0 : i32, i32
  }
  func.func @transform_33(%arg0: i32, %arg1: memref<2xi32, #tpu.memory_space<smem>>) -> (i32, i32) {
    %c0_i32 = arith.constant 0 : i32
    %c0_i32_0 = arith.constant 0 : i32
    %c0_i32_1 = arith.constant 0 : i32
    return %c0_i32, %c0_i32_0 : i32, i32
  }
  func.func @transform_34(%arg0: i32, %arg1: memref<2xi32, #tpu.memory_space<smem>>) -> (i32, i32) {
    %c0_i32 = arith.constant 0 : i32
    %c0_i32_0 = arith.constant 0 : i32
    %c0_i32_1 = arith.constant 0 : i32
    return %c0_i32, %c0_i32_0 : i32, i32
  }
  func.func @transform_35(%arg0: i32, %arg1: memref<2xi32, #tpu.memory_space<smem>>) -> (i32, i32, i32) {
    %c0_i32 = arith.constant 0 : i32
    %c0_i32_0 = arith.constant 0 : i32
    %c0_i32_1 = arith.constant 0 : i32
    return %arg0, %c0_i32, %c0_i32_0 : i32, i32, i32
  }
}

module attributes {stable_mosaic.version = 11 : i64} {
  func.func @_encoder_layer_kernel(%arg0: i32, %arg1: memref<2xi32, #tpu.memory_space<smem>>, %arg2: memref<1x6x32xbf16, #tpu.memory_space<vmem>>, %arg3: memref<1x32xf32, #tpu.memory_space<vmem>>, %arg4: memref<1x32xf32, #tpu.memory_space<vmem>>, %arg5: memref<32x96xbf16, #tpu.memory_space<vmem>>, %arg6: memref<1x96xf32, #tpu.memory_space<vmem>>, %arg7: memref<32x32xbf16, #tpu.memory_space<vmem>>, %arg8: memref<1x32xf32, #tpu.memory_space<vmem>>, %arg9: memref<1x32xf32, #tpu.memory_space<vmem>>, %arg10: memref<1x32xf32, #tpu.memory_space<vmem>>, %arg11: memref<32x64xbf16, #tpu.memory_space<vmem>>, %arg12: memref<1x64xf32, #tpu.memory_space<vmem>>, %arg13: memref<64x32xbf16, #tpu.memory_space<vmem>>, %arg14: memref<1x32xf32, #tpu.memory_space<vmem>>, %arg15: memref<1x6x32xbf16, #tpu.memory_space<vmem>>) attributes {dimension_semantics = [#tpu.dimension_semantics<parallel>], iteration_bounds = array<i64: 2>, scalar_prefetch = 1 : i64, scratch_operands = 0 : i64, tpu.core_type = #tpu.core_type<tc>, window_params = [{transform_indices = @transform_0, window_bounds = array<i64: 1, 6, 32>}, {pipeline_mode = #tpu.pipeline_mode<synchronous>, transform_indices = @transform_1, window_bounds = array<i64: 1, 32>}, {pipeline_mode = #tpu.pipeline_mode<synchronous>, transform_indices = @transform_2, window_bounds = array<i64: 1, 32>}, {pipeline_mode = #tpu.pipeline_mode<synchronous>, transform_indices = @transform_3, window_bounds = array<i64: 32, 96>}, {pipeline_mode = #tpu.pipeline_mode<synchronous>, transform_indices = @transform_4, window_bounds = array<i64: 1, 96>}, {pipeline_mode = #tpu.pipeline_mode<synchronous>, transform_indices = @transform_5, window_bounds = array<i64: 32, 32>}, {pipeline_mode = #tpu.pipeline_mode<synchronous>, transform_indices = @transform_6, window_bounds = array<i64: 1, 32>}, {pipeline_mode = #tpu.pipeline_mode<synchronous>, transform_indices = @transform_7, window_bounds = array<i64: 1, 32>}, {pipeline_mode = #tpu.pipeline_mode<synchronous>, transform_indices = @transform_8, window_bounds = array<i64: 1, 32>}, {pipeline_mode = #tpu.pipeline_mode<synchronous>, transform_indices = @transform_9, window_bounds = array<i64: 32, 64>}, {pipeline_mode = #tpu.pipeline_mode<synchronous>, transform_indices = @transform_10, window_bounds = array<i64: 1, 64>}, {pipeline_mode = #tpu.pipeline_mode<synchronous>, transform_indices = @transform_11, window_bounds = array<i64: 64, 32>}, {pipeline_mode = #tpu.pipeline_mode<synchronous>, transform_indices = @transform_12, window_bounds = array<i64: 1, 32>}, {transform_indices = @transform_13, window_bounds = array<i64: 1, 6, 32>}]} {
    %c0 = arith.constant 0 : index
    %c0_0 = arith.constant 0 : index
    %c0_1 = arith.constant 0 : index
    %0 = vector.load %arg2[%c0, %c0_0, %c0_1] : memref<1x6x32xbf16, #tpu.memory_space<vmem>>, vector<1x6x32xbf16>
    %1 = vector.shape_cast %0 : vector<1x6x32xbf16> to vector<6x32xbf16>
    %2 = arith.extf %1 : vector<6x32xbf16> to vector<6x32xf32>
    %c0_2 = arith.constant 0 : index
    %c0_3 = arith.constant 0 : index
    %3 = vector.load %arg3[%c0_2, %c0_3] : memref<1x32xf32, #tpu.memory_space<vmem>>, vector<1x32xf32>
    %c0_4 = arith.constant 0 : index
    %c0_5 = arith.constant 0 : index
    %4 = vector.load %arg4[%c0_4, %c0_5] : memref<1x32xf32, #tpu.memory_space<vmem>>, vector<1x32xf32>
    %cst = arith.constant dense<0.000000e+00> : vector<6xf32>
    %5 = vector.multi_reduction <add>, %2, %cst [1] : vector<6x32xf32> to vector<6xf32>
    %6 = vector.shape_cast %5 : vector<6xf32> to vector<6x1xf32>
    %cst_6 = arith.constant 3.200000e+01 : f32
    %7 = vector.broadcast %cst_6 : f32 to vector<6x1xf32>
    %8 = arith.divf %6, %7 : vector<6x1xf32>
    %9 = vector.broadcast %8 : vector<6x1xf32> to vector<6x32xf32>
    %10 = arith.subf %2, %9 : vector<6x32xf32>
    %11 = arith.mulf %10, %10 : vector<6x32xf32>
    %cst_7 = arith.constant dense<0.000000e+00> : vector<6xf32>
    %12 = vector.multi_reduction <add>, %11, %cst_7 [1] : vector<6x32xf32> to vector<6xf32>
    %13 = vector.shape_cast %12 : vector<6xf32> to vector<6x1xf32>
    %cst_8 = arith.constant 3.200000e+01 : f32
    %14 = vector.broadcast %cst_8 : f32 to vector<6x1xf32>
    %15 = arith.divf %13, %14 : vector<6x1xf32>
    %cst_9 = arith.constant 9.99999974E-6 : f32
    %16 = vector.broadcast %cst_9 : f32 to vector<6x1xf32>
    %17 = arith.addf %15, %16 : vector<6x1xf32>
    %18 = math.rsqrt %17 : vector<6x1xf32>
    %19 = vector.broadcast %18 : vector<6x1xf32> to vector<6x32xf32>
    %20 = arith.mulf %10, %19 : vector<6x32xf32>
    %21 = vector.broadcast %3 : vector<1x32xf32> to vector<6x32xf32>
    %22 = arith.mulf %20, %21 : vector<6x32xf32>
    %23 = vector.broadcast %4 : vector<1x32xf32> to vector<6x32xf32>
    %24 = arith.addf %22, %23 : vector<6x32xf32>
    %c0_10 = arith.constant 0 : index
    %c0_11 = arith.constant 0 : index
    %25 = vector.load %arg5[%c0_10, %c0_11] : memref<32x96xbf16, #tpu.memory_space<vmem>>, vector<32x96xbf16>
    %26 = arith.truncf %24 : vector<6x32xf32> to vector<6x32xbf16>
    %cst_12 = arith.constant dense<0.000000e+00> : vector<6x96xf32>
    %27 = tpu.matmul %26, %25, %cst_12 {dimension_numbers = #tpu.dot_dimension_numbers<[1], [0], [0], [1], [0, 0, 1, 1], [], []>} : vector<6x32xbf16>, vector<32x96xbf16>, vector<6x96xf32> -> vector<6x96xf32>
    %c0_13 = arith.constant 0 : index
    %c0_14 = arith.constant 0 : index
    %28 = vector.load %arg6[%c0_13, %c0_14] : memref<1x96xf32, #tpu.memory_space<vmem>>, vector<1x96xf32>
    %29 = vector.broadcast %28 : vector<1x96xf32> to vector<6x96xf32>
    %30 = arith.addf %27, %29 : vector<6x96xf32>
    %31 = tpu.iota {dimensions = array<i32: 1>} : vector<6x6xi32>
    %32 = arith.index_cast %arg0 : i32 to index
    %33 = memref.load %arg1[%32] : memref<2xi32, #tpu.memory_space<smem>>
    %34 = vector.broadcast %33 : i32 to vector<6x6xi32>
    %35 = arith.cmpi slt, %31, %34 : vector<6x6xi32>
    %cst_15 = arith.constant 0.000000e+00 : f32
    %cst_16 = arith.constant -1.000000e+09 : f32
    %36 = vector.broadcast %cst_15 : f32 to vector<6x6xf32>
    %37 = vector.broadcast %cst_16 : f32 to vector<6x6xf32>
    %38 = arith.select %35, %36, %37 : vector<6x6xi1>, vector<6x6xf32>
    %39 = vector.extract_strided_slice %30 {offsets = [0, 0], sizes = [6, 16], strides = [1, 1]} : vector<6x96xf32> to vector<6x16xf32>
    %40 = vector.extract_strided_slice %30 {offsets = [0, 32], sizes = [6, 16], strides = [1, 1]} : vector<6x96xf32> to vector<6x16xf32>
    %41 = vector.extract_strided_slice %30 {offsets = [0, 64], sizes = [6, 16], strides = [1, 1]} : vector<6x96xf32> to vector<6x16xf32>
    %42 = arith.truncf %39 : vector<6x16xf32> to vector<6x16xbf16>
    %43 = arith.truncf %40 : vector<6x16xf32> to vector<6x16xbf16>
    %cst_17 = arith.constant dense<0.000000e+00> : vector<6x6xf32>
    %44 = tpu.matmul %42, %43, %cst_17 {dimension_numbers = #tpu.dot_dimension_numbers<[1], [1], [0], [0], [0, 0, 1, 0], [], []>} : vector<6x16xbf16>, vector<6x16xbf16>, vector<6x6xf32> -> vector<6x6xf32>
    %45 = arith.addf %44, %38 : vector<6x6xf32>
    %cst_18 = arith.constant dense<0xFF800000> : vector<6xf32>
    %46 = vector.multi_reduction <maximumf>, %45, %cst_18 [1] : vector<6x6xf32> to vector<6xf32>
    %47 = vector.shape_cast %46 : vector<6xf32> to vector<6x1xf32>
    %48 = vector.broadcast %47 : vector<6x1xf32> to vector<6x6xf32>
    %49 = arith.subf %45, %48 : vector<6x6xf32>
    %50 = math.exp %49 : vector<6x6xf32>
    %cst_19 = arith.constant dense<0.000000e+00> : vector<6xf32>
    %51 = vector.multi_reduction <add>, %50, %cst_19 [1] : vector<6x6xf32> to vector<6xf32>
    %52 = vector.shape_cast %51 : vector<6xf32> to vector<6x1xf32>
    %53 = tpu.reciprocal %52 {approx = true} : vector<6x1xf32> -> vector<6x1xf32>
    %54 = vector.broadcast %53 : vector<6x1xf32> to vector<6x6xf32>
    %55 = arith.mulf %50, %54 : vector<6x6xf32>
    %56 = arith.truncf %55 : vector<6x6xf32> to vector<6x6xbf16>
    %57 = arith.truncf %41 : vector<6x16xf32> to vector<6x16xbf16>
    %cst_20 = arith.constant dense<0.000000e+00> : vector<6x16xf32>
    %58 = tpu.matmul %56, %57, %cst_20 {dimension_numbers = #tpu.dot_dimension_numbers<[1], [0], [0], [1], [0, 0, 1, 1], [], []>} : vector<6x6xbf16>, vector<6x16xbf16>, vector<6x16xf32> -> vector<6x16xf32>
    %59 = vector.extract_strided_slice %30 {offsets = [0, 16], sizes = [6, 16], strides = [1, 1]} : vector<6x96xf32> to vector<6x16xf32>
    %60 = vector.extract_strided_slice %30 {offsets = [0, 48], sizes = [6, 16], strides = [1, 1]} : vector<6x96xf32> to vector<6x16xf32>
    %61 = vector.extract_strided_slice %30 {offsets = [0, 80], sizes = [6, 16], strides = [1, 1]} : vector<6x96xf32> to vector<6x16xf32>
    %62 = arith.truncf %59 : vector<6x16xf32> to vector<6x16xbf16>
    %63 = arith.truncf %60 : vector<6x16xf32> to vector<6x16xbf16>
    %cst_21 = arith.constant dense<0.000000e+00> : vector<6x6xf32>
    %64 = tpu.matmul %62, %63, %cst_21 {dimension_numbers = #tpu.dot_dimension_numbers<[1], [1], [0], [0], [0, 0, 1, 0], [], []>} : vector<6x16xbf16>, vector<6x16xbf16>, vector<6x6xf32> -> vector<6x6xf32>
    %65 = arith.addf %64, %38 : vector<6x6xf32>
    %cst_22 = arith.constant dense<0xFF800000> : vector<6xf32>
    %66 = vector.multi_reduction <maximumf>, %65, %cst_22 [1] : vector<6x6xf32> to vector<6xf32>
    %67 = vector.shape_cast %66 : vector<6xf32> to vector<6x1xf32>
    %68 = vector.broadcast %67 : vector<6x1xf32> to vector<6x6xf32>
    %69 = arith.subf %65, %68 : vector<6x6xf32>
    %70 = math.exp %69 : vector<6x6xf32>
    %cst_23 = arith.constant dense<0.000000e+00> : vector<6xf32>
    %71 = vector.multi_reduction <add>, %70, %cst_23 [1] : vector<6x6xf32> to vector<6xf32>
    %72 = vector.shape_cast %71 : vector<6xf32> to vector<6x1xf32>
    %73 = tpu.reciprocal %72 {approx = true} : vector<6x1xf32> -> vector<6x1xf32>
    %74 = vector.broadcast %73 : vector<6x1xf32> to vector<6x6xf32>
    %75 = arith.mulf %70, %74 : vector<6x6xf32>
    %76 = arith.truncf %75 : vector<6x6xf32> to vector<6x6xbf16>
    %77 = arith.truncf %61 : vector<6x16xf32> to vector<6x16xbf16>
    %cst_24 = arith.constant dense<0.000000e+00> : vector<6x16xf32>
    %78 = tpu.matmul %76, %77, %cst_24 {dimension_numbers = #tpu.dot_dimension_numbers<[1], [0], [0], [1], [0, 0, 1, 1], [], []>} : vector<6x6xbf16>, vector<6x16xbf16>, vector<6x16xf32> -> vector<6x16xf32>
    %79 = tpu.concatenate %58, %78 in 1 : vector<6x16xf32>, vector<6x16xf32> -> vector<6x32xf32>
    %c0_25 = arith.constant 0 : index
    %c0_26 = arith.constant 0 : index
    %80 = vector.load %arg7[%c0_25, %c0_26] : memref<32x32xbf16, #tpu.memory_space<vmem>>, vector<32x32xbf16>
    %81 = arith.truncf %79 : vector<6x32xf32> to vector<6x32xbf16>
    %cst_27 = arith.constant dense<0.000000e+00> : vector<6x32xf32>
    %82 = tpu.matmul %81, %80, %cst_27 {dimension_numbers = #tpu.dot_dimension_numbers<[1], [0], [0], [1], [0, 0, 1, 1], [], []>} : vector<6x32xbf16>, vector<32x32xbf16>, vector<6x32xf32> -> vector<6x32xf32>
    %83 = arith.addf %2, %82 : vector<6x32xf32>
    %c0_28 = arith.constant 0 : index
    %c0_29 = arith.constant 0 : index
    %84 = vector.load %arg8[%c0_28, %c0_29] : memref<1x32xf32, #tpu.memory_space<vmem>>, vector<1x32xf32>
    %85 = vector.broadcast %84 : vector<1x32xf32> to vector<6x32xf32>
    %86 = arith.addf %83, %85 : vector<6x32xf32>
    %c0_30 = arith.constant 0 : index
    %c0_31 = arith.constant 0 : index
    %87 = vector.load %arg9[%c0_30, %c0_31] : memref<1x32xf32, #tpu.memory_space<vmem>>, vector<1x32xf32>
    %c0_32 = arith.constant 0 : index
    %c0_33 = arith.constant 0 : index
    %88 = vector.load %arg10[%c0_32, %c0_33] : memref<1x32xf32, #tpu.memory_space<vmem>>, vector<1x32xf32>
    %cst_34 = arith.constant dense<0.000000e+00> : vector<6xf32>
    %89 = vector.multi_reduction <add>, %86, %cst_34 [1] : vector<6x32xf32> to vector<6xf32>
    %90 = vector.shape_cast %89 : vector<6xf32> to vector<6x1xf32>
    %cst_35 = arith.constant 3.200000e+01 : f32
    %91 = vector.broadcast %cst_35 : f32 to vector<6x1xf32>
    %92 = arith.divf %90, %91 : vector<6x1xf32>
    %93 = vector.broadcast %92 : vector<6x1xf32> to vector<6x32xf32>
    %94 = arith.subf %86, %93 : vector<6x32xf32>
    %95 = arith.mulf %94, %94 : vector<6x32xf32>
    %cst_36 = arith.constant dense<0.000000e+00> : vector<6xf32>
    %96 = vector.multi_reduction <add>, %95, %cst_36 [1] : vector<6x32xf32> to vector<6xf32>
    %97 = vector.shape_cast %96 : vector<6xf32> to vector<6x1xf32>
    %cst_37 = arith.constant 3.200000e+01 : f32
    %98 = vector.broadcast %cst_37 : f32 to vector<6x1xf32>
    %99 = arith.divf %97, %98 : vector<6x1xf32>
    %cst_38 = arith.constant 9.99999974E-6 : f32
    %100 = vector.broadcast %cst_38 : f32 to vector<6x1xf32>
    %101 = arith.addf %99, %100 : vector<6x1xf32>
    %102 = math.rsqrt %101 : vector<6x1xf32>
    %103 = vector.broadcast %102 : vector<6x1xf32> to vector<6x32xf32>
    %104 = arith.mulf %94, %103 : vector<6x32xf32>
    %105 = vector.broadcast %87 : vector<1x32xf32> to vector<6x32xf32>
    %106 = arith.mulf %104, %105 : vector<6x32xf32>
    %107 = vector.broadcast %88 : vector<1x32xf32> to vector<6x32xf32>
    %108 = arith.addf %106, %107 : vector<6x32xf32>
    %c0_39 = arith.constant 0 : index
    %c0_40 = arith.constant 0 : index
    %109 = vector.load %arg11[%c0_39, %c0_40] : memref<32x64xbf16, #tpu.memory_space<vmem>>, vector<32x64xbf16>
    %110 = arith.truncf %108 : vector<6x32xf32> to vector<6x32xbf16>
    %cst_41 = arith.constant dense<0.000000e+00> : vector<6x64xf32>
    %111 = tpu.matmul %110, %109, %cst_41 {dimension_numbers = #tpu.dot_dimension_numbers<[1], [0], [0], [1], [0, 0, 1, 1], [], []>} : vector<6x32xbf16>, vector<32x64xbf16>, vector<6x64xf32> -> vector<6x64xf32>
    %c0_42 = arith.constant 0 : index
    %c0_43 = arith.constant 0 : index
    %112 = vector.load %arg12[%c0_42, %c0_43] : memref<1x64xf32, #tpu.memory_space<vmem>>, vector<1x64xf32>
    %113 = vector.broadcast %112 : vector<1x64xf32> to vector<6x64xf32>
    %114 = arith.addf %111, %113 : vector<6x64xf32>
    %cst_44 = arith.constant 5.000000e-01 : f32
    %115 = vector.broadcast %cst_44 : f32 to vector<6x64xf32>
    %116 = arith.mulf %115, %114 : vector<6x64xf32>
    %cst_45 = arith.constant 4.471500e-02 : f32
    %117 = vector.broadcast %cst_45 : f32 to vector<6x64xf32>
    %118 = arith.mulf %117, %114 : vector<6x64xf32>
    %119 = arith.mulf %118, %114 : vector<6x64xf32>
    %120 = arith.mulf %119, %114 : vector<6x64xf32>
    %121 = arith.addf %114, %120 : vector<6x64xf32>
    %cst_46 = arith.constant 0.797884583 : f32
    %122 = vector.broadcast %cst_46 : f32 to vector<6x64xf32>
    %123 = arith.mulf %122, %121 : vector<6x64xf32>
    %124 = math.tanh %123 : vector<6x64xf32>
    %cst_47 = arith.constant 1.000000e+00 : f32
    %125 = vector.broadcast %cst_47 : f32 to vector<6x64xf32>
    %126 = arith.addf %125, %124 : vector<6x64xf32>
    %127 = arith.mulf %116, %126 : vector<6x64xf32>
    %c0_48 = arith.constant 0 : index
    %c0_49 = arith.constant 0 : index
    %128 = vector.load %arg13[%c0_48, %c0_49] : memref<64x32xbf16, #tpu.memory_space<vmem>>, vector<64x32xbf16>
    %129 = arith.truncf %127 : vector<6x64xf32> to vector<6x64xbf16>
    %cst_50 = arith.constant dense<0.000000e+00> : vector<6x32xf32>
    %130 = tpu.matmul %129, %128, %cst_50 {dimension_numbers = #tpu.dot_dimension_numbers<[1], [0], [0], [1], [0, 0, 1, 1], [], []>} : vector<6x64xbf16>, vector<64x32xbf16>, vector<6x32xf32> -> vector<6x32xf32>
    %131 = arith.addf %86, %130 : vector<6x32xf32>
    %c0_51 = arith.constant 0 : index
    %c0_52 = arith.constant 0 : index
    %132 = vector.load %arg14[%c0_51, %c0_52] : memref<1x32xf32, #tpu.memory_space<vmem>>, vector<1x32xf32>
    %133 = vector.broadcast %132 : vector<1x32xf32> to vector<6x32xf32>
    %134 = arith.addf %131, %133 : vector<6x32xf32>
    %135 = arith.truncf %134 : vector<6x32xf32> to vector<6x32xbf16>
    %c0_53 = arith.constant 0 : index
    %c0_54 = arith.constant 0 : index
    %c0_55 = arith.constant 0 : index
    %136 = vector.load %arg15[%c0_53, %c0_54, %c0_55] : memref<1x6x32xbf16, #tpu.memory_space<vmem>>, vector<1x6x32xbf16>
    %137 = vector.shape_cast %136 : vector<1x6x32xbf16> to vector<6x32xbf16>
    %138 = vector.shape_cast %135 : vector<6x32xbf16> to vector<1x6x32xbf16>
    tpu.vector_store %arg15[%c0_53, %c0_54, %c0_55], %138 {strides = array<i32>} : memref<1x6x32xbf16, #tpu.memory_space<vmem>>, vector<1x6x32xbf16>,
    return
  }
  func.func @transform_0(%arg0: i32, %arg1: memref<2xi32, #tpu.memory_space<smem>>) -> (i32, i32, i32) {
    %c0_i32 = arith.constant 0 : i32
    %c0_i32_0 = arith.constant 0 : i32
    %c0_i32_1 = arith.constant 0 : i32
    return %arg0, %c0_i32, %c0_i32_0 : i32, i32, i32
  }
  func.func @transform_1(%arg0: i32, %arg1: memref<2xi32, #tpu.memory_space<smem>>) -> (i32, i32) {
    %c0_i32 = arith.constant 0 : i32
    %c0_i32_0 = arith.constant 0 : i32
    %c0_i32_1 = arith.constant 0 : i32
    return %c0_i32, %c0_i32_0 : i32, i32
  }
  func.func @transform_2(%arg0: i32, %arg1: memref<2xi32, #tpu.memory_space<smem>>) -> (i32, i32) {
    %c0_i32 = arith.constant 0 : i32
    %c0_i32_0 = arith.constant 0 : i32
    %c0_i32_1 = arith.constant 0 : i32
    return %c0_i32, %c0_i32_0 : i32, i32
  }
  func.func @transform_3(%arg0: i32, %arg1: memref<2xi32, #tpu.memory_space<smem>>) -> (i32, i32) {
    %c0_i32 = arith.constant 0 : i32
    %c0_i32_0 = arith.constant 0 : i32
    %c0_i32_1 = arith.constant 0 : i32
    return %c0_i32, %c0_i32_0 : i32, i32
  }
  func.func @transform_4(%arg0: i32, %arg1: memref<2xi32, #tpu.memory_space<smem>>) -> (i32, i32) {
    %c0_i32 = arith.constant 0 : i32
    %c0_i32_0 = arith.constant 0 : i32
    %c0_i32_1 = arith.constant 0 : i32
    return %c0_i32, %c0_i32_0 : i32, i32
  }
  func.func @transform_5(%arg0: i32, %arg1: memref<2xi32, #tpu.memory_space<smem>>) -> (i32, i32) {
    %c0_i32 = arith.constant 0 : i32
    %c0_i32_0 = arith.constant 0 : i32
    %c0_i32_1 = arith.constant 0 : i32
    return %c0_i32, %c0_i32_0 : i32, i32
  }
  func.func @transform_6(%arg0: i32, %arg1: memref<2xi32, #tpu.memory_space<smem>>) -> (i32, i32) {
    %c0_i32 = arith.constant 0 : i32
    %c0_i32_0 = arith.constant 0 : i32
    %c0_i32_1 = arith.constant 0 : i32
    return %c0_i32, %c0_i32_0 : i32, i32
  }
  func.func @transform_7(%arg0: i32, %arg1: memref<2xi32, #tpu.memory_space<smem>>) -> (i32, i32) {
    %c0_i32 = arith.constant 0 : i32
    %c0_i32_0 = arith.constant 0 : i32
    %c0_i32_1 = arith.constant 0 : i32
    return %c0_i32, %c0_i32_0 : i32, i32
  }
  func.func @transform_8(%arg0: i32, %arg1: memref<2xi32, #tpu.memory_space<smem>>) -> (i32, i32) {
    %c0_i32 = arith.constant 0 : i32
    %c0_i32_0 = arith.constant 0 : i32
    %c0_i32_1 = arith.constant 0 : i32
    return %c0_i32, %c0_i32_0 : i32, i32
  }
  func.func @transform_9(%arg0: i32, %arg1: memref<2xi32, #tpu.memory_space<smem>>) -> (i32, i32) {
    %c0_i32 = arith.constant 0 : i32
    %c0_i32_0 = arith.constant 0 : i32
    %c0_i32_1 = arith.constant 0 : i32
    return %c0_i32, %c0_i32_0 : i32, i32
  }
  func.func @transform_10(%arg0: i32, %arg1: memref<2xi32, #tpu.memory_space<smem>>) -> (i32, i32) {
    %c0_i32 = arith.constant 0 : i32
    %c0_i32_0 = arith.constant 0 : i32
    %c0_i32_1 = arith.constant 0 : i32
    return %c0_i32, %c0_i32_0 : i32, i32
  }
  func.func @transform_11(%arg0: i32, %arg1: memref<2xi32, #tpu.memory_space<smem>>) -> (i32, i32) {
    %c0_i32 = arith.constant 0 : i32
    %c0_i32_0 = arith.constant 0 : i32
    %c0_i32_1 = arith.constant 0 : i32
    return %c0_i32, %c0_i32_0 : i32, i32
  }
  func.func @transform_12(%arg0: i32, %arg1: memref<2xi32, #tpu.memory_space<smem>>) -> (i32, i32) {
    %c0_i32 = arith.constant 0 : i32
    %c0_i32_0 = arith.constant 0 : i32
    %c0_i32_1 = arith.constant 0 : i32
    return %c0_i32, %c0_i32_0 : i32, i32
  }
  func.func @transform_13(%arg0: i32, %arg1: memref<2xi32, #tpu.memory_space<smem>>) -> (i32, i32, i32) {
    %c0_i32 = arith.constant 0 : i32
    %c0_i32_0 = arith.constant 0 : i32
    %c0_i32_1 = arith.constant 0 : i32
    return %arg0, %c0_i32, %c0_i32_0 : i32, i32, i32
  }
}

</mosaic_0001>

<bundles_post_ra>
// kernel: _lambda_.7
= control target key start
LH: loop header
LB: loop body
LE: loop exit
PB: predicated region body
PF: predicated region fallthrough
CT: control target
= control target key end

     0   :  { %s458_s12 = smov 0   ;;  %s493_s0 = inlined_call_operand.vmem [shape: bf16[2,6,32], index: 0, kind: input, shape index: {}]   ;;  %s494_s1 = inlined_call_operand.vmem [shape: f32[1,32], index: 1, kind: input, shape index: {}]   ;;  %s495_s2 = inlined_call_operand.vmem [shape: f32[1,32], index: 2, kind: input, shape index: {}]   ;;  %s496_s3 = inlined_call_operand.vmem [shape: f32[2,32,6], index: 3, kind: output, shape index: {}]  }
   0x1 LB: > { %s381_s13 = sadd.s32 4294967295, %s435_s12   ;;  %p385_p0 = scmp.ge.s32.totalorder %s435_s12, 1  ;;  %s435_s12 = sphi %s458_s12, %s13_s12  }
   0x2   : > { %p136_p1 = scmp.lt.s32.totalorder %s435_s12, 3 }
   0x4   : > { %p137_p2 = pnand %p385_p0, %p136_p1 }
   0x5   : > { %p159_p3 = scmp.lt.s32.totalorder (!%p137_p2), %s381_s13, 1 }
   0x6   : > { %140 = sbr.rel (%p137_p2) target bundleno = 525 (0x20d), region = 32 }
   0xb   : > { %s498_s13 = smov (!%p159_p3, %s381_s13), 1  ;;  %vm172_vm0 = vcmask 259072   ;;  %v201_v8 = vlaneseq  ;;  %vm220_vm1 = vcmask 261120   ;;  %v437_v14 = vmov 0.0   ;;  %v389_v23 = vld [vmem:[%s494_s1] ss:$0 sm:$0xff] }
   0xc   : > { %s386_s14 = sshll.u32 %s498_s13, 2  ;;  %v390_v25 = vld [vmem:[%s495_s2] ss:$0 sm:$0xff]  ;;  %s402_s22 = sshll.u32 %s498_s13, 5  ;;  %vm321_vm6 = vcmask 48128  }
   0xd   : > { %s162_s17 = scalar_lea.vmem %s493_s0, %s386_s14  ;;  %v202_v9 = vshrl.u32 %v201_v8, 7  ;;  %v207_v10 = vand.u32 127, %v201_v8  ;;  %s167_s25 = scalar_lea.vmem %s496_s3, %s402_s22 }
   0xe   : > { %v168_v0 = vld [vmem:[%s162_s17] sm:$0x7] }
   0xf   : > { %v169_v1 = vunpack.c.l.bf16 %v168_v0  ;;  %v204_v11 = vadd.s32 16, %v202_v9  ;;  %v203_v12 = vadd.s32 8, %v202_v9  ;;  %v205_v13 = vadd.s32 24, %v202_v9 }
  0x10   : > { %vm208_vm2 = vcmp.eq.s32.totalorder %v202_v9, %v207_v10 }
  0x11   : > { %v173_v2 = vsel %vm172_vm0, %v169_v1, 0.0  ;;  %vm210_vm3 = vcmp.eq.s32.totalorder %v204_v11, %v207_v10  ;;  %v391_v15 = vsel %vm208_vm2, 1.0, %v437_v14  ;;  %vm209_vm4 = vcmp.eq.s32.totalorder %v203_v12, %v207_v10 }
  0x12   : > { %174 = vadd.xlane.f32.xlu0 %v173_v2  ;;  %v393_v16 = vsel %vm210_vm3, 1.0, %v437_v14  ;;  %vm211_vm5 = vcmp.eq.s32.totalorder %v205_v13, %v207_v10  ;;  %410 = vmatprep.mubr.msk.f32.mxu0 %vm220_vm1, %v391_v15  ;;  %v392_v17 = vsel %vm209_vm4, 1.0, %v437_v14 }
  0x13   : > { %413 = vmatprep.mubr.msk.f32.mxu1 %vm220_vm1, %v393_v16  ;;  %v394_v18 = vsel %vm211_vm5, 1.0, %v437_v14 }
  0x9b   : > { %v175_v3 = vpop.xlane.xlu0 %174 }
  0x9c   : > { %v177_v4 = vmul.f32 0.03125, %v175_v3 }
  0x9e   : > { %v178_v5 = vsub.f32 %v169_v1, %v177_v4 }
  0xa0   : > { %v179_v6 = vmul.f32 %v178_v5, %v178_v5 }
  0xa2   : > { %v180_v7 = vsel %vm172_vm0, %v179_v6, 0.0 }
  0xa3   : > { %181 = vadd.xlane.f32.xlu0 %v180_v7 }
 0x12c   : > { %v182_v19 = vpop.xlane.xlu0 %181 }
 0x12d   : > { %v183_v20 = vmul.f32 0.03125, %v182_v19 }
 0x12f   : > { %v184_v21 = vadd.f32 1e-05, %v183_v20 }
 0x131   : > { %427 = vrsqrt.f32 %v184_v21 }
 0x13e   : > { %v428_v22 = vpop.eup %427 }
 0x13f   : > { %v186_v24 = vmul.f32 %v428_v22, %v178_v5 }
 0x141   : > { %v193_v26 = vmul.f32 %v389_v23, %v186_v24 }
 0x143   : > { %v200_v27 = vadd.f32 %v390_v25, %v193_v26 }
 0x145   : > { %408 = vmatprep.subr.msk.mxu0 %vm220_vm1, %v200_v27  ;;  %416 = vmatprep.subr.msk.mxu1 %vm220_vm1, %v200_v27 }
 0x146   : > { %409 = vmatpush3.xpose.msk.msra.mxu0 %vm220_vm1, %v200_v27  ;;  %417 = vmatpush3.xpose.msk.msra.mxu1 %vm220_vm1, %v200_v27 }
 0x149   : > { %411 = vmatmul.mubr.msk.f32.vlgmr.msra.gmra.mxu0 %vm220_vm1, %v392_v17  ;;  %414 = vmatmul.mubr.msk.f32.vlgmr.msra.gmra.mxu1 %vm220_vm1, %v394_v18 }
 0x209   : > { %v412_v28 = vpop.f32.mrf.mxu0  ;;  %v415_v29 = vpop.f32.mrf.mxu1 }
 0x20a   : > { %323 = vst.msk [vmem:[%s167_s25 + $0x8] sm:$0xff] %vm321_vm6, %v412_v28  ;;  %325 = vst.msk [vmem:[%s167_s25 + $0x18] sm:$0xff] %vm321_vm6, %v415_v29 }
 0x20b   : > { %v302_v30 = vpop.f32.mrf.mxu0  ;;  %v312_v31 = vpop.f32.mrf.mxu1 }
 0x20c   : > { %322 = vst.msk [vmem:[%s167_s25] sm:$0xff] %vm321_vm6, %v302_v30  ;;  %324 = vst.msk [vmem:[%s167_s25 + $0x10] sm:$0xff] %vm321_vm6, %v312_v31 }
 0x20d PF: > { %s13_s12 = sadd.s32 1, %s435_s12  }
 0x20e   : > { %p10_p4 = scmp.ge.s32.totalorder %s13_s12, 4  }
 0x210   :  { %12 = sbr.rel (!%p10_p4) target bundleno = 1 (0x1), region = 62 }

// kernel: _lambda_.5
= control target key start
LH: loop header
LB: loop body
LE: loop exit
PB: predicated region body
PF: predicated region fallthrough
CT: control target
= control target key end

     0   :  { %s1499_s0 = inlined_call_operand.vmem [shape: s32[2], index: 0, kind: input, shape index: {}]   ;;  %s1500_s1 = inlined_call_operand.vmem [shape: bf16[2,6,32], index: 1, kind: input, shape index: {}]   ;;  %s1501_s2 = inlined_call_operand.vmem [shape: f32[1,32], index: 2, kind: input, shape index: {}, may-alias: {2,8}]   ;;  %s1502_s3 = inlined_call_operand.vmem [shape: f32[1,32], index: 3, kind: input, shape index: {}, may-alias: {3,7,9,13}]   ;;  %s1503_s4 = inlined_call_operand.vmem [shape: bf16[32,96], index: 4, kind: input, shape index: {}]   ;;  %s1504_s5 = inlined_call_operand.vmem [shape: f32[1,96], index: 5, kind: input, shape index: {}]   ;;  %s1505_s6 = inlined_call_operand.vmem [shape: bf16[32,32], index: 6, kind: input, shape index: {}]   ;;  %s1506_s7 = inlined_call_operand.vmem [shape: f32[1,32], index: 7, kind: input, shape index: {}, may-alias: {3,7,9,13}]   ;;  %s1507_s8 = inlined_call_operand.vmem [shape: f32[1,32], index: 8, kind: input, shape index: {}, may-alias: {2,8}]   ;;  %s1508_s9 = inlined_call_operand.vmem [shape: f32[1,32], index: 9, kind: input, shape index: {}, may-alias: {3,7,9,13}]   ;;  %s1509_s10 = inlined_call_operand.vmem [shape: bf16[32,64], index: 10, kind: input, shape index: {}]   ;;  %s1510_s11 = inlined_call_operand.vmem [shape: f32[1,64], index: 11, kind: input, shape index: {}]   ;;  %s1511_s12 = inlined_call_operand.vmem [shape: bf16[64,32], index: 12, kind: input, shape index: {}]   ;;  %s1512_s13 = inlined_call_operand.vmem [shape: f32[1,32], index: 13, kind: input, shape index: {}, may-alias: {3,7,9,13}]   ;;  %s1513_s14 = inlined_call_operand.vmem [shape: bf16[2,6,32], index: 14, kind: output, shape index: {}]  }
   0x1   :  { %s19_s15 = sshll.u32 %s1499_s0, 4  ;;  %s20_s15 = int_to_ptr.vmem [resolvable:$true] %s19_s15 }
   0x2   :  { %s1255_s16 = scalar_lea.vmem %s20_s15, 16  ;;  %p1260_p1 = scmp.lt.s32.totalorder %s20_s15, %s20_s15 }
   0x3   :  { %p1256_p0 = scmp.ne.s32.totalorder %s20_s15, %s1255_s16  ;;  %p1261_p2 = scmp.lt.s32.totalorder %s1255_s16, %s1255_s16 }
   0x5   :  { %p1262_p3 = por %p1261_p2, %p1260_p1 }
   0x7   :  { %p1263_p4 = pnand %p1262_p3, %p1256_p0 }
   0x9   :  { %1266 = shalt.err (!%p1263_p4)  }
   0xa   :  { %s1277_s17 = smov [#allocation3]  }
   0xb   :  { %22 = dma.vmem_to_smem %s20_s15, 16, %s1277_s17, [#allocation2] }
   0xc   :  { %1271 = dma.done.wait [#allocation2], 16 }
   0xd   :  { %1272 = vsyncadd [#allocation2], 4294967280 }
   0xe   :  { %24 = sfence }
   0xf   :  { %s1365_s18 = smov 0  }
  0x10 LB: > { %s1371_s0 = sadd.s32 4294967295, %s1275_s18   ;;  %p1100_p5 = scmp.ge.s32.totalorder %s1275_s18, 1  ;;  %s1275_s18 = sphi %s1365_s18, %s30_s18  }
  0x11   : > { %p393_p6 = scmp.lt.s32.totalorder %s1275_s18, 3 }
  0x13   : > { %p394_p7 = pnand %p1100_p5, %p393_p6 }
  0x14   : > { %p435_p8 = scmp.lt.s32.totalorder (!%p394_p7), %s1371_s0, 1  ;;  %s1280_s21 = smov (!%p394_p7), 112  }
  0x15   : > { %397 = sbr.rel (%p394_p7) target bundleno = 2423 (0x977), region = 72  ;;  %s1281_s22 = smov (!%p394_p7), 96  }
  0x16   : > { %s547_s24 = sld [smem:[#allocation3 + %s1371_s0]] (!%p394_p7)  ;;  %s1285_s25 = smov (!%p394_p7), 64  }
  0x17   : > { %s1286_s30 = smov (!%p394_p7), 16  }
  0x1a   : > { %s1377_s19 = scalar_select %p435_p8, %s1371_s0, 1  ;;  %vm448_vm0 = vcmask 259072   ;;  %v1231_v8 = vld [vmem:[%s1503_s4 + $0x8] sm:$0xff]   ;;  %v1278_v9 = vmov 0.0   ;;  %vm1279_vm1 = vmmov 0   ;;  %v1232_v10 = vld [vmem:[%s1503_s4] sm:$0xff]   ;;  %v545_v33 = vlaneseq }
  0x1b   : > { %1153 = vmatprep.subr.bf16.mxu0 %v1278_v9  ;;  %1157 = vmatprep.mubr.msk.bf16.mxu0 %vm1279_vm1, %v1278_v9  ;;  %v1103_v15 = vld [vmem:[%s1501_s2] ss:$0 sm:$0xff]  ;;  %vm501_vm2 = vcmask 261120   ;;  %vm555_vm3 = vcmask 130048   ;;  %v1283_v36 = vmov -1e+09  }
  0x1c   : > { %s1101_s20 = sshll.u32 %s1377_s19, 2  ;;  %1154 = vmatpush3.bf16.msra.mxu0 %v1231_v8  ;;  %1161 = vmatprep.subr.bf16.mxu1 %v1278_v9  ;;  %v1104_v17 = vld [vmem:[%s1502_s3] ss:$0 sm:$0xff]  ;;  %v546_v34 = vand.u32 127, %v545_v33  ;;  %v548_v35 = vstv %s547_s24  ;;  %vm602_vm5 = vcmask 46080   ;;  %s1284_s0 = smov 48  }
  0x1d   : > { %s438_s23 = scalar_lea.vmem %s1500_s1, %s1101_s20  ;;  %1155 = vmatprep.subr.bf16.mxu0 %v1278_v9  ;;  %1163 = vmatprep.mubr.msk.bf16.mxu1 %vm1279_vm1, %v1278_v9  ;;  %v1105_v21 = vld [vmem:[%s1504_s5] ss:$0 sm:$0xff]  ;;  %vm621_vm6 = vcmask 1042432   ;;  %vm617_vm7 = vcmask 48128   ;;  %vm987_vm8 = vcmask 523264   ;;  %s442_s27 = scalar_lea.vmem %s1513_s14, %s1101_s20  ;;  %vm1041_vm9 = vcmask 256000  }
  0x1e   : > { %v444_v0 = vld [vmem:[%s438_s23] sm:$0x7]  ;;  %s1282_s23 = smov 80   ;;  %vm549_vm4 = vcmp.lt.s32.totalorder %v546_v34, %v548_v35 }
  0x1f   : > { %v1385_v1 = vunpack.c.l.bf16 %v444_v0  ;;  %v550_v37 = vsel %vm549_vm4, 0.0, %v1283_v36  ;;  %v1235_v36 = vld [vmem:[%s1509_s10 + $0x8] sm:$0xff]  }
  0x20   : > { %1156 = vmatpush3.bf16.msra.mxu0 %v1232_v10  ;;  %v1233_v10 = vld [vmem:[%s1505_s6 + $0x8] sm:$0xff]  }
  0x21   : > { %v449_v2 = vsel %vm448_vm0, %v1385_v1, 0.0  ;;  %1167 = vmatprep.subr.bf16.mxu0 %v1278_v9 }
  0x22   : > { %450 = vadd.xlane.f32.xlu0 %v449_v2 }
  0xab   : > { %v451_v3 = vpop.xlane.xlu0 %450 }
  0xac   : > { %v453_v4 = vmul.f32 0.03125, %v451_v3 }
  0xae   : > { %v454_v5 = vsub.f32 %v1385_v1, %v453_v4 }
  0xb0   : > { %v455_v6 = vmul.f32 %v454_v5, %v454_v5 }
  0xb2   : > { %v456_v7 = vsel %vm448_vm0, %v455_v6, 0.0 }
  0xb3   : > { %457 = vadd.xlane.f32.xlu0 %v456_v7 }
 0x13c   : > { %v458_v11 = vpop.xlane.xlu0 %457 }
 0x13d   : > { %v459_v12 = vmul.f32 0.03125, %v458_v11  ;;  %v1234_v11 = vld [vmem:[%s1505_s6] sm:$0xff]  }
 0x13f   : > { %v460_v13 = vadd.f32 1e-05, %v459_v12 }
 0x141   : > { %1241 = vrsqrt.f32 %v460_v13 }
 0x14e   : > { %v1242_v14 = vpop.eup %1241 }
 0x14f   : > { %v462_v16 = vmul.f32 %v1242_v14, %v454_v5 }
 0x151   : > { %v469_v18 = vmul.f32 %v1103_v15, %v462_v16 }
 0x153   : > { %v476_v19 = vadd.f32 %v1104_v17, %v469_v18 }
 0x155   : > { %v481_v20 = vpack.c.bf16 %v476_v19, %v476_v19 }
 0x157   : > { %1158 = vmatmul.mubr.msk.bf16.vlgmr.msra.gmra.mxu0 %vm501_vm2, %v481_v20 }
 0x158   : > { %1169 = vmatprep.mubr.msk.bf16.mxu0 %vm1279_vm1, %v1278_v9 }
 0x217   : > { %v539_v22 = vpop.f32.mrf.mxu0 }
 0x218   : > { %v540_v23 = vadd.f32 %v1105_v21, %v539_v22 }
 0x219   : > { %v1159_v24 = vpop.f32.mrf.mxu0 }
 0x21a   : > { %v551_v25 = vpack.c.bf16 %v540_v23, %v540_v23  ;;  %v1116_v24 = vld [vmem:[%s1506_s7] ss:$0 sm:$0xff] }
 0x21b   : > { %v542_v26 = vpop.f32.mrf.mxu0 }
 0x21c   : > { %665 = vrot.lane.b32.xlu0 %v551_v25, %s1280_s21  ;;  %553 = vrot.lane.b32.xlu1 %v551_v25, %s1281_s22 }
 0x21d   : > { %v1160_v27 = vpop.f32.mrf.mxu0 }
 0x220   : > { %667 = vrot.lane.b32.xlu1 %v551_v25, %s1282_s23 }
 0x28e   : > { %v554_v28 = vpop.permute.xlu1 %553  ;;  %v666_v32 = vpop.permute.xlu0 %665 }
 0x28f   : > { %v560_v29 = vsel %vm555_vm3, %v554_v28, 0 }
 0x290   : > { %1162 = vmatpush3.bf16.xpose.msra.mxu1 %v560_v29 }
 0x291   : > { %1173 = vmatprep.subr.bf16.mxu1 %v1278_v9 }
 0x292   : > { %v668_v30 = vpop.permute.xlu1 %667 }
 0x293   : > { %v673_v31 = vsel %vm555_vm3, %v668_v30, 0 }
 0x297   : > { %1164 = vmatmul.mubr.msk.bf16.vlgmr.msra.gmra.mxu1 %vm555_vm3, %v551_v25 }
 0x298   : > { %1174 = vmatpush3.bf16.xpose.msra.mxu1 %v673_v31  ;;  %1175 = vmatprep.mubr.msk.bf16.mxu1 %vm1279_vm1, %v1278_v9 }
 0x299   : > { %1185 = vmatprep.subr.bf16.mxu1 %v1278_v9 }
 0x29f   : > { %1176 = vmatmul.mubr.msk.bf16.vlgmr.msra.gmra.mxu1 %vm555_vm3, %v666_v32 }
 0x2a0   : > { %1189 = vmatprep.mubr.msk.bf16.mxu1 %vm1279_vm1, %v1278_v9  ;;  %1186 = vmatpush3.bf16.msra.mxu1 %v1233_v10 }
 0x2a1   : > { %1187 = vmatprep.subr.bf16.mxu1 %v1278_v9 }
 0x2a4   : > { %1188 = vmatpush3.bf16.msra.mxu1 %v1234_v11 }
 0x2a5   : > { %1201 = vmatprep.subr.bf16.mxu1 %v1278_v9 }
 0x357   : > { %v596_v38 = vpop.f32.mrf.mxu1 }
 0x358   : > { %v597_v39 = vadd.f32 %v596_v38, %v550_v37 }
 0x359   : > { %v1165_v40 = vpop.f32.mrf.mxu1 }
 0x35a   : > { %v603_v41 = vsel %vm602_vm5, %v597_v39, -inf }
 0x35b   : > { %604 = vmax.xlane.f32.xlu1 %v603_v41  ;;  %v599_v42 = vpop.f32.mrf.mxu1  ;;  %v1117_v41 = vld [vmem:[%s1507_s8] ss:$0 sm:$0xff] }
 0x35d   : > { %v1166_v43 = vpop.f32.mrf.mxu1 }
 0x35e   : > { %v1118_v43 = vld [vmem:[%s1508_s9] ss:$0 sm:$0xff] }
 0x35f   : > { %v709_v44 = vpop.f32.mrf.mxu1 }
 0x360   : > { %v710_v45 = vadd.f32 %v709_v44, %v550_v37 }
 0x361   : > { %v1177_v46 = vpop.f32.mrf.mxu1 }
 0x362   : > { %v715_v47 = vsel %vm602_vm5, %v710_v45, -inf }
 0x363   : > { %716 = vmax.xlane.f32.xlu0 %v715_v47  ;;  %v712_v48 = vpop.f32.mrf.mxu1  ;;  %v1237_v47 = vld [vmem:[%s1511_s12 + $0x18] sm:$0xff]  }
 0x364   : > { %v1238_v48 = vld [vmem:[%s1511_s12 + $0x10] sm:$0xff]  }
 0x365   : > { %v1178_v49 = vpop.f32.mrf.mxu1 }
 0x366   : > { %v1239_v49 = vld [vmem:[%s1511_s12 + $0x8] sm:$0xff]  }
 0x379   : > { %727 = vrot.lane.b32.xlu0 %v551_v25, %s1284_s0 }
 0x3e4   : > { %v605_v50 = vpop.xlane.xlu1 %604 }
 0x3e5   : > { %v606_v51 = vsub.f32 %v597_v39, %v605_v50  ;;  %v1240_v50 = vld [vmem:[%s1511_s12] sm:$0xff]  }
 0x3e7   : > { %v607_v52 = vmul.f32 1.442695, %v606_v51  ;;  %v1119_v51 = vld [vmem:[%s1510_s11] ss:$0 sm:$0xff] }
 0x3e9   : > { %1243 = vpow2.f32 %v607_v52 }
 0x3ec   : > { %v717_v53 = vpop.xlane.xlu0 %716 }
 0x3ed   : > { %v718_v54 = vsub.f32 %v710_v45, %v717_v53 }
 0x3ef   : > { %v719_v55 = vmul.f32 1.442695, %v718_v54 }
 0x3f0   : > { %v728_v3 = vpop.permute.xlu0 %727 }
 0x3f1   : > { %1245 = vpow2.f32 %v719_v55  ;;  %v733_v5 = vsel %vm621_vm6, %v728_v3, 0 }
 0x3f6   : > { %v1244_v56 = vpop.eup %1243 }
 0x3f7   : > { %v609_v57 = vsel %vm602_vm5, %v1244_v56, 0.0 }
 0x3f8   : > { %610 = vadd.xlane.f32.xlu1 %v609_v57 }
 0x3fe   : > { %v1246_v58 = vpop.eup %1245 }
 0x3ff   : > { %v721_v59 = vsel %vm602_vm5, %v1246_v58, 0.0 }
 0x400   : > { %722 = vadd.xlane.f32.xlu1 %v721_v59 }
 0x411   : > { %615 = vrot.lane.b32.xlu1 %v551_v25, %s1285_s25 }
 0x481   : > { %v611_v60 = vpop.xlane.xlu1 %610 }
 0x482   : > { %1247 = vrcp.f32 %v611_v60 }
 0x489   : > { %v723_v61 = vpop.xlane.xlu1 %722 }
 0x48a   : > { %1249 = vrcp.f32 %v723_v61 }
 0x48d   : > { %v616_v62 = vpop.permute.xlu1 %615 }
 0x48e   : > { %v623_v63 = vsel %vm621_vm6, %v616_v62, 0 }
 0x48f   : > { %v1248_v0 = vpop.eup %1247  ;;  %1168 = vmatpush3.bf16.msra.mxu0 %v623_v63 }
 0x490   : > { %1179 = vmatprep.subr.bf16.mxu0 %v1278_v9  ;;  %v613_v2 = vmul.f32 %v1248_v0, %v1244_v56 }
 0x492   : > { %v614_v4 = vpack.c.bf16 %v613_v2, %v613_v2 }
 0x494   : > { %1170 = vmatmul.mubr.msk.bf16.vlgmr.msra.gmra.mxu0 %vm617_vm7, %v614_v4  ;;  %v1128_v4 = vld [vmem:[%s1512_s13] ss:$0 sm:$0xff] }
 0x495   : > { %1180 = vmatpush3.bf16.msra.mxu0 %v733_v5  ;;  %1181 = vmatprep.mubr.msk.bf16.mxu0 %vm1279_vm1, %v1278_v9 }
 0x496   : > { %1193 = vmatprep.subr.bf16.mxu0 %v1278_v9 }
 0x497   : > { %v1250_v6 = vpop.eup %1249 }
 0x498   : > { %v725_v7 = vmul.f32 %v1250_v6, %v1246_v58 }
 0x49a   : > { %v726_v8 = vpack.c.bf16 %v725_v7, %v725_v7 }
 0x49c   : > { %1182 = vmatmul.mubr.msk.bf16.vlgmr.msra.gmra.mxu0 %vm617_vm7, %v726_v8 }
 0x49d   : > { %1197 = vmatprep.mubr.msk.bf16.mxu0 %vm1279_vm1, %v1278_v9  ;;  %1194 = vmatpush3.bf16.msra.mxu0 %v1235_v36 }
 0x49e   : > { %1195 = vmatprep.subr.bf16.mxu0 %v1278_v9 }
 0x554   : > { %v659_v12 = vpop.f32.mrf.mxu0 }
 0x556   : > { %v1171_v13 = vpop.f32.mrf.mxu0 }
 0x558   : > { %v662_v14 = vpop.f32.mrf.mxu0 }
 0x55a   : > { %v1172_v15 = vpop.f32.mrf.mxu0 }
 0x55c   : > { %v769_v16 = vpop.f32.mrf.mxu0 }
 0x55d   : > { %776 = vrot.lane.b32.xlu1 %v769_v16, %s1286_s30 }
 0x55e   : > { %v1183_v17 = vpop.f32.mrf.mxu0 }
 0x560   : > { %v772_v18 = vpop.f32.mrf.mxu0 }
 0x562   : > { %v1184_v19 = vpop.f32.mrf.mxu0 }
 0x5cf   : > { %v777_v20 = vpop.permute.xlu1 %776 }
 0x5d0   : > { %v779_v21 = vsel %vm555_vm3, %v659_v12, %v777_v20 }
 0x5d1   : > { %v784_v22 = vpack.c.bf16 %v779_v21, %v779_v21 }
 0x5d3   : > { %1190 = vmatmul.mubr.msk.bf16.vlgmr.msra.gmra.mxu1 %vm501_vm2, %v784_v22 }
 0x5d4   : > { %1209 = vmatprep.mubr.msk.bf16.mxu1 %vm1279_vm1, %v1278_v9  ;;  %1202 = vmatpush3.bf16.msra.mxu1 %v1237_v47 }
 0x5d5   : > { %1203 = vmatprep.subr.bf16.mxu1 %v1278_v9 }
 0x5d8   : > { %1204 = vmatpush3.bf16.msra.mxu1 %v1238_v48 }
 0x5d9   : > { %1205 = vmatprep.subr.bf16.mxu1 %v1278_v9 }
 0x5dc   : > { %1206 = vmatpush3.bf16.msra.mxu1 %v1239_v49 }
 0x5dd   : > { %1207 = vmatprep.subr.bf16.mxu1 %v1278_v9 }
 0x5e0   : > { %1208 = vmatpush3.bf16.msra.mxu1 %v1240_v50 }
 0x693   : > { %v834_v23 = vpop.f32.mrf.mxu1 }
 0x694   : > { %v840_v25 = vadd.f32 %v834_v23, %v1385_v1  ;;  %v1236_v1 = vld [vmem:[%s1509_s10] sm:$0xff]  }
 0x695   : > { %v1191_v26 = vpop.f32.mrf.mxu1  ;;  %1196 = vmatpush3.bf16.msra.mxu0 %v1236_v1 }
 0x696   : > { %v848_v27 = vadd.f32 %v1116_v24, %v840_v25 }
 0x697   : > { %v837_v28 = vpop.f32.mrf.mxu1 }
 0x698   : > { %v851_v29 = vsel %vm448_vm0, %v848_v27, 0.0 }
 0x699   : > { %852 = vadd.xlane.f32.xlu1 %v851_v29  ;;  %v1192_v30 = vpop.f32.mrf.mxu1 }
 0x722   : > { %v853_v31 = vpop.xlane.xlu1 %852 }
 0x723   : > { %v854_v32 = vmul.f32 0.03125, %v853_v31 }
 0x725   : > { %v855_v33 = vsub.f32 %v848_v27, %v854_v32 }
 0x727   : > { %v856_v34 = vmul.f32 %v855_v33, %v855_v33 }
 0x729   : > { %v857_v35 = vsel %vm448_vm0, %v856_v34, 0.0 }
 0x72a   : > { %858 = vadd.xlane.f32.xlu0 %v857_v35 }
 0x7b3   : > { %v859_v37 = vpop.xlane.xlu0 %858 }
 0x7b4   : > { %v860_v38 = vmul.f32 0.03125, %v859_v37 }
 0x7b6   : > { %v861_v39 = vadd.f32 1e-05, %v860_v38 }
 0x7b8   : > { %1251 = vrsqrt.f32 %v861_v39 }
 0x7c5   : > { %v1252_v40 = vpop.eup %1251 }
 0x7c6   : > { %v863_v42 = vmul.f32 %v1252_v40, %v855_v33 }
 0x7c8   : > { %v870_v44 = vmul.f32 %v1117_v41, %v863_v42 }
 0x7ca   : > { %v877_v45 = vadd.f32 %v1118_v43, %v870_v44 }
 0x7cc   : > { %v882_v46 = vpack.c.bf16 %v877_v45, %v877_v45 }
 0x7ce   : > { %1198 = vmatmul.mubr.msk.bf16.vlgmr.msra.gmra.mxu0 %vm501_vm2, %v882_v46 }
 0x88e   : > { %v939_v52 = vpop.f32.mrf.mxu0 }
 0x88f   : > { %v940_v53 = vadd.f32 %v1119_v51, %v939_v52 }
 0x890   : > { %v1199_v54 = vpop.f32.mrf.mxu0 }
 0x891   : > { %v946_v55 = vmul.f32 0.044715, %v940_v53  ;;  %v945_v63 = vmul.f32 0.5, %v940_v53 }
 0x892   : > { %v942_v56 = vpop.f32.mrf.mxu0 }
 0x893   : > { %v947_v57 = vmul.f32 %v946_v55, %v940_v53 }
 0x894   : > { %v1200_v58 = vpop.f32.mrf.mxu0 }
 0x895   : > { %v948_v59 = vmul.f32 %v947_v57, %v940_v53 }
 0x897   : > { %v949_v60 = vadd.f32 %v948_v59, %v940_v53 }
 0x899   : > { %v950_v61 = vmul.f32 0.7978846, %v949_v60 }
 0x89b   : > { %1253 = vtanh.f32 %v950_v61 }
 0x8a8   : > { %v1254_v62 = vpop.eup %1253 }
 0x8a9   : > { %v952_v9 = vadd.f32 1.0, %v1254_v62 }
 0x8ab   : > { %v953_v0 = vmul.f32 %v952_v9, %v945_v63 }
 0x8ad   : > { %v962_v2 = vpack.c.bf16 %v953_v0, %v953_v0 }
 0x8af   : > { %1210 = vmatmul.mubr.msk.bf16.vlgmr.msra.gmra.mxu1 %vm987_vm8, %v962_v2 }
 0x96f   : > { %v1025_v3 = vpop.f32.mrf.mxu1 }
 0x970   : > { %v1031_v5 = vadd.f32 %v1025_v3, %v848_v27 }
 0x971   : > { %v1211_v6 = vpop.f32.mrf.mxu1 }
 0x972   : > { %v1039_v7 = vadd.f32 %v1128_v4, %v1031_v5 }
 0x973   : > { %v1028_v8 = vpop.f32.mrf.mxu1 }
 0x974   : > { %v1040_v10 = vpack.c.bf16 %v1039_v7, %v1039_v7 }
 0x975   : > { %v1212_v11 = vpop.f32.mrf.mxu1 }
 0x976   : > { %1042 = vst.msk [vmem:[%s442_s27] sm:$0x7] %vm1041_vm9, %v1040_v10 }
 0x977 PF: > { %s30_s18 = sadd.s32 1, %s1275_s18  }
 0x978   : > { %p27_p9 = scmp.ge.s32.totalorder %s30_s18, 4  }
 0x97a   :  { %29 = sbr.rel (!%p27_p9) target bundleno = 16 (0x10), region = 102 }

// kernel: _lambda_.4
= control target key start
LH: loop header
LB: loop body
LE: loop exit
PB: predicated region body
PF: predicated region fallthrough
CT: control target
= control target key end

     0   :  { %s7669_s6 = smov 1   ;;  %s7670_s10 = smov 2   ;;  %s10496_s0 = inlined_call_operand.smem [shape: u32[37], index: -1, kind: input, shape index: {}] }
   0x1   :  { %s7719_s5 = sld [smem:[%s10496_s0]]   ;;  %s7671_s14 = smov 3  }
   0x2   :  { %s7724_s9 = sld [smem:[%s10496_s0 + %s7669_s6]]   ;;  %s7672_s18 = smov 4  }
   0x3   :  { %s7729_s13 = sld [smem:[%s10496_s0 + %s7670_s10]]   ;;  %s7673_s22 = smov 5  }
   0x4   :  { %s7734_s17 = sld [smem:[%s10496_s0 + %s7671_s14]]   ;;  %s7674_s26 = smov 6  }
   0x5   :  { %s7739_s21 = sld [smem:[%s10496_s0 + %s7672_s18]]   ;;  %s7675_s30 = smov 7  }
   0x6   :  { %s7744_s25 = sld [smem:[%s10496_s0 + %s7673_s22]]   ;;  %s7676_s4 = smov 8  }
   0x7   :  { %s7749_s29 = sld [smem:[%s10496_s0 + %s7674_s26]]   ;;  %s7677_s10 = smov 9  }
   0x8   :  { %s7754_s3 = sld [smem:[%s10496_s0 + %s7675_s30]]   ;;  %s7678_s15 = smov 10  }
   0x9   :  { %s7759_s8 = sld [smem:[%s10496_s0 + %s7676_s4]]   ;;  %s7679_s20 = smov 11  }
   0xa   :  { %s7764_s14 = sld [smem:[%s10496_s0 + %s7677_s10]]   ;;  %s7680_s26 = smov 12  }
   0xb   :  { %s7769_s19 = sld [smem:[%s10496_s0 + %s7678_s15]]   ;;  %s7681_s1 = smov 13  }
   0xc   :  { %s7774_s24 = sld [smem:[%s10496_s0 + %s7679_s20]]   ;;  %s7682_s7 = smov 14  }
   0xd   :  { %s7779_s30 = sld [smem:[%s10496_s0 + %s7680_s26]]   ;;  %s7683_s15 = smov 15  }
   0xe   :  { %s7784_s6 = sld [smem:[%s10496_s0 + %s7681_s1]]   ;;  %s7684_s22 = smov 16  }
   0xf   :  { %s7789_s12 = sld [smem:[%s10496_s0 + %s7682_s7]]   ;;  %s7685_s28 = smov 17  }
  0x10   :  { %s7794_s20 = sld [smem:[%s10496_s0 + %s7683_s15]]   ;;  %s7686_s7 = smov 18  }
  0x11   :  { %s7799_s27 = sld [smem:[%s10496_s0 + %s7684_s22]]   ;;  %s7687_s15 = smov 19  }
  0x12   :  { %s7804_s4 = sld [smem:[%s10496_s0 + %s7685_s28]]   ;;  %s7688_s22 = smov 20  }
  0x13   :  { %s7689_s28 = smov 21  }
  0x15   :  { %10511 = sst [smem:[#allocation7_spill]] %s7789_s12 }
  0x16   :  { %10512 = sst [smem:[#allocation8_spill]] %s7794_s20 }
  0x17   :  { %10513 = sst [smem:[#allocation9_spill]] %s7799_s27 }
  0x18   :  { %10514 = sst [smem:[#allocation10_spill]] %s7804_s4 }
  0x19   :  { %s7809_s12 = sld [smem:[%s10496_s0 + %s7686_s7]]   ;;  %s7690_s7 = smov 22  }
  0x1a   :  { %s7814_s20 = sld [smem:[%s10496_s0 + %s7687_s15]]   ;;  %s7691_s15 = smov 23  }
  0x1b   :  { %s7819_s27 = sld [smem:[%s10496_s0 + %s7688_s22]]   ;;  %s7692_s22 = smov 24  }
  0x1c   :  { %s7824_s4 = sld [smem:[%s10496_s0 + %s7689_s28]]   ;;  %s7693_s28 = smov 25  }
  0x1f   :  { %10515 = sst [smem:[#allocation11_spill]] %s7809_s12 }
  0x20   :  { %10516 = sst [smem:[#allocation12_spill]] %s7814_s20 }
  0x21   :  { %10517 = sst [smem:[#allocation13_spill]] %s7819_s27 }
  0x22   :  { %10518 = sst [smem:[#allocation14_spill]] %s7824_s4 }
  0x23   :  { %s7829_s12 = sld [smem:[%s10496_s0 + %s7690_s7]]   ;;  %s7694_s7 = smov 26  }
  0x24   :  { %s7834_s20 = sld [smem:[%s10496_s0 + %s7691_s15]]   ;;  %s7695_s15 = smov 27  }
  0x25   :  { %s7839_s27 = sld [smem:[%s10496_s0 + %s7692_s22]]   ;;  %s7696_s22 = smov 28  }
  0x26   :  { %s7844_s4 = sld [smem:[%s10496_s0 + %s7693_s28]]   ;;  %s7697_s28 = smov 29  }
  0x27   :  { %s7854_s23 = sld [smem:[%s10496_s0 + %s7695_s15]]   ;;  %s7699_s15 = smov 31  }
  0x28   :  { %s7859_s1 = sld [smem:[%s10496_s0 + %s7696_s22]]  }
  0x29   :  { %10519 = sst [smem:[#allocation15_spill]] %s7829_s12 }
  0x2a   :  { %10520 = sst [smem:[#allocation16_spill]] %s7834_s20 }
  0x2b   :  { %10521 = sst [smem:[#allocation17_spill]] %s7839_s27  ;;  %s7700_s27 = smov 32  }
  0x2c   :  { %10522 = sst [smem:[#allocation18_spill]] %s7844_s4  ;;  %s7701_s4 = smov 33  }
  0x2d   :  { %s7849_s12 = sld [smem:[%s10496_s0 + %s7694_s7]]   ;;  %s7698_s7 = smov 30  }
  0x2e   :  { %10524 = sst [smem:[#allocation20_spill]] %s7854_s23  ;;  %s78_s23 = sshll.u32 %s7719_s5, 4  ;;  %s79_s23 = int_to_ptr.vmem [resolvable:$true] %s78_s23 }
  0x2f   :  { %10525 = sst [smem:[#allocation21_spill]] %s7859_s1  ;;  %p7652_p1 = scmp.lt.s32.totalorder %s79_s23, %s79_s23 }
  0x30   :  { %s7864_s10 = sld [smem:[%s10496_s0 + %s7697_s28]]   ;;  %s7647_s28 = scalar_lea.vmem %s79_s23, 16 }
  0x31   :  { %s7869_s16 = sld [smem:[%s10496_s0 + %s7698_s7]]   ;;  %p7648_p0 = scmp.ne.s32.totalorder %s79_s23, %s7647_s28 }
  0x32   :  { %s7874_s20 = sld [smem:[%s10496_s0 + %s7699_s15]]   ;;  %s7703_s15 = smov 35  }
  0x33   :  { %10523 = sst [smem:[#allocation19_spill]] %s7849_s12  ;;  %s7702_s12 = smov 34  }
  0x34   :  { %s7879_s1 = sld [smem:[%s10496_s0 + %s7700_s27]]   ;;  %s7704_s27 = smov 36  }
  0x35   :  { %s7895_s22 = sld [smem:[%s10496_s0 + %s7703_s15]]   ;;  %p7653_p2 = scmp.lt.s32.totalorder %s7647_s28, %s7647_s28 }
  0x36   :  { %10526 = sst [smem:[#allocation22_spill]] %s7864_s10 }
  0x37   :  { %10527 = sst [smem:[#allocation23_spill]] %s7869_s16  ;;  %p7654_p3 = por %p7653_p2, %p7652_p1 }
  0x38   :  { %10528 = sst [smem:[#allocation24_spill]] %s7874_s20 }
  0x39   :  { %s7884_s10 = sld [smem:[%s10496_s0 + %s7701_s4]]   ;;  %p7655_p4 = pnand %p7654_p3, %p7648_p0 }
  0x3a   :  { %10529 = sst [smem:[#allocation25_spill]] %s7879_s1 }
  0x3b   :  { %s7889_s16 = sld [smem:[%s10496_s0 + %s7702_s12]]  }
  0x3c   :  { %s7900_s4 = sld [smem:[%s10496_s0 + %s7704_s27]]  }
  0x3d   :  { %7658 = shalt.err (!%p7655_p4)  }
  0x3e   :  { %s7705_s5 = smov [#allocation5]  }
  0x3f   :  { %81 = dma.vmem_to_smem %s79_s23, 16, %s7705_s5, [#allocation4] }
  0x40   :  { %7663 = dma.done.wait [#allocation4], 16 }
  0x41   :  { %7664 = vsyncadd [#allocation4], 4294967280 }
  0x42   :  { %83 = sfence }
  0x43   :  { %s7902_s20 = smov 0  }
  0x44 LB: > { %s7908_s0 = sadd.s32 4294967295, %s7667_s20   ;;  %p6356_p5 = scmp.ge.s32.totalorder %s7667_s20, 1  ;;  %s7667_s20 = sphi %s7902_s20, %s89_s20  }
  0x45   : > { %p981_p6 = scmp.lt.s32.totalorder %s7667_s20, 3 }
  0x47   : > { %p982_p7 = pnand %p6356_p5, %p981_p6 }
  0x49   : > { %985 = sbr.rel (%p982_p7) target bundleno = 5803 (0x16ab), region = 160 }
  0x4e   : > { %p1068_p8 = scmp.lt.s32.totalorder %s7908_s0, 1  ;;  %vm1619_vm0 = vcmask 1044480   ;;  %v10502_v0 = vmov 0.0   ;;  %v7185_v1 = vld [vmem:[%s7729_s13] sm:$0x1f]   ;;  %vm7707_vm1 = vmmov 0  }
  0x4f   : > { %6603 = vmatprep.subr.bf16.mxu0 %v10502_v0  ;;  %6705 = vmatprep.subr.bf16.mxu1 %v10502_v0  ;;  %v1621_v2 = vsel %vm1619_vm0, %v7185_v1, 0  ;;  %vm1253_vm2 = vsmask.f32 7424  ;;  %s7708_s7 = smov 5   ;;  %vm1503_vm3 = vcmask 39936   ;;  %vm1568_vm4 = vcmask 80896  }
  0x50   : > { %s7917_s1 = scalar_select %p1068_p8, %s7908_s0, 1  ;;  %6604 = vmatpush3.bf16.msra.mxu0 %v1621_v2  ;;  %6605 = vmatprep.mubr.msk.bf16.mxu0 %vm7707_vm1, %v10502_v0  ;;  %vm1858_vm5 = vcmask 261120   ;;  %vm2006_vm6 = vcmask 260096   ;;  %vm3497_vm7 = vcmask 523264   ;;  %vm3591_vm8 = vcmask 785408  }
  0x51   : > { %6717 = vmatprep.mubr.msk.bf16.mxu1 %vm7707_vm1, %v10502_v0  ;;  %6137 = vst.msk [vmem:[#allocation3] sm:$0xff] %vm1858_vm5, %v10502_v0  ;;  %s7709_s11 = smov 32   ;;  %s7710_s23 = smov 64   ;;  %vm4784_vm9 = vcmask 256000   ;;  %vm5332_vm10 = vcmask 253952   ;;  %vm5844_vm11 = vcmask 257024  }
  0x52   : > { %s6893_s2 = smul.u32 200, %s7917_s1  ;;  %s10545_s15 = sld [smem:[#allocation7_spill]]  ;;  %vm5996_vm12 = vcmask 259072  }
  0x53   : > { %s10546_s18 = sld [smem:[#allocation8_spill]] }
  0x54   : > { %s7925_s12 = scalar_lea.vmem %s7724_s9, %s6893_s2  ;;  %s10547_s27 = sld [smem:[#allocation11_spill]] }
  0x55   : > { %v7928_v3 = vld [vmem:[%s7925_s12] sm:$0xff]   ;;  %v7931_v4 = vld [vmem:[%s7925_s12 + $0x8] sm:$0xff]   ;;  %v7934_v5 = vld [vmem:[%s7925_s12 + $0x10] sm:$0xff]   ;;  %s10548_s26 = sld [smem:[#allocation9_spill]] }
  0x56   : > { %v1255_v6 = vshrl.u32 %v7928_v3, 16  ;;  %v1257_v7 = vshll.u32 %v7928_v3, 16  ;;  %v1262_v8 = vshll.u32 %v7931_v4, 16  ;;  %v1266_v9 = vshrl.u32 %v7931_v4, 16  ;;  %v7942_v11 = vld [vmem:[%s7925_s12 + $0x18] sm:$0xff]   ;;  %v7946_v13 = vld [vmem:[%s7925_s12 + $0x20] sm:$0xff]  }
  0x57   : > { %v1270_v10 = vshll.u32 %v7934_v5, 16  ;;  %v1274_v12 = vshrl.u32 %v7934_v5, 16  ;;  %v1278_v17 = vshll.u32 %v7942_v11, 16  ;;  %v1282_v18 = vshrl.u32 %v7942_v11, 16  ;;  %v7952_v22 = vld [vmem:[%s7925_s12 + $0x28] sm:$0xff]   ;;  %v7956_v27 = vld [vmem:[%s7925_s12 + $0x30] sm:$0xff]  }
  0x58   : > { %v1259_v14 = vrot.slane %v1257_v7, 1  ;;  %v1264_v15 = vrot.slane %v1262_v8, 1  ;;  %v1286_v19 = vshll.u32 %v7946_v13, 16  ;;  %v1290_v23 = vshrl.u32 %v7946_v13, 16  ;;  %v7959_v28 = vld [vmem:[%s7925_s12 + $0x38] sm:$0xff]   ;;  %v7969_v36 = vld [vmem:[%s7925_s12 + $0x40] sm:$0xff]  }
  0x59   : > { %v1272_v16 = vrot.slane %v1270_v10, 1  ;;  %v1280_v25 = vrot.slane %v1278_v17, 1  ;;  %v1294_v30 = vshll.u32 %v7952_v22, 16  ;;  %v1298_v31 = vshrl.u32 %v7952_v22, 16  ;;  %v7978_v45 = vld [vmem:[%s7925_s12 + $0x48] sm:$0xff]   ;;  %v7981_v47 = vld [vmem:[%s7925_s12 + $0x50] sm:$0xff]  }
  0x5a   : > { %v1260_v20 = vor.u32 %v1259_v14, %v1255_v6  ;;  %v1268_v21 = vor.u32 %v1266_v9, %v1264_v15  ;;  %v1288_v26 = vrot.slane %v1286_v19, 1  ;;  %v1302_v35 = vshll.u32 %v7956_v27, 16  ;;  %v7987_v51 = vld [vmem:[%s7925_s12 + $0x58] sm:$0xff]   ;;  %v7996_v60 = vld [vmem:[%s7925_s12 + $0x60] sm:$0xff]   ;;  %v8000_v62 = vld [vmem:[%s7925_s12 + $0x68] sm:$0xff]   ;;  %s10549_s28 = sld [smem:[#allocation10_spill]] }
  0x5b   : > { %v1276_v24 = vor.u32 %v1274_v12, %v1272_v16  ;;  %v1284_v34 = vor.u32 %v1282_v18, %v1280_v25  ;;  %v1296_v38 = vrot.slane %v1294_v30, 1  ;;  %v1306_v39 = vshrl.u32 %v7956_v27, 16  ;;  %v8007_v8 = vld [vmem:[%s7925_s12 + $0x70] sm:$0xff]   ;;  %v8012_v14 = vld [vmem:[%s7925_s12 + $0x78] sm:$0xff]   ;;  %v8016_v18 = vld [vmem:[%s7925_s12 + $0x80] sm:$0xff]   ;;  %s10550_s5 = sld [smem:[#allocation12_spill]] }
  0x5c   : > { %v1265_v29 = vsel %vm1253_vm2, %v1260_v20, %v1264_v15  ;;  %v1273_v32 = vsel %vm1253_vm2, %v1268_v21, %v1272_v16  ;;  %v1292_v37 = vor.u32 %v1290_v23, %v1288_v26  ;;  %v1310_v40 = vshll.u32 %v7959_v28, 16  ;;  %s10551_s2 = sld [smem:[#allocation15_spill]] }
  0x5d   : > { %1453 = vrot.lane.b32.xlu0 %v1265_v29, %s7708_s7  ;;  %v1281_v33 = vsel %vm1253_vm2, %v1276_v24, %v1280_v25  ;;  %v1289_v41 = vsel %vm1253_vm2, %v1284_v34, %v1288_v26  ;;  %v1304_v42 = vrot.slane %v1302_v35, 1  ;;  %v1314_v43 = vshrl.u32 %v7959_v28, 16  ;;  %v8027_v26 = vld [vmem:[%s7925_s12 + $0x88] sm:$0xff]  }
  0x5e   : > { %1457 = vrot.lane.b32.xlu1 %v1281_v33, %s7708_s7  ;;  %v1318_v44 = vshll.u32 %v7969_v36, 16  ;;  %v1300_v46 = vor.u32 %v1298_v31, %v1296_v38  ;;  %v1312_v48 = vrot.slane %v1310_v40, 1  ;;  %v1322_v49 = vshrl.u32 %v7969_v36, 16  ;;  %v8039_v40 = vld [vmem:[%s7925_s12 + $0x98] sm:$0xff]  }
  0x5f   : > { %v1326_v50 = vshll.u32 %v7978_v45, 16  ;;  %v1297_v52 = vsel %vm1253_vm2, %v1292_v37, %v1296_v38  ;;  %v1308_v53 = vor.u32 %v1306_v39, %v1304_v42  ;;  %v1334_v55 = vshll.u32 %v7981_v47, 16 }
  0x60   : > { %v1320_v54 = vrot.slane %v1318_v44, 1  ;;  %v1305_v56 = vsel %vm1253_vm2, %v1300_v46, %v1304_v42  ;;  %v1316_v57 = vor.u32 %v1314_v43, %v1312_v48  ;;  %v1330_v58 = vshrl.u32 %v7978_v45, 16 }
  0x61   : > { %1455 = vrot.lane.b32.xlu0 %v1273_v32, %s7708_s7  ;;  %v1338_v59 = vshrl.u32 %v7981_v47, 16  ;;  %v1342_v61 = vshll.u32 %v7987_v51, 16  ;;  %v1328_v63 = vrot.slane %v1326_v50, 1  ;;  %v1313_v1 = vsel %vm1253_vm2, %v1308_v53, %v1312_v48  ;;  %v8031_v32 = vld [vmem:[%s7925_s12 + $0x90] sm:$0xff]   ;;  %v8046_v50 = vld [vmem:[%s7925_s12 + $0xa0] sm:$0xff]  }
  0x62   : > { %1459 = vrot.lane.b32.xlu1 %v1289_v41, %s7708_s7  ;;  %v1324_v2 = vor.u32 %v1322_v49, %v1320_v54  ;;  %v1336_v6 = vrot.slane %v1334_v55, 1  ;;  %v1346_v7 = vshrl.u32 %v7987_v51, 16  ;;  %v1321_v9 = vsel %vm1253_vm2, %v1316_v57, %v1320_v54 }
  0x63   : > { %v1332_v10 = vor.u32 %v1330_v58, %v1328_v63  ;;  %v1350_v12 = vshll.u32 %v7996_v60, 16  ;;  %v1344_v16 = vrot.slane %v1342_v61, 1  ;;  %v1358_v17 = vshll.u32 %v8000_v62, 16 }
  0x64   : > { %v1340_v15 = vor.u32 %v1338_v59, %v1336_v6  ;;  %v1354_v19 = vshrl.u32 %v7996_v60, 16  ;;  %v1362_v20 = vshrl.u32 %v8000_v62, 16  ;;  %v1329_v21 = vsel %vm1253_vm2, %v1324_v2, %v1328_v63 }
  0x65   : > { %1461 = vrot.lane.b32.xlu0 %v1297_v52, %s7708_s7  ;;  %v1366_v23 = vshll.u32 %v8007_v8, 16  ;;  %v1374_v24 = vshll.u32 %v8012_v14, 16  ;;  %v1382_v25 = vshll.u32 %v8016_v18, 16  ;;  %v1337_v29 = vsel %vm1253_vm2, %v1332_v10, %v1336_v6 }
  0x66   : > { %1463 = vrot.lane.b32.xlu1 %v1305_v56, %s7708_s7  ;;  %v1348_v30 = vor.u32 %v1346_v7, %v1344_v16  ;;  %v1352_v31 = vrot.slane %v1350_v12, 1  ;;  %v1345_v33 = vsel %vm1253_vm2, %v1340_v15, %v1344_v16  ;;  %v1360_v34 = vrot.slane %v1358_v17, 1  ;;  %v8061_v7 = vld [vmem:[%s7925_s12 + $0xa8] sm:$0xff]  }
  0x67   : > { %v1370_v37 = vshrl.u32 %v8007_v8, 16  ;;  %v1378_v38 = vshrl.u32 %v8012_v14, 16  ;;  %v1390_v39 = vshll.u32 %v8027_v26, 16  ;;  %v1368_v41 = vrot.slane %v1366_v23, 1 }
  0x68   : > { %v1356_v35 = vor.u32 %v1354_v19, %v1352_v31  ;;  %v1376_v42 = vrot.slane %v1374_v24, 1  ;;  %v1384_v43 = vrot.slane %v1382_v25, 1  ;;  %v1386_v44 = vshrl.u32 %v8016_v18, 16 }
  0x69   : > { %1465 = vrot.lane.b32.xlu0 %v1313_v1, %s7708_s7  ;;  %v1353_v46 = vsel %vm1253_vm2, %v1348_v30, %v1352_v31  ;;  %v1364_v48 = vor.u32 %v1362_v20, %v1360_v34  ;;  %v1398_v49 = vshll.u32 %v8031_v32, 16  ;;  %v1394_v52 = vshrl.u32 %v8027_v26, 16  ;;  %v8074_v30 = vld [vmem:[%s7925_s12 + $0xb0] sm:$0xff]  }
  0x6a   : > { %1467 = vrot.lane.b32.xlu1 %v1321_v9, %s7708_s7  ;;  %v1402_v53 = vshrl.u32 %v8031_v32, 16  ;;  %v1392_v54 = vrot.slane %v1390_v39, 1  ;;  %v1406_v55 = vshll.u32 %v8039_v40, 16  ;;  %v1361_v56 = vsel %vm1253_vm2, %v1356_v35, %v1360_v34 }
  0x6b   : > { %v1372_v57 = vor.u32 %v1370_v37, %v1368_v41  ;;  %v1369_v58 = vsel %vm1253_vm2, %v1364_v48, %v1368_v41  ;;  %v1380_v59 = vor.u32 %v1378_v38, %v1376_v42  ;;  %v1400_v61 = vrot.slane %v1398_v49, 1  ;;  %v8086_v41 = vld [vmem:[%s7925_s12 + $0xb8] sm:$0xff]   ;;  %v8093_v49 = vld [vmem:[%s7925_s12 + $0xc0] sm:$0xff]   ;;  %s10552_s12 = sld [smem:[#allocation13_spill]] }
  0x6c   : > { %v1414_v63 = vshll.u32 %v8046_v50, 16  ;;  %v1388_v2 = vor.u32 %v1386_v44, %v1384_v43  ;;  %v1410_v6 = vshrl.u32 %v8039_v40, 16  ;;  %v1396_v10 = vor.u32 %v1394_v52, %v1392_v54 }
  0x6d   : > { %1469 = vrot.lane.b32.xlu0 %v1329_v21, %s7708_s7  ;;  %v1377_v1 = vsel %vm1253_vm2, %v1372_v57, %v1376_v42  ;;  %v1385_v9 = vsel %vm1253_vm2, %v1380_v59, %v1384_v43  ;;  %v1408_v12 = vrot.slane %v1406_v55, 1  ;;  %v1404_v17 = vor.u32 %v1402_v53, %v1400_v61 }
  0x6e   : > { %1471 = vrot.lane.b32.xlu1 %v1337_v29, %s7708_s7  ;;  %v1416_v15 = vrot.slane %v1414_v63, 1  ;;  %v1393_v16 = vsel %vm1253_vm2, %v1388_v2, %v1392_v54  ;;  %v1418_v19 = vshrl.u32 %v8046_v50, 16  ;;  %v1422_v20 = vshll.u32 %v8061_v7, 16 }
  0x6f   : > { %v1401_v21 = vsel %vm1253_vm2, %v1396_v10, %v1400_v61  ;;  %v1412_v23 = vor.u32 %v1410_v6, %v1408_v12  ;;  %v1409_v24 = vsel %vm1253_vm2, %v1404_v17, %v1408_v12  ;;  %v1430_v34 = vshll.u32 %v8074_v30, 16 }
  0x70   : > { %v1420_v25 = vor.u32 %v1418_v19, %v1416_v15  ;;  %v1424_v29 = vrot.slane %v1422_v20, 1  ;;  %v1434_v42 = vshrl.u32 %v8074_v30, 16  ;;  %v1438_v43 = vshll.u32 %v8086_v41, 16 }
  0x71   : > { %1473 = vrot.lane.b32.xlu0 %v1345_v33, %s7708_s7  ;;  %v1417_v31 = vsel %vm1253_vm2, %v1412_v23, %v1416_v15  ;;  %v1426_v33 = vshrl.u32 %v8061_v7, 16  ;;  %v1432_v38 = vrot.slane %v1430_v34, 1  ;;  %v1442_v52 = vshrl.u32 %v8086_v41, 16 }
  0x72   : > { %1475 = vrot.lane.b32.xlu1 %v1353_v46, %s7708_s7  ;;  %v1425_v35 = vsel %vm1253_vm2, %v1420_v25, %v1424_v29  ;;  %v1440_v46 = vrot.slane %v1438_v43, 1  ;;  %v1446_v53 = vshll.u32 %v8093_v49, 16  ;;  %v1450_v57 = vshrl.u32 %v8093_v49, 16 }
  0x73   : > { %v1428_v37 = vor.u32 %v1426_v33, %v1424_v29  ;;  %v1436_v44 = vor.u32 %v1434_v42, %v1432_v38 }
  0x74   : > { %v1444_v54 = vor.u32 %v1442_v52, %v1440_v46  ;;  %v1448_v55 = vrot.slane %v1446_v53, 1 }
  0x75   : > { %1477 = vrot.lane.b32.xlu0 %v1361_v56, %s7708_s7  ;;  %v1433_v39 = vsel %vm1253_vm2, %v1428_v37, %v1432_v38  ;;  %v1441_v48 = vsel %vm1253_vm2, %v1436_v44, %v1440_v46  ;;  %v8226_v44 = vld [vmem:[%s7734_s17] ss:$0 sm:$0xff] }
  0x76   : > { %1479 = vrot.lane.b32.xlu1 %v1369_v58, %s7708_s7  ;;  %v1449_v56 = vsel %vm1253_vm2, %v1444_v54, %v1448_v55  ;;  %v1452_v58 = vor.u32 %v1450_v57, %v1448_v55 }
  0x79   : > { %1481 = vrot.lane.b32.xlu0 %v1377_v1, %s7708_s7 }
  0x7a   : > { %1483 = vrot.lane.b32.xlu1 %v1385_v9, %s7708_s7 }
  0x7d   : > { %1485 = vrot.lane.b32.xlu0 %v1393_v16, %s7708_s7 }
  0x7e   : > { %1487 = vrot.lane.b32.xlu1 %v1401_v21, %s7708_s7 }
  0x81   : > { %1489 = vrot.lane.b32.xlu0 %v1409_v24, %s7708_s7 }
  0x82   : > { %1491 = vrot.lane.b32.xlu1 %v1417_v31, %s7708_s7 }
  0x85   : > { %1493 = vrot.lane.b32.xlu0 %v1425_v35, %s7708_s7 }
  0x86   : > { %1495 = vrot.lane.b32.xlu1 %v1433_v39, %s7708_s7 }
  0x89   : > { %1497 = vrot.lane.b32.xlu0 %v1441_v48, %s7708_s7 }
  0x8a   : > { %1499 = vrot.lane.b32.xlu1 %v1449_v56, %s7708_s7 }
  0x8d   : > { %1501 = vrot.lane.b32.xlu0 %v1452_v58, %s7708_s7  ;;  %s10553_s7 = sld [smem:[#allocation14_spill]] }
  0xcf   : > { %v1454_v59 = vpop.permute.xlu0 %1453 }
  0xd0   : > { %v1505_v61 = vsel %vm1503_vm3, %v7928_v3, %v1454_v59  ;;  %v1458_v2 = vpop.permute.xlu1 %1457 }
  0xd1   : > { %6606 = vmatmul.mubr.msk.bf16.vlgmr.msra.gmra.mxu0 %vm1568_vm4, %v1505_v61  ;;  %v1509_v6 = vsel %vm1503_vm3, %v7934_v5, %v1458_v2 }
  0xd2   : > { %6609 = vmatprep.mubr.msk.bf16.mxu0 %vm7707_vm1, %v10502_v0 }
  0xd3   : > { %v1456_v63 = vpop.permute.xlu0 %1455 }
  0xd4   : > { %v1507_v1 = vsel %vm1503_vm3, %v7931_v4, %v1456_v63  ;;  %v1460_v3 = vpop.permute.xlu1 %1459 }
  0xd5   : > { %v1511_v9 = vsel %vm1503_vm3, %v7942_v11, %v1460_v3 }
  0xd7   : > { %v1462_v4 = vpop.permute.xlu0 %1461 }
  0xd8   : > { %v1513_v10 = vsel %vm1503_vm3, %v7946_v13, %v1462_v4  ;;  %v1464_v5 = vpop.permute.xlu1 %1463 }
  0xd9   : > { %6610 = vmatmul.mubr.msk.bf16.gmra.mxu0 %vm1568_vm4, %v1507_v1  ;;  %v1515_v12 = vsel %vm1503_vm3, %v7952_v22, %v1464_v5 }
  0xda   : > { %6613 = vmatprep.mubr.msk.bf16.mxu0 %vm7707_vm1, %v10502_v0 }
  0xdb   : > { %v1466_v11 = vpop.permute.xlu0 %1465 }
  0xdc   : > { %v1517_v15 = vsel %vm1503_vm3, %v7956_v27, %v1466_v11  ;;  %v1468_v13 = vpop.permute.xlu1 %1467 }
  0xdd   : > { %v1519_v16 = vsel %vm1503_vm3, %v7959_v28, %v1468_v13 }
  0xdf   : > { %v1470_v22 = vpop.permute.xlu0 %1469 }
  0xe0   : > { %v1521_v17 = vsel %vm1503_vm3, %v7969_v36, %v1470_v22  ;;  %v1472_v27 = vpop.permute.xlu1 %1471 }
  0xe1   : > { %6614 = vmatmul.mubr.msk.bf16.gmra.mxu0 %vm1568_vm4, %v1509_v6  ;;  %v1523_v28 = vsel %vm1503_vm3, %v7978_v45, %v1472_v27 }
  0xe2   : > { %6617 = vmatprep.mubr.msk.bf16.mxu0 %vm7707_vm1, %v10502_v0 }
  0xe3   : > { %v1474_v19 = vpop.permute.xlu0 %1473 }
  0xe4   : > { %v1525_v36 = vsel %vm1503_vm3, %v7981_v47, %v1474_v19  ;;  %v1476_v20 = vpop.permute.xlu1 %1475 }
  0xe5   : > { %v1527_v21 = vsel %vm1503_vm3, %v7987_v51, %v1476_v20 }
  0xe7   : > { %v1478_v45 = vpop.permute.xlu0 %1477 }
  0xe8   : > { %v1529_v23 = vsel %vm1503_vm3, %v7996_v60, %v1478_v45  ;;  %v1480_v47 = vpop.permute.xlu1 %1479 }
  0xe9   : > { %6618 = vmatmul.mubr.msk.bf16.gmra.mxu0 %vm1568_vm4, %v1511_v9  ;;  %v1531_v24 = vsel %vm1503_vm3, %v8000_v62, %v1480_v47 }
  0xea   : > { %6621 = vmatprep.mubr.msk.bf16.mxu0 %vm7707_vm1, %v10502_v0 }
  0xeb   : > { %v1482_v51 = vpop.permute.xlu0 %1481 }
  0xec   : > { %v1533_v25 = vsel %vm1503_vm3, %v8007_v8, %v1482_v51  ;;  %v1484_v60 = vpop.permute.xlu1 %1483 }
  0xed   : > { %v1535_v29 = vsel %vm1503_vm3, %v8012_v14, %v1484_v60 }
  0xef   : > { %v1486_v62 = vpop.permute.xlu0 %1485 }
  0xf0   : > { %v1537_v31 = vsel %vm1503_vm3, %v8016_v18, %v1486_v62  ;;  %v1488_v8 = vpop.permute.xlu1 %1487 }
  0xf1   : > { %6622 = vmatmul.mubr.msk.bf16.gmra.mxu0 %vm1568_vm4, %v1513_v10  ;;  %v1539_v33 = vsel %vm1503_vm3, %v8027_v26, %v1488_v8 }
  0xf2   : > { %6625 = vmatprep.mubr.msk.bf16.mxu0 %vm7707_vm1, %v10502_v0 }
  0xf3   : > { %v1490_v14 = vpop.permute.xlu0 %1489 }
  0xf4   : > { %v1541_v34 = vsel %vm1503_vm3, %v8031_v32, %v1490_v14  ;;  %v1492_v18 = vpop.permute.xlu1 %1491 }
  0xf5   : > { %v1543_v35 = vsel %vm1503_vm3, %v8039_v40, %v1492_v18 }
  0xf7   : > { %v1494_v26 = vpop.permute.xlu0 %1493 }
  0xf8   : > { %v1545_v37 = vsel %vm1503_vm3, %v8046_v50, %v1494_v26  ;;  %v1496_v32 = vpop.permute.xlu1 %1495 }
  0xf9   : > { %6626 = vmatmul.mubr.msk.bf16.gmra.mxu0 %vm1568_vm4, %v1515_v12  ;;  %v1547_v38 = vsel %vm1503_vm3, %v8061_v7, %v1496_v32 }
  0xfa   : > { %6629 = vmatprep.mubr.msk.bf16.mxu0 %vm7707_vm1, %v10502_v0 }
  0xfb   : > { %v1498_v40 = vpop.permute.xlu0 %1497 }
  0xfc   : > { %v1549_v39 = vsel %vm1503_vm3, %v8074_v30, %v1498_v40  ;;  %v1500_v50 = vpop.permute.xlu1 %1499 }
  0xfd   : > { %v1551_v42 = vsel %vm1503_vm3, %v8086_v41, %v1500_v50 }
  0xff   : > { %v1502_v7 = vpop.permute.xlu0 %1501 }
 0x100   : > { %v1553_v43 = vsel %vm1503_vm3, %v8093_v49, %v1502_v7 }
 0x101   : > { %6630 = vmatmul.mubr.msk.bf16.gmra.mxu0 %vm1568_vm4, %v1517_v15 }
 0x102   : > { %6633 = vmatprep.mubr.msk.bf16.mxu0 %vm7707_vm1, %v10502_v0 }
 0x109   : > { %6634 = vmatmul.mubr.msk.bf16.gmra.mxu0 %vm1568_vm4, %v1519_v16 }
 0x10a   : > { %6637 = vmatprep.mubr.msk.bf16.mxu0 %vm7707_vm1, %v10502_v0 }
 0x111   : > { %6638 = vmatmul.mubr.msk.bf16.gmra.mxu0 %vm1568_vm4, %v1521_v17 }
 0x112   : > { %6641 = vmatprep.mubr.msk.bf16.mxu0 %vm7707_vm1, %v10502_v0 }
 0x119   : > { %6642 = vmatmul.mubr.msk.bf16.gmra.mxu0 %vm1568_vm4, %v1523_v28 }
 0x11a   : > { %6645 = vmatprep.mubr.msk.bf16.mxu0 %vm7707_vm1, %v10502_v0 }
 0x121   : > { %6646 = vmatmul.mubr.msk.bf16.gmra.mxu0 %vm1568_vm4, %v1525_v36 }
 0x122   : > { %6649 = vmatprep.mubr.msk.bf16.mxu0 %vm7707_vm1, %v10502_v0 }
 0x129   : > { %6650 = vmatmul.mubr.msk.bf16.gmra.mxu0 %vm1568_vm4, %v1527_v21 }
 0x12a   : > { %6653 = vmatprep.mubr.msk.bf16.mxu0 %vm7707_vm1, %v10502_v0 }
 0x131   : > { %6654 = vmatmul.mubr.msk.bf16.gmra.mxu0 %vm1568_vm4, %v1529_v23 }
 0x132   : > { %6657 = vmatprep.mubr.msk.bf16.mxu0 %vm7707_vm1, %v10502_v0 }
 0x139   : > { %6658 = vmatmul.mubr.msk.bf16.gmra.mxu0 %vm1568_vm4, %v1531_v24 }
 0x13a   : > { %6661 = vmatprep.mubr.msk.bf16.mxu0 %vm7707_vm1, %v10502_v0 }
 0x141   : > { %6662 = vmatmul.mubr.msk.bf16.gmra.mxu0 %vm1568_vm4, %v1533_v25 }
 0x142   : > { %6665 = vmatprep.mubr.msk.bf16.mxu0 %vm7707_vm1, %v10502_v0 }
 0x149   : > { %6666 = vmatmul.mubr.msk.bf16.gmra.mxu0 %vm1568_vm4, %v1535_v29 }
 0x14a   : > { %6669 = vmatprep.mubr.msk.bf16.mxu0 %vm7707_vm1, %v10502_v0 }
 0x151   : > { %6670 = vmatmul.mubr.msk.bf16.gmra.mxu0 %vm1568_vm4, %v1537_v31 }
 0x152   : > { %6673 = vmatprep.mubr.msk.bf16.mxu0 %vm7707_vm1, %v10502_v0 }
 0x159   : > { %6674 = vmatmul.mubr.msk.bf16.gmra.mxu0 %vm1568_vm4, %v1539_v33 }
 0x15a   : > { %6677 = vmatprep.mubr.msk.bf16.mxu0 %vm7707_vm1, %v10502_v0 }
 0x161   : > { %6678 = vmatmul.mubr.msk.bf16.gmra.mxu0 %vm1568_vm4, %v1541_v34 }
 0x162   : > { %6681 = vmatprep.mubr.msk.bf16.mxu0 %vm7707_vm1, %v10502_v0 }
 0x169   : > { %6682 = vmatmul.mubr.msk.bf16.gmra.mxu0 %vm1568_vm4, %v1543_v35 }
 0x16a   : > { %6685 = vmatprep.mubr.msk.bf16.mxu0 %vm7707_vm1, %v10502_v0 }
 0x171   : > { %6686 = vmatmul.mubr.msk.bf16.gmra.mxu0 %vm1568_vm4, %v1545_v37 }
 0x172   : > { %6689 = vmatprep.mubr.msk.bf16.mxu0 %vm7707_vm1, %v10502_v0 }
 0x179   : > { %6690 = vmatmul.mubr.msk.bf16.gmra.mxu0 %vm1568_vm4, %v1547_v38 }
 0x17a   : > { %6693 = vmatprep.mubr.msk.bf16.mxu0 %vm7707_vm1, %v10502_v0 }
 0x181   : > { %6694 = vmatmul.mubr.msk.bf16.gmra.mxu0 %vm1568_vm4, %v1549_v39 }
 0x182   : > { %6697 = vmatprep.mubr.msk.bf16.mxu0 %vm7707_vm1, %v10502_v0 }
 0x189   : > { %6698 = vmatmul.mubr.msk.bf16.gmra.mxu0 %vm1568_vm4, %v1551_v42 }
 0x18a   : > { %6701 = vmatprep.mubr.msk.bf16.mxu0 %vm7707_vm1, %v10502_v0 }
 0x191   : > { %v1657_v30 = vpop.f32.mrf.mxu0  ;;  %6702 = vmatmul.mubr.msk.bf16.gmra.mxu0 %vm1568_vm4, %v1553_v43 }
 0x192   : > { %v8230_v46 = vadd.f32 %v8226_v44, %v1657_v30 }
 0x193   : > { %v6607_v48 = vpop.f32.mrf.mxu0 }
 0x194   : > { %v1859_v41 = vsel %vm1858_vm5, %v8230_v46, 0.0 }
 0x195   : > { %1860 = vadd.xlane.f32.xlu1 %v1859_v41  ;;  %v1660_v52 = vpop.f32.mrf.mxu0 }
 0x196   : > { %v8235_v53 = vadd.f32 %v8226_v44, %v1660_v52 }
 0x197   : > { %v6608_v54 = vpop.f32.mrf.mxu0 }
 0x198   : > { %v1862_v49 = vsel %vm1858_vm5, %v8235_v53, 0.0 }
 0x199   : > { %1863 = vadd.xlane.f32.xlu0 %v1862_v49  ;;  %v1665_v55 = vpop.f32.mrf.mxu0 }
 0x19a   : > { %v8240_v56 = vadd.f32 %v8226_v44, %v1665_v55 }
 0x19b   : > { %v6611_v57 = vpop.f32.mrf.mxu0 }
 0x19c   : > { %v1865_v58 = vsel %vm1858_vm5, %v8240_v56, 0.0 }
 0x19d   : > { %1866 = vadd.xlane.f32.xlu0 %v1865_v58  ;;  %v1668_v59 = vpop.f32.mrf.mxu0 }
 0x19e   : > { %v8245_v61 = vadd.f32 %v8226_v44, %v1668_v59 }
 0x19f   : > { %v6612_v63 = vpop.f32.mrf.mxu0 }
 0x1a0   : > { %v1868_v1 = vsel %vm1858_vm5, %v8245_v61, 0.0 }
 0x1a1   : > { %1869 = vadd.xlane.f32.xlu1 %v1868_v1  ;;  %v1673_v2 = vpop.f32.mrf.mxu0 }
 0x1a2   : > { %v8250_v6 = vadd.f32 %v8226_v44, %v1673_v2 }
 0x1a3   : > { %v6615_v3 = vpop.f32.mrf.mxu0 }
 0x1a4   : > { %v1871_v9 = vsel %vm1858_vm5, %v8250_v6, 0.0 }
 0x1a5   : > { %1872 = vadd.xlane.f32.xlu0 %v1871_v9  ;;  %v1676_v4 = vpop.f32.mrf.mxu0 }
 0x1a6   : > { %v8255_v10 = vadd.f32 %v8226_v44, %v1676_v4 }
 0x1a7   : > { %v6616_v5 = vpop.f32.mrf.mxu0 }
 0x1a8   : > { %v1874_v12 = vsel %vm1858_vm5, %v8255_v10, 0.0 }
 0x1a9   : > { %1875 = vadd.xlane.f32.xlu1 %v1874_v12  ;;  %v1681_v11 = vpop.f32.mrf.mxu0 }
 0x1aa   : > { %v8260_v15 = vadd.f32 %v8226_v44, %v1681_v11 }
 0x1ab   : > { %v6619_v13 = vpop.f32.mrf.mxu0 }
 0x1ac   : > { %v1877_v16 = vsel %vm1858_vm5, %v8260_v15, 0.0 }
 0x1ad   : > { %1878 = vadd.xlane.f32.xlu0 %v1877_v16  ;;  %v1684_v22 = vpop.f32.mrf.mxu0 }
 0x1ae   : > { %v8265_v17 = vadd.f32 %v8226_v44, %v1684_v22 }
 0x1af   : > { %v6620_v27 = vpop.f32.mrf.mxu0 }
 0x1b0   : > { %v1880_v28 = vsel %vm1858_vm5, %v8265_v17, 0.0 }
 0x1b1   : > { %1881 = vadd.xlane.f32.xlu1 %v1880_v28  ;;  %v1689_v19 = vpop.f32.mrf.mxu0 }
 0x1b2   : > { %v8270_v36 = vadd.f32 %v8226_v44, %v1689_v19 }
 0x1b3   : > { %v6623_v20 = vpop.f32.mrf.mxu0 }
 0x1b4   : > { %v1883_v21 = vsel %vm1858_vm5, %v8270_v36, 0.0 }
 0x1b5   : > { %1884 = vadd.xlane.f32.xlu0 %v1883_v21  ;;  %v1692_v45 = vpop.f32.mrf.mxu0 }
 0x1b6   : > { %v8275_v23 = vadd.f32 %v8226_v44, %v1692_v45 }
 0x1b7   : > { %v6624_v47 = vpop.f32.mrf.mxu0 }
 0x1b8   : > { %v1886_v24 = vsel %vm1858_vm5, %v8275_v23, 0.0 }
 0x1b9   : > { %1887 = vadd.xlane.f32.xlu1 %v1886_v24  ;;  %v1697_v51 = vpop.f32.mrf.mxu0 }
 0x1ba   : > { %v8280_v25 = vadd.f32 %v8226_v44, %v1697_v51 }
 0x1bb   : > { %v6627_v60 = vpop.f32.mrf.mxu0 }
 0x1bc   : > { %v1889_v29 = vsel %vm1858_vm5, %v8280_v25, 0.0 }
 0x1bd   : > { %1890 = vadd.xlane.f32.xlu0 %v1889_v29  ;;  %v1700_v62 = vpop.f32.mrf.mxu0 }
 0x1be   : > { %v8285_v31 = vadd.f32 %v8226_v44, %v1700_v62 }
 0x1bf   : > { %v6628_v8 = vpop.f32.mrf.mxu0 }
 0x1c0   : > { %v1892_v33 = vsel %vm1858_vm5, %v8285_v31, 0.0 }
 0x1c1   : > { %1893 = vadd.xlane.f32.xlu1 %v1892_v33  ;;  %v1705_v14 = vpop.f32.mrf.mxu0 }
 0x1c2   : > { %v8290_v34 = vadd.f32 %v8226_v44, %v1705_v14 }
 0x1c3   : > { %v6631_v18 = vpop.f32.mrf.mxu0 }
 0x1c4   : > { %v1895_v35 = vsel %vm1858_vm5, %v8290_v34, 0.0 }
 0x1c5   : > { %1896 = vadd.xlane.f32.xlu0 %v1895_v35  ;;  %v1708_v26 = vpop.f32.mrf.mxu0 }
 0x1c6   : > { %v8295_v37 = vadd.f32 %v8226_v44, %v1708_v26 }
 0x1c7   : > { %v6632_v32 = vpop.f32.mrf.mxu0 }
 0x1c8   : > { %v1898_v38 = vsel %vm1858_vm5, %v8295_v37, 0.0 }
 0x1c9   : > { %1899 = vadd.xlane.f32.xlu1 %v1898_v38  ;;  %v1713_v40 = vpop.f32.mrf.mxu0 }
 0x1ca   : > { %v8300_v39 = vadd.f32 %v8226_v44, %v1713_v40 }
 0x1cb   : > { %v6635_v50 = vpop.f32.mrf.mxu0 }
 0x1cc   : > { %v1901_v42 = vsel %vm1858_vm5, %v8300_v39, 0.0 }
 0x1cd   : > { %1902 = vadd.xlane.f32.xlu0 %v1901_v42  ;;  %v1716_v7 = vpop.f32.mrf.mxu0 }
 0x1ce   : > { %v8305_v43 = vadd.f32 %v8226_v44, %v1716_v7 }
 0x1cf   : > { %v6636_v30 = vpop.f32.mrf.mxu0 }
 0x1d0   : > { %v1904_v48 = vsel %vm1858_vm5, %v8305_v43, 0.0 }
 0x1d1   : > { %1905 = vadd.xlane.f32.xlu1 %v1904_v48  ;;  %v1721_v41 = vpop.f32.mrf.mxu0 }
 0x1d2   : > { %v8310_v52 = vadd.f32 %v8226_v44, %v1721_v41 }
 0x1d3   : > { %v6639_v54 = vpop.f32.mrf.mxu0 }
 0x1d4   : > { %v1907_v49 = vsel %vm1858_vm5, %v8310_v52, 0.0 }
 0x1d5   : > { %1908 = vadd.xlane.f32.xlu0 %v1907_v49  ;;  %v1724_v55 = vpop.f32.mrf.mxu0 }
 0x1d6   : > { %v8315_v57 = vadd.f32 %v8226_v44, %v1724_v55 }
 0x1d7   : > { %v6640_v58 = vpop.f32.mrf.mxu0 }
 0x1d8   : > { %v1910_v59 = vsel %vm1858_vm5, %v8315_v57, 0.0 }
 0x1d9   : > { %1911 = vadd.xlane.f32.xlu1 %v1910_v59  ;;  %v1729_v63 = vpop.f32.mrf.mxu0 }
 0x1da   : > { %v8320_v1 = vadd.f32 %v8226_v44, %v1729_v63 }
 0x1db   : > { %v6643_v2 = vpop.f32.mrf.mxu0 }
 0x1dc   : > { %v1913_v3 = vsel %vm1858_vm5, %v8320_v1, 0.0 }
 0x1dd   : > { %1914 = vadd.xlane.f32.xlu0 %v1913_v3  ;;  %v1732_v9 = vpop.f32.mrf.mxu0 }
 0x1de   : > { %v8325_v4 = vadd.f32 %v8226_v44, %v1732_v9 }
 0x1df   : > { %v6644_v5 = vpop.f32.mrf.mxu0 }
 0x1e0   : > { %v1916_v12 = vsel %vm1858_vm5, %v8325_v4, 0.0 }
 0x1e1   : > { %1917 = vadd.xlane.f32.xlu1 %v1916_v12  ;;  %v1737_v11 = vpop.f32.mrf.mxu0 }
 0x1e2   : > { %v8330_v13 = vadd.f32 %v8226_v44, %v1737_v11 }
 0x1e3   : > { %v6647_v16 = vpop.f32.mrf.mxu0 }
 0x1e4   : > { %v1919_v22 = vsel %vm1858_vm5, %v8330_v13, 0.0 }
 0x1e5   : > { %1920 = vadd.xlane.f32.xlu0 %v1919_v22  ;;  %v1740_v27 = vpop.f32.mrf.mxu0 }
 0x1e6   : > { %v8335_v28 = vadd.f32 %v8226_v44, %v1740_v27 }
 0x1e7   : > { %v6648_v19 = vpop.f32.mrf.mxu0 }
 0x1e8   : > { %v1922_v20 = vsel %vm1858_vm5, %v8335_v28, 0.0 }
 0x1e9   : > { %1923 = vadd.xlane.f32.xlu1 %v1922_v20  ;;  %v1745_v21 = vpop.f32.mrf.mxu0 }
 0x1ea   : > { %v8340_v45 = vadd.f32 %v8226_v44, %v1745_v21 }
 0x1eb   : > { %v6651_v47 = vpop.f32.mrf.mxu0 }
 0x1ec   : > { %v1925_v24 = vsel %vm1858_vm5, %v8340_v45, 0.0 }
 0x1ed   : > { %1926 = vadd.xlane.f32.xlu0 %v1925_v24  ;;  %v1748_v51 = vpop.f32.mrf.mxu0 }
 0x1ee   : > { %v8345_v60 = vadd.f32 %v8226_v44, %v1748_v51 }
 0x1ef   : > { %v6652_v29 = vpop.f32.mrf.mxu0 }
 0x1f0   : > { %v1928_v62 = vsel %vm1858_vm5, %v8345_v60, 0.0 }
 0x1f1   : > { %1929 = vadd.xlane.f32.xlu1 %v1928_v62  ;;  %v1753_v8 = vpop.f32.mrf.mxu0 }
 0x1f2   : > { %v8350_v33 = vadd.f32 %v8226_v44, %v1753_v8 }
 0x1f3   : > { %v6655_v14 = vpop.f32.mrf.mxu0 }
 0x1f4   : > { %v1931_v18 = vsel %vm1858_vm5, %v8350_v33, 0.0 }
 0x1f5   : > { %1932 = vadd.xlane.f32.xlu0 %v1931_v18  ;;  %v1756_v35 = vpop.f32.mrf.mxu0 }
 0x1f6   : > { %v8355_v26 = vadd.f32 %v8226_v44, %v1756_v35 }
 0x1f7   : > { %v6656_v32 = vpop.f32.mrf.mxu0 }
 0x1f8   : > { %v1934_v38 = vsel %vm1858_vm5, %v8355_v26, 0.0 }
 0x1f9   : > { %1935 = vadd.xlane.f32.xlu1 %v1934_v38  ;;  %v1761_v40 = vpop.f32.mrf.mxu0 }
 0x1fa   : > { %v8360_v50 = vadd.f32 %v8226_v44, %v1761_v40 }
 0x1fb   : > { %v6659_v42 = vpop.f32.mrf.mxu0 }
 0x1fc   : > { %v1937_v7 = vsel %vm1858_vm5, %v8360_v50, 0.0 }
 0x1fd   : > { %1938 = vadd.xlane.f32.xlu0 %v1937_v7  ;;  %v1764_v30 = vpop.f32.mrf.mxu0 }
 0x1fe   : > { %v8365_v48 = vadd.f32 %v8226_v44, %v1764_v30 }
 0x1ff   : > { %v6660_v41 = vpop.f32.mrf.mxu0 }
 0x200   : > { %v1940_v54 = vsel %vm1858_vm5, %v8365_v48, 0.0 }
 0x201   : > { %1941 = vadd.xlane.f32.xlu1 %v1940_v54  ;;  %v1769_v49 = vpop.f32.mrf.mxu0 }
 0x202   : > { %v8370_v55 = vadd.f32 %v8226_v44, %v1769_v49 }
 0x203   : > { %v6663_v58 = vpop.f32.mrf.mxu0 }
 0x204   : > { %v1943_v59 = vsel %vm1858_vm5, %v8370_v55, 0.0 }
 0x205   : > { %1944 = vadd.xlane.f32.xlu0 %v1943_v59  ;;  %v1772_v63 = vpop.f32.mrf.mxu0 }
 0x206   : > { %v8375_v2 = vadd.f32 %v8226_v44, %v1772_v63 }
 0x207   : > { %v6664_v3 = vpop.f32.mrf.mxu0 }
 0x208   : > { %v1946_v9 = vsel %vm1858_vm5, %v8375_v2, 0.0 }
 0x209   : > { %1947 = vadd.xlane.f32.xlu1 %v1946_v9  ;;  %v1777_v5 = vpop.f32.mrf.mxu0 }
 0x20a   : > { %v8380_v12 = vadd.f32 %v8226_v44, %v1777_v5 }
 0x20b   : > { %v6667_v11 = vpop.f32.mrf.mxu0 }
 0x20c   : > { %v1949_v16 = vsel %vm1858_vm5, %v8380_v12, 0.0 }
 0x20d   : > { %1950 = vadd.xlane.f32.xlu0 %v1949_v16  ;;  %v1780_v22 = vpop.f32.mrf.mxu0 }
 0x20e   : > { %v8385_v27 = vadd.f32 %v8226_v44, %v1780_v22 }
 0x20f   : > { %v6668_v19 = vpop.f32.mrf.mxu0 }
 0x210   : > { %v1952_v20 = vsel %vm1858_vm5, %v8385_v27, 0.0 }
 0x211   : > { %1953 = vadd.xlane.f32.xlu1 %v1952_v20  ;;  %v1785_v21 = vpop.f32.mrf.mxu0 }
 0x212   : > { %v8390_v47 = vadd.f32 %v8226_v44, %v1785_v21 }
 0x213   : > { %v6671_v24 = vpop.f32.mrf.mxu0 }
 0x214   : > { %v1955_v51 = vsel %vm1858_vm5, %v8390_v47, 0.0 }
 0x215   : > { %1956 = vadd.xlane.f32.xlu0 %v1955_v51  ;;  %v1788_v29 = vpop.f32.mrf.mxu0 }
 0x216   : > { %v8395_v62 = vadd.f32 %v8226_v44, %v1788_v29 }
 0x217   : > { %v6672_v8 = vpop.f32.mrf.mxu0 }
 0x218   : > { %v1958_v14 = vsel %vm1858_vm5, %v8395_v62, 0.0 }
 0x219   : > { %1959 = vadd.xlane.f32.xlu1 %v1958_v14  ;;  %v1793_v18 = vpop.f32.mrf.mxu0 }
 0x21a   : > { %v8400_v35 = vadd.f32 %v8226_v44, %v1793_v18 }
 0x21b   : > { %v6675_v32 = vpop.f32.mrf.mxu0 }
 0x21c   : > { %v1961_v38 = vsel %vm1858_vm5, %v8400_v35, 0.0 }
 0x21d   : > { %1962 = vadd.xlane.f32.xlu0 %v1961_v38  ;;  %v1796_v40 = vpop.f32.mrf.mxu0 }
 0x21e   : > { %v8405_v42 = vadd.f32 %v8226_v44, %v1796_v40  ;;  %v1861_v7 = vpop.xlane.xlu1 %1860 }
 0x21f   : > { %v2011_v30 = vmul.f32 0.03125, %v1861_v7  ;;  %v6676_v41 = vpop.f32.mrf.mxu0 }
 0x220   : > { %v1964_v54 = vsel %vm1858_vm5, %v8405_v42, 0.0 }
 0x221   : > { %v8410_v49 = vsub.f32 %v8230_v46, %v2011_v30  ;;  %1965 = vadd.xlane.f32.xlu1 %v1964_v54  ;;  %v1801_v58 = vpop.f32.mrf.mxu0 }
 0x222   : > { %v8413_v59 = vadd.f32 %v8226_v44, %v1801_v58  ;;  %v1864_v63 = vpop.xlane.xlu0 %1863 }
 0x223   : > { %v2012_v3 = vmul.f32 0.03125, %v1864_v63  ;;  %v6679_v9 = vpop.f32.mrf.mxu0  ;;  %v2111_v5 = vmul.f32 %v8410_v49, %v8410_v49 }
 0x224   : > { %v1967_v11 = vsel %vm1858_vm5, %v8413_v59, 0.0 }
 0x225   : > { %v8420_v16 = vsub.f32 %v8235_v53, %v2012_v3  ;;  %1968 = vadd.xlane.f32.xlu0 %v1967_v11  ;;  %v1804_v46 = vpop.f32.mrf.mxu0  ;;  %v2161_v22 = vsel %vm1858_vm5, %v2111_v5, 0.0 }
 0x226   : > { %v8424_v19 = vadd.f32 %v8226_v44, %v1804_v46  ;;  %2162 = vadd.xlane.f32.xlu1 %v2161_v22  ;;  %v1867_v20 = vpop.xlane.xlu0 %1866 }
 0x227   : > { %v2013_v21 = vmul.f32 0.03125, %v1867_v20  ;;  %v6680_v24 = vpop.f32.mrf.mxu0  ;;  %v2112_v51 = vmul.f32 %v8420_v16, %v8420_v16 }
 0x228   : > { %v1970_v29 = vsel %vm1858_vm5, %v8424_v19, 0.0 }
 0x229   : > { %v8431_v53 = vsub.f32 %v8240_v56, %v2013_v21  ;;  %v1809_v8 = vpop.f32.mrf.mxu0  ;;  %v2164_v14 = vsel %vm1858_vm5, %v2112_v51, 0.0 }
 0x22a   : > { %v8435_v18 = vadd.f32 %v8226_v44, %v1809_v8  ;;  %v1870_v32 = vpop.xlane.xlu1 %1869  ;;  %1971 = vadd.xlane.f32.xlu1 %v1970_v29  ;;  %2165 = vadd.xlane.f32.xlu0 %v2164_v14 }
 0x22b   : > { %v2014_v38 = vmul.f32 0.03125, %v1870_v32  ;;  %v6683_v40 = vpop.f32.mrf.mxu0  ;;  %v2113_v7 = vmul.f32 %v8431_v53, %v8431_v53 }
 0x22c   : > { %v1973_v30 = vsel %vm1858_vm5, %v8435_v18, 0.0 }
 0x22d   : > { %v8442_v56 = vsub.f32 %v8245_v61, %v2014_v38  ;;  %v1812_v41 = vpop.f32.mrf.mxu0  ;;  %v2167_v54 = vsel %vm1858_vm5, %v2113_v7, 0.0 }
 0x22e   : > { %v8446_v58 = vadd.f32 %v8226_v44, %v1812_v41  ;;  %1974 = vadd.xlane.f32.xlu0 %v1973_v30  ;;  %2168 = vadd.xlane.f32.xlu1 %v2167_v54  ;;  %v1873_v63 = vpop.xlane.xlu0 %1872 }
 0x22f   : > { %v2015_v3 = vmul.f32 0.03125, %v1873_v63  ;;  %v6684_v9 = vpop.f32.mrf.mxu0  ;;  %v2114_v5 = vmul.f32 %v8442_v56, %v8442_v56 }
 0x230   : > { %v1976_v11 = vsel %vm1858_vm5, %v8446_v58, 0.0 }
 0x231   : > { %v8453_v61 = vsub.f32 %v8250_v6, %v2015_v3  ;;  %v1817_v46 = vpop.f32.mrf.mxu0  ;;  %v2170_v22 = vsel %vm1858_vm5, %v2114_v5, 0.0 }
 0x232   : > { %v8457_v20 = vadd.f32 %v8226_v44, %v1817_v46  ;;  %v1876_v21 = vpop.xlane.xlu1 %1875  ;;  %2171 = vadd.xlane.f32.xlu0 %v2170_v22  ;;  %1977 = vadd.xlane.f32.xlu1 %v1976_v11 }
 0x233   : > { %v2016_v24 = vmul.f32 0.03125, %v1876_v21  ;;  %v6687_v51 = vpop.f32.mrf.mxu0  ;;  %v2115_v29 = vmul.f32 %v8453_v61, %v8453_v61 }
 0x234   : > { %v1979_v8 = vsel %vm1858_vm5, %v8457_v20, 0.0 }
 0x235   : > { %v8464_v6 = vsub.f32 %v8255_v10, %v2016_v24  ;;  %v1820_v14 = vpop.f32.mrf.mxu0  ;;  %v2173_v32 = vsel %vm1858_vm5, %v2115_v29, 0.0 }
 0x236   : > { %v8468_v38 = vadd.f32 %v8226_v44, %v1820_v14  ;;  %1980 = vadd.xlane.f32.xlu0 %v1979_v8  ;;  %2174 = vadd.xlane.f32.xlu1 %v2173_v32  ;;  %v1879_v40 = vpop.xlane.xlu0 %1878 }
 0x237   : > { %v2017_v7 = vmul.f32 0.03125, %v1879_v40  ;;  %v6688_v30 = vpop.f32.mrf.mxu0  ;;  %v2116_v10 = vmul.f32 %v8464_v6, %v8464_v6 }
 0x238   : > { %v1982_v41 = vsel %vm1858_vm5, %v8468_v38, 0.0 }
 0x239   : > { %v8473_v54 = vsub.f32 %v8260_v15, %v2017_v7  ;;  %v1825_v63 = vpop.f32.mrf.mxu0  ;;  %v2176_v24 = vsel %vm1858_vm5, %v2116_v10, 0.0 }
 0x23a   : > { %v8478_v3 = vadd.f32 %v8226_v44, %v1825_v63  ;;  %v1882_v9 = vpop.xlane.xlu1 %1881  ;;  %1983 = vadd.xlane.f32.xlu0 %v1982_v41 }
 0x23b   : > { %v2018_v5 = vmul.f32 0.03125, %v1882_v9  ;;  %v6691_v11 = vpop.f32.mrf.mxu0  ;;  %v2117_v22 = vmul.f32 %v8473_v54, %v8473_v54 }
 0x23c   : > { %v1985_v46 = vsel %vm1858_vm5, %v8478_v3, 0.0 }
 0x23d   : > { %v8485_v15 = vsub.f32 %v8265_v17, %v2018_v5  ;;  %v1828_v21 = vpop.f32.mrf.mxu0  ;;  %1986 = vadd.xlane.f32.xlu1 %v1985_v46  ;;  %v2179_v32 = vsel %vm1858_vm5, %v2117_v22, 0.0 }
 0x23e   : > { %v8489_v51 = vadd.f32 %v8226_v44, %v1828_v21  ;;  %2177 = vadd.xlane.f32.xlu0 %v2176_v24  ;;  %v1885_v29 = vpop.xlane.xlu0 %1884 }
 0x23f   : > { %v2019_v8 = vmul.f32 0.03125, %v1885_v29  ;;  %v6692_v14 = vpop.f32.mrf.mxu0  ;;  %v2118_v30 = vmul.f32 %v8485_v15, %v8485_v15 }
 0x240   : > { %v1988_v40 = vsel %vm1858_vm5, %v8489_v51, 0.0 }
 0x241   : > { %v8495_v7 = vsub.f32 %v8270_v36, %v2019_v8  ;;  %v1833_v17 = vpop.f32.mrf.mxu0  ;;  %2180 = vadd.xlane.f32.xlu1 %v2179_v32  ;;  %v2182_v22 = vsel %vm1858_vm5, %v2118_v30, 0.0 }
 0x242   : > { %v8500_v41 = vadd.f32 %v8226_v44, %v1833_v17  ;;  %v1888_v63 = vpop.xlane.xlu1 %1887  ;;  %1989 = vadd.xlane.f32.xlu0 %v1988_v40 }
 0x243   : > { %v2020_v10 = vmul.f32 0.03125, %v1888_v63  ;;  %v6695_v9 = vpop.f32.mrf.mxu0  ;;  %v2119_v11 = vmul.f32 %v8495_v7, %v8495_v7 }
 0x244   : > { %v1991_v5 = vsel %vm1858_vm5, %v8500_v41, 0.0 }
 0x245   : > { %v8507_v36 = vsub.f32 %v8275_v23, %v2020_v10  ;;  %v1836_v46 = vpop.f32.mrf.mxu0  ;;  %1992 = vadd.xlane.f32.xlu1 %v1991_v5  ;;  %v2185_v14 = vsel %vm1858_vm5, %v2119_v11, 0.0 }
 0x246   : > { %v8511_v21 = vadd.f32 %v8226_v44, %v1836_v46  ;;  %2183 = vadd.xlane.f32.xlu0 %v2182_v22  ;;  %v1891_v24 = vpop.xlane.xlu0 %1890 }
 0x247   : > { %v2021_v29 = vmul.f32 0.03125, %v1891_v24  ;;  %v6696_v8 = vpop.f32.mrf.mxu0  ;;  %v2120_v17 = vmul.f32 %v8507_v36, %v8507_v36 }
 0x248   : > { %v1994_v32 = vsel %vm1858_vm5, %v8511_v21, 0.0 }
 0x249   : > { %v8517_v40 = vsub.f32 %v8280_v25, %v2021_v29  ;;  %v1841_v23 = vpop.f32.mrf.mxu0  ;;  %2186 = vadd.xlane.f32.xlu1 %v2185_v14  ;;  %v2188_v22 = vsel %vm1858_vm5, %v2120_v17, 0.0 }
 0x24a   : > { %v8522_v30 = vadd.f32 %v8226_v44, %v1841_v23  ;;  %v1894_v63 = vpop.xlane.xlu1 %1893  ;;  %1995 = vadd.xlane.f32.xlu0 %v1994_v32 }
 0x24b   : > { %v2022_v10 = vmul.f32 0.03125, %v1894_v63  ;;  %v6699_v9 = vpop.f32.mrf.mxu0  ;;  %v2121_v11 = vmul.f32 %v8517_v40, %v8517_v40 }
 0x24c   : > { %v1997_v5 = vsel %vm1858_vm5, %v8522_v30, 0.0 }
 0x24d   : > { %v8529_v25 = vsub.f32 %v8285_v31, %v2022_v10  ;;  %v1844_v46 = vpop.f32.mrf.mxu0  ;;  %1998 = vadd.xlane.f32.xlu1 %v1997_v5  ;;  %v2191_v32 = vsel %vm1858_vm5, %v2121_v11, 0.0 }
 0x24e   : > { %v8533_v24 = vadd.f32 %v8226_v44, %v1844_v46  ;;  %2189 = vadd.xlane.f32.xlu0 %v2188_v22  ;;  %v1897_v29 = vpop.xlane.xlu0 %1896 }
 0x24f   : > { %v2023_v8 = vmul.f32 0.03125, %v1897_v29  ;;  %v6700_v14 = vpop.f32.mrf.mxu0  ;;  %v2122_v17 = vmul.f32 %v8529_v25, %v8529_v25 }
 0x250   : > { %v2000_v23 = vsel %vm1858_vm5, %v8533_v24, 0.0 }
 0x251   : > { %v8539_v63 = vsub.f32 %v8290_v34, %v2023_v8  ;;  %v1849_v31 = vpop.f32.mrf.mxu0  ;;  %2192 = vadd.xlane.f32.xlu1 %v2191_v32  ;;  %v2194_v8 = vsel %vm1858_vm5, %v2122_v17, 0.0 }
 0x252   : > { %v8544_v10 = vadd.f32 %v8226_v44, %v1849_v31  ;;  %v1900_v9 = vpop.xlane.xlu1 %1899  ;;  %2001 = vadd.xlane.f32.xlu0 %v2000_v23 }
 0x253   : > { %v2024_v5 = vmul.f32 0.03125, %v1900_v9  ;;  %v6703_v46 = vpop.f32.mrf.mxu0  ;;  %v2123_v22 = vmul.f32 %v8539_v63, %v8539_v63 }
 0x254   : > { %v2003_v11 = vsel %vm1858_vm5, %v8544_v10, 0.0 }
 0x255   : > { %v8551_v34 = vsub.f32 %v8295_v37, %v2024_v5  ;;  %v1852_v29 = vpop.f32.mrf.mxu0  ;;  %2004 = vadd.xlane.f32.xlu1 %v2003_v11  ;;  %v2197_v9 = vsel %vm1858_vm5, %v2123_v22, 0.0 }
 0x256   : > { %v8555_v14 = vadd.f32 %v8226_v44, %v1852_v29  ;;  %2195 = vadd.xlane.f32.xlu0 %v2194_v8  ;;  %v1903_v32 = vpop.xlane.xlu0 %1902 }
 0x257   : > { %v2025_v23 = vmul.f32 0.03125, %v1903_v32  ;;  %v6704_v31 = vpop.f32.mrf.mxu0  ;;  %v2124_v37 = vmul.f32 %v8551_v34, %v8551_v34 }
 0x258   : > { %v2007_v46 = vsel %vm2006_vm6, %v8555_v14, 0.0 }
 0x259   : > { %v8563_v5 = vsub.f32 %v8300_v39, %v2025_v23  ;;  %2198 = vadd.xlane.f32.xlu1 %v2197_v9  ;;  %v2200_v29 = vsel %vm1858_vm5, %v2124_v37, 0.0 }
 0x25a   : > { %v1906_v17 = vpop.xlane.xlu1 %1905  ;;  %2008 = vadd.xlane.f32.xlu0 %v2007_v46 }
 0x25b   : > { %v2026_v44 = vmul.f32 0.03125, %v1906_v17  ;;  %v2125_v11 = vmul.f32 %v8563_v5, %v8563_v5 }
 0x25d   : > { %v8569_v22 = vsub.f32 %v8305_v43, %v2026_v44  ;;  %2201 = vadd.xlane.f32.xlu1 %v2200_v29  ;;  %v2203_v8 = vsel %vm1858_vm5, %v2125_v11, 0.0 }
 0x25e   : > { %2204 = vadd.xlane.f32.xlu0 %v2203_v8  ;;  %v1909_v32 = vpop.xlane.xlu0 %1908 }
 0x25f   : > { %v2027_v31 = vmul.f32 0.03125, %v1909_v32  ;;  %v2126_v39 = vmul.f32 %v8569_v22, %v8569_v22 }
 0x261   : > { %v8575_v23 = vsub.f32 %v8310_v52, %v2027_v31  ;;  %v2206_v9 = vsel %vm1858_vm5, %v2126_v39, 0.0 }
 0x262   : > { %v1912_v46 = vpop.xlane.xlu1 %1911  ;;  %2207 = vadd.xlane.f32.xlu1 %v2206_v9 }
 0x263   : > { %v2028_v37 = vmul.f32 0.03125, %v1912_v46  ;;  %v2127_v43 = vmul.f32 %v8575_v23, %v8575_v23 }
 0x265   : > { %v8581_v17 = vsub.f32 %v8315_v57, %v2028_v37  ;;  %v2209_v44 = vsel %vm1858_vm5, %v2127_v43, 0.0 }
 0x266   : > { %2210 = vadd.xlane.f32.xlu0 %v2209_v44  ;;  %v1915_v11 = vpop.xlane.xlu0 %1914 }
 0x267   : > { %v2029_v29 = vmul.f32 0.03125, %v1915_v11  ;;  %v2128_v52 = vmul.f32 %v8581_v17, %v8581_v17 }
 0x269   : > { %v8587_v8 = vsub.f32 %v8320_v1, %v2029_v29  ;;  %v2212_v32 = vsel %vm1858_vm5, %v2128_v52, 0.0 }
 0x26a   : > { %v1918_v31 = vpop.xlane.xlu1 %1917  ;;  %2213 = vadd.xlane.f32.xlu1 %v2212_v32 }
 0x26b   : > { %v2030_v39 = vmul.f32 0.03125, %v1918_v31  ;;  %v2129_v57 = vmul.f32 %v8587_v8, %v8587_v8 }
 0x26d   : > { %v8593_v9 = vsub.f32 %v8325_v4, %v2030_v39  ;;  %v2215_v46 = vsel %vm1858_vm5, %v2129_v57, 0.0 }
 0x26e   : > { %2216 = vadd.xlane.f32.xlu0 %v2215_v46  ;;  %v1921_v37 = vpop.xlane.xlu0 %1920 }
 0x26f   : > { %v2031_v43 = vmul.f32 0.03125, %v1921_v37  ;;  %v2130_v1 = vmul.f32 %v8593_v9, %v8593_v9 }
 0x271   : > { %v8599_v44 = vsub.f32 %v8330_v13, %v2031_v43  ;;  %v2218_v11 = vsel %vm1858_vm5, %v2130_v1, 0.0 }
 0x272   : > { %v1924_v29 = vpop.xlane.xlu1 %1923  ;;  %2219 = vadd.xlane.f32.xlu1 %v2218_v11 }
 0x273   : > { %v2032_v52 = vmul.f32 0.03125, %v1924_v29  ;;  %v2131_v4 = vmul.f32 %v8599_v44, %v8599_v44 }
 0x275   : > { %v8605_v32 = vsub.f32 %v8335_v28, %v2032_v52  ;;  %v2221_v31 = vsel %vm1858_vm5, %v2131_v4, 0.0 }
 0x276   : > { %2222 = vadd.xlane.f32.xlu0 %v2221_v31  ;;  %v1927_v39 = vpop.xlane.xlu0 %1926 }
 0x277   : > { %v2033_v57 = vmul.f32 0.03125, %v1927_v39  ;;  %v2132_v13 = vmul.f32 %v8605_v32, %v8605_v32 }
 0x279   : > { %v8611_v46 = vsub.f32 %v8340_v45, %v2033_v57  ;;  %v2224_v37 = vsel %vm1858_vm5, %v2132_v13, 0.0 }
 0x27a   : > { %v1930_v43 = vpop.xlane.xlu1 %1929  ;;  %2225 = vadd.xlane.f32.xlu1 %v2224_v37 }
 0x27b   : > { %v2034_v1 = vmul.f32 0.03125, %v1930_v43  ;;  %v2133_v28 = vmul.f32 %v8611_v46, %v8611_v46 }
 0x27d   : > { %v8617_v11 = vsub.f32 %v8345_v60, %v2034_v1  ;;  %v2227_v29 = vsel %vm1858_vm5, %v2133_v28, 0.0 }
 0x27e   : > { %2228 = vadd.xlane.f32.xlu0 %v2227_v29  ;;  %v1933_v52 = vpop.xlane.xlu0 %1932 }
 0x27f   : > { %v2035_v4 = vmul.f32 0.03125, %v1933_v52  ;;  %v2134_v45 = vmul.f32 %v8617_v11, %v8617_v11 }
 0x281   : > { %v8623_v31 = vsub.f32 %v8350_v33, %v2035_v4  ;;  %v2230_v39 = vsel %vm1858_vm5, %v2134_v45, 0.0 }
 0x282   : > { %v1936_v57 = vpop.xlane.xlu1 %1935  ;;  %2231 = vadd.xlane.f32.xlu1 %v2230_v39 }
 0x283   : > { %v2036_v13 = vmul.f32 0.03125, %v1936_v57  ;;  %v2135_v60 = vmul.f32 %v8623_v31, %v8623_v31 }
 0x285   : > { %v8629_v37 = vsub.f32 %v8355_v26, %v2036_v13  ;;  %v2233_v43 = vsel %vm1858_vm5, %v2135_v60, 0.0 }
 0x286   : > { %2234 = vadd.xlane.f32.xlu0 %v2233_v43  ;;  %v1939_v1 = vpop.xlane.xlu0 %1938 }
 0x287   : > { %v2037_v28 = vmul.f32 0.03125, %v1939_v1  ;;  %v2136_v33 = vmul.f32 %v8629_v37, %v8629_v37 }
 0x289   : > { %v8635_v29 = vsub.f32 %v8360_v50, %v2037_v28  ;;  %v2236_v52 = vsel %vm1858_vm5, %v2136_v33, 0.0 }
 0x28a   : > { %v1942_v4 = vpop.xlane.xlu1 %1941  ;;  %2237 = vadd.xlane.f32.xlu1 %v2236_v52 }
 0x28b   : > { %v2038_v45 = vmul.f32 0.03125, %v1942_v4  ;;  %v2137_v26 = vmul.f32 %v8635_v29, %v8635_v29 }
 0x28d   : > { %v8641_v39 = vsub.f32 %v8365_v48, %v2038_v45  ;;  %v2239_v57 = vsel %vm1858_vm5, %v2137_v26, 0.0 }
 0x28e   : > { %2240 = vadd.xlane.f32.xlu0 %v2239_v57  ;;  %v1945_v13 = vpop.xlane.xlu0 %1944 }
 0x28f   : > { %v2039_v60 = vmul.f32 0.03125, %v1945_v13  ;;  %v2138_v50 = vmul.f32 %v8641_v39, %v8641_v39 }
 0x291   : > { %v8647_v43 = vsub.f32 %v8370_v55, %v2039_v60  ;;  %v2242_v1 = vsel %vm1858_vm5, %v2138_v50, 0.0 }
 0x292   : > { %v1948_v28 = vpop.xlane.xlu1 %1947  ;;  %2243 = vadd.xlane.f32.xlu1 %v2242_v1 }
 0x293   : > { %v2040_v33 = vmul.f32 0.03125, %v1948_v28  ;;  %v2139_v48 = vmul.f32 %v8647_v43, %v8647_v43 }
 0x295   : > { %v8653_v52 = vsub.f32 %v8375_v2, %v2040_v33  ;;  %v2245_v4 = vsel %vm1858_vm5, %v2139_v48, 0.0 }
 0x296   : > { %2246 = vadd.xlane.f32.xlu0 %v2245_v4  ;;  %v1951_v45 = vpop.xlane.xlu0 %1950 }
 0x297   : > { %v2041_v26 = vmul.f32 0.03125, %v1951_v45  ;;  %v2140_v55 = vmul.f32 %v8653_v52, %v8653_v52 }
 0x299   : > { %v8659_v57 = vsub.f32 %v8380_v12, %v2041_v26  ;;  %v2248_v13 = vsel %vm1858_vm5, %v2140_v55, 0.0 }
 0x29a   : > { %v1954_v60 = vpop.xlane.xlu1 %1953  ;;  %2249 = vadd.xlane.f32.xlu1 %v2248_v13 }
 0x29b   : > { %v2042_v50 = vmul.f32 0.03125, %v1954_v60  ;;  %v2141_v2 = vmul.f32 %v8659_v57, %v8659_v57 }
 0x29d   : > { %v8665_v1 = vsub.f32 %v8385_v27, %v2042_v50  ;;  %v2251_v28 = vsel %vm1858_vm5, %v2141_v2, 0.0 }
 0x29e   : > { %2252 = vadd.xlane.f32.xlu0 %v2251_v28  ;;  %v1957_v33 = vpop.xlane.xlu0 %1956 }
 0x29f   : > { %v2043_v48 = vmul.f32 0.03125, %v1957_v33  ;;  %v2142_v12 = vmul.f32 %v8665_v1, %v8665_v1 }
 0x2a1   : > { %v8671_v4 = vsub.f32 %v8390_v47, %v2043_v48  ;;  %v2254_v45 = vsel %vm1858_vm5, %v2142_v12, 0.0 }
 0x2a2   : > { %v1960_v26 = vpop.xlane.xlu1 %1959  ;;  %2255 = vadd.xlane.f32.xlu1 %v2254_v45 }
 0x2a3   : > { %v2044_v55 = vmul.f32 0.03125, %v1960_v26  ;;  %v2143_v27 = vmul.f32 %v8671_v4, %v8671_v4 }
 0x2a5   : > { %v8677_v13 = vsub.f32 %v8395_v62, %v2044_v55  ;;  %v2257_v60 = vsel %vm1858_vm5, %v2143_v27, 0.0 }
 0x2a6   : > { %2258 = vadd.xlane.f32.xlu0 %v2257_v60  ;;  %v1963_v50 = vpop.xlane.xlu0 %1962 }
 0x2a7   : > { %v2045_v2 = vmul.f32 0.03125, %v1963_v50  ;;  %v2144_v47 = vmul.f32 %v8677_v13, %v8677_v13 }
 0x2a9   : > { %v8683_v28 = vsub.f32 %v8400_v35, %v2045_v2  ;;  %v2260_v33 = vsel %vm1858_vm5, %v2144_v47, 0.0 }
 0x2aa   : > { %v1966_v48 = vpop.xlane.xlu1 %1965  ;;  %2261 = vadd.xlane.f32.xlu1 %v2260_v33 }
 0x2ab   : > { %v2046_v12 = vmul.f32 0.03125, %v1966_v48  ;;  %v2145_v62 = vmul.f32 %v8683_v28, %v8683_v28 }
 0x2ad   : > { %v8689_v45 = vsub.f32 %v8405_v42, %v2046_v12  ;;  %v2263_v26 = vsel %vm1858_vm5, %v2145_v62, 0.0 }
 0x2ae   : > { %2264 = vadd.xlane.f32.xlu0 %v2263_v26  ;;  %v1969_v55 = vpop.xlane.xlu0 %1968 }
 0x2af   : > { %10530 = vst [vmem:[#allocation26_spill] sm:$0xff] %v8689_v45  ;;  %v2047_v27 = vmul.f32 0.03125, %v1969_v55  ;;  %v2163_v60 = vpop.xlane.xlu1 %2162  ;;  %v2146_v35 = vmul.f32 %v8689_v45, %v8689_v45 }
 0x2b0   : > { %v2311_v50 = vmul.f32 0.03125, %v2163_v60 }
 0x2b1   : > { %v8695_v2 = vsub.f32 %v8413_v59, %v2047_v27  ;;  %v2266_v47 = vsel %vm1858_vm5, %v2146_v35, 0.0 }
 0x2b2   : > { %v2361_v33 = vadd.f32 1e-05, %v2311_v50  ;;  %2267 = vadd.xlane.f32.xlu1 %v2266_v47 }
 0x2b3   : > { %v1972_v48 = vpop.xlane.xlu1 %1971  ;;  %v2166_v42 = vpop.xlane.xlu0 %2165  ;;  %v2147_v12 = vmul.f32 %v8695_v2, %v8695_v2 }
 0x2b4   : > { %7235 = vrsqrt.f32 %v2361_v33  ;;  %v2048_v62 = vmul.f32 0.03125, %v1972_v48  ;;  %v2312_v26 = vmul.f32 0.03125, %v2166_v42 }
 0x2b5   : > { %v2269_v55 = vsel %vm1858_vm5, %v2147_v12, 0.0 }
 0x2b6   : > { %v8702_v0 = vsub.f32 %v8424_v19, %v2048_v62  ;;  %v2362_v60 = vadd.f32 1e-05, %v2312_v26  ;;  %2270 = vadd.xlane.f32.xlu0 %v2269_v55 }
 0x2b7   : > { %v2169_v59 = vpop.xlane.xlu1 %2168  ;;  %v1975_v27 = vpop.xlane.xlu0 %1974 }
 0x2b8   : > { %7237 = vrsqrt.f32 %v2362_v60  ;;  %v2313_v35 = vmul.f32 0.03125, %v2169_v59  ;;  %v2049_v50 = vmul.f32 0.03125, %v1975_v27  ;;  %v2148_v47 = vmul.f32 %v8702_v0, %v8702_v0 }
 0x2ba   : > { %v2363_v45 = vadd.f32 1e-05, %v2313_v35  ;;  %v8707_v33 = vsub.f32 %v8435_v18, %v2049_v50  ;;  %v2272_v48 = vsel %vm1858_vm5, %v2148_v47, 0.0 }
 0x2bb   : > { %v1978_v42 = vpop.xlane.xlu1 %1977  ;;  %2273 = vadd.xlane.f32.xlu1 %v2272_v48  ;;  %v2172_v19 = vpop.xlane.xlu0 %2171  ;;  %v8719_v48 = vld [vmem:[%s7739_s21] ss:$0 sm:$0xff] }
 0x2bc   : > { %7239 = vrsqrt.f32 %v2363_v45  ;;  %v2050_v12 = vmul.f32 0.03125, %v1978_v42  ;;  %v2314_v62 = vmul.f32 0.03125, %v2172_v19  ;;  %v2149_v26 = vmul.f32 %v8707_v33, %v8707_v33 }
 0x2be   : > { %v8713_v55 = vsub.f32 %v8446_v58, %v2050_v12  ;;  %v2364_v60 = vadd.f32 1e-05, %v2314_v62  ;;  %v2275_v18 = vsel %vm1858_vm5, %v2149_v26, 0.0  ;;  %v8727_v62 = vld [vmem:[%s7744_s25] ss:$0 sm:$0xff] }
 0x2bf   : > { %v2175_v59 = vpop.xlane.xlu1 %2174  ;;  %2276 = vadd.xlane.f32.xlu0 %v2275_v18  ;;  %v1981_v27 = vpop.xlane.xlu0 %1980 }
 0x2c0   : > { %10531 = vst [vmem:[#allocation27_spill] sm:$0xff] %v8713_v55  ;;  %7241 = vrsqrt.f32 %v2364_v60  ;;  %v2315_v35 = vmul.f32 0.03125, %v2175_v59  ;;  %v2051_v50 = vmul.f32 0.03125, %v1981_v27  ;;  %v2150_v45 = vmul.f32 %v8713_v55, %v8713_v55 }
 0x2c1   : > { %v7236_v47 = vpop.eup %7235 }
 0x2c2   : > { %v2461_v42 = vmul.f32 %v7236_v47, %v8410_v49  ;;  %v2365_v58 = vadd.f32 1e-05, %v2315_v35  ;;  %v8723_v19 = vsub.f32 %v8457_v20, %v2051_v50  ;;  %v2278_v12 = vsel %vm1858_vm5, %v2150_v45, 0.0 }
 0x2c3   : > { %2279 = vadd.xlane.f32.xlu1 %v2278_v12  ;;  %v1984_v26 = vpop.xlane.xlu0 %1983 }
 0x2c4   : > { %10532 = vst [vmem:[#allocation28_spill] sm:$0xff] %v8723_v19  ;;  %v2517_v60 = vmul.f32 %v8719_v48, %v2461_v42  ;;  %7243 = vrsqrt.f32 %v2365_v58  ;;  %v2052_v18 = vmul.f32 0.03125, %v1984_v26  ;;  %v2151_v59 = vmul.f32 %v8723_v19, %v8723_v19 }
 0x2c5   : > { %v7238_v27 = vpop.eup %7237 }
 0x2c6   : > { %v8733_v49 = vadd.f32 %v8727_v62, %v2517_v60  ;;  %v2462_v20 = vmul.f32 %v7238_v27, %v8420_v16  ;;  %v8737_v35 = vsub.f32 %v8468_v38, %v2052_v18  ;;  %v1987_v50 = vpop.xlane.xlu1 %1986  ;;  %v2281_v45 = vsel %vm1858_vm5, %v2151_v59, 0.0 }
 0x2c7   : > { %v2053_v47 = vmul.f32 0.03125, %v1987_v50  ;;  %2282 = vadd.xlane.f32.xlu0 %v2281_v45  ;;  %v2178_v42 = vpop.xlane.xlu0 %2177 }
 0x2c8   : > { %10533 = vst [vmem:[#allocation29_spill] sm:$0xff] %v8737_v35  ;;  %v2673_v58 = vmul.f32 0.044715, %v8733_v49  ;;  %v2518_v12 = vmul.f32 %v8719_v48, %v2462_v20  ;;  %v2316_v26 = vmul.f32 0.03125, %v2178_v42  ;;  %v2152_v16 = vmul.f32 %v8737_v35, %v8737_v35 }
 0x2c9   : > { %v7240_v19 = vpop.eup %7239  ;;  %v8743_v60 = vsub.f32 %v8478_v3, %v2053_v47 }
 0x2ca   : > { %v2723_v38 = vmul.f32 %v2673_v58, %v8733_v49  ;;  %v8749_v18 = vadd.f32 %v8727_v62, %v2518_v12  ;;  %v2463_v59 = vmul.f32 %v7240_v19, %v8431_v53  ;;  %v2366_v27 = vadd.f32 1e-05, %v2316_v26  ;;  %v2181_v50 = vpop.xlane.xlu1 %2180 }
 0x2cb   : > { %10534 = vst [vmem:[#allocation30_spill] sm:$0xff] %v8743_v60  ;;  %v2317_v45 = vmul.f32 0.03125, %v2181_v50  ;;  %v2284_v20 = vsel %vm1858_vm5, %v2152_v16, 0.0  ;;  %v1990_v42 = vpop.xlane.xlu0 %1989  ;;  %v2153_v3 = vmul.f32 %v8743_v60, %v8743_v60 }
 0x2cc   : > { %v2773_v47 = vmul.f32 %v2723_v38, %v8733_v49  ;;  %v2674_v35 = vmul.f32 0.044715, %v8749_v18  ;;  %v2519_v58 = vmul.f32 %v8719_v48, %v2463_v59  ;;  %2285 = vadd.xlane.f32.xlu1 %v2284_v20  ;;  %7245 = vrsqrt.f32 %v2366_v27 }
 0x2cd   : > { %v7242_v12 = vpop.eup %7241  ;;  %v2367_v55 = vadd.f32 1e-05, %v2317_v45  ;;  %v2054_v53 = vmul.f32 0.03125, %v1990_v42  ;;  %v2287_v19 = vsel %vm1858_vm5, %v2153_v3, 0.0 }
 0x2ce   : > { %v2823_v26 = vadd.f32 %v2773_v47, %v8733_v49  ;;  %v2724_v16 = vmul.f32 %v2674_v35, %v8749_v18  ;;  %v8762_v50 = vadd.f32 %v8727_v62, %v2519_v58  ;;  %v2464_v38 = vmul.f32 %v7242_v12, %v8442_v56  ;;  %v1993_v60 = vpop.xlane.xlu1 %1992  ;;  %2288 = vadd.xlane.f32.xlu0 %v2287_v19 }
 0x2cf   : > { %7247 = vrsqrt.f32 %v2367_v55  ;;  %v8766_v59 = vsub.f32 %v8489_v51, %v2054_v53  ;;  %v2055_v27 = vmul.f32 0.03125, %v1993_v60  ;;  %v2184_v45 = vpop.xlane.xlu0 %2183 }
 0x2d0   : > { %v2873_v20 = vmul.f32 0.7978846, %v2823_v26  ;;  %v2774_v42 = vmul.f32 %v2724_v16, %v8749_v18  ;;  %v2675_v3 = vmul.f32 0.044715, %v8762_v50  ;;  %v2520_v35 = vmul.f32 %v8719_v48, %v2464_v38 }
 0x2d1   : > { %v7244_v47 = vpop.eup %7243  ;;  %v8772_v58 = vsub.f32 %v8500_v41, %v2055_v27  ;;  %v2318_v56 = vmul.f32 0.03125, %v2184_v45  ;;  %v2154_v55 = vmul.f32 %v8766_v59, %v8766_v59 }
 0x2d2   : > { %7249 = vtanh.f32 %v2873_v20  ;;  %v2824_v51 = vadd.f32 %v2774_v42, %v8749_v18  ;;  %v2725_v60 = vmul.f32 %v2675_v3, %v8762_v50  ;;  %v2465_v12 = vmul.f32 %v7244_v47, %v8453_v61  ;;  %v2187_v53 = vpop.xlane.xlu1 %2186 }
 0x2d3   : > { %v8780_v19 = vadd.f32 %v8727_v62, %v2520_v35  ;;  %v2368_v26 = vadd.f32 1e-05, %v2318_v56  ;;  %v2319_v16 = vmul.f32 0.03125, %v2187_v53  ;;  %v2290_v41 = vsel %vm1858_vm5, %v2154_v55, 0.0  ;;  %v1996_v38 = vpop.xlane.xlu0 %1995 }
 0x2d4   : > { %v2874_v27 = vmul.f32 0.7978846, %v2824_v51  ;;  %v2775_v45 = vmul.f32 %v2725_v60, %v8762_v50  ;;  %v2521_v20 = vmul.f32 %v8719_v48, %v2465_v12  ;;  %2291 = vadd.xlane.f32.xlu1 %v2290_v41  ;;  %v2056_v42 = vmul.f32 0.03125, %v1996_v38 }
 0x2d5   : > { %v2676_v3 = vmul.f32 0.044715, %v8780_v19  ;;  %7251 = vrsqrt.f32 %v2368_v26  ;;  %v2369_v61 = vadd.f32 1e-05, %v2319_v16  ;;  %v2155_v12 = vmul.f32 %v8772_v58, %v8772_v58 }
 0x2d6   : > { %7253 = vtanh.f32 %v2874_v27  ;;  %v2825_v47 = vadd.f32 %v2775_v45, %v8762_v50  ;;  %v8788_v35 = vadd.f32 %v8727_v62, %v2521_v20  ;;  %v8791_v56 = vsub.f32 %v8511_v21, %v2056_v42  ;;  %v1999_v55 = vpop.xlane.xlu1 %1998 }
 0x2d7   : > { %v2726_v51 = vmul.f32 %v2676_v3, %v8780_v19  ;;  %7255 = vrsqrt.f32 %v2369_v61  ;;  %v2057_v60 = vmul.f32 0.03125, %v1999_v55  ;;  %v2190_v53 = vpop.xlane.xlu0 %2189  ;;  %v2293_v21 = vsel %vm1858_vm5, %v2155_v12, 0.0 }
 0x2d8   : > { %10535 = vst [vmem:[#allocation31_spill] sm:$0xff] %v8791_v56  ;;  %v2875_v26 = vmul.f32 0.7978846, %v2825_v47  ;;  %v2677_v16 = vmul.f32 0.044715, %v8788_v35  ;;  %v2320_v41 = vmul.f32 0.03125, %v2190_v53  ;;  %v2156_v45 = vmul.f32 %v8791_v56, %v8791_v56  ;;  %2294 = vadd.xlane.f32.xlu0 %v2293_v21 }
 0x2d9   : > { %v2776_v38 = vmul.f32 %v2726_v51, %v8780_v19  ;;  %v8799_v27 = vsub.f32 %v8522_v30, %v2057_v60  ;;  %v7246_v20 = vpop.eup %7245 }
 0x2da   : > { %7257 = vtanh.f32 %v2875_v26  ;;  %v2727_v42 = vmul.f32 %v2677_v16, %v8788_v35  ;;  %v2370_v3 = vadd.f32 1e-05, %v2320_v41  ;;  %v2193_v61 = vpop.xlane.xlu1 %2192  ;;  %v2466_v55 = vmul.f32 %v7246_v20, %v8464_v6 }
 0x2db   : > { %v2826_v47 = vadd.f32 %v2776_v38, %v8780_v19  ;;  %v2321_v51 = vmul.f32 0.03125, %v2193_v61  ;;  %v2296_v30 = vsel %vm1858_vm5, %v2156_v45, 0.0  ;;  %v2002_v60 = vpop.xlane.xlu0 %2001  ;;  %v2157_v26 = vmul.f32 %v8799_v27, %v8799_v27 }
 0x2dc   : > { %v7248_v53 = vpop.eup %7247  ;;  %v2777_v12 = vmul.f32 %v2727_v42, %v8788_v35  ;;  %7259 = vrsqrt.f32 %v2370_v3  ;;  %2297 = vadd.xlane.f32.xlu1 %v2296_v30  ;;  %v2058_v56 = vmul.f32 0.03125, %v2002_v60  ;;  %v2522_v41 = vmul.f32 %v8719_v48, %v2466_v55 }
 0x2dd   : > { %v2876_v16 = vmul.f32 0.7978846, %v2826_v47  ;;  %v2467_v38 = vmul.f32 %v7248_v53, %v8473_v54  ;;  %v2371_v21 = vadd.f32 1e-05, %v2321_v51  ;;  %v2623_v6 = vmul.f32 0.5, %v8733_v49 }
 0x2de   : > { %v2827_v45 = vadd.f32 %v2777_v12, %v8788_v35  ;;  %v8816_v20 = vsub.f32 %v8533_v24, %v2058_v56  ;;  %v2005_v42 = vpop.xlane.xlu1 %2004  ;;  %v2299_v3 = vsel %vm1858_vm5, %v2157_v26, 0.0  ;;  %v8820_v30 = vadd.f32 %v8727_v62, %v2522_v41 }
 0x2df   : > { %v7250_v61 = vpop.eup %7249  ;;  %7261 = vtanh.f32 %v2876_v16  ;;  %v2523_v47 = vmul.f32 %v8719_v48, %v2467_v38  ;;  %v2059_v55 = vmul.f32 0.03125, %v2005_v42  ;;  %2300 = vadd.xlane.f32.xlu0 %v2299_v3  ;;  %v2196_v54 = vpop.xlane.xlu0 %2195 }
 0x2e0   : > { %10536 = vst [vmem:[#allocation32_spill] sm:$0xff] %v8816_v20  ;;  %v2973_v51 = vadd.f32 1.0, %v7250_v61  ;;  %v2877_v49 = vmul.f32 0.7978846, %v2827_v45  ;;  %7263 = vrsqrt.f32 %v2371_v21  ;;  %v2322_v60 = vmul.f32 0.03125, %v2196_v54 }
 0x2e1   : > { %v2678_v24 = vmul.f32 0.044715, %v8820_v30  ;;  %v8825_v56 = vadd.f32 %v8727_v62, %v2523_v47  ;;  %v8828_v53 = vsub.f32 %v8544_v10, %v2059_v55  ;;  %v2158_v38 = vmul.f32 %v8816_v20, %v8816_v20 }
 0x2e2   : > { %v7252_v12 = vpop.eup %7251  ;;  %v3023_v26 = vmul.f32 %v2973_v51, %v2623_v6  ;;  %7265 = vtanh.f32 %v2877_v49  ;;  %v2372_v16 = vadd.f32 1e-05, %v2322_v60  ;;  %v2199_v41 = vpop.xlane.xlu1 %2198  ;;  %v2624_v21 = vmul.f32 0.5, %v8749_v18 }
 0x2e3   : > { %v7254_v42 = vpop.eup %7253  ;;  %v2728_v45 = vmul.f32 %v2678_v24, %v8820_v30  ;;  %v2679_v3 = vmul.f32 0.044715, %v8825_v56  ;;  %v2468_v61 = vmul.f32 %v7252_v12, %v8485_v15  ;;  %v2009_v47 = vpop.xlane.xlu0 %2008  ;;  %v2323_v55 = vmul.f32 0.03125, %v2199_v41 }
 0x2e4   : > { %v7256_v10 = vpop.eup %7255  ;;  %3073 = vst.msk [vmem:[#allocation2] sm:$0xff] %vm1858_vm5, %v3023_v26  ;;  %v2974_v6 = vadd.f32 1.0, %v7254_v42  ;;  %7267 = vrsqrt.f32 %v2372_v16  ;;  %v2302_v54 = vsel %vm1858_vm5, %v2158_v38, 0.0  ;;  %v2060_v12 = vmul.f32 0.03125, %v2009_v47 }
 0x2e5   : > { %v2778_v51 = vmul.f32 %v2728_v45, %v8820_v30  ;;  %v2729_v49 = vmul.f32 %v2679_v3, %v8825_v56  ;;  %v2524_v18 = vmul.f32 %v8719_v48, %v2468_v61  ;;  %v2469_v60 = vmul.f32 %v7256_v10, %v8495_v7  ;;  %2303 = vadd.xlane.f32.xlu1 %v2302_v54 }
 0x2e6   : > { %v3024_v24 = vmul.f32 %v2974_v6, %v2624_v21  ;;  %v2373_v15 = vadd.f32 1e-05, %v2323_v55  ;;  %v2202_v20 = vpop.xlane.xlu1 %2201  ;;  %v2159_v26 = vmul.f32 %v8828_v53, %v8828_v53  ;;  %v2625_v7 = vmul.f32 0.5, %v8762_v50 }
 0x2e7   : > { %v7258_v16 = vpop.eup %7257  ;;  %v2828_v41 = vadd.f32 %v2778_v51, %v8820_v30  ;;  %v2779_v38 = vmul.f32 %v2729_v49, %v8825_v56  ;;  %v8847_v42 = vadd.f32 %v8727_v62, %v2524_v18  ;;  %v2525_v45 = vmul.f32 %v8719_v48, %v2469_v60  ;;  %v2205_v50 = vpop.xlane.xlu0 %2204 }
 0x2e8   : > { %3074 = vst.msk [vmem:[#allocation2 + $0x8] sm:$0xff] %vm1858_vm5, %v3024_v24  ;;  %v2975_v21 = vadd.f32 1.0, %v7258_v16  ;;  %7269 = vrsqrt.f32 %v2373_v15  ;;  %v2324_v3 = vmul.f32 0.03125, %v2202_v20  ;;  %v8855_v55 = vsub.f32 %v8555_v14, %v2060_v12 }
 0x2e9   : > { %v7260_v61 = vpop.eup %7259  ;;  %v2878_v47 = vmul.f32 0.7978846, %v2828_v41  ;;  %v2829_v10 = vadd.f32 %v2779_v38, %v8825_v56  ;;  %v2680_v6 = vmul.f32 0.044715, %v8847_v42  ;;  %v8858_v51 = vadd.f32 %v8727_v62, %v2525_v45 }
 0x2ea   : > { %v3025_v54 = vmul.f32 %v2975_v21, %v2625_v7  ;;  %v2470_v49 = vmul.f32 %v7260_v61, %v8507_v36  ;;  %v2374_v18 = vadd.f32 1e-05, %v2324_v3  ;;  %v2305_v24 = vsel %vm1858_vm5, %v2159_v26, 0.0 }
 0x2eb   : > { %7271 = vtanh.f32 %v2878_v47  ;;  %v2879_v60 = vmul.f32 0.7978846, %v2829_v10  ;;  %v2730_v20 = vmul.f32 %v2680_v6, %v8847_v42  ;;  %v2208_v15 = vpop.xlane.xlu1 %2207  ;;  %v2626_v14 = vmul.f32 0.5, %v8780_v19  ;;  %2306 = vadd.xlane.f32.xlu0 %v2305_v24  ;;  %v7195_v24 = vld [vmem:[%s7749_s29 + $0x28] sm:$0xff]  }
 0x2ec   : > { %v7262_v16 = vpop.eup %7261  ;;  %3075 = vst.msk [vmem:[#allocation2 + $0x10] sm:$0xff] %vm1858_vm5, %v3025_v54  ;;  %v2681_v12 = vmul.f32 0.044715, %v8858_v51  ;;  %v2526_v41 = vmul.f32 %v8719_v48, %v2470_v49  ;;  %7273 = vrsqrt.f32 %v2374_v18  ;;  %v2325_v7 = vmul.f32 0.03125, %v2205_v50  ;;  %6706 = vmatpush3.bf16.msra.mxu1 %v7195_v24 }
 0x2ed   : > { %v7264_v36 = vpop.eup %7263  ;;  %v2976_v38 = vadd.f32 1.0, %v7262_v16  ;;  %7275 = vtanh.f32 %v2879_v60  ;;  %v2780_v45 = vmul.f32 %v2730_v20, %v8847_v42  ;;  %v2326_v3 = vmul.f32 0.03125, %v2208_v15 }
 0x2ee   : > { %v2731_v26 = vmul.f32 %v2681_v12, %v8858_v51  ;;  %v8870_v21 = vadd.f32 %v8727_v62, %v2526_v41  ;;  %v2471_v19 = vmul.f32 %v7264_v36, %v8517_v40  ;;  %v2375_v6 = vadd.f32 1e-05, %v2325_v7 }
 0x2ef   : > { %v7266_v61 = vpop.eup %7265  ;;  %v3026_v47 = vmul.f32 %v2976_v38, %v2626_v14  ;;  %v2830_v10 = vadd.f32 %v2780_v45, %v8847_v42  ;;  %v2160_v54 = vmul.f32 %v8855_v55, %v8855_v55  ;;  %v2627_v49 = vmul.f32 0.5, %v8788_v35  ;;  %v2211_v20 = vpop.xlane.xlu0 %2210 }
 0x2f0   : > { %v2977_v18 = vadd.f32 1.0, %v7266_v61  ;;  %v2781_v50 = vmul.f32 %v2731_v26, %v8858_v51  ;;  %v2682_v60 = vmul.f32 0.044715, %v8870_v21  ;;  %v2527_v15 = vmul.f32 %v8719_v48, %v2471_v19 }
 0x2f1   : > { %v7268_v16 = vpop.eup %7267  ;;  %3076 = vst.msk [vmem:[#allocation2 + $0x18] sm:$0xff] %vm1858_vm5, %v3026_v47  ;;  %v2880_v40 = vmul.f32 0.7978846, %v2830_v10  ;;  %7277 = vrsqrt.f32 %v2375_v6  ;;  %v2376_v14 = vadd.f32 1e-05, %v2326_v3  ;;  %v2308_v45 = vsel %vm2006_vm6, %v2160_v54, 0.0 }
 0x2f2   : > { %v3027_v12 = vmul.f32 %v2977_v18, %v2627_v49  ;;  %v2831_v41 = vadd.f32 %v2781_v50, %v8858_v51  ;;  %v2732_v35 = vmul.f32 %v2682_v60, %v8870_v21  ;;  %v2472_v36 = vmul.f32 %v7268_v16, %v8529_v25  ;;  %2309 = vadd.xlane.f32.xlu1 %v2308_v45  ;;  %v7196_v25 = vld [vmem:[%s7749_s29 + $0x20] sm:$0xff]  }
 0x2f3   : > { %7279 = vtanh.f32 %v2880_v40  ;;  %v8886_v38 = vadd.f32 %v8727_v62, %v2527_v15  ;;  %v2327_v7 = vmul.f32 0.03125, %v2211_v20  ;;  %v2214_v26 = vpop.xlane.xlu1 %2213  ;;  %v10537_v19 = vmov 0.0  }
 0x2f4   : > { %6707 = vmatprep.subr.bf16.mxu1 %v10537_v19  ;;  %3077 = vst.msk [vmem:[#allocation2 + $0x20] sm:$0xff] %vm1858_vm5, %v3027_v12  ;;  %v2881_v3 = vmul.f32 0.7978846, %v2831_v41  ;;  %v2782_v61 = vmul.f32 %v2732_v35, %v8870_v21  ;;  %v2528_v47 = vmul.f32 %v8719_v48, %v2472_v36  ;;  %7281 = vrsqrt.f32 %v2376_v14  ;;  %v7197_v36 = vld [vmem:[%s7749_s29 + $0x18] sm:$0xff]  }
 0x2f5   : > { %v7270_v10 = vpop.eup %7269  ;;  %v2683_v6 = vmul.f32 0.044715, %v8886_v38  ;;  %v2377_v49 = vadd.f32 1e-05, %v2327_v7  ;;  %v2328_v18 = vmul.f32 0.03125, %v2214_v26  ;;  %6708 = vmatpush3.bf16.msra.mxu1 %v7196_v25  ;;  %v2628_v20 = vmul.f32 0.5, %v8820_v30 }
 0x2f6   : > { %7283 = vtanh.f32 %v2881_v3  ;;  %v2832_v54 = vadd.f32 %v2782_v61, %v8870_v21  ;;  %v8897_v50 = vadd.f32 %v8727_v62, %v2528_v47  ;;  %v2473_v60 = vmul.f32 %v7270_v10, %v8539_v63  ;;  %6709 = vmatprep.subr.bf16.mxu1 %v10537_v19 }
 0x2f7   : > { %v2733_v24 = vmul.f32 %v2683_v6, %v8886_v38  ;;  %7285 = vrsqrt.f32 %v2377_v49  ;;  %v2378_v16 = vadd.f32 1e-05, %v2328_v18  ;;  %v2217_v40 = vpop.xlane.xlu0 %2216  ;;  %v2629_v14 = vmul.f32 0.5, %v8825_v56 }
 0x2f8   : > { %v7272_v15 = vpop.eup %7271  ;;  %v2882_v12 = vmul.f32 0.7978846, %v2832_v54  ;;  %v2684_v41 = vmul.f32 0.044715, %v8897_v50  ;;  %v2529_v35 = vmul.f32 %v8719_v48, %v2473_v60  ;;  %v2329_v7 = vmul.f32 0.03125, %v2217_v40 }
 0x2f9   : > { %v7274_v63 = vpop.eup %7273  ;;  %v2978_v45 = vadd.f32 1.0, %v7272_v15  ;;  %v2783_v30 = vmul.f32 %v2733_v24, %v8886_v38  ;;  %7287 = vrsqrt.f32 %v2378_v16  ;;  %6710 = vmatpush3.bf16.msra.mxu1 %v7197_v36  ;;  %v3175_v24 = vld [vmem:[#allocation2 + $0x11] ss:$2 sm:$0xff] }
 0x2fa   : > { %v7276_v26 = vpop.eup %7275  ;;  %7289 = vtanh.f32 %v2882_v12  ;;  %v2734_v3 = vmul.f32 %v2684_v41, %v8897_v50  ;;  %v8910_v61 = vadd.f32 %v8727_v62, %v2529_v35  ;;  %v2474_v56 = vmul.f32 %v7274_v63, %v8551_v34  ;;  %6711 = vmatprep.subr.bf16.mxu1 %v10537_v19  ;;  %v7198_v16 = vld [vmem:[%s7749_s29 + $0x10] sm:$0xff]  }
 0x2fb   : > { %v3028_v47 = vmul.f32 %v2978_v45, %v2628_v20  ;;  %v2979_v25 = vadd.f32 1.0, %v7276_v26  ;;  %v2833_v10 = vadd.f32 %v2783_v30, %v8886_v38  ;;  %v2379_v6 = vadd.f32 1e-05, %v2329_v7  ;;  %v2220_v49 = vpop.xlane.xlu1 %2219  ;;  %v3225_v15 = vld [vmem:[#allocation2 + $0x12] ss:$2 sm:$0xff] }
 0x2fc   : > { %v2784_v18 = vmul.f32 %v2734_v3, %v8897_v50  ;;  %v2685_v54 = vmul.f32 0.044715, %v8910_v61  ;;  %v2530_v60 = vmul.f32 %v8719_v48, %v2474_v56  ;;  %v2330_v20 = vmul.f32 0.03125, %v2220_v49  ;;  %v3173_v45 = vld [vmem:[#allocation2 + $0x1] ss:$2 sm:$0xff] }
 0x2fd   : > { %3078 = vst.msk [vmem:[#allocation2 + $0x28] sm:$0xff] %vm1858_vm5, %v3028_v47  ;;  %v3029_v34 = vmul.f32 %v2979_v25, %v2629_v14  ;;  %v2883_v40 = vmul.f32 0.7978846, %v2833_v10  ;;  %7291 = vrsqrt.f32 %v2379_v6  ;;  %v2630_v41 = vmul.f32 0.5, %v8847_v42  ;;  %6712 = vmatpush3.bf16.msra.mxu1 %v7198_v16  ;;  %v3223_v26 = vld [vmem:[#allocation2 + $0x2] ss:$2 sm:$0xff] }
 0x2fe   : > { %v7278_v12 = vpop.eup %7277  ;;  %v2834_v35 = vadd.f32 %v2784_v18, %v8897_v50  ;;  %v2735_v36 = vmul.f32 %v2685_v54, %v8910_v61  ;;  %v8924_v63 = vadd.f32 %v8727_v62, %v2530_v60  ;;  %v2380_v30 = vadd.f32 1e-05, %v2330_v20  ;;  %6713 = vmatprep.subr.bf16.mxu1 %v10537_v19  ;;  %v7199_v6 = vld [vmem:[%s7749_s29 + $0x8] sm:$0xff]  }
 0x2ff   : > { %3079 = vst.msk [vmem:[#allocation2 + $0x30] sm:$0xff] %vm1858_vm5, %v3029_v34  ;;  %7293 = vtanh.f32 %v2883_v40  ;;  %v2475_v14 = vmul.f32 %v7278_v12, %v8563_v5  ;;  %v6944_v7 = vpack.i.bf16 %v3175_v24, %v3173_v45  ;;  %v2223_v3 = vpop.xlane.xlu0 %2222  ;;  %v6949_v10 = vpack.i.bf16 %v3225_v15, %v3223_v26 }
 0x300   : > { %v7280_v42 = vpop.eup %7279  ;;  %v2884_v56 = vmul.f32 0.7978846, %v2834_v35  ;;  %v2785_v47 = vmul.f32 %v2735_v36, %v8910_v61  ;;  %v2686_v25 = vmul.f32 0.044715, %v8924_v63  ;;  %7295 = vrsqrt.f32 %v2380_v30 }
 0x301   : > { %v7282_v49 = vpop.eup %7281  ;;  %v2980_v18 = vadd.f32 1.0, %v7280_v42  ;;  %v2531_v54 = vmul.f32 %v8719_v48, %v2475_v14  ;;  %v2331_v5 = vmul.f32 0.03125, %v2223_v3  ;;  %6945 = vrot.lane.b32.xlu0 %v6944_v7, %s7709_s11  ;;  %6714 = vmatpush3.bf16.msra.mxu1 %v7199_v6  ;;  %v2631_v20 = vmul.f32 0.5, %v8858_v51 }
 0x302   : > { %7297 = vtanh.f32 %v2884_v56  ;;  %v2835_v60 = vadd.f32 %v2785_v47, %v8910_v61  ;;  %v2736_v24 = vmul.f32 %v2686_v25, %v8924_v63  ;;  %v2476_v16 = vmul.f32 %v7282_v49, %v8569_v22  ;;  %6715 = vmatprep.subr.bf16.mxu1 %v10537_v19 }
 0x303   : > { %v7284_v34 = vpop.eup %7283  ;;  %v3030_v40 = vmul.f32 %v2980_v18, %v2630_v41  ;;  %v8939_v15 = vadd.f32 %v8727_v62, %v2531_v54  ;;  %v2381_v12 = vadd.f32 1e-05, %v2331_v5  ;;  %v2226_v30 = vpop.xlane.xlu1 %2225  ;;  %6950 = vrot.lane.b32.xlu1 %v6949_v10, %s7710_s23  ;;  %v2632_v10 = vmul.f32 0.5, %v8870_v21 }
 0x304   : > { %v7286_v35 = vpop.eup %7285  ;;  %v2981_v36 = vadd.f32 1.0, %v7284_v34  ;;  %v2885_v45 = vmul.f32 0.7978846, %v2835_v60  ;;  %v2786_v14 = vmul.f32 %v2736_v24, %v8924_v63  ;;  %v2532_v22 = vmul.f32 %v8719_v48, %v2476_v16 }
 0x305   : > { %3080 = vst.msk [vmem:[#allocation2 + $0x38] sm:$0xff] %vm1858_vm5, %v3030_v40  ;;  %v2687_v41 = vmul.f32 0.044715, %v8939_v15  ;;  %v2477_v51 = vmul.f32 %v7286_v35, %v8575_v23  ;;  %7299 = vrsqrt.f32 %v2381_v12  ;;  %v2332_v23 = vmul.f32 0.03125, %v2226_v30 }
 0x306   : > { %v7288_v7 = vpop.eup %7287  ;;  %v3031_v26 = vmul.f32 %v2981_v36, %v2631_v20  ;;  %7301 = vtanh.f32 %v2885_v45  ;;  %v2836_v3 = vadd.f32 %v2786_v14, %v8924_v63  ;;  %v8950_v42 = vadd.f32 %v8727_v62, %v2532_v22 }
 0x307   : > { %v7290_v56 = vpop.eup %7289  ;;  %v2737_v47 = vmul.f32 %v2687_v41, %v8939_v15  ;;  %v2533_v25 = vmul.f32 %v8719_v48, %v2477_v51  ;;  %v2478_v6 = vmul.f32 %v7288_v7, %v8581_v17  ;;  %v2229_v49 = vpop.xlane.xlu0 %2228  ;;  %v2382_v34 = vadd.f32 1e-05, %v2332_v23  ;;  %v7200_v51 = vld [vmem:[%s7749_s29] sm:$0xff]  }
 0x308   : > { %3081 = vst.msk [vmem:[#allocation2 + $0x40] sm:$0xff] %vm1858_vm5, %v3031_v26  ;;  %v2982_v18 = vadd.f32 1.0, %v7290_v56  ;;  %v2886_v54 = vmul.f32 0.7978846, %v2836_v3  ;;  %v2688_v5 = vmul.f32 0.044715, %v8950_v42  ;;  %6716 = vmatpush3.bf16.msra.mxu1 %v7200_v51 }
 0x309   : > { %v2787_v60 = vmul.f32 %v2737_v47, %v8939_v15  ;;  %v8960_v24 = vadd.f32 %v8727_v62, %v2533_v25  ;;  %v2534_v16 = vmul.f32 %v8719_v48, %v2478_v6  ;;  %v2333_v12 = vmul.f32 0.03125, %v2229_v49  ;;  %6769 = vmatprep.subr.bf16.mxu1 %v10537_v19 }
 0x30a   : > { %v7292_v17 = vpop.eup %7291  ;;  %v3032_v40 = vmul.f32 %v2982_v18, %v2632_v10  ;;  %7303 = vtanh.f32 %v2886_v54  ;;  %v2738_v20 = vmul.f32 %v2688_v5, %v8950_v42  ;;  %v2633_v21 = vmul.f32 0.5, %v8886_v38 }
 0x30b   : > { %v2837_v35 = vadd.f32 %v2787_v60, %v8939_v15  ;;  %v2689_v36 = vmul.f32 0.044715, %v8960_v24  ;;  %v8968_v45 = vadd.f32 %v8727_v62, %v2534_v16  ;;  %v2479_v30 = vmul.f32 %v7292_v17, %v8587_v8  ;;  %v2232_v23 = vpop.xlane.xlu1 %2231 }
 0x30c   : > { %v7294_v14 = vpop.eup %7293  ;;  %3082 = vst.msk [vmem:[#allocation2 + $0x48] sm:$0xff] %vm1858_vm5, %v3032_v40  ;;  %v2788_v22 = vmul.f32 %v2738_v20, %v8950_v42  ;;  %7305 = vrsqrt.f32 %v2382_v34  ;;  %v2383_v41 = vadd.f32 1e-05, %v2333_v12  ;;  %v2634_v38 = vmul.f32 0.5, %v8897_v50  ;;  %v3179_v49 = vld [vmem:[#allocation2 + $0x31] ss:$2 sm:$0xff] }
 0x30d   : > { %v2983_v7 = vadd.f32 1.0, %v7294_v14  ;;  %v2887_v26 = vmul.f32 0.7978846, %v2837_v35  ;;  %v2739_v3 = vmul.f32 %v2689_v36, %v8960_v24  ;;  %v7296_v56 = vpop.eup %7295  ;;  %v2690_v25 = vmul.f32 0.044715, %v8968_v45 }
 0x30e   : > { %v2838_v47 = vadd.f32 %v2788_v22, %v8950_v42  ;;  %v2535_v6 = vmul.f32 %v8719_v48, %v2479_v30  ;;  %7307 = vrsqrt.f32 %v2383_v41  ;;  %v2480_v50 = vmul.f32 %v7296_v56, %v8593_v9  ;;  %v3177_v34 = vld [vmem:[#allocation2 + $0x21] ss:$2 sm:$0xff] }
 0x30f   : > { %v7298_v8 = vpop.eup %7297  ;;  %v3033_v10 = vmul.f32 %v2983_v7, %v2633_v21  ;;  %7309 = vtanh.f32 %v2887_v26  ;;  %v2789_v18 = vmul.f32 %v2739_v3, %v8960_v24  ;;  %v2740_v60 = vmul.f32 %v2690_v25, %v8968_v45  ;;  %v2235_v21 = vpop.xlane.xlu0 %2234  ;;  %v3229_v56 = vld [vmem:[#allocation2 + $0x32] ss:$2 sm:$0xff] }
 0x310   : > { %v2984_v54 = vadd.f32 1.0, %v7298_v8  ;;  %v2888_v5 = vmul.f32 0.7978846, %v2838_v47  ;;  %v8984_v16 = vadd.f32 %v8727_v62, %v2535_v6  ;;  %v2536_v40 = vmul.f32 %v8719_v48, %v2480_v50 }
 0x311   : > { %3083 = vst.msk [vmem:[#allocation2 + $0x50] sm:$0xff] %vm1858_vm5, %v3033_v10  ;;  %v2839_v17 = vadd.f32 %v2789_v18, %v8960_v24  ;;  %v2334_v20 = vmul.f32 0.03125, %v2232_v23  ;;  %v6954_v12 = vpack.i.bf16 %v3179_v49, %v3177_v34  ;;  %v2635_v36 = vmul.f32 0.5, %v8910_v61  ;;  %v3227_v10 = vld [vmem:[#allocation2 + $0x22] ss:$2 sm:$0xff] }
 0x312   : > { %v7300_v9 = vpop.eup %7299  ;;  %v3034_v35 = vmul.f32 %v2984_v54, %v2634_v38  ;;  %7311 = vtanh.f32 %v2888_v5  ;;  %v2790_v14 = vmul.f32 %v2740_v60, %v8968_v45  ;;  %v2691_v41 = vmul.f32 0.044715, %v8984_v16 }
 0x313   : > { %v7302_v22 = vpop.eup %7301  ;;  %v2889_v30 = vmul.f32 0.7978846, %v2839_v17  ;;  %v8993_v51 = vadd.f32 %v8727_v62, %v2536_v40  ;;  %v2481_v7 = vmul.f32 %v7300_v9, %v8599_v44  ;;  %6955 = vrot.lane.b32.xlu1 %v6954_v12, %s7709_s11  ;;  %v2384_v61 = vadd.f32 1e-05, %v2334_v20  ;;  %v2238_v23 = vpop.xlane.xlu1 %2237 }
 0x314   : > { %3084 = vst.msk [vmem:[#allocation2 + $0x58] sm:$0xff] %vm1858_vm5, %v3034_v35  ;;  %v2985_v26 = vadd.f32 1.0, %v7302_v22  ;;  %v2840_v38 = vadd.f32 %v2790_v14, %v8968_v45  ;;  %v2335_v3 = vmul.f32 0.03125, %v2235_v21  ;;  %v2636_v47 = vmul.f32 0.5, %v8924_v63 }
 0x315   : > { %7313 = vtanh.f32 %v2889_v30  ;;  %v2741_v25 = vmul.f32 %v2691_v41, %v8984_v16  ;;  %v2692_v6 = vmul.f32 0.044715, %v8993_v51  ;;  %v2537_v8 = vmul.f32 %v8719_v48, %v2481_v7 }
 0x316   : > { %v3035_v49 = vmul.f32 %v2985_v26, %v2635_v36  ;;  %v2890_v44 = vmul.f32 0.7978846, %v2840_v38  ;;  %7315 = vrsqrt.f32 %v2384_v61  ;;  %v2385_v5 = vadd.f32 1e-05, %v2335_v3 }
 0x317   : > { %v7304_v18 = vpop.eup %7303  ;;  %v2791_v50 = vmul.f32 %v2741_v25, %v8984_v16  ;;  %v2742_v54 = vmul.f32 %v2692_v6, %v8993_v51  ;;  %v6959_v60 = vpack.i.bf16 %v3229_v56, %v3227_v10  ;;  %v2241_v63 = vpop.xlane.xlu0 %2240  ;;  %v9007_v17 = vadd.f32 %v8727_v62, %v2537_v8  ;;  %v3181_v6 = vld [vmem:[#allocation2 + $0x41] ss:$2 sm:$0xff] }
 0x318   : > { %3085 = vst.msk [vmem:[#allocation2 + $0x60] sm:$0xff] %vm1858_vm5, %v3035_v49  ;;  %v2986_v34 = vadd.f32 1.0, %v7304_v18  ;;  %7317 = vtanh.f32 %v2890_v44  ;;  %v2336_v40 = vmul.f32 0.03125, %v2238_v23  ;;  %v2337_v9 = vmul.f32 0.03125, %v2241_v63 }
 0x319   : > { %v7306_v20 = vpop.eup %7305  ;;  %v2841_v12 = vadd.f32 %v2791_v50, %v8984_v16  ;;  %v2792_v21 = vmul.f32 %v2742_v54, %v8993_v51  ;;  %7319 = vrsqrt.f32 %v2385_v5  ;;  %6960 = vrot.lane.b32.xlu0 %v6959_v60, %s7710_s23  ;;  %v2637_v36 = vmul.f32 0.5, %v8939_v15 }
 0x31a   : > { %v3036_v35 = vmul.f32 %v2986_v34, %v2636_v47  ;;  %v2693_v14 = vmul.f32 0.044715, %v9007_v17  ;;  %v2482_v22 = vmul.f32 %v7306_v20, %v8605_v32  ;;  %v2386_v26 = vadd.f32 1e-05, %v2336_v40 }
 0x31b   : > { %v7308_v30 = vpop.eup %7307  ;;  %v2891_v41 = vmul.f32 0.7978846, %v2841_v12  ;;  %v2842_v7 = vadd.f32 %v2792_v21, %v8993_v51  ;;  %v2387_v38 = vadd.f32 1e-05, %v2337_v9  ;;  %v2244_v61 = vpop.xlane.xlu1 %2243  ;;  %v3183_v23 = vld [vmem:[#allocation2 + $0x51] ss:$2 sm:$0xff] }
 0x31c   : > { %v7310_v3 = vpop.eup %7309  ;;  %3086 = vst.msk [vmem:[#allocation2 + $0x68] sm:$0xff] %vm1858_vm5, %v3036_v35  ;;  %v2743_v56 = vmul.f32 %v2693_v14, %v9007_v17  ;;  %v2538_v47 = vmul.f32 %v8719_v48, %v2482_v22  ;;  %v2483_v15 = vmul.f32 %v7308_v30, %v8611_v46  ;;  %v2338_v25 = vmul.f32 0.03125, %v2244_v61  ;;  %v3231_v12 = vld [vmem:[#allocation2 + $0x42] ss:$2 sm:$0xff] }
 0x31d   : > { %v2987_v32 = vadd.f32 1.0, %v7310_v3  ;;  %7321 = vtanh.f32 %v2891_v41  ;;  %v2892_v49 = vmul.f32 0.7978846, %v2842_v7  ;;  %v6964_v44 = vpack.i.bf16 %v3183_v23, %v3181_v6 }
 0x31e   : > { %v2793_v8 = vmul.f32 %v2743_v56, %v9007_v17  ;;  %v9022_v10 = vadd.f32 %v8727_v62, %v2538_v47  ;;  %v2539_v18 = vmul.f32 %v8719_v48, %v2483_v15  ;;  %7323 = vrsqrt.f32 %v2386_v26 }
 0x31f   : > { %v7312_v50 = vpop.eup %7311  ;;  %v3037_v54 = vmul.f32 %v2987_v32, %v2637_v36  ;;  %7325 = vtanh.f32 %v2892_v49  ;;  %v2388_v5 = vadd.f32 1e-05, %v2338_v25  ;;  %6965 = vrot.lane.b32.xlu1 %v6964_v44, %s7709_s11  ;;  %v2247_v46 = vpop.xlane.xlu0 %2246  ;;  %v3233_v60 = vld [vmem:[#allocation2 + $0x52] ss:$2 sm:$0xff]  ;;  %v2638_v63 = vmul.f32 0.5, %v8950_v42 }
 0x320   : > { %v2988_v34 = vadd.f32 1.0, %v7312_v50  ;;  %v2843_v40 = vadd.f32 %v2793_v8, %v9007_v17  ;;  %v2694_v20 = vmul.f32 0.044715, %v9022_v10  ;;  %v9031_v48 = vadd.f32 %v8727_v62, %v2539_v18  ;;  %v9044_v32 = vld [vmem:[%s7739_s21] ss:$0 sm:$0xff] }
 0x321   : > { %3087 = vst.msk [vmem:[#allocation2 + $0x70] sm:$0xff] %vm1858_vm5, %v3037_v54  ;;  %7327 = vrsqrt.f32 %v2387_v38  ;;  %v2339_v21 = vmul.f32 0.03125, %v2247_v46  ;;  %v6969_v9 = vpack.i.bf16 %v3233_v60, %v3231_v12  ;;  %v2639_v30 = vmul.f32 0.5, %v8960_v24  ;;  %v9051_v54 = vld [vmem:[%s7744_s25] ss:$0 sm:$0xff] }
 0x322   : > { %v7314_v35 = vpop.eup %7313  ;;  %v3038_v36 = vmul.f32 %v2988_v34, %v2638_v63  ;;  %v2893_v14 = vmul.f32 0.7978846, %v2843_v40  ;;  %v2744_v22 = vmul.f32 %v2694_v20, %v9022_v10  ;;  %7329 = vrsqrt.f32 %v2388_v5 }
 0x323   : > { %v7316_v42 = vpop.eup %7315  ;;  %v2989_v41 = vadd.f32 1.0, %v7314_v35  ;;  %v2695_v7 = vmul.f32 0.044715, %v9031_v48  ;;  %v2389_v26 = vadd.f32 1e-05, %v2339_v21  ;;  %6970 = vrot.lane.b32.xlu0 %v6969_v9, %s7710_s23  ;;  %v2250_v62 = vpop.xlane.xlu1 %2249  ;;  %v2640_v24 = vmul.f32 0.5, %v8968_v45 }
 0x324   : > { %3088 = vst.msk [vmem:[#allocation2 + $0x78] sm:$0xff] %vm1858_vm5, %v3038_v36  ;;  %7331 = vtanh.f32 %v2893_v14  ;;  %v2794_v38 = vmul.f32 %v2744_v22, %v9022_v10  ;;  %v2484_v61 = vmul.f32 %v7316_v42, %v8617_v11  ;;  %v2340_v3 = vmul.f32 0.03125, %v2250_v62 }
 0x325   : > { %v7318_v56 = vpop.eup %7317  ;;  %v3039_v47 = vmul.f32 %v2989_v41, %v2639_v30  ;;  %v2745_v15 = vmul.f32 %v2695_v7, %v9031_v48  ;;  %7333 = vrsqrt.f32 %v2389_v26  ;;  %v2641_v40 = vmul.f32 0.5, %v8984_v16 }
 0x326   : > { %v7320_v25 = vpop.eup %7319  ;;  %v2990_v6 = vadd.f32 1.0, %v7318_v56  ;;  %v2844_v23 = vadd.f32 %v2794_v38, %v9022_v10  ;;  %v2540_v49 = vmul.f32 %v9044_v32, %v2484_v61  ;;  %v2390_v44 = vadd.f32 1e-05, %v2340_v3  ;;  %v3185_v56 = vld [vmem:[#allocation2 + $0x61] ss:$2 sm:$0xff] }
 0x327   : > { %3089 = vst.msk [vmem:[#allocation2 + $0x80] sm:$0xff] %vm1858_vm5, %v3039_v47  ;;  %v2795_v11 = vmul.f32 %v2745_v15, %v9031_v48  ;;  %v2485_v8 = vmul.f32 %v7320_v25, %v8623_v31  ;;  %v2253_v18 = vpop.xlane.xlu0 %2252  ;;  %v2642_v16 = vmul.f32 0.5, %v8993_v51 }
 0x328   : > { %v3040_v45 = vmul.f32 %v2990_v6, %v2640_v24  ;;  %v2894_v50 = vmul.f32 0.7978846, %v2844_v23  ;;  %v9054_v5 = vadd.f32 %v9051_v54, %v2540_v49  ;;  %7335 = vrsqrt.f32 %v2390_v44 }
 0x329   : > { %v2845_v46 = vadd.f32 %v2795_v11, %v9031_v48  ;;  %v2541_v60 = vmul.f32 %v9044_v32, %v2485_v8  ;;  %v2341_v63 = vmul.f32 0.03125, %v2253_v18  ;;  %v3235_v8 = vld [vmem:[#allocation2 + $0x62] ss:$2 sm:$0xff] }
 0x32a   : > { %v7322_v34 = vpop.eup %7321  ;;  %3090 = vst.msk [vmem:[#allocation2 + $0x88] sm:$0xff] %vm1858_vm5, %v3040_v45  ;;  %7337 = vtanh.f32 %v2894_v50  ;;  %v2696_v31 = vmul.f32 0.044715, %v9054_v5 }
 0x32b   : > { %v7324_v20 = vpop.eup %7323  ;;  %v2991_v12 = vadd.f32 1.0, %v7322_v34  ;;  %v2895_v21 = vmul.f32 0.7978846, %v2845_v46  ;;  %v9062_v9 = vadd.f32 %v9051_v54, %v2541_v60  ;;  %v2391_v35 = vadd.f32 1e-05, %v2341_v63  ;;  %v2256_v36 = vpop.xlane.xlu1 %2255 }
 0x32c   : > { %v7326_v14 = vpop.eup %7325  ;;  %v2746_v22 = vmul.f32 %v2696_v31, %v9054_v5  ;;  %v2486_v42 = vmul.f32 %v7324_v20, %v8629_v37  ;;  %v3187_v30 = vld [vmem:[#allocation2 + $0x71] ss:$2 sm:$0xff]  ;;  %v2342_v41 = vmul.f32 0.03125, %v2256_v36  ;;  %v2643_v60 = vmul.f32 0.5, %v9007_v17 }
 0x32d   : > { %v3041_v7 = vmul.f32 %v2991_v12, %v2641_v40  ;;  %v2992_v26 = vadd.f32 1.0, %v7326_v14  ;;  %7339 = vtanh.f32 %v2895_v21  ;;  %v2697_v61 = vmul.f32 0.044715, %v9062_v9 }
 0x32e   : > { %v7328_v62 = vpop.eup %7327  ;;  %v2796_v38 = vmul.f32 %v2746_v22, %v9054_v5  ;;  %v2542_v3 = vmul.f32 %v9044_v32, %v2486_v42  ;;  %7341 = vrsqrt.f32 %v2391_v35  ;;  %v3237_v47 = vld [vmem:[#allocation2 + $0x72] ss:$2 sm:$0xff]  ;;  %v6974_v25 = vpack.i.bf16 %v3187_v30, %v3185_v56 }
 0x32f   : > { %v7330_v24 = vpop.eup %7329  ;;  %3091 = vst.msk [vmem:[#allocation2 + $0x90] sm:$0xff] %vm1858_vm5, %v3041_v7  ;;  %v3042_v37 = vmul.f32 %v2992_v26, %v2642_v16  ;;  %v2487_v15 = vmul.f32 %v7328_v62, %v8635_v29  ;;  %v2392_v51 = vadd.f32 1e-05, %v2342_v41  ;;  %v2259_v6 = vpop.xlane.xlu0 %2258  ;;  %v2747_v49 = vmul.f32 %v2697_v61, %v9062_v9 }
 0x330   : > { %v2846_v23 = vadd.f32 %v2796_v38, %v9054_v5  ;;  %v9075_v44 = vadd.f32 %v9051_v54, %v2542_v3  ;;  %v2488_v11 = vmul.f32 %v7330_v24, %v8641_v39  ;;  %6975 = vrot.lane.b32.xlu1 %v6974_v25, %s7709_s11  ;;  %v6979_v29 = vpack.i.bf16 %v3237_v47, %v3235_v8 }
 0x331   : > { %v7332_v18 = vpop.eup %7331  ;;  %3092 = vst.msk [vmem:[#allocation2 + $0x98] sm:$0xff] %vm1858_vm5, %v3042_v37  ;;  %v2543_v45 = vmul.f32 %v9044_v32, %v2487_v15  ;;  %7343 = vrsqrt.f32 %v2392_v51  ;;  %v2343_v50 = vmul.f32 0.03125, %v2259_v6  ;;  %v2797_v40 = vmul.f32 %v2747_v49, %v9062_v9 }
 0x332   : > { %v7334_v46 = vpop.eup %7333  ;;  %v2993_v63 = vadd.f32 1.0, %v7332_v18  ;;  %v2896_v34 = vmul.f32 0.7978846, %v2846_v23  ;;  %v2698_v39 = vmul.f32 0.044715, %v9075_v44  ;;  %v2544_v20 = vmul.f32 %v9044_v32, %v2488_v11  ;;  %6980 = vrot.lane.b32.xlu0 %v6979_v29, %s7710_s23 }
 0x333   : > { %v9085_v31 = vadd.f32 %v9051_v54, %v2543_v45  ;;  %v2489_v12 = vmul.f32 %v7334_v46, %v8647_v43  ;;  %v2847_v35 = vadd.f32 %v2797_v40, %v9062_v9  ;;  %v2393_v17 = vadd.f32 1e-05, %v2343_v50  ;;  %v2262_v61 = vpop.xlane.xlu1 %2261 }
 0x334   : > { %v3043_v21 = vmul.f32 %v2993_v63, %v2643_v60  ;;  %7345 = vtanh.f32 %v2896_v34  ;;  %v2748_v14 = vmul.f32 %v2698_v39, %v9075_v44  ;;  %v9094_v42 = vadd.f32 %v9051_v54, %v2544_v20 }
 0x335   : > { %v7336_v36 = vpop.eup %7335  ;;  %v2699_v22 = vmul.f32 0.044715, %v9085_v31  ;;  %v2897_v30 = vmul.f32 0.7978846, %v2847_v35  ;;  %v2545_v43 = vmul.f32 %v9044_v32, %v2489_v12  ;;  %7347 = vrsqrt.f32 %v2393_v17 }
 0x336   : > { %3093 = vst.msk [vmem:[#allocation2 + $0xa0] sm:$0xff] %vm1858_vm5, %v3043_v21  ;;  %v2490_v41 = vmul.f32 %v7336_v36, %v8653_v52  ;;  %v2644_v16 = vmul.f32 0.5, %v9022_v10  ;;  %v2798_v26 = vmul.f32 %v2748_v14, %v9075_v44  ;;  %v2700_v38 = vmul.f32 0.044715, %v9094_v42 }
 0x337   : > { %v7338_v7 = vpop.eup %7337  ;;  %v2749_v62 = vmul.f32 %v2699_v22, %v9085_v31  ;;  %7349 = vtanh.f32 %v2897_v30  ;;  %v9104_v56 = vadd.f32 %v9051_v54, %v2545_v43  ;;  %v2645_v52 = vmul.f32 0.5, %v9031_v48  ;;  %v2265_v60 = vpop.xlane.xlu0 %2264  ;;  %v3189_v43 = vld [vmem:[#allocation2 + $0x81] ss:$2 sm:$0xff] }
 0x338   : > { %v2994_v3 = vadd.f32 1.0, %v7338_v7  ;;  %v2546_v47 = vmul.f32 %v9044_v32, %v2490_v41  ;;  %v2848_v24 = vadd.f32 %v2798_v26, %v9075_v44  ;;  %v2750_v37 = vmul.f32 %v2700_v38, %v9094_v42  ;;  %v3191_v35 = vld [vmem:[#allocation2 + $0x91] ss:$2 sm:$0xff] }
 0x339   : > { %v2799_v10 = vmul.f32 %v2749_v62, %v9085_v31  ;;  %v2701_v51 = vmul.f32 0.044715, %v9104_v56  ;;  %v2344_v23 = vmul.f32 0.03125, %v2262_v61  ;;  %v2646_v45 = vmul.f32 0.5, %v9054_v5 }
 0x33a   : > { %v7340_v15 = vpop.eup %7339  ;;  %v3044_v25 = vmul.f32 %v2994_v3, %v2644_v16  ;;  %v9113_v6 = vadd.f32 %v9051_v54, %v2546_v47  ;;  %v2898_v8 = vmul.f32 0.7978846, %v2848_v24  ;;  %v2800_v48 = vmul.f32 %v2750_v37, %v9094_v42 }
 0x33b   : > { %v7342_v49 = vpop.eup %7341  ;;  %v2995_v11 = vadd.f32 1.0, %v7340_v15  ;;  %v2849_v18 = vadd.f32 %v2799_v10, %v9085_v31  ;;  %v2751_v29 = vmul.f32 %v2701_v51, %v9104_v56  ;;  %v2394_v5 = vadd.f32 1e-05, %v2344_v23  ;;  %v2268_v41 = vpop.xlane.xlu1 %2267 }
 0x33c   : > { %3094 = vst.msk [vmem:[#allocation2 + $0xa8] sm:$0xff] %vm1858_vm5, %v3044_v25  ;;  %v2702_v50 = vmul.f32 0.044715, %v9113_v6  ;;  %v2491_v46 = vmul.f32 %v7342_v49, %v8659_v57  ;;  %7351 = vtanh.f32 %v2898_v8  ;;  %v2850_v40 = vadd.f32 %v2800_v48, %v9094_v42 }
 0x33d   : > { %v3045_v63 = vmul.f32 %v2995_v11, %v2645_v52  ;;  %v2899_v34 = vmul.f32 0.7978846, %v2849_v18  ;;  %v2801_v20 = vmul.f32 %v2751_v29, %v9104_v56  ;;  %v2345_v36 = vmul.f32 0.03125, %v2265_v60  ;;  %v3241_v37 = vld [vmem:[#allocation2 + $0x92] ss:$2 sm:$0xff] }
 0x33e   : > { %v7344_v39 = vpop.eup %7343  ;;  %v2752_v12 = vmul.f32 %v2702_v50, %v9113_v6  ;;  %v2547_v21 = vmul.f32 %v9044_v32, %v2491_v46  ;;  %v2900_v17 = vmul.f32 0.7978846, %v2850_v40  ;;  %v6984_v62 = vpack.i.bf16 %v3191_v35, %v3189_v43  ;;  %v3239_v18 = vld [vmem:[#allocation2 + $0x82] ss:$2 sm:$0xff] }
 0x33f   : > { %3095 = vst.msk [vmem:[#allocation2 + $0xb0] sm:$0xff] %vm1858_vm5, %v3045_v63  ;;  %7353 = vtanh.f32 %v2899_v34  ;;  %v2492_v57 = vmul.f32 %v7344_v39, %v8665_v1  ;;  %v2851_v14 = vadd.f32 %v2801_v20, %v9104_v56  ;;  %v2395_v26 = vadd.f32 1e-05, %v2345_v36 }
 0x340   : > { %v2802_v22 = vmul.f32 %v2752_v12, %v9113_v6  ;;  %v9131_v30 = vadd.f32 %v9051_v54, %v2547_v21  ;;  %7355 = vrsqrt.f32 %v2394_v5  ;;  %v2647_v1 = vmul.f32 0.5, %v9062_v9  ;;  %6985 = vrot.lane.b32.xlu1 %v6984_v62, %s7709_s11  ;;  %v2271_v9 = vpop.xlane.xlu0 %2270 }
 0x341   : > { %v7346_v7 = vpop.eup %7345  ;;  %7357 = vtanh.f32 %v2900_v17  ;;  %v2548_v16 = vmul.f32 %v9044_v32, %v2492_v57  ;;  %v2901_v61 = vmul.f32 0.7978846, %v2851_v14  ;;  %v2346_v10 = vmul.f32 0.03125, %v2268_v41 }
 0x342   : > { %v2996_v38 = vadd.f32 1.0, %v7346_v7  ;;  %v2852_v3 = vadd.f32 %v2802_v22, %v9113_v6  ;;  %v7348_v47 = vpop.eup %7347  ;;  %v2703_v52 = vmul.f32 0.044715, %v9131_v30  ;;  %7359 = vrsqrt.f32 %v2395_v26 }
 0x343   : > { %v9138_v24 = vadd.f32 %v9051_v54, %v2548_v16  ;;  %7361 = vtanh.f32 %v2901_v61  ;;  %v2493_v51 = vmul.f32 %v7348_v47, %v8671_v4  ;;  %v2396_v8 = vadd.f32 1e-05, %v2346_v10 }
 0x344   : > { %v3046_v15 = vmul.f32 %v2996_v38, %v2646_v45  ;;  %v2902_v25 = vmul.f32 0.7978846, %v2852_v3  ;;  %v7350_v23 = vpop.eup %7349  ;;  %v2753_v49 = vmul.f32 %v2703_v52, %v9131_v30  ;;  %v2274_v48 = vpop.xlane.xlu1 %2273  ;;  %v6989_v45 = vpack.i.bf16 %v3241_v37, %v3239_v18  ;;  %v3193_v38 = vld [vmem:[#allocation2 + $0xa1] ss:$2 sm:$0xff] }
 0x345   : > { %v2704_v11 = vmul.f32 0.044715, %v9138_v24  ;;  %v2997_v29 = vadd.f32 1.0, %v7350_v23  ;;  %v2549_v50 = vmul.f32 %v9044_v32, %v2493_v51  ;;  %v2347_v60 = vmul.f32 0.03125, %v2271_v9 }
 0x346   : > { %3096 = vst.msk [vmem:[#allocation2 + $0xb8] sm:$0xff] %vm1858_vm5, %v3046_v15  ;;  %7363 = vtanh.f32 %v2902_v25  ;;  %v2803_v46 = vmul.f32 %v2753_v49, %v9131_v30  ;;  %6990 = vrot.lane.b32.xlu0 %v6989_v45, %s7710_s23  ;;  %v2348_v40 = vmul.f32 0.03125, %v2274_v48  ;;  %v2648_v17 = vmul.f32 0.5, %v9075_v44 }
 0x347   : > { %v2754_v4 = vmul.f32 %v2704_v11, %v9138_v24  ;;  %7365 = vrsqrt.f32 %v2396_v8  ;;  %v3047_v63 = vmul.f32 %v2997_v29, %v2647_v1  ;;  %v9149_v34 = vadd.f32 %v9051_v54, %v2549_v50  ;;  %v3243_v8 = vld [vmem:[#allocation2 + $0xa2] ss:$2 sm:$0xff] }
 0x348   : > { %v2277_v39 = vpop.xlane.xlu0 %2276  ;;  %v2853_v20 = vadd.f32 %v2803_v46, %v9131_v30  ;;  %v2397_v21 = vadd.f32 1e-05, %v2347_v60  ;;  %v2649_v57 = vmul.f32 0.5, %v9085_v31  ;;  %v2398_v14 = vadd.f32 1e-05, %v2348_v40 }
 0x349   : > { %v2804_v12 = vmul.f32 %v2754_v4, %v9138_v24  ;;  %v2349_v5 = vmul.f32 0.03125, %v2277_v39  ;;  %v7352_v35 = vpop.eup %7351  ;;  %3097 = vst.msk [vmem:[#allocation2 + $0xc0] sm:$0xff] %vm1858_vm5, %v3047_v63  ;;  %v2705_v36 = vmul.f32 0.044715, %v9149_v34  ;;  %v2650_v16 = vmul.f32 0.5, %v9094_v42 }
 0x34a   : > { %v2998_v22 = vadd.f32 1.0, %v7352_v35  ;;  %v2903_v43 = vmul.f32 0.7978846, %v2853_v20  ;;  %7367 = vrsqrt.f32 %v2397_v21  ;;  %v2651_v23 = vmul.f32 0.5, %v9104_v56 }
 0x34b   : > { %v2854_v41 = vadd.f32 %v2804_v12, %v9138_v24  ;;  %v2755_v26 = vmul.f32 %v2705_v36, %v9149_v34  ;;  %7369 = vrsqrt.f32 %v2398_v14  ;;  %v2399_v62 = vadd.f32 1e-05, %v2349_v5 }
 0x34c   : > { %v7354_v7 = vpop.eup %7353  ;;  %v2280_v1 = vpop.xlane.xlu1 %2279  ;;  %v3048_v61 = vmul.f32 %v2998_v22, %v2648_v17  ;;  %7371 = vtanh.f32 %v2903_v43 }
 0x34d   : > { %v7356_v44 = vpop.eup %7355  ;;  %v2999_v31 = vadd.f32 1.0, %v7354_v7  ;;  %v2904_v3 = vmul.f32 0.7978846, %v2854_v41  ;;  %v3195_v47 = vld [vmem:[#allocation2 + $0xb1] ss:$2 sm:$0xff]  ;;  %v2805_v10 = vmul.f32 %v2755_v26, %v9149_v34  ;;  %7373 = vrsqrt.f32 %v2399_v62 }
 0x34e   : > { %v7358_v52 = vpop.eup %7357  ;;  %v2494_v37 = vmul.f32 %v7356_v44, %v8677_v13  ;;  %v6994_v15 = vpack.i.bf16 %v3195_v47, %v3193_v38  ;;  %3098 = vst.msk [vmem:[#allocation2 + $0xc8] sm:$0xff] %vm1858_vm5, %v3048_v61  ;;  %v2350_v51 = vmul.f32 0.03125, %v2280_v1 }
 0x34f   : > { %v3049_v42 = vmul.f32 %v2999_v31, %v2649_v57  ;;  %v3000_v25 = vadd.f32 1.0, %v7358_v52  ;;  %7375 = vtanh.f32 %v2904_v3  ;;  %v7360_v9 = vpop.eup %7359  ;;  %v2855_v49 = vadd.f32 %v2805_v10, %v9149_v34  ;;  %v10538_v57 = vld [vmem:[#allocation26_spill] sm:$0xff] }
 0x350   : > { %v2550_v11 = vmul.f32 %v9044_v32, %v2494_v37  ;;  %6995 = vrot.lane.b32.xlu1 %v6994_v15, %s7709_s11  ;;  %v2283_v18 = vpop.xlane.xlu0 %2282  ;;  %v7362_v13 = vpop.eup %7361  ;;  %v2495_v29 = vmul.f32 %v7360_v9, %v8683_v28  ;;  %v2400_v50 = vadd.f32 1e-05, %v2350_v51  ;;  %v3245_v45 = vld [vmem:[#allocation2 + $0xb2] ss:$2 sm:$0xff]  ;;  %v2652_v28 = vmul.f32 0.5, %v9113_v6 }
 0x351   : > { %3099 = vst.msk [vmem:[#allocation2 + $0xd0] sm:$0xff] %vm1858_vm5, %v3049_v42  ;;  %v3050_v48 = vmul.f32 %v3000_v25, %v2650_v16  ;;  %v2351_v46 = vmul.f32 0.03125, %v2283_v18  ;;  %v3001_v4 = vadd.f32 1.0, %v7362_v13  ;;  %v2905_v60 = vmul.f32 0.7978846, %v2855_v49 }
 0x352   : > { %v9171_v56 = vadd.f32 %v9051_v54, %v2550_v11  ;;  %v6999_v63 = vpack.i.bf16 %v3245_v45, %v3243_v8  ;;  %v2551_v39 = vmul.f32 %v9044_v32, %v2495_v29  ;;  %7377 = vrsqrt.f32 %v2400_v50 }
 0x353   : > { %v7364_v40 = vpop.eup %7363  ;;  %3100 = vst.msk [vmem:[#allocation2 + $0xd8] sm:$0xff] %vm1858_vm5, %v3050_v48  ;;  %v2401_v20 = vadd.f32 1e-05, %v2351_v46  ;;  %v3051_v21 = vmul.f32 %v3001_v4, %v2651_v23  ;;  %7379 = vtanh.f32 %v2905_v60  ;;  %v2653_v52 = vmul.f32 0.5, %v9131_v30 }
 0x354   : > { %v7366_v12 = vpop.eup %7365  ;;  %v3002_v5 = vadd.f32 1.0, %v7364_v40  ;;  %7000 = vrot.lane.b32.xlu0 %v6999_v63, %s7710_s23  ;;  %v2706_v35 = vmul.f32 0.044715, %v9171_v56  ;;  %v9179_v17 = vadd.f32 %v9051_v54, %v2551_v39  ;;  %v2654_v10 = vmul.f32 0.5, %v9138_v24 }
 0x355   : > { %v2496_v36 = vmul.f32 %v7366_v12, %v10538_v57  ;;  %7381 = vrsqrt.f32 %v2401_v20  ;;  %v2286_v14 = vpop.xlane.xlu1 %2285  ;;  %3101 = vst.msk [vmem:[#allocation2 + $0xe0] sm:$0xff] %vm1858_vm5, %v3051_v21  ;;  %v3197_v46 = vld [vmem:[#allocation2 + $0xc1] ss:$2 sm:$0xff]  ;;  %v2655_v40 = vmul.f32 0.5, %v9149_v34 }
 0x356   : > { %v3052_v22 = vmul.f32 %v3002_v5, %v2652_v28  ;;  %v2352_v43 = vmul.f32 0.03125, %v2286_v14  ;;  %v2756_v41 = vmul.f32 %v2706_v35, %v9171_v56  ;;  %v2707_v6 = vmul.f32 0.044715, %v9179_v17  ;;  %v10539_v5 = vld [vmem:[#allocation27_spill] sm:$0xff] }
 0x357   : > { %v2552_v7 = vmul.f32 %v9044_v32, %v2496_v36  ;;  %v2289_v16 = vpop.xlane.xlu0 %2288  ;;  %v7368_v26 = vpop.eup %7367 }
 0x358   : > { %3102 = vst.msk [vmem:[#allocation2 + $0xe8] sm:$0xff] %vm1858_vm5, %v3052_v22  ;;  %v2402_v62 = vadd.f32 1e-05, %v2352_v43  ;;  %v2353_v38 = vmul.f32 0.03125, %v2289_v16  ;;  %v7370_v1 = vpop.eup %7369  ;;  %v2806_v44 = vmul.f32 %v2756_v41, %v9171_v56  ;;  %v2757_v61 = vmul.f32 %v2707_v6, %v9179_v17 }
 0x359   : > { %v9190_v31 = vadd.f32 %v9051_v54, %v2552_v7  ;;  %v2497_v3 = vmul.f32 %v7368_v26, %v8695_v2  ;;  %v7372_v47 = vpop.eup %7371  ;;  %v2498_v37 = vmul.f32 %v7370_v1, %v8702_v0 }
 0x35a   : > { %7383 = vrsqrt.f32 %v2402_v62  ;;  %v7374_v15 = vpop.eup %7373  ;;  %v3003_v42 = vadd.f32 1.0, %v7372_v47  ;;  %v2856_v25 = vadd.f32 %v2806_v44, %v9171_v56  ;;  %v2807_v51 = vmul.f32 %v2757_v61, %v9179_v17  ;;  %v3199_v24 = vld [vmem:[#allocation2 + $0xd1] ss:$2 sm:$0xff] }
 0x35b   : > { %v2403_v9 = vadd.f32 1e-05, %v2353_v38  ;;  %v2708_v49 = vmul.f32 0.044715, %v9190_v31  ;;  %v2553_v2 = vmul.f32 %v9044_v32, %v2497_v3  ;;  %v2554_v11 = vmul.f32 %v9044_v32, %v2498_v37  ;;  %v10540_v38 = vld [vmem:[#allocation28_spill] sm:$0xff] }
 0x35c   : > { %v7376_v23 = vpop.eup %7375  ;;  %v2499_v30 = vmul.f32 %v7374_v15, %v8707_v33  ;;  %v3053_v8 = vmul.f32 %v3003_v42, %v2653_v52  ;;  %v2906_v18 = vmul.f32 0.7978846, %v2856_v25  ;;  %v2857_v13 = vadd.f32 %v2807_v51, %v9179_v17  ;;  %v3249_v7 = vld [vmem:[#allocation2 + $0xd2] ss:$2 sm:$0xff]  ;;  %v3247_v52 = vld [vmem:[#allocation2 + $0xc2] ss:$2 sm:$0xff] }
 0x35d   : > { %v3004_v0 = vadd.f32 1.0, %v7376_v23  ;;  %v2758_v48 = vmul.f32 %v2708_v49, %v9190_v31  ;;  %v9205_v29 = vadd.f32 %v9051_v54, %v2553_v2  ;;  %v9208_v50 = vadd.f32 %v9051_v54, %v2554_v11  ;;  %v2292_v22 = vpop.xlane.xlu1 %2291  ;;  %v10541_v11 = vld [vmem:[#allocation29_spill] sm:$0xff] }
 0x35e   : > { %v2555_v45 = vmul.f32 %v9044_v32, %v2499_v30  ;;  %3103 = vst.msk [vmem:[#allocation2 + $0xf0] sm:$0xff] %vm1858_vm5, %v3053_v8  ;;  %7385 = vtanh.f32 %v2906_v18  ;;  %v2907_v4 = vmul.f32 0.7978846, %v2857_v13  ;;  %v7004_v60 = vpack.i.bf16 %v3199_v24, %v3197_v46 }
 0x35f   : > { %v3054_v33 = vmul.f32 %v3004_v0, %v2654_v10  ;;  %v7378_v63 = vpop.eup %7377  ;;  %v2808_v39 = vmul.f32 %v2758_v48, %v9190_v31  ;;  %v2709_v20 = vmul.f32 0.044715, %v9205_v29  ;;  %v2710_v21 = vmul.f32 0.044715, %v9208_v50 }
 0x360   : > { %v7380_v12 = vpop.eup %7379  ;;  %7387 = vtanh.f32 %v2907_v4  ;;  %v9218_v28 = vadd.f32 %v9051_v54, %v2555_v45  ;;  %v2500_v35 = vmul.f32 %v7378_v63, %v10539_v5  ;;  %7005 = vrot.lane.b32.xlu1 %v7004_v60, %s7709_s11  ;;  %v2354_v47 = vmul.f32 0.03125, %v2292_v22 }
 0x361   : > { %3104 = vst.msk [vmem:[#allocation2 + $0xf8] sm:$0xff] %vm1858_vm5, %v3054_v33  ;;  %v3005_v36 = vadd.f32 1.0, %v7380_v12  ;;  %v2858_v34 = vadd.f32 %v2808_v39, %v9190_v31  ;;  %v2759_v14 = vmul.f32 %v2709_v20, %v9205_v29  ;;  %7389 = vrsqrt.f32 %v2403_v9  ;;  %v2295_v42 = vpop.xlane.xlu0 %2294 }
 0x362   : > { %v7382_v57 = vpop.eup %7381  ;;  %v2760_v43 = vmul.f32 %v2710_v21, %v9208_v50  ;;  %v2711_v41 = vmul.f32 0.044715, %v9218_v28  ;;  %v2556_v6 = vmul.f32 %v9044_v32, %v2500_v35  ;;  %v7009_v15 = vpack.i.bf16 %v3249_v7, %v3247_v52 }
 0x363   : > { %v3055_v16 = vmul.f32 %v3005_v36, %v2655_v40  ;;  %v2908_v26 = vmul.f32 0.7978846, %v2858_v34  ;;  %v2809_v62 = vmul.f32 %v2759_v14, %v9205_v29  ;;  %v2501_v1 = vmul.f32 %v7382_v57, %v10540_v38 }
 0x364   : > { %v2810_v44 = vmul.f32 %v2760_v43, %v9208_v50  ;;  %v2761_v61 = vmul.f32 %v2711_v41, %v9218_v28  ;;  %v9232_v3 = vadd.f32 %v9051_v54, %v2556_v6  ;;  %v2404_v24 = vadd.f32 1e-05, %v2354_v47  ;;  %7010 = vrot.lane.b32.xlu0 %v7009_v15, %s7710_s23 }
 0x365   : > { %3105 = vst.msk [vmem:[#allocation2 + $0x100] sm:$0xff] %vm1858_vm5, %v3055_v16  ;;  %7391 = vtanh.f32 %v2908_v26  ;;  %v2859_v10 = vadd.f32 %v2809_v62, %v9205_v29  ;;  %v2557_v37 = vmul.f32 %v9044_v32, %v2501_v1  ;;  %v2355_v13 = vmul.f32 0.03125, %v2295_v42  ;;  %v2298_v48 = vpop.xlane.xlu1 %2297  ;;  %v10542_v1 = vld [vmem:[#allocation30_spill] sm:$0xff] }
 0x366   : > { %v2860_v51 = vadd.f32 %v2810_v44, %v9208_v50  ;;  %v2811_v9 = vmul.f32 %v2761_v61, %v9218_v28  ;;  %v2712_v23 = vmul.f32 0.044715, %v9232_v3  ;;  %v2656_v45 = vmul.f32 0.5, %v9171_v56 }
 0x367   : > { %v7384_v25 = vpop.eup %7383  ;;  %v2909_v49 = vmul.f32 0.7978846, %v2859_v10  ;;  %v9241_v2 = vadd.f32 %v9051_v54, %v2557_v37  ;;  %v2405_v40 = vadd.f32 1e-05, %v2355_v13  ;;  %v2356_v21 = vmul.f32 0.03125, %v2298_v48 }
 0x368   : > { %v2502_v30 = vmul.f32 %v7384_v25, %v10541_v11  ;;  %v2910_v8 = vmul.f32 0.7978846, %v2860_v51  ;;  %v2861_v0 = vadd.f32 %v2811_v9, %v9218_v28  ;;  %v2762_v18 = vmul.f32 %v2712_v23, %v9232_v3  ;;  %v2301_v4 = vpop.xlane.xlu0 %2300  ;;  %v3203_v22 = vld [vmem:[#allocation2 + $0xf1] ss:$2 sm:$0xff]  ;;  %v3251_v51 = vld [vmem:[#allocation2 + $0xe2] ss:$2 sm:$0xff] }
 0x369   : > { %7393 = vtanh.f32 %v2909_v49  ;;  %v2713_v46 = vmul.f32 0.044715, %v9241_v2  ;;  %v2357_v35 = vmul.f32 0.03125, %v2301_v4  ;;  %v2657_v36 = vmul.f32 0.5, %v9179_v17  ;;  %v3201_v17 = vld [vmem:[#allocation2 + $0xe1] ss:$2 sm:$0xff] }
 0x36a   : > { %v2558_v33 = vmul.f32 %v9044_v32, %v2502_v30  ;;  %7395 = vtanh.f32 %v2910_v8  ;;  %v2911_v60 = vmul.f32 0.7978846, %v2861_v0  ;;  %v2812_v63 = vmul.f32 %v2762_v18, %v9232_v3 }
 0x36b   : > { %v7386_v39 = vpop.eup %7385  ;;  %v2763_v20 = vmul.f32 %v2713_v46, %v9241_v2  ;;  %7397 = vrsqrt.f32 %v2404_v24  ;;  %v2406_v26 = vadd.f32 1e-05, %v2356_v21  ;;  %v2407_v61 = vadd.f32 1e-05, %v2357_v35 }
 0x36c   : > { %v9253_v12 = vadd.f32 %v9051_v54, %v2558_v33  ;;  %v3006_v56 = vadd.f32 1.0, %v7386_v39  ;;  %7399 = vtanh.f32 %v2911_v60  ;;  %v2862_v5 = vadd.f32 %v2812_v63, %v9232_v3  ;;  %v3253_v47 = vld [vmem:[#allocation2 + $0xf2] ss:$2 sm:$0xff] }
 0x36d   : > { %v7388_v57 = vpop.eup %7387  ;;  %v2813_v34 = vmul.f32 %v2763_v20, %v9241_v2  ;;  %7401 = vrsqrt.f32 %v2405_v40  ;;  %v7014_v10 = vpack.i.bf16 %v3203_v22, %v3201_v17  ;;  %v2658_v23 = vmul.f32 0.5, %v9190_v31 }
 0x36e   : > { %v2714_v14 = vmul.f32 0.044715, %v9253_v12  ;;  %v2304_v43 = vpop.xlane.xlu1 %2303  ;;  %v7390_v41 = vpop.eup %7389  ;;  %v3056_v6 = vmul.f32 %v3006_v56, %v2656_v45  ;;  %v3007_v7 = vadd.f32 1.0, %v7388_v57  ;;  %v2912_v16 = vmul.f32 0.7978846, %v2862_v5 }
 0x36f   : > { %v2863_v62 = vadd.f32 %v2813_v34, %v9241_v2  ;;  %v2503_v44 = vmul.f32 %v7390_v41, %v10542_v1  ;;  %v2358_v37 = vmul.f32 0.03125, %v2304_v43  ;;  %7015 = vrot.lane.b32.xlu1 %v7014_v10, %s7709_s11  ;;  %v7019_v11 = vpack.i.bf16 %v3253_v47, %v3251_v51 }
 0x370   : > { %v2764_v38 = vmul.f32 %v2714_v14, %v9253_v12  ;;  %3106 = vst.msk [vmem:[#allocation2 + $0x108] sm:$0xff] %vm1858_vm5, %v3056_v6  ;;  %v3057_v52 = vmul.f32 %v3007_v7, %v2657_v36  ;;  %7403 = vtanh.f32 %v2912_v16  ;;  %v2659_v33 = vmul.f32 0.5, %v9205_v29 }
 0x371   : > { %v2913_v15 = vmul.f32 0.7978846, %v2863_v62  ;;  %v2559_v25 = vmul.f32 %v9044_v32, %v2503_v44  ;;  %7405 = vrsqrt.f32 %v2406_v26  ;;  %v2408_v49 = vadd.f32 1e-05, %v2358_v37  ;;  %7020 = vrot.lane.b32.xlu0 %v7019_v11, %s7710_s23 }
 0x372   : > { %v2814_v42 = vmul.f32 %v2764_v38, %v9253_v12  ;;  %v7392_v9 = vpop.eup %7391  ;;  %3107 = vst.msk [vmem:[#allocation2 + $0x110] sm:$0xff] %vm1858_vm5, %v3057_v52  ;;  %7407 = vrsqrt.f32 %v2407_v61  ;;  %v2660_v40 = vmul.f32 0.5, %v9208_v50  ;;  %v2661_v34 = vmul.f32 0.5, %v9218_v28 }
 0x373   : > { %v3008_v30 = vadd.f32 1.0, %v7392_v9  ;;  %7409 = vtanh.f32 %v2913_v15  ;;  %v2615_v8 = vadd.f32 %v9051_v54, %v2559_v25  ;;  %v2662_v41 = vmul.f32 0.5, %v9232_v3  ;;  %v10543_v15 = vld [vmem:[#allocation31_spill] sm:$0xff] }
 0x374   : > { %v2864_v24 = vadd.f32 %v2814_v42, %v9253_v12  ;;  %7411 = vrsqrt.f32 %v2408_v49  ;;  %v2307_v0 = vpop.xlane.xlu0 %2306  ;;  %v2663_v1 = vmul.f32 0.5, %v9241_v2  ;;  %v2664_v44 = vmul.f32 0.5, %v9253_v12 }
 0x375   : > { %v3058_v18 = vmul.f32 %v3008_v30, %v2658_v23  ;;  %v2715_v48 = vmul.f32 0.044715, %v2615_v8  ;;  %v2359_v31 = vmul.f32 0.03125, %v2307_v0  ;;  %v9288_v3 = vmul.f32 0.5, %v2615_v8 }
 0x376   : > { %v2914_v13 = vmul.f32 0.7978846, %v2864_v24  ;;  %v7394_v45 = vpop.eup %7393 }
 0x377   : > { %v7396_v46 = vpop.eup %7395  ;;  %3108 = vst.msk [vmem:[#allocation2 + $0x118] sm:$0xff] %vm1858_vm5, %v3058_v18  ;;  %v3009_v4 = vadd.f32 1.0, %v7394_v45  ;;  %v2765_v60 = vmul.f32 %v2715_v48, %v2615_v8  ;;  %v2409_v20 = vadd.f32 1e-05, %v2359_v31 }
 0x378   : > { %7413 = vtanh.f32 %v2914_v13  ;;  %v7398_v63 = vpop.eup %7397  ;;  %v3010_v39 = vadd.f32 1.0, %v7396_v46  ;;  %v6946_v6 = vpop.permute.xlu0 %6945 }
 0x379   : > { %v7400_v21 = vpop.eup %7399  ;;  %v3059_v56 = vmul.f32 %v3009_v4, %v2659_v33  ;;  %v2815_v5 = vmul.f32 %v2765_v60, %v2615_v8  ;;  %v2504_v35 = vmul.f32 %v7398_v63, %v8766_v59  ;;  %7415 = vrsqrt.f32 %v2409_v20  ;;  %v3125_v4 = vld [vmem:[#allocation2 + $0x10] ss:$2 sm:$0xff]  ;;  %v3123_v20 = vld [vmem:[#allocation2] ss:$2 sm:$0xff] }
 0x37a   : > { %v7402_v57 = vpop.eup %7401  ;;  %v3060_v36 = vmul.f32 %v3010_v39, %v2660_v40  ;;  %v3011_v14 = vadd.f32 1.0, %v7400_v21  ;;  %v6948_v52 = vunpack.i.h.bf16 %v6946_v6  ;;  %v6947_v11 = vunpack.i.l.bf16 %v6946_v6 }
 0x37b   : > { %3109 = vst.msk [vmem:[#allocation2 + $0x120] sm:$0xff] %vm1858_vm5, %v3059_v56  ;;  %v2865_v29 = vadd.f32 %v2815_v5, %v2615_v8  ;;  %v2560_v22 = vmul.f32 %v9044_v32, %v2504_v35  ;;  %v2505_v50 = vmul.f32 %v7402_v57, %v8772_v58  ;;  %v2310_v59 = vpop.xlane.xlu1 %2309  ;;  %v10544_v8 = vld [vmem:[#allocation32_spill] sm:$0xff] }
 0x37c   : > { %3110 = vst.msk [vmem:[#allocation2 + $0x128] sm:$0xff] %vm1858_vm5, %v3060_v36  ;;  %v3061_v43 = vmul.f32 %v3011_v14, %v2661_v34  ;;  %v2360_v62 = vmul.f32 0.03125, %v2310_v59  ;;  %v3473_v21 = vsel %vm1858_vm5, %v3125_v4, %v6948_v52  ;;  %v3472_v35 = vsel %vm1858_vm5, %v3123_v20, %v6947_v11 }
 0x37d   : > { %v7404_v7 = vpop.eup %7403  ;;  %v2915_v16 = vmul.f32 0.7978846, %v2865_v29  ;;  %v9282_v28 = vadd.f32 %v9051_v54, %v2560_v22  ;;  %v2561_v26 = vmul.f32 %v9044_v32, %v2505_v50 }
 0x37e   : > { %v7406_v38 = vpop.eup %7405  ;;  %3111 = vst.msk [vmem:[#allocation2 + $0x130] sm:$0xff] %vm1858_vm5, %v3061_v43  ;;  %v3012_v58 = vadd.f32 1.0, %v7404_v7  ;;  %v2410_v51 = vadd.f32 1e-05, %v2360_v62  ;;  %v3207_v50 = vld [vmem:[#allocation2 + $0x111] ss:$2 sm:$0xff] }
 0x37f   : > { %v7408_v61 = vpop.eup %7407  ;;  %7417 = vtanh.f32 %v2915_v16  ;;  %v2716_v17 = vmul.f32 0.044715, %v9282_v28  ;;  %v9292_v47 = vadd.f32 %v9051_v54, %v2561_v26  ;;  %v2506_v42 = vmul.f32 %v7406_v38, %v10543_v15  ;;  %v6951_v2 = vpop.permute.xlu1 %6950  ;;  %v3205_v62 = vld [vmem:[#allocation2 + $0x101] ss:$2 sm:$0xff] }
 0x380   : > { %v7410_v10 = vpop.eup %7409  ;;  %v3062_v37 = vmul.f32 %v3012_v58, %v2662_v41  ;;  %v2507_v25 = vmul.f32 %v7408_v61, %v8799_v27  ;;  %7419 = vrsqrt.f32 %v2410_v51  ;;  %v6953_v48 = vunpack.i.h.bf16 %v6951_v2 }
 0x381   : > { %v7412_v9 = vpop.eup %7411  ;;  %v3013_v12 = vadd.f32 1.0, %v7410_v10  ;;  %v2766_v23 = vmul.f32 %v2716_v17, %v9282_v28  ;;  %v2717_v49 = vmul.f32 0.044715, %v9292_v47  ;;  %v2562_v30 = vmul.f32 %v9044_v32, %v2506_v42  ;;  %v3255_v17 = vld [vmem:[#allocation2 + $0x102] ss:$2 sm:$0xff] }
 0x382   : > { %3112 = vst.msk [vmem:[#allocation2 + $0x138] sm:$0xff] %vm1858_vm5, %v3062_v37  ;;  %v2563_v24 = vmul.f32 %v9044_v32, %v2507_v25  ;;  %v2508_v0 = vmul.f32 %v7412_v9, %v10544_v8  ;;  %v6952_v60 = vunpack.i.l.bf16 %v6951_v2  ;;  %v3499_v57 = vsel %vm3497_vm7, %v3473_v21, %v6953_v48  ;;  %v3257_v7 = vld [vmem:[#allocation2 + $0x112] ss:$2 sm:$0xff] }
 0x383   : > { %v3063_v27 = vmul.f32 %v3013_v12, %v2663_v1  ;;  %v2816_v18 = vmul.f32 %v2766_v23, %v9282_v28  ;;  %v2767_v13 = vmul.f32 %v2717_v49, %v9292_v47  ;;  %v9305_v31 = vadd.f32 %v9051_v54, %v2562_v30  ;;  %v3127_v12 = vld [vmem:[#allocation2 + $0x20] ss:$2 sm:$0xff]  ;;  %v3129_v23 = vld [vmem:[#allocation2 + $0x30] ss:$2 sm:$0xff] }
 0x384   : > { %v9308_v46 = vadd.f32 %v9051_v54, %v2563_v24  ;;  %v2564_v33 = vmul.f32 %v9044_v32, %v2508_v0  ;;  %v3498_v59 = vsel %vm3497_vm7, %v3472_v35, %v6952_v60  ;;  %v7024_v61 = vpack.i.bf16 %v3207_v50, %v3205_v62 }
 0x385   : > { %v7414_v45 = vpop.eup %7413  ;;  %3113 = vst.msk [vmem:[#allocation2 + $0x140] sm:$0xff] %vm1858_vm5, %v3063_v27  ;;  %v2866_v40 = vadd.f32 %v2816_v18, %v9282_v28  ;;  %v2817_v39 = vmul.f32 %v2767_v13, %v9292_v47  ;;  %v2718_v56 = vmul.f32 0.044715, %v9305_v31  ;;  %v6956_v38 = vpop.permute.xlu1 %6955  ;;  %v7029_v10 = vpack.i.bf16 %v3257_v7, %v3255_v17  ;;  %v3259_v21 = vld [vmem:[#allocation2 + $0x122] ss:$2 sm:$0xff] }
 0x386   : > { %v3014_v63 = vadd.f32 1.0, %v7414_v45  ;;  %v2719_v5 = vmul.f32 0.044715, %v9308_v46  ;;  %v7416_v36 = vpop.eup %7415  ;;  %v9321_v22 = vadd.f32 %v9051_v54, %v2564_v33  ;;  %v3535_v37 = vpack.c.bf16 %v3499_v57, %v3498_v59  ;;  %7025 = vrot.lane.b32.xlu1 %v7024_v61, %s7709_s11  ;;  %v3133_v59 = vld [vmem:[#allocation2 + $0x50] ss:$2 sm:$0xff] }
 0x387   : > { %v2916_v14 = vmul.f32 0.7978846, %v2866_v40  ;;  %v2867_v29 = vadd.f32 %v2817_v39, %v9292_v47  ;;  %v2768_v43 = vmul.f32 %v2718_v56, %v9305_v31  ;;  %v2509_v6 = vmul.f32 %v7416_v36, %v8828_v53  ;;  %7030 = vrot.lane.b32.xlu0 %v7029_v10, %s7710_s23  ;;  %v7645_v56 = vld [vmem:[%s7739_s21] ss:$0 sm:$0xff] }
 0x388   : > { %v3064_v34 = vmul.f32 %v3014_v63, %v2664_v44  ;;  %v2769_v41 = vmul.f32 %v2719_v5, %v9308_v46  ;;  %v2720_v26 = vmul.f32 0.044715, %v9321_v22  ;;  %v6958_v2 = vunpack.i.h.bf16 %v6956_v38  ;;  %6718 = vmatmul.mubr.msk.bf16.vlgmr.msra.gmra.mxu1 %vm3591_vm8, %v3535_v37  ;;  %v3209_v63 = vld [vmem:[#allocation2 + $0x121] ss:$2 sm:$0xff] }
 0x389   : > { %7421 = vtanh.f32 %v2916_v14  ;;  %v2917_v16 = vmul.f32 0.7978846, %v2867_v29  ;;  %v2818_v58 = vmul.f32 %v2768_v43, %v9305_v31  ;;  %v2565_v44 = vmul.f32 %v9044_v32, %v2509_v6  ;;  %6721 = vmatprep.mubr.msk.bf16.mxu1 %vm7707_vm1, %v10537_v19  ;;  %v7646_v29 = vld [vmem:[%s7744_s25] ss:$0 sm:$0xff] }
 0x38a   : > { %3114 = vst.msk [vmem:[#allocation2 + $0x148] sm:$0xff] %vm1858_vm5, %v3064_v34  ;;  %v2819_v1 = vmul.f32 %v2769_v41, %v9308_v46  ;;  %v2770_v52 = vmul.f32 %v2720_v26, %v9321_v22  ;;  %v6957_v49 = vunpack.i.l.bf16 %v6956_v38  ;;  %v3475_v8 = vsel %vm1858_vm5, %v3129_v23, %v6958_v2  ;;  %v3131_v6 = vld [vmem:[#allocation2 + $0x40] ss:$2 sm:$0xff] }
 0x38b   : > { %v6961_v53 = vpop.permute.xlu0 %6960  ;;  %7423 = vtanh.f32 %v2917_v16  ;;  %v2868_v42 = vadd.f32 %v2818_v58, %v9305_v31  ;;  %v9336_v51 = vadd.f32 %v9051_v54, %v2565_v44  ;;  %v3211_v54 = vld [vmem:[#allocation2 + $0x131] ss:$2 sm:$0xff]  ;;  %v2666_v62 = vmul.f32 0.5, %v9282_v28 }
 0x38c   : > { %v7418_v15 = vpop.eup %7417  ;;  %v2869_v25 = vadd.f32 %v2819_v1, %v9308_v46  ;;  %v2820_v9 = vmul.f32 %v2770_v52, %v9321_v22  ;;  %v6963_v11 = vunpack.i.h.bf16 %v6961_v53  ;;  %v3474_v48 = vsel %vm1858_vm5, %v3127_v12, %v6957_v49  ;;  %v3261_v45 = vld [vmem:[#allocation2 + $0x132] ss:$2 sm:$0xff] }
 0x38d   : > { %v3015_v32 = vadd.f32 1.0, %v7418_v15  ;;  %v2918_v30 = vmul.f32 0.7978846, %v2868_v42  ;;  %v7420_v0 = vpop.eup %7419  ;;  %v2721_v13 = vmul.f32 0.044715, %v9336_v51  ;;  %v6962_v60 = vunpack.i.l.bf16 %v6961_v53 }
 0x38e   : > { %v2919_v24 = vmul.f32 0.7978846, %v2869_v25  ;;  %v2870_v18 = vadd.f32 %v2820_v9, %v9321_v22  ;;  %v2510_v33 = vmul.f32 %v7420_v0, %v8855_v55  ;;  %v3501_v4 = vsel %vm3497_vm7, %v3475_v8, %v6963_v11 }
 0x38f   : > { %v3065_v27 = vmul.f32 %v3015_v32, %v9288_v3  ;;  %7425 = vtanh.f32 %v2918_v30  ;;  %v2771_v39 = vmul.f32 %v2721_v13, %v9336_v51  ;;  %v7034_v20 = vpack.i.bf16 %v3211_v54, %v3209_v63 }
 0x390   : > { %7427 = vtanh.f32 %v2919_v24  ;;  %v2920_v3 = vmul.f32 0.7978846, %v2870_v18  ;;  %v2566_v5 = vmul.f32 %v7645_v56, %v2510_v33  ;;  %v3500_v35 = vsel %vm3497_vm7, %v3474_v48, %v6962_v60 }
 0x391   : > { %v6966_v40 = vpop.permute.xlu1 %6965  ;;  %3115 = vst.msk [vmem:[#allocation2 + $0x150] sm:$0xff] %vm1858_vm5, %v3065_v27  ;;  %v7039_v57 = vpack.i.bf16 %v3261_v45, %v3259_v21  ;;  %v2821_v36 = vmul.f32 %v2771_v39, %v9336_v51  ;;  %v3536_v34 = vpack.c.bf16 %v3501_v4, %v3500_v35  ;;  %7035 = vrot.lane.b32.xlu1 %v7034_v20, %s7709_s11  ;;  %v2667_v10 = vmul.f32 0.5, %v9292_v47  ;;  %v3213_v18 = vld [vmem:[#allocation2 + $0x141] ss:$2 sm:$0xff]  ;;  %v3135_v20 = vld [vmem:[#allocation2 + $0x60] ss:$2 sm:$0xff] }
 0x392   : > { %v6968_v55 = vunpack.i.h.bf16 %v6966_v40  ;;  %7429 = vtanh.f32 %v2920_v3  ;;  %v6967_v14 = vunpack.i.l.bf16 %v6966_v40  ;;  %v9358_v50 = vadd.f32 %v7646_v29, %v2566_v5 }
 0x393   : > { %7040 = vrot.lane.b32.xlu0 %v7039_v57, %s7710_s23  ;;  %v2871_v41 = vadd.f32 %v2821_v36, %v9336_v51  ;;  %6722 = vmatmul.mubr.msk.bf16.gmra.mxu1 %vm3591_vm8, %v3536_v34  ;;  %v2668_v47 = vmul.f32 0.5, %v9305_v31  ;;  %v2669_v11 = vmul.f32 0.5, %v9308_v46  ;;  %v2670_v0 = vmul.f32 0.5, %v9321_v22  ;;  %v3137_v22 = vld [vmem:[#allocation2 + $0x70] ss:$2 sm:$0xff] }
 0x394   : > { %v2722_v38 = vmul.f32 0.044715, %v9358_v50  ;;  %v3477_v58 = vsel %vm1858_vm5, %v3133_v59, %v6968_v55  ;;  %v3476_v1 = vsel %vm1858_vm5, %v3131_v6, %v6967_v14  ;;  %6725 = vmatprep.mubr.msk.bf16.mxu1 %vm7707_vm1, %v10537_v19  ;;  %v2671_v5 = vmul.f32 0.5, %v9336_v51 }
 0x395   : > { %v6971_v43 = vpop.permute.xlu0 %6970  ;;  %v2921_v61 = vmul.f32 0.7978846, %v2871_v41  ;;  %v2672_v6 = vmul.f32 0.5, %v9358_v50 }
 0x396   : > { %v6973_v7 = vunpack.i.h.bf16 %v6971_v43  ;;  %v6972_v16 = vunpack.i.l.bf16 %v6971_v43  ;;  %v7422_v26 = vpop.eup %7421  ;;  %v2772_v28 = vmul.f32 %v2722_v38, %v9358_v50 }
 0x397   : > { %v3016_v44 = vadd.f32 1.0, %v7422_v26  ;;  %7431 = vtanh.f32 %v2921_v61 }
 0x398   : > { %v3503_v17 = vsel %vm3497_vm7, %v3477_v58, %v6973_v7  ;;  %v3502_v53 = vsel %vm3497_vm7, %v3476_v1, %v6972_v16  ;;  %v7424_v52 = vpop.eup %7423  ;;  %v2822_v25 = vmul.f32 %v2772_v28, %v9358_v50  ;;  %v3263_v46 = vld [vmem:[#allocation2 + $0x142] ss:$2 sm:$0xff] }
 0x399   : > { %v3066_v37 = vmul.f32 %v3016_v44, %v2666_v62  ;;  %v3017_v15 = vadd.f32 1.0, %v7424_v52  ;;  %v3537_v42 = vpack.c.bf16 %v3503_v17, %v3502_v53  ;;  %v3139_v53 = vld [vmem:[#allocation2 + $0x80] ss:$2 sm:$0xff]  ;;  %v3141_v52 = vld [vmem:[#allocation2 + $0x90] ss:$2 sm:$0xff] }
 0x39a   : > { %v2872_v32 = vadd.f32 %v2822_v25, %v9358_v50 }
 0x39b   : > { %3116 = vst.msk [vmem:[#allocation2 + $0x158] sm:$0xff] %vm1858_vm5, %v3066_v37  ;;  %v3067_v2 = vmul.f32 %v3017_v15, %v2667_v10  ;;  %6726 = vmatmul.mubr.msk.bf16.gmra.mxu1 %vm3591_vm8, %v3537_v42 }
 0x39c   : > { %v7426_v9 = vpop.eup %7425  ;;  %v2922_v49 = vmul.f32 0.7978846, %v2872_v32  ;;  %6729 = vmatprep.mubr.msk.bf16.mxu1 %vm7707_vm1, %v10537_v19 }
 0x39d   : > { %3117 = vst.msk [vmem:[#allocation2 + $0x160] sm:$0xff] %vm1858_vm5, %v3067_v2  ;;  %v7428_v12 = vpop.eup %7427  ;;  %v3018_v23 = vadd.f32 1.0, %v7426_v9 }
 0x39e   : > { %v3019_v30 = vadd.f32 1.0, %v7428_v12  ;;  %7433 = vtanh.f32 %v2922_v49 }
 0x39f   : > { %v7430_v24 = vpop.eup %7429  ;;  %v3068_v8 = vmul.f32 %v3018_v23, %v2668_v47  ;;  %v3143_v47 = vld [vmem:[#allocation2 + $0xa0] ss:$2 sm:$0xff]  ;;  %v3145_v23 = vld [vmem:[#allocation2 + $0xb0] ss:$2 sm:$0xff] }
 0x3a0   : > { %v3069_v54 = vmul.f32 %v3019_v30, %v2669_v11  ;;  %v3020_v27 = vadd.f32 1.0, %v7430_v24 }
 0x3a1   : > { %3118 = vst.msk [vmem:[#allocation2 + $0x168] sm:$0xff] %vm1858_vm5, %v3068_v8 }
 0x3a2   : > { %v3215_v13 = vld [vmem:[#allocation2 + $0x151] ss:$2 sm:$0xff]  ;;  %v6976_v31 = vpop.permute.xlu1 %6975  ;;  %3119 = vst.msk [vmem:[#allocation2 + $0x170] sm:$0xff] %vm1858_vm5, %v3069_v54  ;;  %v3070_v48 = vmul.f32 %v3020_v27, %v2670_v0 }
 0x3a3   : > { %v7044_v45 = vpack.i.bf16 %v3215_v13, %v3213_v18  ;;  %v6978_v33 = vunpack.i.h.bf16 %v6976_v31  ;;  %v6977_v4 = vunpack.i.l.bf16 %v6976_v31 }
 0x3a4   : > { %v3265_v60 = vld [vmem:[#allocation2 + $0x152] ss:$2 sm:$0xff]  ;;  %v6981_v63 = vpop.permute.xlu0 %6980  ;;  %3120 = vst.msk [vmem:[#allocation2 + $0x178] sm:$0xff] %vm1858_vm5, %v3070_v48  ;;  %v7432_v39 = vpop.eup %7431 }
 0x3a5   : > { %7045 = vrot.lane.b32.xlu1 %v7044_v45, %s7709_s11  ;;  %v7049_v40 = vpack.i.bf16 %v3265_v60, %v3263_v46  ;;  %v6983_v3 = vunpack.i.h.bf16 %v6981_v63  ;;  %v3479_v21 = vsel %vm1858_vm5, %v3137_v22, %v6978_v33  ;;  %v6982_v56 = vunpack.i.l.bf16 %v6981_v63  ;;  %v3147_v48 = vld [vmem:[#allocation2 + $0xc0] ss:$2 sm:$0xff]  ;;  %v3149_v45 = vld [vmem:[#allocation2 + $0xd0] ss:$2 sm:$0xff] }
 0x3a6   : > { %v3021_v35 = vadd.f32 1.0, %v7432_v39  ;;  %v3478_v57 = vsel %vm1858_vm5, %v3135_v20, %v6977_v4 }
 0x3a7   : > { %7050 = vrot.lane.b32.xlu0 %v7049_v40, %s7710_s23  ;;  %v3505_v55 = vsel %vm3497_vm7, %v3479_v21, %v6983_v3  ;;  %v3504_v36 = vsel %vm3497_vm7, %v3478_v57, %v6982_v56  ;;  %v3151_v56 = vld [vmem:[#allocation2 + $0xe0] ss:$2 sm:$0xff] }
 0x3a8   : > { %v3071_v34 = vmul.f32 %v3021_v35, %v2671_v5  ;;  %v3538_v14 = vpack.c.bf16 %v3505_v55, %v3504_v36  ;;  %v3217_v29 = vld [vmem:[#allocation2 + $0x161] ss:$2 sm:$0xff]  ;;  %v3153_v5 = vld [vmem:[#allocation2 + $0xf0] ss:$2 sm:$0xff] }
 0x3a9   : > { %v3267_v16 = vld [vmem:[#allocation2 + $0x162] ss:$2 sm:$0xff] }
 0x3aa   : > { %3121 = vst.msk [vmem:[#allocation2 + $0x180] sm:$0xff] %vm1858_vm5, %v3071_v34  ;;  %6730 = vmatmul.mubr.msk.bf16.gmra.mxu1 %vm3591_vm8, %v3538_v14 }
 0x3ab   : > { %v3219_v43 = vld [vmem:[#allocation2 + $0x171] ss:$2 sm:$0xff]  ;;  %6733 = vmatprep.mubr.msk.bf16.mxu1 %vm7707_vm1, %v10537_v19  ;;  %v7434_v51 = vpop.eup %7433 }
 0x3ac   : > { %v7054_v41 = vpack.i.bf16 %v3219_v43, %v3217_v29  ;;  %v3022_v59 = vadd.f32 1.0, %v7434_v51 }
 0x3ae   : > { %7055 = vrot.lane.b32.xlu1 %v7054_v41, %s7709_s11  ;;  %v3072_v7 = vmul.f32 %v3022_v59, %v2672_v6  ;;  %v3155_v59 = vld [vmem:[#allocation2 + $0x100] ss:$2 sm:$0xff] }
 0x3b0   : > { %3122 = vst.msk [vmem:[#allocation2 + $0x188] sm:$0x7f] %vm2006_vm6, %v3072_v7  ;;  %v3157_v7 = vld [vmem:[#allocation2 + $0x110] ss:$2 sm:$0xff] }
 0x3b1   : > { %v3269_v26 = vld [vmem:[#allocation2 + $0x172] ss:$2 sm:$0xff] }
 0x3b2   : > { %v7059_v62 = vpack.i.bf16 %v3269_v26, %v3267_v16  ;;  %v6986_v38 = vpop.permute.xlu1 %6985 }
 0x3b3   : > { %v6988_v58 = vunpack.i.h.bf16 %v6986_v38  ;;  %v6987_v1 = vunpack.i.l.bf16 %v6986_v38 }
 0x3b4   : > { %7060 = vrot.lane.b32.xlu0 %v7059_v62, %s7710_s23 }
 0x3b5   : > { %v3480_v28 = vsel %vm1858_vm5, %v3139_v53, %v6987_v1  ;;  %v3481_v37 = vsel %vm1858_vm5, %v3141_v52, %v6988_v58 }
 0x3b7   : > { %v3221_v61 = vld [vmem:[#allocation2 + $0x181] ss:$2 sm:$0x7f]  ;;  %v3271_v17 = vld [vmem:[#allocation2 + $0x182] ss:$2 sm:$0x7f] }
 0x3b8   : > { %v6991_v44 = vpop.permute.xlu0 %6990  ;;  %3345 = vrot.lane.b32.xlu1 %v3221_v61, %s7709_s11  ;;  %3445 = vrot.lane.b32.xlu0 %v3271_v17, %s7710_s23 }
 0x3b9   : > { %v6993_v50 = vunpack.i.h.bf16 %v6991_v44  ;;  %v6992_v10 = vunpack.i.l.bf16 %v6991_v44 }
 0x3bb   : > { %v3507_v15 = vsel %vm3497_vm7, %v3481_v37, %v6993_v50  ;;  %v3506_v42 = vsel %vm3497_vm7, %v3480_v28, %v6992_v10  ;;  %v3159_v50 = vld [vmem:[#allocation2 + $0x120] ss:$2 sm:$0xff]  ;;  %v3161_v10 = vld [vmem:[#allocation2 + $0x130] ss:$2 sm:$0xff] }
 0x3bc   : > { %v3539_v25 = vpack.c.bf16 %v3507_v15, %v3506_v42 }
 0x3be   : > { %6734 = vmatmul.mubr.msk.bf16.gmra.mxu1 %vm3591_vm8, %v3539_v25 }
 0x3bf   : > { %6737 = vmatprep.mubr.msk.bf16.mxu1 %vm7707_vm1, %v10537_v19 }
 0x3c2   : > { %v6996_v2 = vpop.permute.xlu1 %6995 }
 0x3c3   : > { %v6998_v32 = vunpack.i.h.bf16 %v6996_v2  ;;  %v6997_v9 = vunpack.i.l.bf16 %v6996_v2 }
 0x3c5   : > { %v3482_v30 = vsel %vm1858_vm5, %v3143_v47, %v6997_v9  ;;  %v3483_v24 = vsel %vm1858_vm5, %v3145_v23, %v6998_v32 }
 0x3c6   : > { %v7001_v12 = vpop.permute.xlu0 %7000 }
 0x3c7   : > { %v7003_v49 = vunpack.i.h.bf16 %v7001_v12  ;;  %v7002_v11 = vunpack.i.l.bf16 %v7001_v12 }
 0x3c9   : > { %v3509_v8 = vsel %vm3497_vm7, %v3483_v24, %v7003_v49  ;;  %v3508_v54 = vsel %vm3497_vm7, %v3482_v30, %v7002_v11  ;;  %v3163_v49 = vld [vmem:[#allocation2 + $0x140] ss:$2 sm:$0xff]  ;;  %v3165_v11 = vld [vmem:[#allocation2 + $0x150] ss:$2 sm:$0xff] }
 0x3ca   : > { %v3540_v0 = vpack.c.bf16 %v3509_v8, %v3508_v54 }
 0x3cc   : > { %6738 = vmatmul.mubr.msk.bf16.gmra.mxu1 %vm3591_vm8, %v3540_v0 }
 0x3cd   : > { %6741 = vmatprep.mubr.msk.bf16.mxu1 %vm7707_vm1, %v10537_v19 }
 0x3d2   : > { %v7006_v27 = vpop.permute.xlu1 %7005 }
 0x3d3   : > { %v7008_v18 = vunpack.i.h.bf16 %v7006_v27  ;;  %v7007_v13 = vunpack.i.l.bf16 %v7006_v27 }
 0x3d5   : > { %v3484_v46 = vsel %vm1858_vm5, %v3147_v48, %v7007_v13  ;;  %v3485_v60 = vsel %vm1858_vm5, %v3149_v45, %v7008_v18 }
 0x3d6   : > { %v7011_v31 = vpop.permute.xlu0 %7010 }
 0x3d7   : > { %v7013_v33 = vunpack.i.h.bf16 %v7011_v31  ;;  %v7012_v4 = vunpack.i.l.bf16 %v7011_v31 }
 0x3d9   : > { %v3511_v63 = vsel %vm3497_vm7, %v3485_v60, %v7013_v33  ;;  %v3510_v22 = vsel %vm3497_vm7, %v3484_v46, %v7012_v4  ;;  %v3167_v33 = vld [vmem:[#allocation2 + $0x160] ss:$2 sm:$0xff]  ;;  %v3169_v4 = vld [vmem:[#allocation2 + $0x170] ss:$2 sm:$0xff] }
 0x3da   : > { %v3541_v40 = vpack.c.bf16 %v3511_v63, %v3510_v22 }
 0x3dc   : > { %6742 = vmatmul.mubr.msk.bf16.gmra.mxu1 %vm3591_vm8, %v3541_v40 }
 0x3dd   : > { %6745 = vmatprep.mubr.msk.bf16.mxu1 %vm7707_vm1, %v10537_v19 }
 0x3e1   : > { %v7016_v3 = vpop.permute.xlu1 %7015 }
 0x3e2   : > { %v7018_v39 = vunpack.i.h.bf16 %v7016_v3  ;;  %v7017_v20 = vunpack.i.l.bf16 %v7016_v3 }
 0x3e3   : > { %v7021_v21 = vpop.permute.xlu0 %7020 }
 0x3e4   : > { %v7023_v35 = vunpack.i.h.bf16 %v7021_v21  ;;  %v7022_v57 = vunpack.i.l.bf16 %v7021_v21  ;;  %v3486_v55 = vsel %vm1858_vm5, %v3151_v56, %v7017_v20  ;;  %v3487_v36 = vsel %vm1858_vm5, %v3153_v5, %v7018_v39  ;;  %v3171_v21 = vld [vmem:[#allocation2 + $0x180] ss:$2 sm:$0x7f] }
 0x3e6   : > { %v3513_v34 = vsel %vm3497_vm7, %v3487_v36, %v7023_v35  ;;  %v3512_v14 = vsel %vm3497_vm7, %v3486_v55, %v7022_v57  ;;  %v9465_v55 = vld [vmem:[%s7754_s3] ss:$0 sm:$0xff] }
 0x3e7   : > { %v3542_v29 = vpack.c.bf16 %v3513_v34, %v3512_v14 }
 0x3e9   : > { %6746 = vmatmul.mubr.msk.bf16.gmra.mxu1 %vm3591_vm8, %v3542_v29 }
 0x3ea   : > { %6749 = vmatprep.mubr.msk.bf16.mxu1 %vm7707_vm1, %v10537_v19 }
 0x3f8   : > { %v7026_v43 = vpop.permute.xlu1 %7025 }
 0x3f9   : > { %v7028_v51 = vunpack.i.h.bf16 %v7026_v43  ;;  %v7027_v41 = vunpack.i.l.bf16 %v7026_v43  ;;  %v7031_v6 = vpop.permute.xlu0 %7030 }
 0x3fa   : > { %v7033_v16 = vunpack.i.h.bf16 %v7031_v6  ;;  %v7032_v26 = vunpack.i.l.bf16 %v7031_v6 }
 0x3fb   : > { %v3488_v62 = vsel %vm1858_vm5, %v3155_v59, %v7027_v41  ;;  %v3489_v38 = vsel %vm1858_vm5, %v3157_v7, %v7028_v51 }
 0x3fc   : > { %v3515_v58 = vsel %vm3497_vm7, %v3489_v38, %v7033_v16  ;;  %v3514_v1 = vsel %vm3497_vm7, %v3488_v62, %v7032_v26 }
 0x3fd   : > { %v3543_v44 = vpack.c.bf16 %v3515_v58, %v3514_v1 }
 0x3ff   : > { %6750 = vmatmul.mubr.msk.bf16.gmra.mxu1 %vm3591_vm8, %v3543_v44 }
 0x400   : > { %6753 = vmatprep.mubr.msk.bf16.mxu1 %vm7707_vm1, %v10537_v19 }
 0x403   : > { %v7036_v61 = vpop.permute.xlu1 %7035 }
 0x404   : > { %v7038_v17 = vunpack.i.h.bf16 %v7036_v61  ;;  %v7037_v53 = vunpack.i.l.bf16 %v7036_v61 }
 0x405   : > { %v7041_v52 = vpop.permute.xlu0 %7040 }
 0x406   : > { %v7043_v28 = vunpack.i.h.bf16 %v7041_v52  ;;  %v7042_v37 = vunpack.i.l.bf16 %v7041_v52  ;;  %v3490_v15 = vsel %vm1858_vm5, %v3159_v50, %v7037_v53  ;;  %v3491_v42 = vsel %vm1858_vm5, %v3161_v10, %v7038_v17 }
 0x408   : > { %v3517_v25 = vsel %vm3497_vm7, %v3491_v42, %v7043_v28  ;;  %v3516_v2 = vsel %vm3497_vm7, %v3490_v15, %v7042_v37 }
 0x409   : > { %v3544_v32 = vpack.c.bf16 %v3517_v25, %v3516_v2 }
 0x40b   : > { %6754 = vmatmul.mubr.msk.bf16.gmra.mxu1 %vm3591_vm8, %v3544_v32 }
 0x40c   : > { %6757 = vmatprep.mubr.msk.bf16.mxu1 %vm7707_vm1, %v10537_v19 }
 0x417   : > { %v7046_v9 = vpop.permute.xlu1 %7045 }
 0x418   : > { %v7048_v12 = vunpack.i.h.bf16 %v7046_v9  ;;  %v7047_v47 = vunpack.i.l.bf16 %v7046_v9 }
 0x419   : > { %v7051_v23 = vpop.permute.xlu0 %7050 }
 0x41a   : > { %v7053_v30 = vunpack.i.h.bf16 %v7051_v23  ;;  %v7052_v24 = vunpack.i.l.bf16 %v7051_v23  ;;  %v3492_v8 = vsel %vm1858_vm5, %v3163_v49, %v7047_v47  ;;  %v3493_v54 = vsel %vm1858_vm5, %v3165_v11, %v7048_v12 }
 0x41c   : > { %v3519_v0 = vsel %vm3497_vm7, %v3493_v54, %v7053_v30  ;;  %v3518_v27 = vsel %vm3497_vm7, %v3492_v8, %v7052_v24 }
 0x41d   : > { %v3545_v18 = vpack.c.bf16 %v3519_v0, %v3518_v27 }
 0x41f   : > { %6758 = vmatmul.mubr.msk.bf16.gmra.mxu1 %vm3591_vm8, %v3545_v18 }
 0x420   : > { %6761 = vmatprep.mubr.msk.bf16.mxu1 %vm7707_vm1, %v10537_v19  ;;  %v7056_v13 = vpop.permute.xlu1 %7055 }
 0x421   : > { %v7058_v31 = vunpack.i.h.bf16 %v7056_v13  ;;  %v7057_v48 = vunpack.i.l.bf16 %v7056_v13 }
 0x423   : > { %v3494_v63 = vsel %vm1858_vm5, %v3167_v33, %v7057_v48  ;;  %v3495_v22 = vsel %vm1858_vm5, %v3169_v4, %v7058_v31 }
 0x426   : > { %v7061_v45 = vpop.permute.xlu0 %7060 }
 0x427   : > { %v7063_v46 = vunpack.i.h.bf16 %v7061_v45  ;;  %v7062_v60 = vunpack.i.l.bf16 %v7061_v45 }
 0x429   : > { %v3521_v40 = vsel %vm3497_vm7, %v3495_v22, %v7063_v46  ;;  %v3520_v3 = vsel %vm3497_vm7, %v3494_v63, %v7062_v60 }
 0x42a   : > { %v3546_v39 = vpack.c.bf16 %v3521_v40, %v3520_v3  ;;  %v3346_v20 = vpop.permute.xlu1 %3345  ;;  %v3446_v5 = vpop.permute.xlu0 %3445 }
 0x42b   : > { %v3496_v56 = vsel %vm1858_vm5, %v3171_v21, %v3346_v20 }
 0x42c   : > { %6762 = vmatmul.mubr.msk.bf16.gmra.mxu1 %vm3591_vm8, %v3546_v39  ;;  %v3522_v35 = vsel %vm3497_vm7, %v3496_v56, %v3446_v5 }
 0x42d   : > { %6765 = vmatprep.mubr.msk.bf16.mxu1 %vm7707_vm1, %v10537_v19  ;;  %v3547_v57 = vpack.c.bf16 %v3522_v35, %v3522_v35 }
 0x434   : > { %6766 = vmatmul.mubr.msk.bf16.gmra.mxu1 %vm3591_vm8, %v3547_v57 }
 0x435   : > { %6781 = vmatprep.mubr.msk.bf16.mxu1 %vm7707_vm1, %v10537_v19 }
 0x448   : > { %v3665_v36 = vpop.f32.mrf.mxu1 }
 0x449   : > { %v9468_v34 = vadd.f32 %v9465_v55, %v3665_v36 }
 0x44a   : > { %v6719_v14 = vpop.f32.mrf.mxu1 }
 0x44b   : > { %v3769_v29 = vsel %vm1858_vm5, %v9468_v34, 0.0 }
 0x44c   : > { %3770 = vadd.xlane.f32.xlu1 %v3769_v29  ;;  %v3668_v43 = vpop.f32.mrf.mxu1 }
 0x44d   : > { %v9473_v51 = vadd.f32 %v9465_v55, %v3668_v43 }
 0x44e   : > { %v6720_v41 = vpop.f32.mrf.mxu1 }
 0x44f   : > { %v3772_v6 = vsel %vm1858_vm5, %v9473_v51, 0.0 }
 0x450   : > { %3773 = vadd.xlane.f32.xlu0 %v3772_v6 }
 0x453   : > { %v3673_v59 = vpop.f32.mrf.mxu1 }
 0x454   : > { %v9478_v7 = vadd.f32 %v9465_v55, %v3673_v59 }
 0x455   : > { %v6723_v16 = vpop.f32.mrf.mxu1 }
 0x456   : > { %v3775_v26 = vsel %vm1858_vm5, %v9478_v7, 0.0 }
 0x457   : > { %3776 = vadd.xlane.f32.xlu0 %v3775_v26  ;;  %v3676_v62 = vpop.f32.mrf.mxu1 }
 0x458   : > { %v9483_v38 = vadd.f32 %v9465_v55, %v3676_v62 }
 0x459   : > { %v6724_v58 = vpop.f32.mrf.mxu1 }
 0x45a   : > { %v3778_v1 = vsel %vm1858_vm5, %v9483_v38, 0.0 }
 0x45b   : > { %3779 = vadd.xlane.f32.xlu1 %v3778_v1  ;;  %v3681_v44 = vpop.f32.mrf.mxu1 }
 0x45c   : > { %v9488_v61 = vadd.f32 %v9465_v55, %v3681_v44 }
 0x45d   : > { %v6727_v17 = vpop.f32.mrf.mxu1 }
 0x45e   : > { %v3781_v53 = vsel %vm1858_vm5, %v9488_v61, 0.0 }
 0x45f   : > { %3782 = vadd.xlane.f32.xlu0 %v3781_v53  ;;  %v3684_v52 = vpop.f32.mrf.mxu1 }
 0x460   : > { %v9493_v50 = vadd.f32 %v9465_v55, %v3684_v52 }
 0x461   : > { %v6728_v10 = vpop.f32.mrf.mxu1 }
 0x462   : > { %v3784_v28 = vsel %vm1858_vm5, %v9493_v50, 0.0 }
 0x463   : > { %3785 = vadd.xlane.f32.xlu1 %v3784_v28 }
 0x46a   : > { %v3689_v37 = vpop.f32.mrf.mxu1 }
 0x46b   : > { %v9498_v15 = vadd.f32 %v9465_v55, %v3689_v37 }
 0x46c   : > { %v6731_v42 = vpop.f32.mrf.mxu1 }
 0x46d   : > { %v3787_v25 = vsel %vm1858_vm5, %v9498_v15, 0.0 }
 0x46e   : > { %3788 = vadd.xlane.f32.xlu0 %v3787_v25  ;;  %v3692_v2 = vpop.f32.mrf.mxu1 }
 0x46f   : > { %v9503_v32 = vadd.f32 %v9465_v55, %v3692_v2 }
 0x470   : > { %v6732_v9 = vpop.f32.mrf.mxu1 }
 0x471   : > { %v3790_v12 = vsel %vm1858_vm5, %v9503_v32, 0.0 }
 0x472   : > { %3791 = vadd.xlane.f32.xlu1 %v3790_v12 }
 0x47e   : > { %v3697_v47 = vpop.f32.mrf.mxu1 }
 0x47f   : > { %v9508_v23 = vadd.f32 %v9465_v55, %v3697_v47 }
 0x480   : > { %v6735_v49 = vpop.f32.mrf.mxu1 }
 0x481   : > { %v3793_v11 = vsel %vm1858_vm5, %v9508_v23, 0.0 }
 0x482   : > { %3794 = vadd.xlane.f32.xlu0 %v3793_v11  ;;  %v3700_v30 = vpop.f32.mrf.mxu1 }
 0x483   : > { %v9513_v24 = vadd.f32 %v9465_v55, %v3700_v30 }
 0x484   : > { %v6736_v8 = vpop.f32.mrf.mxu1 }
 0x485   : > { %v3796_v54 = vsel %vm1858_vm5, %v9513_v24, 0.0 }
 0x486   : > { %3797 = vadd.xlane.f32.xlu1 %v3796_v54 }
 0x48c   : > { %v3705_v0 = vpop.f32.mrf.mxu1 }
 0x48d   : > { %v9518_v27 = vadd.f32 %v9465_v55, %v3705_v0 }
 0x48e   : > { %v6739_v18 = vpop.f32.mrf.mxu1 }
 0x48f   : > { %v3799_v13 = vsel %vm1858_vm5, %v9518_v27, 0.0 }
 0x490   : > { %3800 = vadd.xlane.f32.xlu0 %v3799_v13  ;;  %v3708_v31 = vpop.f32.mrf.mxu1 }
 0x491   : > { %v9523_v48 = vadd.f32 %v9465_v55, %v3708_v31 }
 0x492   : > { %v6740_v45 = vpop.f32.mrf.mxu1 }
 0x493   : > { %v3802_v33 = vsel %vm1858_vm5, %v9523_v48, 0.0 }
 0x494   : > { %3803 = vadd.xlane.f32.xlu1 %v3802_v33 }
 0x49c   : > { %v3713_v4 = vpop.f32.mrf.mxu1 }
 0x49d   : > { %v9528_v46 = vadd.f32 %v9465_v55, %v3713_v4 }
 0x49e   : > { %v6743_v60 = vpop.f32.mrf.mxu1 }
 0x49f   : > { %v3805_v63 = vsel %vm1858_vm5, %v9528_v46, 0.0 }
 0x4a0   : > { %3806 = vadd.xlane.f32.xlu0 %v3805_v63  ;;  %v3716_v22 = vpop.f32.mrf.mxu1 }
 0x4a1   : > { %v9533_v40 = vadd.f32 %v9465_v55, %v3716_v22 }
 0x4a2   : > { %v6744_v3 = vpop.f32.mrf.mxu1 }
 0x4a3   : > { %v3808_v39 = vsel %vm1858_vm5, %v9533_v40, 0.0 }
 0x4a4   : > { %3809 = vadd.xlane.f32.xlu1 %v3808_v39 }
 0x4a9   : > { %v3721_v20 = vpop.f32.mrf.mxu1 }
 0x4aa   : > { %v9538_v21 = vadd.f32 %v9465_v55, %v3721_v20 }
 0x4ab   : > { %v6747_v56 = vpop.f32.mrf.mxu1 }
 0x4ac   : > { %v3811_v5 = vsel %vm1858_vm5, %v9538_v21, 0.0 }
 0x4ad   : > { %3812 = vadd.xlane.f32.xlu0 %v3811_v5  ;;  %v3724_v35 = vpop.f32.mrf.mxu1 }
 0x4ae   : > { %v9543_v57 = vadd.f32 %v9465_v55, %v3724_v35 }
 0x4af   : > { %v6748_v36 = vpop.f32.mrf.mxu1 }
 0x4b0   : > { %v3814_v14 = vsel %vm1858_vm5, %v9543_v57, 0.0 }
 0x4b1   : > { %3815 = vadd.xlane.f32.xlu1 %v3814_v14 }
 0x4bf   : > { %v3729_v29 = vpop.f32.mrf.mxu1 }
 0x4c0   : > { %v9548_v43 = vadd.f32 %v9465_v55, %v3729_v29 }
 0x4c1   : > { %v6751_v41 = vpop.f32.mrf.mxu1 }
 0x4c2   : > { %v3817_v6 = vsel %vm1858_vm5, %v9548_v43, 0.0 }
 0x4c3   : > { %3818 = vadd.xlane.f32.xlu0 %v3817_v6  ;;  %v3732_v59 = vpop.f32.mrf.mxu1 }
 0x4c4   : > { %v9553_v16 = vadd.f32 %v9465_v55, %v3732_v59 }
 0x4c5   : > { %v6752_v26 = vpop.f32.mrf.mxu1 }
 0x4c6   : > { %v3820_v62 = vsel %vm1858_vm5, %v9553_v16, 0.0 }
 0x4c7   : > { %3821 = vadd.xlane.f32.xlu1 %v3820_v62 }
 0x4cb   : > { %v3737_v58 = vpop.f32.mrf.mxu1 }
 0x4cc   : > { %v9558_v1 = vadd.f32 %v9465_v55, %v3737_v58 }
 0x4cd   : > { %v6755_v44 = vpop.f32.mrf.mxu1 }
 0x4ce   : > { %v3823_v17 = vsel %vm1858_vm5, %v9558_v1, 0.0 }
 0x4cf   : > { %3824 = vadd.xlane.f32.xlu0 %v3823_v17  ;;  %v3740_v53 = vpop.f32.mrf.mxu1 }
 0x4d0   : > { %v9563_v52 = vadd.f32 %v9465_v55, %v3740_v53 }
 0x4d1   : > { %v6756_v10 = vpop.f32.mrf.mxu1 }
 0x4d2   : > { %v3826_v28 = vsel %vm1858_vm5, %v9563_v52, 0.0 }
 0x4d3   : > { %3827 = vadd.xlane.f32.xlu1 %v3826_v28 }
 0x4d5   : > { %v3771_v11 = vpop.xlane.xlu1 %3770 }
 0x4d6   : > { %v3844_v8 = vmul.f32 0.03125, %v3771_v11 }
 0x4d8   : > { %v9581_v13 = vsub.f32 %v9468_v34, %v3844_v8 }
 0x4d9   : > { %v3774_v30 = vpop.xlane.xlu0 %3773 }
 0x4da   : > { %v3845_v31 = vmul.f32 0.03125, %v3774_v30  ;;  %v3894_v34 = vmul.f32 %v9581_v13, %v9581_v13 }
 0x4dc   : > { %v9589_v39 = vsub.f32 %v9473_v51, %v3845_v31  ;;  %v3919_v59 = vsel %vm1858_vm5, %v3894_v34, 0.0 }
 0x4df   : > { %v3745_v37 = vpop.f32.mrf.mxu1 }
 0x4e0   : > { %v9568_v42 = vadd.f32 %v9465_v55, %v3745_v37  ;;  %v3777_v54 = vpop.xlane.xlu0 %3776 }
 0x4e1   : > { %v6759_v25 = vpop.f32.mrf.mxu1  ;;  %v3846_v33 = vmul.f32 0.03125, %v3777_v54 }
 0x4e2   : > { %v3829_v2 = vsel %vm1858_vm5, %v9568_v42, 0.0 }
 0x4e3   : > { %3830 = vadd.xlane.f32.xlu0 %v3829_v2  ;;  %v3748_v9 = vpop.f32.mrf.mxu1  ;;  %v9594_v5 = vsub.f32 %v9478_v7, %v3846_v33  ;;  %v3895_v7 = vmul.f32 %v9589_v39, %v9589_v39 }
 0x4e4   : > { %v9573_v12 = vadd.f32 %v9465_v55, %v3748_v9  ;;  %v3780_v4 = vpop.xlane.xlu1 %3779 }
 0x4e5   : > { %v6760_v47 = vpop.f32.mrf.mxu1  ;;  %v3847_v20 = vmul.f32 0.03125, %v3780_v4  ;;  %v3922_v10 = vsel %vm1858_vm5, %v3895_v7, 0.0 }
 0x4e6   : > { %v3832_v49 = vsel %vm1858_vm5, %v9573_v12, 0.0 }
 0x4e7   : > { %3833 = vadd.xlane.f32.xlu1 %v3832_v49  ;;  %v9602_v51 = vsub.f32 %v9483_v38, %v3847_v20 }
 0x4e8   : > { %v3783_v63 = vpop.xlane.xlu0 %3782 }
 0x4e9   : > { %v3848_v35 = vmul.f32 0.03125, %v3783_v63  ;;  %v3897_v28 = vmul.f32 %v9602_v51, %v9602_v51 }
 0x4eb   : > { %v9608_v26 = vsub.f32 %v9488_v61, %v3848_v35  ;;  %v3928_v49 = vsel %vm1858_vm5, %v3897_v28, 0.0 }
 0x4ec   : > { %v3753_v0 = vpop.f32.mrf.mxu1  ;;  %v3786_v14 = vpop.xlane.xlu1 %3785 }
 0x4ed   : > { %v9578_v18 = vadd.f32 %v9465_v55, %v3753_v0  ;;  %v3849_v62 = vmul.f32 0.03125, %v3786_v14  ;;  %v3898_v9 = vmul.f32 %v9608_v26, %v9608_v26 }
 0x4ee   : > { %v6763_v45 = vpop.f32.mrf.mxu1 }
 0x4ef   : > { %v3835_v60 = vsel %vm1858_vm5, %v9578_v18, 0.0  ;;  %v9618_v61 = vsub.f32 %v9493_v50, %v3849_v62  ;;  %v3931_v50 = vsel %vm1858_vm5, %v3898_v9, 0.0 }
 0x4f0   : > { %3836 = vadd.xlane.f32.xlu0 %v3835_v60  ;;  %v3756_v22 = vpop.f32.mrf.mxu1 }
 0x4f1   : > { %v9586_v3 = vadd.f32 %v9465_v55, %v3756_v22  ;;  %v3899_v30 = vmul.f32 %v9618_v61, %v9618_v61 }
 0x4f2   : > { %v6764_v56 = vpop.f32.mrf.mxu1 }
 0x4f3   : > { %v3838_v36 = vsel %vm1858_vm5, %v9586_v3, 0.0  ;;  %v3934_v54 = vsel %vm1858_vm5, %v3899_v30, 0.0 }
 0x4f4   : > { %3839 = vadd.xlane.f32.xlu1 %v3838_v36  ;;  %v3761_v29 = vpop.f32.mrf.mxu1 }
 0x4f5   : > { %v9599_v41 = vadd.f32 %v9465_v55, %v3761_v29  ;;  %v3896_v55 = vmul.f32 %v9594_v5, %v9594_v5 }
 0x4f6   : > { %v6767_v6 = vpop.f32.mrf.mxu1 }
 0x4f7   : > { %v3841_v58 = vsel %vm2006_vm6, %v9599_v41, 0.0  ;;  %v3789_v44 = vpop.xlane.xlu0 %3788  ;;  %v3925_v25 = vsel %vm1858_vm5, %v3896_v55, 0.0 }
 0x4f8   : > { %3920 = vadd.xlane.f32.xlu1 %v3919_v59  ;;  %3842 = vadd.xlane.f32.xlu0 %v3841_v58  ;;  %v3764_v38 = vpop.f32.mrf.mxu1  ;;  %v3850_v17 = vmul.f32 0.03125, %v3789_v44 }
 0x4fa   : > { %v6768_v53 = vpop.f32.mrf.mxu1  ;;  %v9621_v37 = vsub.f32 %v9498_v15, %v3850_v17 }
 0x4fb   : > { %v3792_v2 = vpop.xlane.xlu1 %3791 }
 0x4fc   : > { %3926 = vadd.xlane.f32.xlu1 %v3925_v25  ;;  %3923 = vadd.xlane.f32.xlu0 %v3922_v10  ;;  %v3851_v47 = vmul.f32 0.03125, %v3792_v2  ;;  %v3900_v15 = vmul.f32 %v9621_v37, %v9621_v37 }
 0x4fe   : > { %v9628_v11 = vsub.f32 %v9503_v32, %v3851_v47  ;;  %v3937_v8 = vsel %vm1858_vm5, %v3900_v15, 0.0 }
 0x500   : > { %3932 = vadd.xlane.f32.xlu1 %v3931_v50  ;;  %3929 = vadd.xlane.f32.xlu0 %v3928_v49  ;;  %v3901_v0 = vmul.f32 %v9628_v11, %v9628_v11 }
 0x502   : > { %v3940_v32 = vsel %vm1858_vm5, %v3901_v0, 0.0 }
 0x504   : > { %3938 = vadd.xlane.f32.xlu1 %v3937_v8  ;;  %3935 = vadd.xlane.f32.xlu0 %v3934_v54 }
 0x508   : > { %3941 = vadd.xlane.f32.xlu0 %v3940_v32 }
 0x50b   : > { %v3795_v31 = vpop.xlane.xlu0 %3794 }
 0x50c   : > { %v3852_v45 = vmul.f32 0.03125, %v3795_v31 }
 0x50e   : > { %v9641_v33 = vsub.f32 %v9508_v23, %v3852_v45 }
 0x50f   : > { %v3798_v4 = vpop.xlane.xlu1 %3797 }
 0x510   : > { %v3853_v60 = vmul.f32 0.03125, %v3798_v4  ;;  %v3902_v63 = vmul.f32 %v9641_v33, %v9641_v33 }
 0x512   : > { %v9646_v22 = vsub.f32 %v9513_v24, %v3853_v60  ;;  %v3943_v20 = vsel %vm1858_vm5, %v3902_v63, 0.0 }
 0x513   : > { %3944 = vadd.xlane.f32.xlu1 %v3943_v20 }
 0x514   : > { %v3903_v56 = vmul.f32 %v9646_v22, %v9646_v22 }
 0x516   : > { %v3946_v34 = vsel %vm1858_vm5, %v3903_v56, 0.0 }
 0x517   : > { %3947 = vadd.xlane.f32.xlu0 %v3946_v34 }
 0x519   : > { %v3801_v35 = vpop.xlane.xlu0 %3800 }
 0x51a   : > { %v3854_v23 = vmul.f32 0.03125, %v3801_v35 }
 0x51c   : > { %v9653_v36 = vsub.f32 %v9518_v27, %v3854_v23 }
 0x51d   : > { %v3804_v14 = vpop.xlane.xlu1 %3803 }
 0x51e   : > { %v3855_v29 = vmul.f32 0.03125, %v3804_v14  ;;  %v3904_v24 = vmul.f32 %v9653_v36, %v9653_v36 }
 0x520   : > { %v9658_v6 = vsub.f32 %v9523_v48, %v3855_v29  ;;  %v3949_v59 = vsel %vm1858_vm5, %v3904_v24, 0.0 }
 0x521   : > { %3950 = vadd.xlane.f32.xlu1 %v3949_v59 }
 0x522   : > { %v3905_v7 = vmul.f32 %v9658_v6, %v9658_v6 }
 0x524   : > { %v3952_v62 = vsel %vm1858_vm5, %v3905_v7, 0.0 }
 0x525   : > { %3953 = vadd.xlane.f32.xlu0 %v3952_v62 }
 0x529   : > { %v3807_v58 = vpop.xlane.xlu0 %3806 }
 0x52a   : > { %v3856_v27 = vmul.f32 0.03125, %v3807_v58 }
 0x52c   : > { %v9665_v44 = vsub.f32 %v9528_v46, %v3856_v27 }
 0x52d   : > { %v3810_v55 = vpop.xlane.xlu1 %3809 }
 0x52e   : > { %v3857_v38 = vmul.f32 0.03125, %v3810_v55  ;;  %v3906_v48 = vmul.f32 %v9665_v44, %v9665_v44 }
 0x530   : > { %v9670_v17 = vsub.f32 %v9533_v40, %v3857_v38  ;;  %v3955_v53 = vsel %vm1858_vm5, %v3906_v48, 0.0 }
 0x531   : > { %3956 = vadd.xlane.f32.xlu1 %v3955_v53 }
 0x532   : > { %v3907_v10 = vmul.f32 %v9670_v17, %v9670_v17 }
 0x534   : > { %v3958_v28 = vsel %vm1858_vm5, %v3907_v10, 0.0 }
 0x535   : > { %3959 = vadd.xlane.f32.xlu0 %v3958_v28 }
 0x536   : > { %v3813_v25 = vpop.xlane.xlu0 %3812 }
 0x537   : > { %v3858_v46 = vmul.f32 0.03125, %v3813_v25 }
 0x539   : > { %v9677_v2 = vsub.f32 %v9538_v21, %v3858_v46 }
 0x53a   : > { %v3816_v9 = vpop.xlane.xlu1 %3815 }
 0x53b   : > { %v3859_v47 = vmul.f32 0.03125, %v3816_v9  ;;  %v3908_v40 = vmul.f32 %v9677_v2, %v9677_v2 }
 0x53d   : > { %v9682_v49 = vsub.f32 %v9543_v57, %v3859_v47  ;;  %v3961_v50 = vsel %vm1858_vm5, %v3908_v40, 0.0 }
 0x53e   : > { %3962 = vadd.xlane.f32.xlu1 %v3961_v50 }
 0x53f   : > { %v3909_v15 = vmul.f32 %v9682_v49, %v9682_v49 }
 0x541   : > { %v3964_v30 = vsel %vm1858_vm5, %v3909_v15, 0.0 }
 0x542   : > { %3965 = vadd.xlane.f32.xlu0 %v3964_v30 }
 0x54c   : > { %v3819_v8 = vpop.xlane.xlu0 %3818 }
 0x54d   : > { %v3860_v21 = vmul.f32 0.03125, %v3819_v8 }
 0x54f   : > { %v9689_v54 = vsub.f32 %v9548_v43, %v3860_v21 }
 0x550   : > { %v3822_v0 = vpop.xlane.xlu1 %3821 }
 0x551   : > { %v3861_v32 = vmul.f32 0.03125, %v3822_v0  ;;  %v3910_v57 = vmul.f32 %v9689_v54, %v9689_v54 }
 0x553   : > { %v9694_v31 = vsub.f32 %v9553_v16, %v3861_v32  ;;  %v3967_v45 = vsel %vm1858_vm5, %v3910_v57, 0.0 }
 0x554   : > { %3968 = vadd.xlane.f32.xlu1 %v3967_v45 }
 0x555   : > { %v3911_v60 = vmul.f32 %v9694_v31, %v9694_v31 }
 0x557   : > { %v3970_v20 = vsel %vm1858_vm5, %v3911_v60, 0.0 }
 0x558   : > { %v3825_v4 = vpop.xlane.xlu0 %3824  ;;  %3971 = vadd.xlane.f32.xlu0 %v3970_v20 }
 0x559   : > { %v3862_v63 = vmul.f32 0.03125, %v3825_v4 }
 0x55b   : > { %v9701_v43 = vsub.f32 %v9558_v1, %v3862_v63 }
 0x55c   : > { %v3828_v56 = vpop.xlane.xlu1 %3827 }
 0x55d   : > { %v3863_v34 = vmul.f32 0.03125, %v3828_v56  ;;  %v3912_v16 = vmul.f32 %v9701_v43, %v9701_v43 }
 0x55f   : > { %v9706_v35 = vsub.f32 %v9563_v52, %v3863_v34  ;;  %v3973_v23 = vsel %vm1858_vm5, %v3912_v16, 0.0 }
 0x560   : > { %3974 = vadd.xlane.f32.xlu1 %v3973_v23 }
 0x561   : > { %v3913_v14 = vmul.f32 %v9706_v35, %v9706_v35 }
 0x563   : > { %v3976_v29 = vsel %vm1858_vm5, %v3913_v14, 0.0 }
 0x564   : > { %3977 = vadd.xlane.f32.xlu0 %v3976_v29 }
 0x56c   : > { %v3831_v1 = vpop.xlane.xlu0 %3830 }
 0x56d   : > { %v3864_v24 = vmul.f32 0.03125, %v3831_v1 }
 0x56f   : > { %v9713_v59 = vsub.f32 %v9568_v42, %v3864_v24 }
 0x570   : > { %v3834_v7 = vpop.xlane.xlu1 %3833 }
 0x571   : > { %v3865_v62 = vmul.f32 0.03125, %v3834_v7  ;;  %v3914_v52 = vmul.f32 %v9713_v59, %v9713_v59 }
 0x573   : > { %v9718_v58 = vsub.f32 %v9573_v12, %v3865_v62  ;;  %v3979_v27 = vsel %vm1858_vm5, %v3914_v52, 0.0 }
 0x574   : > { %3980 = vadd.xlane.f32.xlu1 %v3979_v27 }
 0x575   : > { %v3915_v55 = vmul.f32 %v9718_v58, %v9718_v58 }
 0x577   : > { %v3982_v38 = vsel %vm1858_vm5, %v3915_v55, 0.0  ;;  %v9743_v55 = vld [vmem:[%s7759_s8] ss:$0 sm:$0xff] }
 0x578   : > { %3983 = vadd.xlane.f32.xlu0 %v3982_v38 }
 0x579   : > { %v3837_v48 = vpop.xlane.xlu0 %3836 }
 0x57a   : > { %v3866_v42 = vmul.f32 0.03125, %v3837_v48 }
 0x57c   : > { %v9725_v53 = vsub.f32 %v9578_v18, %v3866_v42  ;;  %v9747_v42 = vld [vmem:[%s7764_s14] ss:$0 sm:$0xff] }
 0x57d   : > { %v3840_v10 = vpop.xlane.xlu1 %3839 }
 0x57e   : > { %v3867_v28 = vmul.f32 0.03125, %v3840_v10  ;;  %v3916_v12 = vmul.f32 %v9725_v53, %v9725_v53 }
 0x580   : > { %v9730_v25 = vsub.f32 %v9586_v3, %v3867_v28  ;;  %v3985_v46 = vsel %vm1858_vm5, %v3916_v12, 0.0 }
 0x581   : > { %3986 = vadd.xlane.f32.xlu1 %v3985_v46  ;;  %v3921_v9 = vpop.xlane.xlu1 %3920  ;;  %v3843_v47 = vpop.xlane.xlu0 %3842 }
 0x582   : > { %v3994_v40 = vmul.f32 0.03125, %v3921_v9  ;;  %v3868_v50 = vmul.f32 0.03125, %v3843_v47  ;;  %v3917_v15 = vmul.f32 %v9730_v25, %v9730_v25 }
 0x584   : > { %v4019_v18 = vadd.f32 1e-05, %v3994_v40  ;;  %v9736_v30 = vsub.f32 %v9599_v41, %v3868_v50  ;;  %v3988_v8 = vsel %vm1858_vm5, %v3917_v15, 0.0 }
 0x585   : > { %v3927_v21 = vpop.xlane.xlu1 %3926  ;;  %3989 = vadd.xlane.f32.xlu0 %v3988_v8  ;;  %v3924_v3 = vpop.xlane.xlu0 %3923 }
 0x586   : > { %7435 = vrsqrt.f32 %v4019_v18  ;;  %v3996_v0 = vmul.f32 0.03125, %v3927_v21  ;;  %v3995_v32 = vmul.f32 0.03125, %v3924_v3  ;;  %v3918_v57 = vmul.f32 %v9736_v30, %v9736_v30 }
 0x588   : > { %v4021_v45 = vadd.f32 1e-05, %v3996_v0  ;;  %v4020_v4 = vadd.f32 1e-05, %v3995_v32  ;;  %v3991_v60 = vsel %vm2006_vm6, %v3918_v57, 0.0 }
 0x589   : > { %v3933_v63 = vpop.xlane.xlu1 %3932  ;;  %3992 = vadd.xlane.f32.xlu1 %v3991_v60  ;;  %v3930_v20 = vpop.xlane.xlu0 %3929 }
 0x58a   : > { %7437 = vrsqrt.f32 %v4021_v45  ;;  %v3998_v41 = vmul.f32 0.03125, %v3933_v63  ;;  %v3997_v56 = vmul.f32 0.03125, %v3930_v20 }
 0x58b   : > { %7439 = vrsqrt.f32 %v4020_v4 }
 0x58c   : > { %v4023_v34 = vadd.f32 1e-05, %v3998_v41  ;;  %v4022_v16 = vadd.f32 1e-05, %v3997_v56 }
 0x58d   : > { %v3939_v23 = vpop.xlane.xlu1 %3938  ;;  %v3936_v14 = vpop.xlane.xlu0 %3935 }
 0x58e   : > { %7441 = vrsqrt.f32 %v4023_v34  ;;  %v4000_v29 = vmul.f32 0.03125, %v3939_v23  ;;  %v3999_v1 = vmul.f32 0.03125, %v3936_v14 }
 0x58f   : > { %7443 = vrsqrt.f32 %v4022_v16 }
 0x590   : > { %v4025_v24 = vadd.f32 1e-05, %v4000_v29  ;;  %v4024_v7 = vadd.f32 1e-05, %v3999_v1 }
 0x591   : > { %v3942_v62 = vpop.xlane.xlu0 %3941 }
 0x592   : > { %7445 = vrsqrt.f32 %v4025_v24  ;;  %v4001_v52 = vmul.f32 0.03125, %v3942_v62 }
 0x593   : > { %v7436_v27 = vpop.eup %7435  ;;  %7447 = vrsqrt.f32 %v4024_v7 }
 0x594   : > { %v4069_v38 = vmul.f32 %v7436_v27, %v9581_v13  ;;  %v4026_v48 = vadd.f32 1e-05, %v4001_v52 }
 0x596   : > { %v4100_v10 = vmul.f32 %v9743_v55, %v4069_v38  ;;  %7449 = vrsqrt.f32 %v4026_v48 }
 0x597   : > { %v7438_v28 = vpop.eup %7437 }
 0x598   : > { %v7440_v12 = vpop.eup %7439  ;;  %v9751_v46 = vadd.f32 %v9747_v42, %v4100_v10  ;;  %v4071_v9 = vmul.f32 %v7438_v28, %v9594_v5 }
 0x599   : > { %v4070_v47 = vmul.f32 %v7440_v12, %v9589_v39 }
 0x59a   : > { %v4181_v40 = vmul.f32 0.044715, %v9751_v46  ;;  %v4102_v50 = vmul.f32 %v9743_v55, %v4071_v9 }
 0x59b   : > { %v7442_v13 = vpop.eup %7441  ;;  %v4101_v15 = vmul.f32 %v9743_v55, %v4070_v47 }
 0x59c   : > { %v7444_v18 = vpop.eup %7443  ;;  %v4206_v8 = vmul.f32 %v4181_v40, %v9751_v46  ;;  %v9760_v21 = vadd.f32 %v9747_v42, %v4102_v50  ;;  %v4073_v3 = vmul.f32 %v7442_v13, %v9608_v26  ;;  %v3945_v0 = vpop.xlane.xlu1 %3944 }
 0x59d   : > { %v9764_v5 = vadd.f32 %v9747_v42, %v4101_v15  ;;  %v4072_v39 = vmul.f32 %v7444_v18, %v9602_v51  ;;  %v4002_v32 = vmul.f32 0.03125, %v3945_v0 }
 0x59e   : > { %v4231_v57 = vmul.f32 %v4206_v8, %v9751_v46  ;;  %v4183_v45 = vmul.f32 0.044715, %v9760_v21  ;;  %v4104_v4 = vmul.f32 %v9743_v55, %v4073_v3 }
 0x59f   : > { %v7446_v60 = vpop.eup %7445  ;;  %v4182_v63 = vmul.f32 0.044715, %v9764_v5  ;;  %v4103_v20 = vmul.f32 %v9743_v55, %v4072_v39  ;;  %v4027_v41 = vadd.f32 1e-05, %v4002_v32 }
 0x5a0   : > { %v7448_v26 = vpop.eup %7447  ;;  %v4256_v56 = vadd.f32 %v4231_v57, %v9751_v46  ;;  %v4208_v34 = vmul.f32 %v4183_v45, %v9760_v21  ;;  %v9775_v51 = vadd.f32 %v9747_v42, %v4104_v4  ;;  %v4075_v16 = vmul.f32 %v7446_v60, %v9621_v37  ;;  %v3948_v38 = vpop.xlane.xlu0 %3947 }
 0x5a1   : > { %v4207_v23 = vmul.f32 %v4182_v63, %v9764_v5  ;;  %v9780_v14 = vadd.f32 %v9747_v42, %v4103_v20  ;;  %v4074_v29 = vmul.f32 %v7448_v26, %v9618_v61  ;;  %7451 = vrsqrt.f32 %v4027_v41 }
 0x5a2   : > { %v4281_v1 = vmul.f32 0.7978846, %v4256_v56  ;;  %v4233_v24 = vmul.f32 %v4208_v34, %v9760_v21  ;;  %v4185_v7 = vmul.f32 0.044715, %v9775_v51  ;;  %v4106_v37 = vmul.f32 %v9743_v55, %v4075_v16 }
 0x5a3   : > { %v7450_v62 = vpop.eup %7449  ;;  %v4232_v52 = vmul.f32 %v4207_v23, %v9764_v5  ;;  %v4184_v27 = vmul.f32 0.044715, %v9780_v14  ;;  %v4105_v61 = vmul.f32 %v9743_v55, %v4074_v29  ;;  %v4003_v15 = vmul.f32 0.03125, %v3948_v38 }
 0x5a4   : > { %7453 = vtanh.f32 %v4281_v1  ;;  %v4258_v48 = vadd.f32 %v4233_v24, %v9760_v21  ;;  %v4210_v10 = vmul.f32 %v4185_v7, %v9775_v51  ;;  %v9794_v9 = vadd.f32 %v9747_v42, %v4106_v37 }
 0x5a5   : > { %v4257_v28 = vadd.f32 %v4232_v52, %v9764_v5  ;;  %v4209_v12 = vmul.f32 %v4184_v27, %v9780_v14  ;;  %v4076_v47 = vmul.f32 %v7450_v62, %v9628_v11  ;;  %v9799_v13 = vadd.f32 %v9747_v42, %v4105_v61 }
 0x5a6   : > { %v4283_v40 = vmul.f32 0.7978846, %v4258_v48  ;;  %v4235_v50 = vmul.f32 %v4210_v10, %v9775_v51  ;;  %v4187_v3 = vmul.f32 0.044715, %v9794_v9  ;;  %v4028_v63 = vadd.f32 1e-05, %v4003_v15 }
 0x5a7   : > { %v4282_v18 = vmul.f32 0.7978846, %v4257_v28  ;;  %v4234_v8 = vmul.f32 %v4209_v12, %v9780_v14  ;;  %v4186_v39 = vmul.f32 0.044715, %v9799_v13  ;;  %v4107_v45 = vmul.f32 %v9743_v55, %v4076_v47 }
 0x5a8   : > { %7455 = vtanh.f32 %v4283_v40  ;;  %v4260_v0 = vadd.f32 %v4235_v50, %v9775_v51  ;;  %v4212_v57 = vmul.f32 %v4187_v3, %v9794_v9  ;;  %v4156_v12 = vmul.f32 0.5, %v9751_v46 }
 0x5a9   : > { %7457 = vtanh.f32 %v4282_v18  ;;  %v4259_v11 = vadd.f32 %v4234_v8, %v9780_v14  ;;  %v4211_v60 = vmul.f32 %v4186_v39, %v9799_v13  ;;  %v9811_v56 = vadd.f32 %v9747_v42, %v4107_v45  ;;  %v7202_v45 = vld [vmem:[%s7769_s19 + $0x20] sm:$0xff]  }
 0x5aa   : > { %v3951_v32 = vpop.xlane.xlu1 %3950  ;;  %v4285_v4 = vmul.f32 0.7978846, %v4260_v0  ;;  %v4237_v26 = vmul.f32 %v4212_v57, %v9794_v9  ;;  %v4158_v46 = vmul.f32 0.5, %v9760_v21  ;;  %v4160_v21 = vmul.f32 0.5, %v9775_v51 }
 0x5ab   : > { %v4004_v20 = vmul.f32 0.03125, %v3951_v32  ;;  %v4284_v41 = vmul.f32 0.7978846, %v4259_v11  ;;  %v4236_v34 = vmul.f32 %v4211_v60, %v9799_v13  ;;  %v4188_v1 = vmul.f32 0.044715, %v9811_v56 }
 0x5ac   : > { %7459 = vtanh.f32 %v4285_v4  ;;  %v4262_v29 = vadd.f32 %v4237_v26, %v9794_v9  ;;  %v4157_v32 = vmul.f32 0.5, %v9764_v5 }
 0x5ad   : > { %v4029_v16 = vadd.f32 1e-05, %v4004_v20  ;;  %7461 = vtanh.f32 %v4284_v41  ;;  %v4261_v7 = vadd.f32 %v4236_v34, %v9799_v13  ;;  %v4213_v27 = vmul.f32 %v4188_v1, %v9811_v56 }
 0x5ae   : > { %v3954_v23 = vpop.xlane.xlu0 %3953  ;;  %v7452_v24 = vpop.eup %7451  ;;  %7463 = vrsqrt.f32 %v4028_v63  ;;  %v4287_v52 = vmul.f32 0.7978846, %v4262_v29  ;;  %v4159_v34 = vmul.f32 0.5, %v9780_v14  ;;  %v7203_v29 = vld [vmem:[%s7769_s19 + $0x18] sm:$0xff]   ;;  %v4162_v14 = vmul.f32 0.5, %v9794_v9 }
 0x5af   : > { %v4005_v62 = vmul.f32 0.03125, %v3954_v23  ;;  %v4077_v37 = vmul.f32 %v7452_v24, %v9641_v33  ;;  %7465 = vrsqrt.f32 %v4029_v16  ;;  %v4286_v38 = vmul.f32 0.7978846, %v4261_v7  ;;  %v7201_v33 = vld [vmem:[%s7769_s19 + $0x28] sm:$0xff]  }
 0x5b0   : > { %7467 = vtanh.f32 %v4287_v52  ;;  %v4238_v61 = vmul.f32 %v4213_v27, %v9811_v56  ;;  %6770 = vmatpush3.bf16.msra.mxu1 %v7201_v33 }
 0x5b1   : > { %v4030_v48 = vadd.f32 1e-05, %v4005_v62  ;;  %v7454_v10 = vpop.eup %7453  ;;  %v4108_v28 = vmul.f32 %v9743_v55, %v4077_v37  ;;  %7469 = vtanh.f32 %v4286_v38  ;;  %6771 = vmatprep.subr.bf16.mxu1 %v10537_v19 }
 0x5b2   : > { %v4331_v47 = vadd.f32 1.0, %v7454_v10  ;;  %v4263_v40 = vadd.f32 %v4238_v61, %v9811_v56 }
 0x5b3   : > { %v9824_v50 = vadd.f32 %v9747_v42, %v4108_v28  ;;  %7471 = vrsqrt.f32 %v4030_v48 }
 0x5b4   : > { %v4356_v15 = vmul.f32 %v4331_v47, %v4156_v12  ;;  %v4288_v8 = vmul.f32 0.7978846, %v4263_v40  ;;  %6772 = vmatpush3.bf16.msra.mxu1 %v7202_v45  ;;  %v4161_v47 = vmul.f32 0.5, %v9799_v13  ;;  %v4163_v45 = vmul.f32 0.5, %v9811_v56 }
 0x5b5   : > { %v7456_v18 = vpop.eup %7455  ;;  %v4189_v3 = vmul.f32 0.044715, %v9824_v50  ;;  %6773 = vmatprep.subr.bf16.mxu1 %v10537_v19 }
 0x5b6   : > { %v7458_v0 = vpop.eup %7457  ;;  %4381 = vst.msk [vmem:[#allocation2] sm:$0xff] %vm1858_vm5, %v4356_v15  ;;  %v4333_v39 = vadd.f32 1.0, %v7456_v18  ;;  %7473 = vtanh.f32 %v4288_v8 }
 0x5b7   : > { %v4332_v11 = vadd.f32 1.0, %v7458_v0  ;;  %v4214_v57 = vmul.f32 %v4189_v3, %v9824_v50 }
 0x5b8   : > { %v4358_v4 = vmul.f32 %v4333_v39, %v4158_v46  ;;  %6774 = vmatpush3.bf16.msra.mxu1 %v7203_v29 }
 0x5b9   : > { %v7460_v60 = vpop.eup %7459  ;;  %v4357_v63 = vmul.f32 %v4332_v11, %v4157_v32  ;;  %v4239_v20 = vmul.f32 %v4214_v57, %v9824_v50  ;;  %6775 = vmatprep.subr.bf16.mxu1 %v10537_v19  ;;  %v7205_v32 = vld [vmem:[%s7769_s19 + $0x8] sm:$0xff]  }
 0x5ba   : > { %v7462_v41 = vpop.eup %7461  ;;  %4383 = vst.msk [vmem:[#allocation2 + $0x10] sm:$0xff] %vm1858_vm5, %v4358_v4  ;;  %v4335_v26 = vadd.f32 1.0, %v7460_v60  ;;  %v3957_v62 = vpop.xlane.xlu1 %3956 }
 0x5bb   : > { %v7464_v5 = vpop.eup %7463  ;;  %4382 = vst.msk [vmem:[#allocation2 + $0x8] sm:$0xff] %vm1858_vm5, %v4357_v63  ;;  %v4334_v16 = vadd.f32 1.0, %v7462_v41  ;;  %v4264_v23 = vadd.f32 %v4239_v20, %v9824_v50  ;;  %v4006_v37 = vmul.f32 0.03125, %v3957_v62 }
 0x5bc   : > { %v7466_v1 = vpop.eup %7465  ;;  %v4360_v24 = vmul.f32 %v4335_v26, %v4160_v21  ;;  %v4078_v7 = vmul.f32 %v7464_v5, %v9646_v22 }
 0x5bd   : > { %v4359_v52 = vmul.f32 %v4334_v16, %v4159_v34  ;;  %v4289_v51 = vmul.f32 0.7978846, %v4264_v23  ;;  %v4079_v27 = vmul.f32 %v7466_v1, %v9653_v36  ;;  %v7468_v38 = vpop.eup %7467  ;;  %v4031_v28 = vadd.f32 1e-05, %v4006_v37  ;;  %v7204_v36 = vld [vmem:[%s7769_s19 + $0x10] sm:$0xff]   ;;  %v7206_v23 = vld [vmem:[%s7769_s19] sm:$0xff]  }
 0x5be   : > { %4385 = vst.msk [vmem:[#allocation2 + $0x20] sm:$0xff] %vm1858_vm5, %v4360_v24  ;;  %v4109_v48 = vmul.f32 %v9743_v55, %v4078_v7  ;;  %v7470_v10 = vpop.eup %7469  ;;  %v4337_v22 = vadd.f32 1.0, %v7468_v38  ;;  %v3960_v33 = vpop.xlane.xlu0 %3959  ;;  %6776 = vmatpush3.bf16.msra.mxu1 %v7204_v36 }
 0x5bf   : > { %4384 = vst.msk [vmem:[#allocation2 + $0x18] sm:$0xff] %vm1858_vm5, %v4359_v52  ;;  %7475 = vtanh.f32 %v4289_v51  ;;  %v4110_v61 = vmul.f32 %v9743_v55, %v4079_v27  ;;  %v4336_v40 = vadd.f32 1.0, %v7470_v10  ;;  %v4007_v46 = vmul.f32 0.03125, %v3960_v33  ;;  %6777 = vmatprep.subr.bf16.mxu1 %v10537_v19 }
 0x5c0   : > { %v7472_v12 = vpop.eup %7471  ;;  %v9853_v9 = vadd.f32 %v9747_v42, %v4109_v48  ;;  %v4362_v15 = vmul.f32 %v4337_v22, %v4162_v14  ;;  %7477 = vrsqrt.f32 %v4031_v28  ;;  %v4164_v10 = vmul.f32 0.5, %v9824_v50 }
 0x5c1   : > { %v9856_v18 = vadd.f32 %v9747_v42, %v4110_v61  ;;  %v4080_v8 = vmul.f32 %v7472_v12, %v9658_v6  ;;  %v4361_v3 = vmul.f32 %v4336_v40, %v4161_v47  ;;  %v4032_v57 = vadd.f32 1e-05, %v4007_v46 }
 0x5c2   : > { %v4190_v0 = vmul.f32 0.044715, %v9853_v9  ;;  %4387 = vst.msk [vmem:[#allocation2 + $0x30] sm:$0xff] %vm1858_vm5, %v4362_v15  ;;  %6778 = vmatpush3.bf16.msra.mxu1 %v7205_v32  ;;  %v4432_v41 = vld [vmem:[#allocation2 + $0x2] ss:$2 sm:$0xff] }
 0x5c3   : > { %v4191_v13 = vmul.f32 0.044715, %v9856_v18  ;;  %v4111_v39 = vmul.f32 %v9743_v55, %v4080_v8  ;;  %v7474_v11 = vpop.eup %7473  ;;  %4386 = vst.msk [vmem:[#allocation2 + $0x28] sm:$0xff] %vm1858_vm5, %v4361_v3  ;;  %7479 = vrsqrt.f32 %v4032_v57  ;;  %6779 = vmatprep.subr.bf16.mxu1 %v10537_v19  ;;  %v4419_v16 = vld [vmem:[#allocation2 + $0x1] ss:$2 sm:$0xff] }
 0x5c4   : > { %v4215_v6 = vmul.f32 %v4190_v0, %v9853_v9  ;;  %v4338_v4 = vadd.f32 1.0, %v7474_v11 }
 0x5c5   : > { %v4216_v60 = vmul.f32 %v4191_v13, %v9856_v18  ;;  %v9870_v63 = vadd.f32 %v9747_v42, %v4111_v39 }
 0x5c6   : > { %v4240_v20 = vmul.f32 %v4215_v6, %v9853_v9  ;;  %v4433_v21 = vld [vmem:[#allocation2 + $0x12] ss:$2 sm:$0xff]  ;;  %v4420_v26 = vld [vmem:[#allocation2 + $0x11] ss:$2 sm:$0xff]  ;;  %v4363_v5 = vmul.f32 %v4338_v4, %v4163_v45  ;;  %6780 = vmatpush3.bf16.msra.mxu1 %v7206_v23 }
 0x5c7   : > { %v4241_v34 = vmul.f32 %v4216_v60, %v9856_v18  ;;  %v4192_v56 = vmul.f32 0.044715, %v9870_v63  ;;  %v7069_v1 = vpack.i.bf16 %v4433_v21, %v4432_v41  ;;  %v7064_v24 = vpack.i.bf16 %v4420_v26, %v4419_v16  ;;  %v3963_v52 = vpop.xlane.xlu1 %3962 }
 0x5c8   : > { %v4265_v29 = vadd.f32 %v4240_v20, %v9853_v9  ;;  %4388 = vst.msk [vmem:[#allocation2 + $0x38] sm:$0xff] %vm1858_vm5, %v4363_v5  ;;  %v4008_v27 = vmul.f32 0.03125, %v3963_v52  ;;  %v4165_v21 = vmul.f32 0.5, %v9853_v9 }
 0x5c9   : > { %v4266_v7 = vadd.f32 %v4241_v34, %v9856_v18  ;;  %v4217_v62 = vmul.f32 %v4192_v56, %v9870_v63  ;;  %7070 = vrot.lane.b32.xlu1 %v7069_v1, %s7710_s23  ;;  %7065 = vrot.lane.b32.xlu0 %v7064_v24, %s7709_s11  ;;  %v4166_v34 = vmul.f32 0.5, %v9856_v18 }
 0x5ca   : > { %v4290_v51 = vmul.f32 0.7978846, %v4265_v29  ;;  %v4033_v48 = vadd.f32 1e-05, %v4008_v27  ;;  %v4421_v8 = vld [vmem:[#allocation2 + $0x21] ss:$2 sm:$0xff] }
 0x5cb   : > { %v4291_v37 = vmul.f32 0.7978846, %v4266_v7  ;;  %v4242_v38 = vmul.f32 %v4217_v62, %v9870_v63  ;;  %v3966_v28 = vpop.xlane.xlu0 %3965  ;;  %v4434_v57 = vld [vmem:[#allocation2 + $0x22] ss:$2 sm:$0xff] }
 0x5cc   : > { %v7476_v14 = vpop.eup %7475  ;;  %7481 = vtanh.f32 %v4290_v51  ;;  %v4009_v12 = vmul.f32 0.03125, %v3966_v28  ;;  %v4167_v51 = vmul.f32 0.5, %v9870_v63 }
 0x5cd   : > { %v4339_v22 = vadd.f32 1.0, %v7476_v14  ;;  %7483 = vtanh.f32 %v4291_v37  ;;  %v4267_v61 = vadd.f32 %v4242_v38, %v9870_v63  ;;  %v7478_v36 = vpop.eup %7477 }
 0x5ce   : > { %7485 = vrsqrt.f32 %v4033_v48  ;;  %v4081_v33 = vmul.f32 %v7478_v36, %v9665_v44  ;;  %v4034_v15 = vadd.f32 1e-05, %v4009_v12 }
 0x5cf   : > { %v4364_v47 = vmul.f32 %v4339_v22, %v4164_v10  ;;  %v4292_v40 = vmul.f32 0.7978846, %v4267_v61  ;;  %v4422_v3 = vld [vmem:[#allocation2 + $0x31] ss:$2 sm:$0xff] }
 0x5d0   : > { %v4112_v50 = vmul.f32 %v9743_v55, %v4081_v33  ;;  %v7074_v0 = vpack.i.bf16 %v4422_v3, %v4421_v8  ;;  %v7480_v46 = vpop.eup %7479 }
 0x5d1   : > { %4389 = vst.msk [vmem:[#allocation2 + $0x40] sm:$0xff] %vm1858_vm5, %v4364_v47  ;;  %7487 = vtanh.f32 %v4292_v40  ;;  %v4082_v39 = vmul.f32 %v7480_v46, %v9670_v17 }
 0x5d2   : > { %7489 = vrsqrt.f32 %v4034_v15  ;;  %v9890_v13 = vadd.f32 %v9747_v42, %v4112_v50  ;;  %7075 = vrot.lane.b32.xlu1 %v7074_v0, %s7709_s11 }
 0x5d3   : > { %v4113_v32 = vmul.f32 %v9743_v55, %v4082_v39 }
 0x5d4   : > { %v4193_v44 = vmul.f32 0.044715, %v9890_v13 }
 0x5d5   : > { %v9898_v6 = vadd.f32 %v9747_v42, %v4113_v32 }
 0x5d6   : > { %v4218_v11 = vmul.f32 %v4193_v44, %v9890_v13 }
 0x5d7   : > { %v4194_v17 = vmul.f32 0.044715, %v9898_v6 }
 0x5d8   : > { %v4435_v45 = vld [vmem:[#allocation2 + $0x32] ss:$2 sm:$0xff]  ;;  %v4243_v60 = vmul.f32 %v4218_v11, %v9890_v13 }
 0x5d9   : > { %v7482_v4 = vpop.eup %7481  ;;  %v7079_v20 = vpack.i.bf16 %v4435_v45, %v4434_v57  ;;  %v4219_v29 = vmul.f32 %v4194_v17, %v9898_v6 }
 0x5da   : > { %v7484_v41 = vpop.eup %7483  ;;  %v4340_v26 = vadd.f32 1.0, %v7482_v4  ;;  %v4268_v16 = vadd.f32 %v4243_v60, %v9890_v13  ;;  %v4168_v4 = vmul.f32 0.5, %v9890_v13 }
 0x5db   : > { %v7486_v5 = vpop.eup %7485  ;;  %v4341_v56 = vadd.f32 1.0, %v7484_v41  ;;  %7080 = vrot.lane.b32.xlu0 %v7079_v20, %s7710_s23  ;;  %v4244_v9 = vmul.f32 %v4219_v29, %v9898_v6 }
 0x5dc   : > { %v4365_v23 = vmul.f32 %v4340_v26, %v4165_v21  ;;  %v4083_v1 = vmul.f32 %v7486_v5, %v9677_v2  ;;  %v4293_v7 = vmul.f32 0.7978846, %v4268_v16 }
 0x5dd   : > { %v4366_v24 = vmul.f32 %v4341_v56, %v4166_v34  ;;  %v4269_v37 = vadd.f32 %v4244_v9, %v9898_v6  ;;  %v3969_v61 = vpop.xlane.xlu1 %3968  ;;  %v4169_v56 = vmul.f32 0.5, %v9898_v6 }
 0x5de   : > { %v7488_v62 = vpop.eup %7487  ;;  %4390 = vst.msk [vmem:[#allocation2 + $0x48] sm:$0xff] %vm1858_vm5, %v4365_v23  ;;  %v4114_v52 = vmul.f32 %v9743_v55, %v4083_v1  ;;  %7491 = vtanh.f32 %v4293_v7  ;;  %v4010_v28 = vmul.f32 0.03125, %v3969_v61 }
 0x5df   : > { %v7490_v18 = vpop.eup %7489  ;;  %4391 = vst.msk [vmem:[#allocation2 + $0x50] sm:$0xff] %vm1858_vm5, %v4366_v24  ;;  %v4342_v27 = vadd.f32 1.0, %v7488_v62  ;;  %v4294_v48 = vmul.f32 0.7978846, %v4269_v37 }
 0x5e0   : > { %v4145_v2 = vadd.f32 %v9747_v42, %v4114_v52  ;;  %v4084_v38 = vmul.f32 %v7490_v18, %v9682_v49  ;;  %v4035_v12 = vadd.f32 1e-05, %v4010_v28 }
 0x5e1   : > { %v4367_v14 = vmul.f32 %v4342_v27, %v4167_v51  ;;  %7493 = vtanh.f32 %v4294_v48  ;;  %v3972_v33 = vpop.xlane.xlu0 %3971 }
 0x5e2   : > { %v4195_v10 = vmul.f32 0.044715, %v4145_v2  ;;  %v4115_v22 = vmul.f32 %v9743_v55, %v4084_v38  ;;  %7495 = vrsqrt.f32 %v4035_v12  ;;  %v4011_v49 = vmul.f32 0.03125, %v3972_v33 }
 0x5e3   : > { %4392 = vst.msk [vmem:[#allocation2 + $0x58] sm:$0xff] %vm1858_vm5, %v4367_v14  ;;  %v4170_v51 = vmul.f32 0.5, %v4145_v2 }
 0x5e4   : > { %v4220_v36 = vmul.f32 %v4195_v10, %v4145_v2  ;;  %v9919_v63 = vadd.f32 %v9747_v42, %v4115_v22  ;;  %v4036_v3 = vadd.f32 1e-05, %v4011_v49 }
 0x5e5   : > { %v4423_v39 = vld [vmem:[#allocation2 + $0x41] ss:$2 sm:$0xff] }
 0x5e6   : > { %v4245_v47 = vmul.f32 %v4220_v36, %v4145_v2  ;;  %v4196_v40 = vmul.f32 0.044715, %v9919_v63  ;;  %7497 = vrsqrt.f32 %v4036_v3  ;;  %v4436_v7 = vld [vmem:[#allocation2 + $0x42] ss:$2 sm:$0xff] }
 0x5e8   : > { %v4270_v15 = vadd.f32 %v4245_v47, %v4145_v2  ;;  %v4221_v8 = vmul.f32 %v4196_v40, %v9919_v63  ;;  %v4171_v2 = vmul.f32 0.5, %v9919_v63 }
 0x5e9   : > { %v3975_v46 = vpop.xlane.xlu1 %3974 }
 0x5ea   : > { %v4295_v50 = vmul.f32 0.7978846, %v4270_v15  ;;  %v4246_v0 = vmul.f32 %v4221_v8, %v9919_v63  ;;  %v4424_v44 = vld [vmem:[#allocation2 + $0x51] ss:$2 sm:$0xff]  ;;  %v4012_v32 = vmul.f32 0.03125, %v3975_v46 }
 0x5eb   : > { %v7084_v11 = vpack.i.bf16 %v4424_v44, %v4423_v39  ;;  %v7492_v57 = vpop.eup %7491 }
 0x5ec   : > { %7499 = vtanh.f32 %v4295_v50  ;;  %v4271_v45 = vadd.f32 %v4246_v0, %v9919_v63  ;;  %v4343_v60 = vadd.f32 1.0, %v7492_v57  ;;  %v4037_v20 = vadd.f32 1e-05, %v4012_v32 }
 0x5ed   : > { %7085 = vrot.lane.b32.xlu1 %v7084_v11, %s7709_s11  ;;  %v3978_v21 = vpop.xlane.xlu0 %3977 }
 0x5ee   : > { %v4296_v41 = vmul.f32 0.7978846, %v4271_v45  ;;  %v4368_v26 = vmul.f32 %v4343_v60, %v4168_v4  ;;  %7501 = vrsqrt.f32 %v4037_v20  ;;  %v4013_v17 = vmul.f32 0.03125, %v3978_v21  ;;  %v7494_v5 = vpop.eup %7493 }
 0x5ef   : > { %v4344_v16 = vadd.f32 1.0, %v7494_v5  ;;  %v7496_v23 = vpop.eup %7495 }
 0x5f0   : > { %7503 = vtanh.f32 %v4296_v41  ;;  %4393 = vst.msk [vmem:[#allocation2 + $0x60] sm:$0xff] %vm1858_vm5, %v4368_v26  ;;  %v4038_v34 = vadd.f32 1e-05, %v4013_v17  ;;  %v4085_v29 = vmul.f32 %v7496_v23, %v9689_v54 }
 0x5f1   : > { %v4369_v13 = vmul.f32 %v4344_v16, %v4169_v56 }
 0x5f2   : > { %7505 = vrsqrt.f32 %v4038_v34  ;;  %v4116_v1 = vmul.f32 %v9743_v55, %v4085_v29 }
 0x5f3   : > { %4394 = vst.msk [vmem:[#allocation2 + $0x68] sm:$0xff] %vm1858_vm5, %v4369_v13  ;;  %v7498_v24 = vpop.eup %7497 }
 0x5f4   : > { %v9933_v52 = vadd.f32 %v9747_v42, %v4116_v1  ;;  %v4086_v18 = vmul.f32 %v7498_v24, %v9694_v31 }
 0x5f6   : > { %v4197_v37 = vmul.f32 0.044715, %v9933_v52  ;;  %v4117_v54 = vmul.f32 %v9743_v55, %v4086_v18 }
 0x5f7   : > { %v4437_v62 = vld [vmem:[#allocation2 + $0x52] ss:$2 sm:$0xff] }
 0x5f8   : > { %v7089_v6 = vpack.i.bf16 %v4437_v62, %v4436_v7  ;;  %v4222_v22 = vmul.f32 %v4197_v37, %v9933_v52  ;;  %v9941_v61 = vadd.f32 %v9747_v42, %v4117_v54  ;;  %v4172_v54 = vmul.f32 0.5, %v9933_v52 }
 0x5f9   : > { %v7500_v9 = vpop.eup %7499 }
 0x5fa   : > { %v4345_v27 = vadd.f32 1.0, %v7500_v9  ;;  %7090 = vrot.lane.b32.xlu0 %v7089_v6, %s7710_s23  ;;  %v4247_v12 = vmul.f32 %v4222_v22, %v9933_v52  ;;  %v4198_v47 = vmul.f32 0.044715, %v9941_v61  ;;  %v4425_v21 = vld [vmem:[#allocation2 + $0x61] ss:$2 sm:$0xff] }
 0x5fb   : > { %v7502_v38 = vpop.eup %7501 }
 0x5fc   : > { %v4370_v14 = vmul.f32 %v4345_v27, %v4170_v51  ;;  %v4087_v31 = vmul.f32 %v7502_v38, %v9701_v43  ;;  %v4272_v3 = vadd.f32 %v4247_v12, %v9933_v52  ;;  %v4223_v43 = vmul.f32 %v4198_v47, %v9941_v61 }
 0x5fd   : > { %v3981_v48 = vpop.xlane.xlu1 %3980  ;;  %v7504_v10 = vpop.eup %7503 }
 0x5fe   : > { %v4014_v28 = vmul.f32 0.03125, %v3981_v48  ;;  %4395 = vst.msk [vmem:[#allocation2 + $0x70] sm:$0xff] %vm1858_vm5, %v4370_v14  ;;  %v4346_v36 = vadd.f32 1.0, %v7504_v10  ;;  %v4118_v40 = vmul.f32 %v9743_v55, %v4087_v31  ;;  %v4297_v46 = vmul.f32 0.7978846, %v4272_v3 }
 0x5ff   : > { %v7506_v33 = vpop.eup %7505  ;;  %v4248_v39 = vmul.f32 %v4223_v43, %v9941_v61 }
 0x600   : > { %v4371_v49 = vmul.f32 %v4346_v36, %v4171_v2  ;;  %v4039_v15 = vadd.f32 1e-05, %v4014_v28  ;;  %v9952_v50 = vadd.f32 %v9747_v42, %v4118_v40  ;;  %v4088_v63 = vmul.f32 %v7506_v33, %v9706_v35 }
 0x601   : > { %v3984_v8 = vpop.xlane.xlu0 %3983  ;;  %v4273_v57 = vadd.f32 %v4248_v39, %v9941_v61  ;;  %v4173_v36 = vmul.f32 0.5, %v9941_v61 }
 0x602   : > { %4396 = vst.msk [vmem:[#allocation2 + $0x78] sm:$0xff] %vm1858_vm5, %v4371_v49  ;;  %7507 = vrsqrt.f32 %v4039_v15  ;;  %v4015_v0 = vmul.f32 0.03125, %v3984_v8  ;;  %v4199_v44 = vmul.f32 0.044715, %v9952_v50  ;;  %v4119_v32 = vmul.f32 %v9743_v55, %v4088_v63 }
 0x603   : > { %7509 = vtanh.f32 %v4297_v46  ;;  %v4298_v35 = vmul.f32 0.7978846, %v4273_v57  ;;  %v4174_v15 = vmul.f32 0.5, %v9952_v50 }
 0x604   : > { %v4040_v11 = vadd.f32 1e-05, %v4015_v0  ;;  %v4224_v45 = vmul.f32 %v4199_v44, %v9952_v50  ;;  %v9962_v4 = vadd.f32 %v9747_v42, %v4119_v32 }
 0x605   : > { %v4438_v44 = vld [vmem:[#allocation2 + $0x62] ss:$2 sm:$0xff] }
 0x606   : > { %7511 = vrsqrt.f32 %v4040_v11  ;;  %v4249_v60 = vmul.f32 %v4224_v45, %v9952_v50  ;;  %v4200_v20 = vmul.f32 0.044715, %v9962_v4 }
 0x607   : > { %7513 = vtanh.f32 %v4298_v35  ;;  %v4175_v35 = vmul.f32 0.5, %v9962_v4 }
 0x608   : > { %v4274_v41 = vadd.f32 %v4249_v60, %v9952_v50  ;;  %v4225_v17 = vmul.f32 %v4200_v20, %v9962_v4 }
 0x609   : > { %v4426_v26 = vld [vmem:[#allocation2 + $0x71] ss:$2 sm:$0xff] }
 0x60a   : > { %v3987_v5 = vpop.xlane.xlu1 %3986  ;;  %v7094_v34 = vpack.i.bf16 %v4426_v26, %v4425_v21  ;;  %v4299_v56 = vmul.f32 0.7978846, %v4274_v41  ;;  %v4250_v23 = vmul.f32 %v4225_v17, %v9962_v4 }
 0x60b   : > { %v4016_v16 = vmul.f32 0.03125, %v3987_v5 }
 0x60c   : > { %7095 = vrot.lane.b32.xlu1 %v7094_v34, %s7709_s11  ;;  %7515 = vtanh.f32 %v4299_v56  ;;  %v4275_v29 = vadd.f32 %v4250_v23, %v9962_v4 }
 0x60d   : > { %v4041_v13 = vadd.f32 1e-05, %v4016_v16 }
 0x60e   : > { %v3990_v1 = vpop.xlane.xlu0 %3989  ;;  %v4300_v62 = vmul.f32 0.7978846, %v4275_v29 }
 0x60f   : > { %v7508_v24 = vpop.eup %7507  ;;  %7517 = vrsqrt.f32 %v4041_v13  ;;  %v4017_v7 = vmul.f32 0.03125, %v3990_v1 }
 0x610   : > { %v4089_v9 = vmul.f32 %v7508_v24, %v9713_v59  ;;  %v7510_v6 = vpop.eup %7509  ;;  %7519 = vtanh.f32 %v4300_v62 }
 0x611   : > { %v4042_v18 = vadd.f32 1e-05, %v4017_v7  ;;  %v4347_v38 = vadd.f32 1.0, %v7510_v6 }
 0x612   : > { %v4120_v51 = vmul.f32 %v9743_v55, %v4089_v9  ;;  %v3993_v27 = vpop.xlane.xlu1 %3992 }
 0x613   : > { %v7512_v37 = vpop.eup %7511  ;;  %7521 = vrsqrt.f32 %v4042_v18  ;;  %v4018_v14 = vmul.f32 0.03125, %v3993_v27  ;;  %v4372_v22 = vmul.f32 %v4347_v38, %v4172_v54 }
 0x614   : > { %v9975_v48 = vadd.f32 %v9747_v42, %v4120_v51  ;;  %v4090_v10 = vmul.f32 %v7512_v37, %v9718_v58  ;;  %v7514_v59 = vpop.eup %7513 }
 0x615   : > { %v4043_v31 = vadd.f32 1e-05, %v4018_v14  ;;  %4397 = vst.msk [vmem:[#allocation2 + $0x80] sm:$0xff] %vm1858_vm5, %v4372_v22  ;;  %v4348_v52 = vadd.f32 1.0, %v7514_v59 }
 0x616   : > { %v4201_v28 = vmul.f32 0.044715, %v9975_v48  ;;  %v4121_v2 = vmul.f32 %v9743_v55, %v4090_v10 }
 0x617   : > { %7523 = vrsqrt.f32 %v4043_v31  ;;  %v4373_v40 = vmul.f32 %v4348_v52, %v4173_v36 }
 0x618   : > { %v4226_v12 = vmul.f32 %v4201_v28, %v9975_v48  ;;  %v9984_v47 = vadd.f32 %v9747_v42, %v4121_v2 }
 0x619   : > { %v7516_v58 = vpop.eup %7515  ;;  %4398 = vst.msk [vmem:[#allocation2 + $0x88] sm:$0xff] %vm1858_vm5, %v4373_v40 }
 0x61a   : > { %v4251_v33 = vmul.f32 %v4226_v12, %v9975_v48  ;;  %v4202_v49 = vmul.f32 0.044715, %v9984_v47  ;;  %v4349_v8 = vadd.f32 1.0, %v7516_v58  ;;  %v4177_v31 = vmul.f32 0.5, %v9984_v47 }
 0x61c   : > { %v7518_v3 = vpop.eup %7517  ;;  %v4276_v61 = vadd.f32 %v4251_v33, %v9975_v48  ;;  %v4227_v43 = vmul.f32 %v4202_v49, %v9984_v47  ;;  %v4374_v63 = vmul.f32 %v4349_v8, %v4174_v15  ;;  %v4439_v32 = vld [vmem:[#allocation2 + $0x72] ss:$2 sm:$0xff] }
 0x61d   : > { %v4091_v0 = vmul.f32 %v7518_v3, %v9725_v53  ;;  %v7520_v11 = vpop.eup %7519  ;;  %v7099_v50 = vpack.i.bf16 %v4439_v32, %v4438_v44 }
 0x61e   : > { %v4301_v46 = vmul.f32 0.7978846, %v4276_v61  ;;  %v4252_v39 = vmul.f32 %v4227_v43, %v9984_v47  ;;  %4399 = vst.msk [vmem:[#allocation2 + $0x90] sm:$0xff] %vm1858_vm5, %v4374_v63  ;;  %v4350_v60 = vadd.f32 1.0, %v7520_v11  ;;  %v4407_v43 = vld [vmem:[#allocation2 + $0x10] ss:$2 sm:$0xff] }
 0x61f   : > { %v4122_v57 = vmul.f32 %v9743_v55, %v4091_v0  ;;  %7100 = vrot.lane.b32.xlu0 %v7099_v50, %s7710_s23 }
 0x620   : > { %v7522_v45 = vpop.eup %7521  ;;  %7525 = vtanh.f32 %v4301_v46  ;;  %v4277_v20 = vadd.f32 %v4252_v39, %v9984_v47  ;;  %v4375_v21 = vmul.f32 %v4350_v60, %v4175_v35  ;;  %v4427_v18 = vld [vmem:[#allocation2 + $0x81] ss:$2 sm:$0xff]  ;;  %v4406_v39 = vld [vmem:[#allocation2] ss:$2 sm:$0xff] }
 0x621   : > { %v4153_v53 = vadd.f32 %v9747_v42, %v4122_v57  ;;  %v4092_v41 = vmul.f32 %v7522_v45, %v9730_v25 }
 0x622   : > { %v4302_v26 = vmul.f32 0.7978846, %v4277_v20  ;;  %4400 = vst.msk [vmem:[#allocation2 + $0x98] sm:$0xff] %vm1858_vm5, %v4375_v21 }
 0x623   : > { %v4203_v17 = vmul.f32 0.044715, %v4153_v53  ;;  %v4123_v5 = vmul.f32 %v9743_v55, %v4092_v41  ;;  %v4178_v40 = vmul.f32 0.5, %v4153_v53 }
 0x624   : > { %v7524_v34 = vpop.eup %7523  ;;  %7527 = vtanh.f32 %v4302_v26 }
 0x625   : > { %v4228_v4 = vmul.f32 %v4203_v17, %v4153_v53  ;;  %v4154_v56 = vadd.f32 %v9747_v42, %v4123_v5  ;;  %v4093_v16 = vmul.f32 %v7524_v34, %v9736_v30  ;;  %v4176_v30 = vmul.f32 0.5, %v9975_v48  ;;  %v4440_v48 = vld [vmem:[#allocation2 + $0x82] ss:$2 sm:$0xff] }
 0x627   : > { %v4253_v23 = vmul.f32 %v4228_v4, %v4153_v53  ;;  %v4204_v13 = vmul.f32 0.044715, %v4154_v56  ;;  %v4124_v25 = vmul.f32 %v9743_v55, %v4093_v16  ;;  %v4179_v0 = vmul.f32 0.5, %v4154_v56  ;;  %v4408_v4 = vld [vmem:[#allocation2 + $0x20] ss:$2 sm:$0xff] }
 0x628   : > { %v4409_v16 = vld [vmem:[#allocation2 + $0x30] ss:$2 sm:$0xff] }
 0x629   : > { %v4278_v29 = vadd.f32 %v4253_v23, %v4153_v53  ;;  %v4229_v1 = vmul.f32 %v4204_v13, %v4154_v56  ;;  %v4155_v24 = vadd.f32 %v9747_v42, %v4124_v25  ;;  %v4428_v6 = vld [vmem:[#allocation2 + $0x91] ss:$2 sm:$0xff] }
 0x62a   : > { %v7104_v54 = vpack.i.bf16 %v4428_v6, %v4427_v18 }
 0x62b   : > { %v4303_v7 = vmul.f32 0.7978846, %v4278_v29  ;;  %v4254_v62 = vmul.f32 %v4229_v1, %v4154_v56  ;;  %v4205_v9 = vmul.f32 0.044715, %v4155_v24  ;;  %v4180_v60 = vmul.f32 0.5, %v4155_v24 }
 0x62c   : > { %7105 = vrot.lane.b32.xlu1 %v7104_v54, %s7709_s11 }
 0x62d   : > { %v7526_v51 = vpop.eup %7525  ;;  %7529 = vtanh.f32 %v4303_v7  ;;  %v4279_v27 = vadd.f32 %v4254_v62, %v4154_v56  ;;  %v4230_v37 = vmul.f32 %v4205_v9, %v4155_v24 }
 0x62e   : > { %v4351_v38 = vadd.f32 1.0, %v7526_v51 }
 0x62f   : > { %v4304_v14 = vmul.f32 0.7978846, %v4279_v27  ;;  %v4255_v10 = vmul.f32 %v4230_v37, %v4155_v24 }
 0x630   : > { %v4376_v55 = vmul.f32 %v4351_v38, %v4176_v30  ;;  %v4410_v38 = vld [vmem:[#allocation2 + $0x40] ss:$2 sm:$0xff] }
 0x631   : > { %v7528_v22 = vpop.eup %7527  ;;  %7531 = vtanh.f32 %v4304_v14  ;;  %v4280_v42 = vadd.f32 %v4255_v10, %v4155_v24  ;;  %v4411_v14 = vld [vmem:[#allocation2 + $0x50] ss:$2 sm:$0xff] }
 0x632   : > { %4401 = vst.msk [vmem:[#allocation2 + $0xa0] sm:$0xff] %vm1858_vm5, %v4376_v55  ;;  %v4352_v59 = vadd.f32 1.0, %v7528_v22 }
 0x633   : > { %v4305_v28 = vmul.f32 0.7978846, %v4280_v42 }
 0x634   : > { %v4377_v2 = vmul.f32 %v4352_v59, %v4177_v31 }
 0x635   : > { %7533 = vtanh.f32 %v4305_v28 }
 0x636   : > { %4402 = vst.msk [vmem:[#allocation2 + $0xa8] sm:$0xff] %vm1858_vm5, %v4377_v2 }
 0x639   : > { %v4441_v36 = vld [vmem:[#allocation2 + $0x92] ss:$2 sm:$0xff] }
 0x63a   : > { %v7530_v52 = vpop.eup %7529  ;;  %v7109_v12 = vpack.i.bf16 %v4441_v36, %v4440_v48 }
 0x63b   : > { %v4353_v58 = vadd.f32 1.0, %v7530_v52  ;;  %v7071_v33 = vpop.permute.xlu1 %7070  ;;  %v7066_v49 = vpop.permute.xlu0 %7065 }
 0x63c   : > { %7110 = vrot.lane.b32.xlu0 %v7109_v12, %s7710_s23  ;;  %v7073_v8 = vunpack.i.h.bf16 %v7071_v33  ;;  %v7072_v3 = vunpack.i.l.bf16 %v7071_v33  ;;  %v7068_v47 = vunpack.i.h.bf16 %v7066_v49  ;;  %v7067_v63 = vunpack.i.l.bf16 %v7066_v49  ;;  %v4412_v12 = vld [vmem:[#allocation2 + $0x60] ss:$2 sm:$0xff] }
 0x63d   : > { %v4378_v15 = vmul.f32 %v4353_v58, %v4178_v40  ;;  %v4429_v21 = vld [vmem:[#allocation2 + $0xa1] ss:$2 sm:$0xff]  ;;  %v4413_v40 = vld [vmem:[#allocation2 + $0x70] ss:$2 sm:$0xff] }
 0x63e   : > { %v7532_v61 = vpop.eup %7531  ;;  %v4550_v44 = vsel %vm1858_vm5, %v4407_v43, %v7068_v47  ;;  %v4549_v11 = vsel %vm1858_vm5, %v4406_v39, %v7067_v63  ;;  %v4415_v39 = vld [vmem:[#allocation2 + $0x90] ss:$2 sm:$0xff] }
 0x63f   : > { %4403 = vst.msk [vmem:[#allocation2 + $0xb0] sm:$0xff] %vm1858_vm5, %v4378_v15  ;;  %v4354_v46 = vadd.f32 1.0, %v7532_v61  ;;  %v4563_v32 = vsel %vm3497_vm7, %v4550_v44, %v7073_v8  ;;  %v4562_v50 = vsel %vm3497_vm7, %v4549_v11, %v7072_v3 }
 0x640   : > { %v4587_v35 = vpack.c.bf16 %v4563_v32, %v4562_v50 }
 0x641   : > { %v4379_v57 = vmul.f32 %v4354_v46, %v4179_v0  ;;  %v4414_v46 = vld [vmem:[#allocation2 + $0x80] ss:$2 sm:$0xff] }
 0x642   : > { %v7534_v45 = vpop.eup %7533  ;;  %6782 = vmatmul.mubr.msk.bf16.vlgmr.msra.gmra.mxu1 %vm3591_vm8, %v4587_v35 }
 0x643   : > { %4404 = vst.msk [vmem:[#allocation2 + $0xb8] sm:$0xff] %vm1858_vm5, %v4379_v57  ;;  %v4355_v20 = vadd.f32 1.0, %v7534_v45  ;;  %6785 = vmatprep.mubr.msk.bf16.mxu1 %vm7707_vm1, %v10537_v19 }
 0x644   : > { %v7076_v41 = vpop.permute.xlu1 %7075 }
 0x645   : > { %v4380_v53 = vmul.f32 %v4355_v20, %v4180_v60  ;;  %v7078_v17 = vunpack.i.h.bf16 %v7076_v41  ;;  %v7077_v5 = vunpack.i.l.bf16 %v7076_v41 }
 0x646   : > { %v4442_v25 = vld [vmem:[#allocation2 + $0xa2] ss:$2 sm:$0xff] }
 0x647   : > { %4405 = vst.msk [vmem:[#allocation2 + $0xc0] sm:$0x7f] %vm2006_vm6, %v4380_v53  ;;  %v4551_v1 = vsel %vm1858_vm5, %v4408_v4, %v7077_v5  ;;  %v4552_v24 = vsel %vm1858_vm5, %v4409_v16, %v7078_v17 }
 0x64a   : > { %v4430_v26 = vld [vmem:[#allocation2 + $0xb1] ss:$2 sm:$0xff] }
 0x64b   : > { %v7114_v34 = vpack.i.bf16 %v4430_v26, %v4429_v21  ;;  %v4416_v21 = vld [vmem:[#allocation2 + $0xa0] ss:$2 sm:$0xff]  ;;  %v4417_v26 = vld [vmem:[#allocation2 + $0xb0] ss:$2 sm:$0xff] }
 0x64d   : > { %v7081_v56 = vpop.permute.xlu0 %7080  ;;  %7115 = vrot.lane.b32.xlu1 %v7114_v34, %s7709_s11 }
 0x64e   : > { %v7083_v23 = vunpack.i.h.bf16 %v7081_v56  ;;  %v7082_v13 = vunpack.i.l.bf16 %v7081_v56  ;;  %v4443_v29 = vld [vmem:[#allocation2 + $0xb2] ss:$2 sm:$0xff]  ;;  %v4431_v18 = vld [vmem:[#allocation2 + $0xc1] ss:$2 sm:$0x7] }
 0x64f   : > { %v7119_v7 = vpack.i.bf16 %v4443_v29, %v4442_v25  ;;  %v4444_v51 = vld [vmem:[#allocation2 + $0xc2] ss:$2 sm:$0x7] }
 0x650   : > { %v4565_v62 = vsel %vm3497_vm7, %v4552_v24, %v7083_v23  ;;  %v4564_v9 = vsel %vm3497_vm7, %v4551_v1, %v7082_v13  ;;  %v4418_v29 = vld [vmem:[#allocation2 + $0xc0] ss:$2 sm:$0x7] }
 0x651   : > { %v4588_v6 = vpack.c.bf16 %v4565_v62, %v4564_v9  ;;  %7120 = vrot.lane.b32.xlu0 %v7119_v7, %s7710_s23  ;;  %4482 = vrot.lane.b32.xlu1 %v4431_v18, %s7709_s11  ;;  %v10066_v62 = vld [vmem:[%s7774_s24] ss:$0 sm:$0xff] }
 0x653   : > { %6786 = vmatmul.mubr.msk.bf16.gmra.mxu1 %vm3591_vm8, %v4588_v6 }
 0x654   : > { %6789 = vmatprep.mubr.msk.bf16.mxu1 %vm7707_vm1, %v10537_v19 }
 0x655   : > { %4534 = vrot.lane.b32.xlu0 %v4444_v51, %s7710_s23 }
 0x65f   : > { %v7086_v27 = vpop.permute.xlu1 %7085 }
 0x660   : > { %v7088_v37 = vunpack.i.h.bf16 %v7086_v27  ;;  %v7087_v54 = vunpack.i.l.bf16 %v7086_v27 }
 0x662   : > { %v4553_v22 = vsel %vm1858_vm5, %v4410_v38, %v7087_v54  ;;  %v4554_v42 = vsel %vm1858_vm5, %v4411_v14, %v7088_v37 }
 0x66c   : > { %v7091_v30 = vpop.permute.xlu0 %7090 }
 0x66d   : > { %v7093_v10 = vunpack.i.h.bf16 %v7091_v30  ;;  %v7092_v55 = vunpack.i.l.bf16 %v7091_v30 }
 0x66f   : > { %v4567_v31 = vsel %vm3497_vm7, %v4554_v42, %v7093_v10  ;;  %v4566_v59 = vsel %vm3497_vm7, %v4553_v22, %v7092_v55 }
 0x670   : > { %v4589_v28 = vpack.c.bf16 %v4567_v31, %v4566_v59 }
 0x672   : > { %6790 = vmatmul.mubr.msk.bf16.gmra.mxu1 %vm3591_vm8, %v4589_v28 }
 0x673   : > { %6793 = vmatprep.mubr.msk.bf16.mxu1 %vm7707_vm1, %v10537_v19 }
 0x67e   : > { %v7096_v2 = vpop.permute.xlu1 %7095 }
 0x67f   : > { %v7098_v48 = vunpack.i.h.bf16 %v7096_v2  ;;  %v7097_v36 = vunpack.i.l.bf16 %v7096_v2 }
 0x681   : > { %v4555_v49 = vsel %vm1858_vm5, %v4412_v12, %v7097_v36  ;;  %v4556_v15 = vsel %vm1858_vm5, %v4413_v40, %v7098_v48 }
 0x691   : > { %v7101_v52 = vpop.permute.xlu0 %7100 }
 0x692   : > { %v7103_v58 = vunpack.i.h.bf16 %v7101_v52  ;;  %v7102_v33 = vunpack.i.l.bf16 %v7101_v52 }
 0x694   : > { %v4569_v8 = vsel %vm3497_vm7, %v4556_v15, %v7103_v58  ;;  %v4568_v3 = vsel %vm3497_vm7, %v4555_v49, %v7102_v33 }
 0x695   : > { %v4590_v47 = vpack.c.bf16 %v4569_v8, %v4568_v3 }
 0x697   : > { %6794 = vmatmul.mubr.msk.bf16.gmra.mxu1 %vm3591_vm8, %v4590_v47 }
 0x698   : > { %6797 = vmatprep.mubr.msk.bf16.mxu1 %vm7707_vm1, %v10537_v19 }
 0x69e   : > { %v7106_v61 = vpop.permute.xlu1 %7105 }
 0x69f   : > { %v7108_v43 = vunpack.i.h.bf16 %v7106_v61  ;;  %v7107_v63 = vunpack.i.l.bf16 %v7106_v61 }
 0x6a1   : > { %v4557_v11 = vsel %vm1858_vm5, %v4414_v46, %v7107_v63  ;;  %v4558_v57 = vsel %vm1858_vm5, %v4415_v39, %v7108_v43 }
 0x6ae   : > { %v7111_v0 = vpop.permute.xlu0 %7110 }
 0x6af   : > { %v7113_v44 = vunpack.i.h.bf16 %v7111_v0  ;;  %v7112_v32 = vunpack.i.l.bf16 %v7111_v0 }
 0x6b1   : > { %v4571_v50 = vsel %vm3497_vm7, %v4558_v57, %v7113_v44  ;;  %v4570_v45 = vsel %vm3497_vm7, %v4557_v11, %v7112_v32 }
 0x6b2   : > { %v4591_v35 = vpack.c.bf16 %v4571_v50, %v4570_v45 }
 0x6b4   : > { %6798 = vmatmul.mubr.msk.bf16.gmra.mxu1 %vm3591_vm8, %v4591_v35 }
 0x6b5   : > { %6801 = vmatprep.mubr.msk.bf16.mxu1 %vm7707_vm1, %v10537_v19 }
 0x6bf   : > { %v7116_v60 = vpop.permute.xlu1 %7115 }
 0x6c0   : > { %v7118_v20 = vunpack.i.h.bf16 %v7116_v60  ;;  %v7117_v53 = vunpack.i.l.bf16 %v7116_v60 }
 0x6c2   : > { %v4559_v34 = vsel %vm1858_vm5, %v4416_v21, %v7117_v53  ;;  %v4560_v4 = vsel %vm1858_vm5, %v4417_v26, %v7118_v20 }
 0x6c3   : > { %v7121_v41 = vpop.permute.xlu0 %7120  ;;  %v4483_v13 = vpop.permute.xlu1 %4482 }
 0x6c4   : > { %v7123_v17 = vunpack.i.h.bf16 %v7121_v41  ;;  %v7122_v5 = vunpack.i.l.bf16 %v7121_v41  ;;  %v4561_v1 = vsel %vm1858_vm5, %v4418_v29, %v4483_v13 }
 0x6c6   : > { %v4573_v56 = vsel %vm3497_vm7, %v4560_v4, %v7123_v17  ;;  %v4572_v16 = vsel %vm3497_vm7, %v4559_v34, %v7122_v5 }
 0x6c7   : > { %v4592_v23 = vpack.c.bf16 %v4573_v56, %v4572_v16  ;;  %v4535_v25 = vpop.permute.xlu0 %4534 }
 0x6c8   : > { %v4574_v24 = vsel %vm3497_vm7, %v4561_v1, %v4535_v25 }
 0x6c9   : > { %6802 = vmatmul.mubr.msk.bf16.gmra.mxu1 %vm3591_vm8, %v4592_v23  ;;  %v4593_v7 = vpack.c.bf16 %v4574_v24, %v4574_v24 }
 0x6ca   : > { %6805 = vmatprep.mubr.msk.bf16.mxu1 %vm7707_vm1, %v10537_v19 }
 0x6d1   : > { %6806 = vmatmul.mubr.msk.bf16.gmra.mxu1 %vm3591_vm8, %v4593_v7 }
 0x702   : > { %v4692_v9 = vpop.f32.mrf.mxu1 }
 0x703   : > { %v10069_v18 = vadd.f32 %v10066_v62, %v4692_v9 }
 0x704   : > { %v6783_v6 = vpop.f32.mrf.mxu1 }
 0x705   : > { %v4748_v51 = vsel %vm1858_vm5, %v10069_v18, 0.0 }
 0x706   : > { %4749 = vadd.xlane.f32.xlu1 %v4748_v51  ;;  %v4695_v27 = vpop.f32.mrf.mxu1 }
 0x707   : > { %v10074_v37 = vadd.f32 %v10066_v62, %v4695_v27 }
 0x708   : > { %v6784_v54 = vpop.f32.mrf.mxu1 }
 0x709   : > { %v4751_v30 = vsel %vm1858_vm5, %v10074_v37, 0.0 }
 0x70a   : > { %4752 = vadd.xlane.f32.xlu0 %v4751_v30 }
 0x713   : > { %v4700_v38 = vpop.f32.mrf.mxu1 }
 0x714   : > { %v10079_v14 = vadd.f32 %v10066_v62, %v4700_v38 }
 0x715   : > { %v6787_v10 = vpop.f32.mrf.mxu1 }
 0x716   : > { %v4754_v55 = vsel %vm1858_vm5, %v10079_v14, 0.0 }
 0x717   : > { %4755 = vadd.xlane.f32.xlu0 %v4754_v55  ;;  %v4703_v22 = vpop.f32.mrf.mxu1 }
 0x718   : > { %v10084_v42 = vadd.f32 %v10066_v62, %v4703_v22 }
 0x719   : > { %v6788_v31 = vpop.f32.mrf.mxu1 }
 0x71a   : > { %v4757_v59 = vsel %vm1858_vm5, %v10084_v42, 0.0 }
 0x71b   : > { %4758 = vadd.xlane.f32.xlu1 %v4757_v59 }
 0x732   : > { %v4708_v28 = vpop.f32.mrf.mxu1 }
 0x733   : > { %v10089_v2 = vadd.f32 %v10066_v62, %v4708_v28 }
 0x734   : > { %v6791_v48 = vpop.f32.mrf.mxu1 }
 0x735   : > { %v4760_v36 = vsel %vm1858_vm5, %v10089_v2, 0.0 }
 0x736   : > { %4761 = vadd.xlane.f32.xlu0 %v4760_v36  ;;  %v4711_v52 = vpop.f32.mrf.mxu1 }
 0x737   : > { %v10094_v12 = vadd.f32 %v10066_v62, %v4711_v52 }
 0x738   : > { %v6792_v40 = vpop.f32.mrf.mxu1 }
 0x739   : > { %v4763_v58 = vsel %vm1858_vm5, %v10094_v12, 0.0 }
 0x73a   : > { %4764 = vadd.xlane.f32.xlu1 %v4763_v58 }
 0x757   : > { %v4716_v33 = vpop.f32.mrf.mxu1 }
 0x758   : > { %v10099_v49 = vadd.f32 %v10066_v62, %v4716_v33 }
 0x759   : > { %v6795_v15 = vpop.f32.mrf.mxu1 }
 0x75a   : > { %v4766_v8 = vsel %vm1858_vm5, %v10099_v49, 0.0 }
 0x75b   : > { %4767 = vadd.xlane.f32.xlu0 %v4766_v8  ;;  %v4719_v3 = vpop.f32.mrf.mxu1 }
 0x75c   : > { %v10104_v47 = vadd.f32 %v10066_v62, %v4719_v3 }
 0x75d   : > { %v6796_v61 = vpop.f32.mrf.mxu1 }
 0x75e   : > { %v4769_v43 = vsel %vm1858_vm5, %v10104_v47, 0.0 }
 0x75f   : > { %4770 = vadd.xlane.f32.xlu1 %v4769_v43 }
 0x774   : > { %v4724_v63 = vpop.f32.mrf.mxu1 }
 0x775   : > { %v10109_v0 = vadd.f32 %v10066_v62, %v4724_v63 }
 0x776   : > { %v6799_v46 = vpop.f32.mrf.mxu1 }
 0x777   : > { %v4772_v39 = vsel %vm1858_vm5, %v10109_v0, 0.0 }
 0x778   : > { %4773 = vadd.xlane.f32.xlu0 %v4772_v39  ;;  %v4727_v44 = vpop.f32.mrf.mxu1 }
 0x779   : > { %v10114_v32 = vadd.f32 %v10066_v62, %v4727_v44 }
 0x77a   : > { %v6800_v11 = vpop.f32.mrf.mxu1 }
 0x77b   : > { %v4775_v57 = vsel %vm1858_vm5, %v10114_v32, 0.0 }
 0x77c   : > { %4776 = vadd.xlane.f32.xlu1 %v4775_v57 }
 0x789   : > { %v4732_v50 = vpop.f32.mrf.mxu1 }
 0x78a   : > { %v10119_v45 = vadd.f32 %v10066_v62, %v4732_v50 }
 0x78b   : > { %v6803_v35 = vpop.f32.mrf.mxu1 }
 0x78c   : > { %v4778_v60 = vsel %vm1858_vm5, %v10119_v45, 0.0 }
 0x78d   : > { %4779 = vadd.xlane.f32.xlu0 %v4778_v60  ;;  %v4735_v20 = vpop.f32.mrf.mxu1 }
 0x78e   : > { %v10124_v53 = vadd.f32 %v10066_v62, %v4735_v20 }
 0x78f   : > { %v6804_v41 = vpop.f32.mrf.mxu1  ;;  %v4750_v26 = vpop.xlane.xlu1 %4749 }
 0x790   : > { %v4781_v21 = vsel %vm1858_vm5, %v10124_v53, 0.0  ;;  %v4788_v5 = vmul.f32 0.03125, %v4750_v26 }
 0x791   : > { %4782 = vadd.xlane.f32.xlu1 %v4781_v21  ;;  %v4740_v17 = vpop.f32.mrf.mxu1 }
 0x792   : > { %v10129_v34 = vadd.f32 %v10066_v62, %v4740_v17  ;;  %v10132_v56 = vsub.f32 %v10069_v18, %v4788_v5 }
 0x793   : > { %v6807_v4 = vpop.f32.mrf.mxu1  ;;  %v4753_v23 = vpop.xlane.xlu0 %4752 }
 0x794   : > { %v4785_v16 = vsel %vm4784_vm9, %v10129_v34, 0.0  ;;  %v4789_v25 = vmul.f32 0.03125, %v4753_v23  ;;  %v4814_v29 = vmul.f32 %v10132_v56, %v10132_v56 }
 0x795   : > { %4786 = vadd.xlane.f32.xlu0 %v4785_v16  ;;  %v4743_v13 = vpop.f32.mrf.mxu1 }
 0x796   : > { %v10139_v24 = vsub.f32 %v10074_v37, %v4789_v25  ;;  %v4827_v7 = vsel %vm1858_vm5, %v4814_v29, 0.0 }
 0x797   : > { %v6808_v1 = vpop.f32.mrf.mxu1  ;;  %4828 = vadd.xlane.f32.xlu1 %v4827_v7 }
 0x798   : > { %v4815_v62 = vmul.f32 %v10139_v24, %v10139_v24 }
 0x79a   : > { %v4830_v9 = vsel %vm1858_vm5, %v4815_v62, 0.0 }
 0x79b   : > { %4831 = vadd.xlane.f32.xlu0 %v4830_v9 }
 0x7a0   : > { %v4756_v18 = vpop.xlane.xlu0 %4755 }
 0x7a1   : > { %v4790_v6 = vmul.f32 0.03125, %v4756_v18 }
 0x7a3   : > { %v10146_v51 = vsub.f32 %v10079_v14, %v4790_v6 }
 0x7a4   : > { %v4759_v27 = vpop.xlane.xlu1 %4758 }
 0x7a5   : > { %v4791_v54 = vmul.f32 0.03125, %v4759_v27  ;;  %v4816_v37 = vmul.f32 %v10146_v51, %v10146_v51 }
 0x7a7   : > { %v10151_v30 = vsub.f32 %v10084_v42, %v4791_v54  ;;  %v4833_v38 = vsel %vm1858_vm5, %v4816_v37, 0.0  ;;  %v10212_v54 = vld [vmem:[%s7779_s30] ss:$0 sm:$0xff] }
 0x7a8   : > { %4834 = vadd.xlane.f32.xlu1 %v4833_v38 }
 0x7a9   : > { %v4817_v10 = vmul.f32 %v10151_v30, %v10151_v30 }
 0x7ab   : > { %v4836_v55 = vsel %vm1858_vm5, %v4817_v10, 0.0 }
 0x7ac   : > { %4837 = vadd.xlane.f32.xlu0 %v4836_v55  ;;  %v10216_v55 = vld [vmem:[%s7784_s6] ss:$0 sm:$0xff] }
 0x7bf   : > { %v4762_v22 = vpop.xlane.xlu0 %4761 }
 0x7c0   : > { %v4792_v14 = vmul.f32 0.03125, %v4762_v22 }
 0x7c2   : > { %v10158_v31 = vsub.f32 %v10089_v2, %v4792_v14 }
 0x7c3   : > { %v4765_v59 = vpop.xlane.xlu1 %4764 }
 0x7c4   : > { %v4793_v28 = vmul.f32 0.03125, %v4765_v59  ;;  %v4818_v42 = vmul.f32 %v10158_v31, %v10158_v31 }
 0x7c6   : > { %v10163_v48 = vsub.f32 %v10094_v12, %v4793_v28  ;;  %v4839_v36 = vsel %vm1858_vm5, %v4818_v42, 0.0 }
 0x7c7   : > { %4840 = vadd.xlane.f32.xlu1 %v4839_v36 }
 0x7c8   : > { %v4819_v52 = vmul.f32 %v10163_v48, %v10163_v48 }
 0x7ca   : > { %v4842_v40 = vsel %vm1858_vm5, %v4819_v52, 0.0 }
 0x7cb   : > { %4843 = vadd.xlane.f32.xlu0 %v4842_v40 }
 0x7e4   : > { %v4768_v58 = vpop.xlane.xlu0 %4767 }
 0x7e5   : > { %v4794_v2 = vmul.f32 0.03125, %v4768_v58 }
 0x7e7   : > { %v10170_v33 = vsub.f32 %v10099_v49, %v4794_v2 }
 0x7e8   : > { %v4771_v15 = vpop.xlane.xlu1 %4770 }
 0x7e9   : > { %v4795_v8 = vmul.f32 0.03125, %v4771_v15  ;;  %v4820_v12 = vmul.f32 %v10170_v33, %v10170_v33 }
 0x7eb   : > { %v10175_v3 = vsub.f32 %v10104_v47, %v4795_v8  ;;  %v4845_v61 = vsel %vm1858_vm5, %v4820_v12, 0.0 }
 0x7ec   : > { %4846 = vadd.xlane.f32.xlu1 %v4845_v61 }
 0x7ed   : > { %v4821_v43 = vmul.f32 %v10175_v3, %v10175_v3 }
 0x7ef   : > { %v4848_v63 = vsel %vm1858_vm5, %v4821_v43, 0.0 }
 0x7f0   : > { %4849 = vadd.xlane.f32.xlu0 %v4848_v63 }
 0x801   : > { %v4774_v46 = vpop.xlane.xlu0 %4773 }
 0x802   : > { %v4796_v49 = vmul.f32 0.03125, %v4774_v46 }
 0x804   : > { %v10182_v39 = vsub.f32 %v10109_v0, %v4796_v49 }
 0x805   : > { %v4777_v44 = vpop.xlane.xlu1 %4776 }
 0x806   : > { %v4797_v11 = vmul.f32 0.03125, %v4777_v44  ;;  %v4822_v47 = vmul.f32 %v10182_v39, %v10182_v39 }
 0x808   : > { %v10187_v57 = vsub.f32 %v10114_v32, %v4797_v11  ;;  %v4851_v50 = vsel %vm1858_vm5, %v4822_v47, 0.0 }
 0x809   : > { %4852 = vadd.xlane.f32.xlu1 %v4851_v50 }
 0x80a   : > { %v4823_v35 = vmul.f32 %v10187_v57, %v10187_v57 }
 0x80c   : > { %v4854_v60 = vsel %vm1858_vm5, %v4823_v35, 0.0 }
 0x80d   : > { %4855 = vadd.xlane.f32.xlu0 %v4854_v60 }
 0x816   : > { %v4780_v20 = vpop.xlane.xlu0 %4779 }
 0x817   : > { %v4798_v0 = vmul.f32 0.03125, %v4780_v20 }
 0x819   : > { %v10194_v41 = vsub.f32 %v10119_v45, %v4798_v0 }
 0x81a   : > { %v4783_v21 = vpop.xlane.xlu1 %4782 }
 0x81b   : > { %v4799_v26 = vmul.f32 0.03125, %v4783_v21  ;;  %v4824_v32 = vmul.f32 %v10194_v41, %v10194_v41 }
 0x81d   : > { %v10199_v17 = vsub.f32 %v10124_v53, %v4799_v26  ;;  %v4857_v5 = vsel %vm1858_vm5, %v4824_v32, 0.0 }
 0x81e   : > { %4858 = vadd.xlane.f32.xlu1 %v4857_v5  ;;  %v4787_v4 = vpop.xlane.xlu0 %4786 }
 0x81f   : > { %v4800_v16 = vmul.f32 0.03125, %v4787_v4  ;;  %v4825_v23 = vmul.f32 %v10199_v17, %v10199_v17 }
 0x820   : > { %v4829_v25 = vpop.xlane.xlu1 %4828 }
 0x821   : > { %v10205_v13 = vsub.f32 %v10129_v34, %v4800_v16  ;;  %v4860_v45 = vsel %vm1858_vm5, %v4825_v23, 0.0  ;;  %v4866_v29 = vmul.f32 0.03125, %v4829_v25 }
 0x822   : > { %4861 = vadd.xlane.f32.xlu0 %v4860_v45 }
 0x823   : > { %v4826_v53 = vmul.f32 %v10205_v13, %v10205_v13  ;;  %v4879_v1 = vadd.f32 1e-05, %v4866_v29 }
 0x824   : > { %v4832_v62 = vpop.xlane.xlu0 %4831 }
 0x825   : > { %v4863_v7 = vsel %vm4784_vm9, %v4826_v53, 0.0  ;;  %7535 = vrsqrt.f32 %v4879_v1  ;;  %v4867_v9 = vmul.f32 0.03125, %v4832_v62 }
 0x826   : > { %4864 = vadd.xlane.f32.xlu1 %v4863_v7 }
 0x827   : > { %v4880_v18 = vadd.f32 1e-05, %v4867_v9 }
 0x829   : > { %7537 = vrsqrt.f32 %v4880_v18 }
 0x831   : > { %v4835_v34 = vpop.xlane.xlu1 %4834 }
 0x832   : > { %v4868_v6 = vmul.f32 0.03125, %v4835_v34  ;;  %v7536_v27 = vpop.eup %7535 }
 0x833   : > { %v4905_v38 = vmul.f32 %v7536_v27, %v10132_v56 }
 0x834   : > { %v4881_v37 = vadd.f32 1e-05, %v4868_v6 }
 0x835   : > { %v4838_v10 = vpop.xlane.xlu0 %4837  ;;  %v4924_v14 = vmul.f32 %v10212_v54, %v4905_v38 }
 0x836   : > { %7539 = vrsqrt.f32 %v4881_v37  ;;  %v4869_v22 = vmul.f32 0.03125, %v4838_v10  ;;  %v7538_v59 = vpop.eup %7537 }
 0x837   : > { %v4943_v42 = vadd.f32 %v10216_v55, %v4924_v14  ;;  %v4906_v36 = vmul.f32 %v7538_v59, %v10139_v24 }
 0x838   : > { %v4882_v28 = vadd.f32 1e-05, %v4869_v22 }
 0x839   : > { %v4969_v52 = vmul.f32 0.044715, %v4943_v42  ;;  %v4925_v40 = vmul.f32 %v10212_v54, %v4906_v36  ;;  %v4956_v25 = vmul.f32 0.5, %v4943_v42 }
 0x83a   : > { %7541 = vrsqrt.f32 %v4882_v28 }
 0x83b   : > { %v4982_v58 = vmul.f32 %v4969_v52, %v4943_v42  ;;  %v4944_v56 = vadd.f32 %v10216_v55, %v4925_v40 }
 0x83d   : > { %v4995_v2 = vmul.f32 %v4982_v58, %v4943_v42  ;;  %v4970_v15 = vmul.f32 0.044715, %v4944_v56  ;;  %v4957_v34 = vmul.f32 0.5, %v4944_v56 }
 0x83f   : > { %v5008_v8 = vadd.f32 %v4995_v2, %v4943_v42  ;;  %v4983_v12 = vmul.f32 %v4970_v15, %v4944_v56 }
 0x841   : > { %v5021_v43 = vmul.f32 0.7978846, %v5008_v8  ;;  %v4996_v63 = vmul.f32 %v4983_v12, %v4944_v56 }
 0x843   : > { %v7540_v61 = vpop.eup %7539  ;;  %7543 = vtanh.f32 %v5021_v43  ;;  %v5009_v49 = vadd.f32 %v4996_v63, %v4944_v56 }
 0x844   : > { %v4907_v46 = vmul.f32 %v7540_v61, %v10146_v51 }
 0x845   : > { %v5022_v11 = vmul.f32 0.7978846, %v5009_v49 }
 0x846   : > { %v4926_v24 = vmul.f32 %v10212_v54, %v4907_v46 }
 0x847   : > { %v7542_v44 = vpop.eup %7541  ;;  %7545 = vtanh.f32 %v5022_v11 }
 0x848   : > { %v4945_v47 = vadd.f32 %v10216_v55, %v4926_v24  ;;  %v4908_v50 = vmul.f32 %v7542_v44, %v10151_v30 }
 0x84a   : > { %v4971_v35 = vmul.f32 0.044715, %v4945_v47  ;;  %v4927_v60 = vmul.f32 %v10212_v54, %v4908_v50  ;;  %v4958_v10 = vmul.f32 0.5, %v4945_v47 }
 0x84c   : > { %v4984_v20 = vmul.f32 %v4971_v35, %v4945_v47  ;;  %v4946_v0 = vadd.f32 %v10216_v55, %v4927_v60 }
 0x84e   : > { %v4997_v21 = vmul.f32 %v4984_v20, %v4945_v47  ;;  %v4972_v26 = vmul.f32 0.044715, %v4946_v0  ;;  %v4959_v36 = vmul.f32 0.5, %v4946_v0 }
 0x850   : > { %v5010_v51 = vadd.f32 %v4997_v21, %v4945_v47  ;;  %v4985_v32 = vmul.f32 %v4972_v26, %v4946_v0  ;;  %v4841_v5 = vpop.xlane.xlu1 %4840  ;;  %v7544_v4 = vpop.eup %7543 }
 0x851   : > { %v4870_v45 = vmul.f32 0.03125, %v4841_v5  ;;  %v5047_v29 = vadd.f32 1.0, %v7544_v4 }
 0x852   : > { %v5023_v16 = vmul.f32 0.7978846, %v5010_v51  ;;  %v4998_v23 = vmul.f32 %v4985_v32, %v4946_v0 }
 0x853   : > { %v4883_v53 = vadd.f32 1e-05, %v4870_v45  ;;  %v5060_v1 = vmul.f32 %v5047_v29, %v4956_v25 }
 0x854   : > { %7547 = vtanh.f32 %v5023_v16  ;;  %v5011_v30 = vadd.f32 %v4998_v23, %v4946_v0  ;;  %v4844_v7 = vpop.xlane.xlu0 %4843  ;;  %v7546_v62 = vpop.eup %7545 }
 0x855   : > { %7549 = vrsqrt.f32 %v4883_v53  ;;  %v4871_v18 = vmul.f32 0.03125, %v4844_v7  ;;  %5073 = vst.msk [vmem:[#allocation2] sm:$0xff] %vm1858_vm5, %v5060_v1  ;;  %v5048_v6 = vadd.f32 1.0, %v7546_v62 }
 0x856   : > { %v5024_v9 = vmul.f32 0.7978846, %v5011_v30 }
 0x857   : > { %v4884_v27 = vadd.f32 1e-05, %v4871_v18  ;;  %v5061_v37 = vmul.f32 %v5048_v6, %v4957_v34 }
 0x858   : > { %7551 = vtanh.f32 %v5024_v9 }
 0x859   : > { %7553 = vrsqrt.f32 %v4884_v27  ;;  %5074 = vst.msk [vmem:[#allocation2 + $0x8] sm:$0xff] %vm1858_vm5, %v5061_v37 }
 0x860   : > { %v5093_v24 = vld [vmem:[#allocation2 + $0x1] ss:$2 sm:$0xff] }
 0x861   : > { %v7548_v38 = vpop.eup %7547 }
 0x862   : > { %v5049_v22 = vadd.f32 1.0, %v7548_v38  ;;  %v7550_v14 = vpop.eup %7549 }
 0x863   : > { %v4909_v28 = vmul.f32 %v7550_v14, %v10158_v31 }
 0x864   : > { %v5062_v59 = vmul.f32 %v5049_v22, %v4958_v10 }
 0x865   : > { %v7552_v42 = vpop.eup %7551  ;;  %v4928_v40 = vmul.f32 %v10212_v54, %v4909_v28 }
 0x866   : > { %5075 = vst.msk [vmem:[#allocation2 + $0x10] sm:$0xff] %vm1858_vm5, %v5062_v59  ;;  %v5050_v52 = vadd.f32 1.0, %v7552_v42  ;;  %v7554_v58 = vpop.eup %7553 }
 0x867   : > { %v4947_v2 = vadd.f32 %v10216_v55, %v4928_v40  ;;  %v4910_v15 = vmul.f32 %v7554_v58, %v10163_v48 }
 0x868   : > { %v5063_v56 = vmul.f32 %v5050_v52, %v4959_v36 }
 0x869   : > { %v4973_v8 = vmul.f32 0.044715, %v4947_v2  ;;  %v4929_v12 = vmul.f32 %v10212_v54, %v4910_v15  ;;  %v4960_v5 = vmul.f32 0.5, %v4947_v2 }
 0x86a   : > { %5076 = vst.msk [vmem:[#allocation2 + $0x18] sm:$0xff] %vm1858_vm5, %v5063_v56 }
 0x86b   : > { %v4986_v61 = vmul.f32 %v4973_v8, %v4947_v2  ;;  %v4948_v31 = vadd.f32 %v10216_v55, %v4929_v12 }
 0x86d   : > { %v4999_v43 = vmul.f32 %v4986_v61, %v4947_v2  ;;  %v4974_v63 = vmul.f32 0.044715, %v4948_v31  ;;  %v4961_v45 = vmul.f32 0.5, %v4948_v31  ;;  %v5100_v62 = vld [vmem:[#allocation2 + $0x2] ss:$2 sm:$0xff] }
 0x86f   : > { %v5012_v46 = vadd.f32 %v4999_v43, %v4947_v2  ;;  %v4987_v49 = vmul.f32 %v4974_v63, %v4948_v31 }
 0x871   : > { %v5094_v44 = vld [vmem:[#allocation2 + $0x11] ss:$2 sm:$0xff]  ;;  %v5025_v11 = vmul.f32 0.7978846, %v5012_v46  ;;  %v5000_v47 = vmul.f32 %v4987_v49, %v4948_v31 }
 0x872   : > { %v7124_v50 = vpack.i.bf16 %v5094_v44, %v5093_v24 }
 0x873   : > { %7555 = vtanh.f32 %v5025_v11  ;;  %v5013_v35 = vadd.f32 %v5000_v47, %v4948_v31 }
 0x874   : > { %7125 = vrot.lane.b32.xlu0 %v7124_v50, %s7709_s11 }
 0x875   : > { %v5026_v48 = vmul.f32 0.7978846, %v5013_v35  ;;  %v4847_v60 = vpop.xlane.xlu1 %4846 }
 0x876   : > { %v4872_v20 = vmul.f32 0.03125, %v4847_v60 }
 0x877   : > { %7557 = vtanh.f32 %v5026_v48 }
 0x878   : > { %v4885_v0 = vadd.f32 1e-05, %v4872_v20 }
 0x879   : > { %v4850_v21 = vpop.xlane.xlu0 %4849 }
 0x87a   : > { %7559 = vrsqrt.f32 %v4885_v0  ;;  %v4873_v26 = vmul.f32 0.03125, %v4850_v21 }
 0x87c   : > { %v4886_v51 = vadd.f32 1e-05, %v4873_v26 }
 0x87e   : > { %7561 = vrsqrt.f32 %v4886_v51 }
 0x880   : > { %v7556_v32 = vpop.eup %7555 }
 0x881   : > { %v5051_v4 = vadd.f32 1.0, %v7556_v32 }
 0x883   : > { %v5064_v16 = vmul.f32 %v5051_v4, %v4960_v5 }
 0x884   : > { %v7558_v23 = vpop.eup %7557 }
 0x885   : > { %5077 = vst.msk [vmem:[#allocation2 + $0x20] sm:$0xff] %vm1858_vm5, %v5064_v16  ;;  %v5052_v25 = vadd.f32 1.0, %v7558_v23  ;;  %v7207_v23 = vld [vmem:[%s10545_s15 + $0x28] sm:$0xff]  }
 0x886   : > { %6809 = vmatprep.subr.bf16.mxu1 %v7207_v23 }
 0x887   : > { %v5065_v29 = vmul.f32 %v5052_v25, %v4961_v45  ;;  %v7560_v30 = vpop.eup %7559  ;;  %v7208_v45 = vld [vmem:[%s10545_s15 + $0x20] sm:$0xff]   ;;  %6810 = vmatpush3.bf16.msra.mxu1 %v7207_v23 }
 0x888   : > { %v4911_v53 = vmul.f32 %v7560_v30, %v10170_v33  ;;  %6811 = vmatprep.subr.bf16.mxu1 %v7208_v45 }
 0x889   : > { %5078 = vst.msk [vmem:[#allocation2 + $0x28] sm:$0xff] %vm1858_vm5, %v5065_v29 }
 0x88a   : > { %v4930_v1 = vmul.f32 %v10212_v54, %v4911_v53 }
 0x88b   : > { %v7562_v7 = vpop.eup %7561  ;;  %6812 = vmatpush3.bf16.msra.mxu1 %v7208_v45 }
 0x88c   : > { %v5101_v9 = vld [vmem:[#allocation2 + $0x12] ss:$2 sm:$0xff]  ;;  %v4949_v18 = vadd.f32 %v10216_v55, %v4930_v1  ;;  %v4912_v34 = vmul.f32 %v7562_v7, %v10175_v3 }
 0x88d   : > { %v7129_v6 = vpack.i.bf16 %v5101_v9, %v5100_v62  ;;  %v7209_v62 = vld [vmem:[%s10545_s15 + $0x18] sm:$0xff]  }
 0x88e   : > { %v4975_v27 = vmul.f32 0.044715, %v4949_v18  ;;  %v4931_v37 = vmul.f32 %v10212_v54, %v4912_v34  ;;  %v4962_v46 = vmul.f32 0.5, %v4949_v18  ;;  %6813 = vmatprep.subr.bf16.mxu1 %v7209_v62 }
 0x88f   : > { %7130 = vrot.lane.b32.xlu1 %v7129_v6, %s7710_s23  ;;  %6814 = vmatpush3.bf16.msra.mxu1 %v7209_v62 }
 0x890   : > { %v4988_v38 = vmul.f32 %v4975_v27, %v4949_v18  ;;  %v4950_v10 = vadd.f32 %v10216_v55, %v4931_v37  ;;  %v7210_v27 = vld [vmem:[%s10545_s15 + $0x10] sm:$0xff]  }
 0x891   : > { %6815 = vmatprep.subr.bf16.mxu1 %v7210_v27 }
 0x892   : > { %v4853_v22 = vpop.xlane.xlu1 %4852  ;;  %v5001_v14 = vmul.f32 %v4988_v38, %v4949_v18  ;;  %v4976_v59 = vmul.f32 0.044715, %v4950_v10  ;;  %v4963_v20 = vmul.f32 0.5, %v4950_v10 }
 0x893   : > { %v4874_v33 = vmul.f32 0.03125, %v4853_v22  ;;  %v7211_v22 = vld [vmem:[%s10545_s15 + $0x8] sm:$0xff]   ;;  %6816 = vmatpush3.bf16.msra.mxu1 %v7210_v27 }
 0x894   : > { %v5014_v42 = vadd.f32 %v5001_v14, %v4949_v18  ;;  %v4989_v36 = vmul.f32 %v4976_v59, %v4950_v10  ;;  %v5095_v18 = vld [vmem:[#allocation2 + $0x21] ss:$2 sm:$0xff]  ;;  %6817 = vmatprep.subr.bf16.mxu1 %v7211_v22 }
 0x895   : > { %v4887_v28 = vadd.f32 1e-05, %v4874_v33 }
 0x896   : > { %v4856_v52 = vpop.xlane.xlu0 %4855  ;;  %v5027_v3 = vmul.f32 0.7978846, %v5014_v42  ;;  %v5002_v58 = vmul.f32 %v4989_v36, %v4950_v10 }
 0x897   : > { %7563 = vrsqrt.f32 %v4887_v28  ;;  %v4875_v40 = vmul.f32 0.03125, %v4856_v52  ;;  %6818 = vmatpush3.bf16.msra.mxu1 %v7211_v22  ;;  %v5087_v22 = vld [vmem:[#allocation2 + $0x10] ss:$2 sm:$0xff] }
 0x898   : > { %7565 = vtanh.f32 %v5027_v3  ;;  %v5015_v2 = vadd.f32 %v5002_v58, %v4950_v10 }
 0x899   : > { %v4888_v56 = vadd.f32 1e-05, %v4875_v40 }
 0x89a   : > { %v5028_v15 = vmul.f32 0.7978846, %v5015_v2 }
 0x89b   : > { %7567 = vrsqrt.f32 %v4888_v56 }
 0x89c   : > { %7569 = vtanh.f32 %v5028_v15 }
 0x8a4   : > { %v7564_v8 = vpop.eup %7563 }
 0x8a5   : > { %v4913_v12 = vmul.f32 %v7564_v8, %v10182_v39  ;;  %v7566_v61 = vpop.eup %7565 }
 0x8a6   : > { %v5053_v49 = vadd.f32 1.0, %v7566_v61 }
 0x8a7   : > { %v4932_v31 = vmul.f32 %v10212_v54, %v4913_v12  ;;  %v4859_v43 = vpop.xlane.xlu1 %4858 }
 0x8a8   : > { %v7568_v63 = vpop.eup %7567  ;;  %v4876_v24 = vmul.f32 0.03125, %v4859_v43  ;;  %v5066_v47 = vmul.f32 %v5053_v49, %v4962_v46 }
 0x8a9   : > { %v10252_v44 = vadd.f32 %v10216_v55, %v4932_v31  ;;  %v4914_v11 = vmul.f32 %v7568_v63, %v10187_v57  ;;  %v7570_v35 = vpop.eup %7569 }
 0x8aa   : > { %v4889_v50 = vadd.f32 1e-05, %v4876_v24  ;;  %5079 = vst.msk [vmem:[#allocation2 + $0x30] sm:$0xff] %vm1858_vm5, %v5066_v47  ;;  %v5054_v0 = vadd.f32 1.0, %v7570_v35  ;;  %v7212_v24 = vld [vmem:[%s10545_s15] sm:$0xff]  }
 0x8ab   : > { %v4977_v48 = vmul.f32 0.044715, %v10252_v44  ;;  %v4933_v39 = vmul.f32 %v10212_v54, %v4914_v11  ;;  %v4862_v60 = vpop.xlane.xlu0 %4861  ;;  %v4964_v56 = vmul.f32 0.5, %v10252_v44  ;;  %6819 = vmatprep.subr.bf16.mxu1 %v7212_v24 }
 0x8ac   : > { %7571 = vrsqrt.f32 %v4889_v50  ;;  %v4877_v21 = vmul.f32 0.03125, %v4862_v60  ;;  %v5067_v51 = vmul.f32 %v5054_v0, %v4963_v20  ;;  %6820 = vmatpush3.bf16.msra.mxu1 %v7212_v24 }
 0x8ad   : > { %v4990_v26 = vmul.f32 %v4977_v48, %v10252_v44  ;;  %v4952_v57 = vadd.f32 %v10216_v55, %v4933_v39  ;;  %6845 = vmatprep.subr.bf16.mxu1 %v10537_v19 }
 0x8ae   : > { %v4890_v32 = vadd.f32 1e-05, %v4877_v21  ;;  %5080 = vst.msk [vmem:[#allocation2 + $0x38] sm:$0xff] %vm1858_vm5, %v5067_v51 }
 0x8af   : > { %v5003_v5 = vmul.f32 %v4990_v26, %v10252_v44  ;;  %v4978_v4 = vmul.f32 0.044715, %v4952_v57  ;;  %v4865_v16 = vpop.xlane.xlu1 %4864  ;;  %v4965_v46 = vmul.f32 0.5, %v4952_v57 }
 0x8b0   : > { %7573 = vrsqrt.f32 %v4890_v32  ;;  %v4878_v25 = vmul.f32 0.03125, %v4865_v16 }
 0x8b1   : > { %v5016_v29 = vadd.f32 %v5003_v5, %v10252_v44  ;;  %v4991_v30 = vmul.f32 %v4978_v4, %v4952_v57  ;;  %v5102_v39 = vld [vmem:[#allocation2 + $0x22] ss:$2 sm:$0xff] }
 0x8b2   : > { %v4891_v53 = vadd.f32 1e-05, %v4878_v25 }
 0x8b3   : > { %v5029_v1 = vmul.f32 0.7978846, %v5016_v29  ;;  %v5004_v7 = vmul.f32 %v4991_v30, %v4952_v57 }
 0x8b4   : > { %7575 = vrsqrt.f32 %v4891_v53 }
 0x8b5   : > { %7577 = vtanh.f32 %v5029_v1  ;;  %v5017_v9 = vadd.f32 %v5004_v7, %v4952_v57  ;;  %v5096_v6 = vld [vmem:[#allocation2 + $0x31] ss:$2 sm:$0xff] }
 0x8b6   : > { %v7134_v37 = vpack.i.bf16 %v5096_v6, %v5095_v18 }
 0x8b7   : > { %v5030_v34 = vmul.f32 0.7978846, %v5017_v9 }
 0x8b8   : > { %7135 = vrot.lane.b32.xlu1 %v7134_v37, %s7709_s11 }
 0x8b9   : > { %v7572_v38 = vpop.eup %7571  ;;  %7579 = vtanh.f32 %v5030_v34 }
 0x8ba   : > { %v4915_v10 = vmul.f32 %v7572_v38, %v10194_v41 }
 0x8bc   : > { %v4934_v33 = vmul.f32 %v10212_v54, %v4915_v10  ;;  %v5086_v10 = vld [vmem:[#allocation2] ss:$2 sm:$0xff] }
 0x8bd   : > { %v7574_v14 = vpop.eup %7573 }
 0x8be   : > { %v4953_v59 = vadd.f32 %v10216_v55, %v4934_v33  ;;  %v4916_v28 = vmul.f32 %v7574_v14, %v10199_v17 }
 0x8c0   : > { %v4979_v42 = vmul.f32 0.044715, %v4953_v59  ;;  %v4935_v36 = vmul.f32 %v10212_v54, %v4916_v28  ;;  %v4966_v26 = vmul.f32 0.5, %v4953_v59 }
 0x8c1   : > { %v7576_v52 = vpop.eup %7575 }
 0x8c2   : > { %v7578_v40 = vpop.eup %7577  ;;  %v4992_v41 = vmul.f32 %v4979_v42, %v4953_v59  ;;  %v4954_v3 = vadd.f32 %v10216_v55, %v4935_v36  ;;  %v4917_v58 = vmul.f32 %v7576_v52, %v10205_v13 }
 0x8c3   : > { %v5055_v2 = vadd.f32 1.0, %v7578_v40 }
 0x8c4   : > { %v5005_v15 = vmul.f32 %v4992_v41, %v4953_v59  ;;  %v4980_v8 = vmul.f32 0.044715, %v4954_v3  ;;  %v4936_v17 = vmul.f32 %v10212_v54, %v4917_v58  ;;  %v4967_v5 = vmul.f32 0.5, %v4954_v3 }
 0x8c5   : > { %v5068_v12 = vmul.f32 %v5055_v2, %v4964_v56  ;;  %v5088_v56 = vld [vmem:[#allocation2 + $0x20] ss:$2 sm:$0xff]  ;;  %v5089_v2 = vld [vmem:[#allocation2 + $0x30] ss:$2 sm:$0xff] }
 0x8c6   : > { %v7580_v61 = vpop.eup %7579  ;;  %v5018_v31 = vadd.f32 %v5005_v15, %v4953_v59  ;;  %v4993_v43 = vmul.f32 %v4980_v8, %v4954_v3  ;;  %v4955_v63 = vadd.f32 %v10216_v55, %v4936_v17 }
 0x8c7   : > { %5081 = vst.msk [vmem:[#allocation2 + $0x40] sm:$0xff] %vm1858_vm5, %v5068_v12  ;;  %v5056_v49 = vadd.f32 1.0, %v7580_v61 }
 0x8c8   : > { %v5031_v13 = vmul.f32 0.7978846, %v5018_v31  ;;  %v5006_v11 = vmul.f32 %v4993_v43, %v4954_v3  ;;  %v4981_v47 = vmul.f32 0.044715, %v4955_v63  ;;  %v4968_v45 = vmul.f32 0.5, %v4955_v63 }
 0x8c9   : > { %v5069_v44 = vmul.f32 %v5056_v49, %v4965_v46 }
 0x8ca   : > { %7581 = vtanh.f32 %v5031_v13  ;;  %v5019_v50 = vadd.f32 %v5006_v11, %v4954_v3  ;;  %v4994_v35 = vmul.f32 %v4981_v47, %v4955_v63 }
 0x8cb   : > { %5082 = vst.msk [vmem:[#allocation2 + $0x48] sm:$0xff] %vm1858_vm5, %v5069_v44 }
 0x8cc   : > { %v5032_v54 = vmul.f32 0.7978846, %v5019_v50  ;;  %v5007_v55 = vmul.f32 %v4994_v35, %v4955_v63 }
 0x8ce   : > { %7583 = vtanh.f32 %v5032_v54  ;;  %v5020_v48 = vadd.f32 %v5007_v55, %v4955_v63  ;;  %v5103_v60 = vld [vmem:[#allocation2 + $0x32] ss:$2 sm:$0xff] }
 0x8cf   : > { %v7139_v20 = vpack.i.bf16 %v5103_v60, %v5102_v39 }
 0x8d0   : > { %v5033_v0 = vmul.f32 0.7978846, %v5020_v48 }
 0x8d1   : > { %7140 = vrot.lane.b32.xlu0 %v7139_v20, %s7710_s23 }
 0x8d2   : > { %7585 = vtanh.f32 %v5033_v0  ;;  %v5097_v30 = vld [vmem:[#allocation2 + $0x41] ss:$2 sm:$0xff]  ;;  %v5090_v13 = vld [vmem:[#allocation2 + $0x40] ss:$2 sm:$0xff] }
 0x8d7   : > { %v7582_v21 = vpop.eup %7581 }
 0x8d8   : > { %v5057_v57 = vadd.f32 1.0, %v7582_v21 }
 0x8da   : > { %v5070_v51 = vmul.f32 %v5057_v57, %v4966_v26  ;;  %v6451_v57 = vld [vmem:[%s10546_s18] ss:$0 sm:$0xff]  ;;  %s10554_s18 = sld [smem:[#allocation16_spill]] }
 0x8db   : > { %v7584_v32 = vpop.eup %7583 }
 0x8dc   : > { %5083 = vst.msk [vmem:[#allocation2 + $0x50] sm:$0xff] %vm1858_vm5, %v5070_v51  ;;  %v5058_v4 = vadd.f32 1.0, %v7584_v32 }
 0x8de   : > { %v5071_v16 = vmul.f32 %v5058_v4, %v4967_v5 }
 0x8df   : > { %v7586_v23 = vpop.eup %7585 }
 0x8e0   : > { %5084 = vst.msk [vmem:[#allocation2 + $0x58] sm:$0xff] %vm1858_vm5, %v5071_v16  ;;  %v5059_v25 = vadd.f32 1.0, %v7586_v23 }
 0x8e2   : > { %v5072_v29 = vmul.f32 %v5059_v25, %v4968_v45 }
 0x8e3   : > { %v5104_v7 = vld [vmem:[#allocation2 + $0x42] ss:$2 sm:$0xff] }
 0x8e4   : > { %5085 = vst.msk [vmem:[#allocation2 + $0x60] sm:$0x7] %vm4784_vm9, %v5072_v29 }
 0x8e6   : > { %v7126_v6 = vpop.permute.xlu0 %7125 }
 0x8e7   : > { %v5098_v53 = vld [vmem:[#allocation2 + $0x51] ss:$2 sm:$0xff]  ;;  %v7128_v27 = vunpack.i.h.bf16 %v7126_v6  ;;  %v7127_v37 = vunpack.i.l.bf16 %v7126_v6  ;;  %v5091_v47 = vld [vmem:[#allocation2 + $0x50] ss:$2 sm:$0xff] }
 0x8e8   : > { %v7144_v1 = vpack.i.bf16 %v5098_v53, %v5097_v30 }
 0x8e9   : > { %v5164_v59 = vsel %vm1858_vm5, %v5087_v22, %v7128_v27  ;;  %v5163_v28 = vsel %vm1858_vm5, %v5086_v10, %v7127_v37 }
 0x8ea   : > { %7145 = vrot.lane.b32.xlu1 %v7144_v1, %s7709_s11 }
 0x8eb   : > { %v5099_v62 = vld [vmem:[#allocation2 + $0x61] ss:$2 sm:$0x1]  ;;  %v5105_v9 = vld [vmem:[#allocation2 + $0x52] ss:$2 sm:$0xff] }
 0x8ec   : > { %5126 = vrot.lane.b32.xlu0 %v5099_v62, %s7709_s11  ;;  %v7149_v18 = vpack.i.bf16 %v5105_v9, %v5104_v7  ;;  %v5106_v34 = vld [vmem:[#allocation2 + $0x62] ss:$2 sm:$0x1]  ;;  %v5092_v44 = vld [vmem:[#allocation2 + $0x60] ss:$2 sm:$0x1] }
 0x8ee   : > { %7150 = vrot.lane.b32.xlu1 %v7149_v18, %s7710_s23 }
 0x8f0   : > { %5154 = vrot.lane.b32.xlu0 %v5106_v34, %s7710_s23 }
 0x901   : > { %v7131_v38 = vpop.permute.xlu1 %7130 }
 0x902   : > { %v7133_v33 = vunpack.i.h.bf16 %v7131_v38  ;;  %v7132_v14 = vunpack.i.l.bf16 %v7131_v38 }
 0x904   : > { %v5170_v42 = vsel %vm3497_vm7, %v5163_v28, %v7132_v14  ;;  %v5171_v36 = vsel %vm3497_vm7, %v5164_v59, %v7133_v33 }
 0x905   : > { %v5189_v52 = vpack.c.bf16 %v5171_v36, %v5170_v42 }
 0x907   : > { %6821 = vmatprep.mubr.msk.bf16.mxu1 %vm3591_vm8, %v5189_v52 }
 0x92a   : > { %v7136_v40 = vpop.permute.xlu1 %7135 }
 0x92b   : > { %v7138_v41 = vunpack.i.h.bf16 %v7136_v40  ;;  %v7137_v3 = vunpack.i.l.bf16 %v7136_v40 }
 0x92d   : > { %v5165_v17 = vsel %vm1858_vm5, %v5088_v56, %v7137_v3  ;;  %v5166_v12 = vsel %vm1858_vm5, %v5089_v2, %v7138_v41 }
 0x943   : > { %v7141_v58 = vpop.permute.xlu0 %7140 }
 0x944   : > { %v7143_v15 = vunpack.i.h.bf16 %v7141_v58  ;;  %v7142_v8 = vunpack.i.l.bf16 %v7141_v58 }
 0x946   : > { %v5173_v61 = vsel %vm3497_vm7, %v5166_v12, %v7143_v15  ;;  %v5172_v31 = vsel %vm3497_vm7, %v5165_v17, %v7142_v8 }
 0x947   : > { %v5190_v43 = vpack.c.bf16 %v5173_v61, %v5172_v31 }
 0x949   : > { %6822 = vmatmul.mubr.msk.bf16.vlgmr.msra.gmra.mxu1 %vm3591_vm8, %v5190_v43 }
 0x95c   : > { %v7146_v63 = vpop.permute.xlu1 %7145 }
 0x95d   : > { %v7148_v46 = vunpack.i.h.bf16 %v7146_v63  ;;  %v7147_v49 = vunpack.i.l.bf16 %v7146_v63 }
 0x95e   : > { %v5127_v24 = vpop.permute.xlu0 %5126 }
 0x95f   : > { %v5167_v54 = vsel %vm1858_vm5, %v5090_v13, %v7147_v49  ;;  %v5168_v55 = vsel %vm1858_vm5, %v5091_v47, %v7148_v46  ;;  %v5169_v48 = vsel %vm1858_vm5, %v5092_v44, %v5127_v24 }
 0x960   : > { %v7151_v11 = vpop.permute.xlu1 %7150 }
 0x961   : > { %v7153_v50 = vunpack.i.h.bf16 %v7151_v11  ;;  %v7152_v35 = vunpack.i.l.bf16 %v7151_v11 }
 0x962   : > { %v5155_v39 = vpop.permute.xlu0 %5154 }
 0x963   : > { %v5174_v60 = vsel %vm3497_vm7, %v5167_v54, %v7152_v35  ;;  %v5175_v20 = vsel %vm3497_vm7, %v5168_v55, %v7153_v50  ;;  %v5176_v0 = vsel %vm3497_vm7, %v5169_v48, %v5155_v39 }
 0x964   : > { %v5191_v21 = vpack.c.bf16 %v5175_v20, %v5174_v60  ;;  %v5192_v26 = vpack.c.bf16 %v5176_v0, %v5176_v0  ;;  %v7213_v60 = vld [vmem:[%s10547_s27 + $0x28] sm:$0xff]   ;;  %v7214_v20 = vld [vmem:[%s10547_s27 + $0x20] sm:$0xff]   ;;  %v7215_v0 = vld [vmem:[%s10547_s27 + $0x18] sm:$0xff]  }
 0x965   : > { %6829 = vmatprep.subr.bf16.mxu0 %v7213_v60 }
 0x966   : > { %6825 = vmatprep.mubr.msk.bf16.mxu1 %vm3591_vm8, %v5191_v21  ;;  %6830 = vmatpush3.bf16.msra.mxu0 %v7213_v60  ;;  %v7216_v21 = vld [vmem:[%s10547_s27 + $0x10] sm:$0xff]  }
 0x967   : > { %6826 = vmatmul.mubr.msk.bf16.gmra.mxu1 %vm3591_vm8, %v5192_v26  ;;  %6831 = vmatprep.subr.bf16.mxu0 %v7214_v20  ;;  %v7217_v26 = vld [vmem:[%s10547_s27 + $0x8] sm:$0xff]  }
 0x968   : > { %6853 = vmatprep.mubr.msk.bf16.mxu1 %vm7707_vm1, %v10537_v19 }
 0x96a   : > { %6832 = vmatpush3.bf16.msra.mxu0 %v7214_v20 }
 0x96b   : > { %6833 = vmatprep.subr.bf16.mxu0 %v7215_v0 }
 0x96e   : > { %6834 = vmatpush3.bf16.msra.mxu0 %v7215_v0 }
 0x96f   : > { %6835 = vmatprep.subr.bf16.mxu0 %v7216_v21 }
 0x972   : > { %6836 = vmatpush3.bf16.msra.mxu0 %v7216_v21 }
 0x973   : > { %6837 = vmatprep.subr.bf16.mxu0 %v7217_v26 }
 0x976   : > { %6838 = vmatpush3.bf16.msra.mxu0 %v7217_v26 }
 0xa09   : > { %v6823_v51 = vpop.f32.mrf.mxu1 }
 0xa0a   : > { %v5291_v32 = vadd.f32 %v6823_v51, %v6451_v57 }
 0xa0b   : > { %v5282_v5 = vpop.f32.mrf.mxu1 }
 0xa0c   : > { %v5283_v4 = vadd.f32 %v6451_v57, %v5282_v5  ;;  %v5320_v16 = vsel %vm1858_vm5, %v5291_v32, 0.0 }
 0xa0d   : > { %5321 = vadd.xlane.f32.xlu0 %v5320_v16  ;;  %v6824_v23 = vpop.f32.mrf.mxu1 }
 0xa0e   : > { %v5294_v45 = vadd.f32 %v6824_v23, %v6451_v57  ;;  %v5314_v25 = vsel %vm1858_vm5, %v5283_v4, 0.0 }
 0xa0f   : > { %v5285_v29 = vpop.f32.mrf.mxu1  ;;  %5315 = vadd.xlane.f32.xlu1 %v5314_v25 }
 0xa10   : > { %v5286_v30 = vadd.f32 %v6451_v57, %v5285_v29  ;;  %v5323_v1 = vsel %vm1858_vm5, %v5294_v45, 0.0 }
 0xa12   : > { %v5317_v53 = vsel %vm1858_vm5, %v5286_v30, 0.0 }
 0xa13   : > { %5318 = vadd.xlane.f32.xlu0 %v5317_v53  ;;  %5324 = vadd.xlane.f32.xlu1 %v5323_v1 }
 0xa27   : > { %v6827_v7 = vpop.f32.mrf.mxu1 }
 0xa28   : > { %v5307_v34 = vadd.f32 %v6827_v7, %v6451_v57  ;;  %v10360_v7 = vld [vmem:[%s10548_s26] ss:$0 sm:$0xff]  ;;  %s10555_s26 = sld [smem:[#allocation19_spill]] }
 0xa29   : > { %v5298_v62 = vpop.f32.mrf.mxu1 }
 0xa2a   : > { %v5299_v9 = vadd.f32 %v6451_v57, %v5298_v62  ;;  %v5333_v38 = vsel %vm5332_vm10, %v5307_v34, 0.0 }
 0xa2b   : > { %v6828_v18 = vpop.f32.mrf.mxu1 }
 0xa2c   : > { %v5326_v6 = vsel %vm1858_vm5, %v5299_v9, 0.0 }
 0xa2d   : > { %v5301_v27 = vpop.f32.mrf.mxu1  ;;  %5327 = vadd.xlane.f32.xlu0 %v5326_v6 }
 0xa2e   : > { %v5302_v37 = vadd.f32 %v6451_v57, %v5301_v27 }
 0xa30   : > { %v5329_v10 = vsel %vm1858_vm5, %v5302_v37, 0.0 }
 0xa31   : > { %5334 = vadd.xlane.f32.xlu0 %v5333_v38  ;;  %5330 = vadd.xlane.f32.xlu1 %v5329_v10 }
 0xa96   : > { %v5322_v22 = vpop.xlane.xlu0 %5321 }
 0xa97   : > { %v5338_v33 = vmul.f32 0.03125, %v5322_v22 }
 0xa98   : > { %v5316_v14 = vpop.xlane.xlu1 %5315 }
 0xa99   : > { %v10319_v59 = vsub.f32 %v5291_v32, %v5338_v33  ;;  %v5336_v28 = vmul.f32 0.03125, %v5316_v14 }
 0xa9b   : > { %v10321_v42 = vsub.f32 %v5283_v4, %v5336_v28  ;;  %v5352_v36 = vmul.f32 %v10319_v59, %v10319_v59 }
 0xa9c   : > { %v5319_v52 = vpop.xlane.xlu0 %5318  ;;  %v5325_v40 = vpop.xlane.xlu1 %5324 }
 0xa9d   : > { %v5337_v41 = vmul.f32 0.03125, %v5319_v52  ;;  %v5339_v3 = vmul.f32 0.03125, %v5325_v40  ;;  %v5363_v58 = vsel %vm1858_vm5, %v5352_v36, 0.0  ;;  %v5350_v56 = vmul.f32 %v10321_v42, %v10321_v42 }
 0xa9e   : > { %5364 = vadd.xlane.f32.xlu1 %v5363_v58 }
 0xa9f   : > { %v10328_v2 = vsub.f32 %v5286_v30, %v5337_v41  ;;  %v10330_v15 = vsub.f32 %v5294_v45, %v5339_v3  ;;  %v5357_v8 = vsel %vm1858_vm5, %v5350_v56, 0.0 }
 0xaa1   : > { %v5353_v17 = vmul.f32 %v10330_v15, %v10330_v15  ;;  %v5351_v61 = vmul.f32 %v10328_v2, %v10328_v2 }
 0xaa2   : > { %5358 = vadd.xlane.f32.xlu1 %v5357_v8 }
 0xaa3   : > { %v5366_v12 = vsel %vm1858_vm5, %v5353_v17, 0.0  ;;  %v5360_v31 = vsel %vm1858_vm5, %v5351_v61, 0.0 }
 0xaa4   : > { %5367 = vadd.xlane.f32.xlu0 %v5366_v12 }
 0xaa8   : > { %5361 = vadd.xlane.f32.xlu0 %v5360_v31 }
 0xab6   : > { %v5328_v43 = vpop.xlane.xlu0 %5327 }
 0xab7   : > { %v5340_v63 = vmul.f32 0.03125, %v5328_v43 }
 0xab9   : > { %v10339_v46 = vsub.f32 %v5299_v9, %v5340_v63  ;;  %v10364_v9 = vld [vmem:[%s10549_s28] ss:$0 sm:$0xff]  ;;  %s10556_s28 = sld [smem:[#allocation17_spill]] }
 0xaba   : > { %v5335_v49 = vpop.xlane.xlu0 %5334  ;;  %v5331_v24 = vpop.xlane.xlu1 %5330 }
 0xabb   : > { %v5342_v13 = vmul.f32 0.03125, %v5335_v49  ;;  %v5341_v11 = vmul.f32 0.03125, %v5331_v24  ;;  %v5354_v47 = vmul.f32 %v10339_v46, %v10339_v46 }
 0xabd   : > { %v10343_v44 = vsub.f32 %v5307_v34, %v5342_v13  ;;  %v10345_v50 = vsub.f32 %v5302_v37, %v5341_v11  ;;  %v5369_v35 = vsel %vm1858_vm5, %v5354_v47, 0.0 }
 0xabe   : > { %5370 = vadd.xlane.f32.xlu1 %v5369_v35 }
 0xabf   : > { %v5356_v54 = vmul.f32 %v10343_v44, %v10343_v44  ;;  %v5355_v55 = vmul.f32 %v10345_v50, %v10345_v50 }
 0xac1   : > { %v5375_v48 = vsel %vm5332_vm10, %v5356_v54, 0.0  ;;  %v5372_v39 = vsel %vm1858_vm5, %v5355_v55, 0.0 }
 0xac2   : > { %5376 = vadd.xlane.f32.xlu1 %v5375_v48  ;;  %5373 = vadd.xlane.f32.xlu0 %v5372_v39 }
 0xb27   : > { %v5365_v57 = vpop.xlane.xlu1 %5364 }
 0xb28   : > { %v5380_v51 = vmul.f32 0.03125, %v5365_v57 }
 0xb2a   : > { %v5387_v32 = vadd.f32 1e-05, %v5380_v51 }
 0xb2b   : > { %v5359_v5 = vpop.xlane.xlu1 %5358 }
 0xb2c   : > { %7587 = vrsqrt.f32 %v5387_v32  ;;  %v5378_v4 = vmul.f32 0.03125, %v5359_v5 }
 0xb2d   : > { %v5368_v16 = vpop.xlane.xlu0 %5367 }
 0xb2e   : > { %v5385_v23 = vadd.f32 1e-05, %v5378_v4  ;;  %v5381_v45 = vmul.f32 0.03125, %v5368_v16 }
 0xb30   : > { %7589 = vrsqrt.f32 %v5385_v23  ;;  %v5388_v25 = vadd.f32 1e-05, %v5381_v45 }
 0xb31   : > { %v5362_v29 = vpop.xlane.xlu0 %5361 }
 0xb32   : > { %7591 = vrsqrt.f32 %v5388_v25  ;;  %v5379_v30 = vmul.f32 0.03125, %v5362_v29 }
 0xb34   : > { %v5386_v53 = vadd.f32 1e-05, %v5379_v30 }
 0xb36   : > { %7593 = vrsqrt.f32 %v5386_v53 }
 0xb39   : > { %v7588_v1 = vpop.eup %7587 }
 0xb3a   : > { %v5401_v62 = vmul.f32 %v7588_v1, %v10319_v59 }
 0xb3c   : > { %v5414_v18 = vmul.f32 %v10360_v7, %v5401_v62 }
 0xb3d   : > { %v7590_v34 = vpop.eup %7589 }
 0xb3e   : > { %v5427_v6 = vadd.f32 %v10364_v9, %v5414_v18  ;;  %v5399_v27 = vmul.f32 %v7590_v34, %v10321_v42 }
 0xb3f   : > { %v7592_v37 = vpop.eup %7591 }
 0xb40   : > { %v5441_v38 = vmul.f32 0.044715, %v5427_v6  ;;  %v5412_v10 = vmul.f32 %v10360_v7, %v5399_v27  ;;  %v5402_v22 = vmul.f32 %v7592_v37, %v10330_v15  ;;  %v5434_v57 = vmul.f32 0.5, %v5427_v6 }
 0xb42   : > { %v5448_v33 = vmul.f32 %v5441_v38, %v5427_v6  ;;  %v5425_v14 = vadd.f32 %v10364_v9, %v5412_v10  ;;  %v5415_v59 = vmul.f32 %v10360_v7, %v5402_v22 }
 0xb43   : > { %v7594_v28 = vpop.eup %7593 }
 0xb44   : > { %v5455_v36 = vmul.f32 %v5448_v33, %v5427_v6  ;;  %v5439_v52 = vmul.f32 0.044715, %v5425_v14  ;;  %v5428_v40 = vadd.f32 %v10364_v9, %v5415_v59  ;;  %v5400_v41 = vmul.f32 %v7594_v28, %v10328_v2 }
 0xb45   : > { %v5432_v23 = vmul.f32 0.5, %v5425_v14 }
 0xb46   : > { %v5462_v3 = vadd.f32 %v5455_v36, %v5427_v6  ;;  %v5446_v42 = vmul.f32 %v5439_v52, %v5425_v14  ;;  %v5442_v58 = vmul.f32 0.044715, %v5428_v40  ;;  %v5413_v56 = vmul.f32 %v10360_v7, %v5400_v41 }
 0xb47   : > { %v5371_v8 = vpop.xlane.xlu1 %5370  ;;  %v5435_v1 = vmul.f32 0.5, %v5428_v40 }
 0xb48   : > { %v5469_v17 = vmul.f32 0.7978846, %v5462_v3  ;;  %v5453_v15 = vmul.f32 %v5446_v42, %v5425_v14  ;;  %v5449_v12 = vmul.f32 %v5442_v58, %v5428_v40  ;;  %v5382_v61 = vmul.f32 0.03125, %v5371_v8 }
 0xb49   : > { %v5426_v31 = vadd.f32 %v10364_v9, %v5413_v56 }
 0xb4a   : > { %7595 = vtanh.f32 %v5469_v17  ;;  %v5460_v43 = vadd.f32 %v5453_v15, %v5425_v14  ;;  %v5456_v63 = vmul.f32 %v5449_v12, %v5428_v40  ;;  %v5389_v49 = vadd.f32 1e-05, %v5382_v61 }
 0xb4b   : > { %v5440_v24 = vmul.f32 0.044715, %v5426_v31  ;;  %v5374_v13 = vpop.xlane.xlu0 %5373  ;;  %v5377_v11 = vpop.xlane.xlu1 %5376  ;;  %v5433_v14 = vmul.f32 0.5, %v5426_v31 }
 0xb4c   : > { %v5467_v2 = vmul.f32 0.7978846, %v5460_v43  ;;  %v5463_v47 = vadd.f32 %v5456_v63, %v5428_v40  ;;  %7597 = vrsqrt.f32 %v5389_v49  ;;  %v5383_v35 = vmul.f32 0.03125, %v5374_v13 }
 0xb4d   : > { %v5447_v54 = vmul.f32 %v5440_v24, %v5426_v31  ;;  %v5384_v55 = vmul.f32 0.03125, %v5377_v11 }
 0xb4e   : > { %7599 = vtanh.f32 %v5467_v2  ;;  %v5470_v48 = vmul.f32 0.7978846, %v5463_v47  ;;  %v5390_v39 = vadd.f32 1e-05, %v5383_v35 }
 0xb4f   : > { %v5454_v60 = vmul.f32 %v5447_v54, %v5426_v31  ;;  %v5391_v20 = vadd.f32 1e-05, %v5384_v55 }
 0xb50   : > { %7601 = vtanh.f32 %v5470_v48 }
 0xb51   : > { %v5461_v0 = vadd.f32 %v5454_v60, %v5426_v31  ;;  %7603 = vrsqrt.f32 %v5390_v39 }
 0xb52   : > { %7605 = vrsqrt.f32 %v5391_v20 }
 0xb53   : > { %v5468_v21 = vmul.f32 0.7978846, %v5461_v0 }
 0xb55   : > { %7607 = vtanh.f32 %v5468_v21 }
 0xb57   : > { %v7596_v26 = vpop.eup %7595 }
 0xb58   : > { %v5483_v51 = vadd.f32 1.0, %v7596_v26 }
 0xb59   : > { %v7598_v32 = vpop.eup %7597 }
 0xb5a   : > { %v5490_v5 = vmul.f32 %v5483_v51, %v5434_v57  ;;  %v5403_v4 = vmul.f32 %v7598_v32, %v10339_v46 }
 0xb5b   : > { %v7600_v16 = vpop.eup %7599 }
 0xb5c   : > { %5497 = vst.msk [vmem:[#allocation2 + $0x10] sm:$0xff] %vm1858_vm5, %v5490_v5  ;;  %v5481_v45 = vadd.f32 1.0, %v7600_v16  ;;  %v5416_v25 = vmul.f32 %v10360_v7, %v5403_v4 }
 0xb5d   : > { %v7602_v29 = vpop.eup %7601 }
 0xb5e   : > { %v7604_v30 = vpop.eup %7603  ;;  %v5488_v53 = vmul.f32 %v5481_v45, %v5432_v23  ;;  %v5484_v62 = vadd.f32 1.0, %v7602_v29  ;;  %v5429_v18 = vadd.f32 %v10364_v9, %v5416_v25 }
 0xb5f   : > { %v7606_v34 = vpop.eup %7605  ;;  %v5404_v6 = vmul.f32 %v7604_v30, %v10345_v50 }
 0xb60   : > { %5495 = vst.msk [vmem:[#allocation2] sm:$0xff] %vm1858_vm5, %v5488_v53  ;;  %v5491_v46 = vmul.f32 %v5484_v62, %v5435_v1  ;;  %v5443_v27 = vmul.f32 0.044715, %v5429_v18  ;;  %v5405_v37 = vmul.f32 %v7606_v34, %v10343_v44  ;;  %v7218_v44 = vld [vmem:[%s10547_s27] sm:$0xff]   ;;  %v5436_v49 = vmul.f32 0.5, %v5429_v18 }
 0xb61   : > { %v5417_v38 = vmul.f32 %v10360_v7, %v5404_v6  ;;  %6839 = vmatprep.subr.bf16.mxu0 %v7218_v44 }
 0xb62   : > { %v7608_v10 = vpop.eup %7607  ;;  %5498 = vst.msk [vmem:[#allocation2 + $0x18] sm:$0xff] %vm1858_vm5, %v5491_v46  ;;  %v5450_v22 = vmul.f32 %v5443_v27, %v5429_v18  ;;  %v5418_v33 = vmul.f32 %v10360_v7, %v5405_v37  ;;  %6840 = vmatpush3.bf16.msra.mxu0 %v7218_v44 }
 0xb63   : > { %v5482_v59 = vadd.f32 1.0, %v7608_v10  ;;  %v5430_v28 = vadd.f32 %v10364_v9, %v5417_v38  ;;  %6877 = vmatprep.subr.bf16.mxu0 %v10537_v19  ;;  %v6464_v38 = vld [vmem:[%s10550_s5] ss:$0 sm:$0xff]  ;;  %s10557_s5 = sld [smem:[#allocation18_spill]] }
 0xb64   : > { %v5457_v50 = vmul.f32 %v5450_v22, %v5429_v18  ;;  %v5431_v36 = vadd.f32 %v10364_v9, %v5418_v33 }
 0xb65   : > { %v5489_v52 = vmul.f32 %v5482_v59, %v5433_v14  ;;  %v5444_v40 = vmul.f32 0.044715, %v5430_v28  ;;  %v5437_v47 = vmul.f32 0.5, %v5430_v28 }
 0xb66   : > { %v5464_v41 = vadd.f32 %v5457_v50, %v5429_v18  ;;  %v5445_v3 = vmul.f32 0.044715, %v5431_v36  ;;  %v5438_v54 = vmul.f32 0.5, %v5431_v36 }
 0xb67   : > { %5496 = vst.msk [vmem:[#allocation2 + $0x8] sm:$0xff] %vm1858_vm5, %v5489_v52  ;;  %v5451_v42 = vmul.f32 %v5444_v40, %v5430_v28 }
 0xb68   : > { %v5471_v58 = vmul.f32 0.7978846, %v5464_v41  ;;  %v5452_v56 = vmul.f32 %v5445_v3, %v5431_v36 }
 0xb69   : > { %v5458_v8 = vmul.f32 %v5451_v42, %v5430_v28  ;;  %v5506_v31 = vld [vmem:[#allocation2 + $0x11] ss:$2 sm:$0xff]  ;;  %v5503_v25 = vld [vmem:[#allocation2 + $0x10] ss:$2 sm:$0xff] }
 0xb6a   : > { %7609 = vtanh.f32 %v5471_v58  ;;  %v5459_v7 = vmul.f32 %v5452_v56, %v5431_v36 }
 0xb6b   : > { %v5465_v17 = vadd.f32 %v5458_v8, %v5430_v28 }
 0xb6c   : > { %v5466_v15 = vadd.f32 %v5459_v7, %v5431_v36 }
 0xb6d   : > { %v5472_v9 = vmul.f32 0.7978846, %v5465_v17 }
 0xb6e   : > { %v5473_v12 = vmul.f32 0.7978846, %v5466_v15  ;;  %v5505_v61 = vld [vmem:[#allocation2 + $0x1] ss:$2 sm:$0xff]  ;;  %v5508_v21 = vld [vmem:[#allocation2 + $0x2] ss:$2 sm:$0xff] }
 0xb6f   : > { %7611 = vtanh.f32 %v5472_v9  ;;  %v7154_v43 = vpack.i.bf16 %v5506_v31, %v5505_v61  ;;  %v5502_v29 = vld [vmem:[#allocation2] ss:$2 sm:$0xff] }
 0xb70   : > { %7613 = vtanh.f32 %v5473_v12 }
 0xb71   : > { %7155 = vrot.lane.b32.xlu0 %v7154_v43, %s7709_s11  ;;  %v7219_v43 = vld [vmem:[%s10551_s2 + $0x18] sm:$0xff]  }
 0xb72   : > { %6846 = vmatpush3.bf16.msra.mxu1 %v7219_v43 }
 0xb73   : > { %6847 = vmatprep.subr.bf16.mxu1 %v10537_v19 }
 0xb77   : > { %v7610_v63 = vpop.eup %7609 }
 0xb78   : > { %v5485_v24 = vadd.f32 1.0, %v7610_v63  ;;  %v7220_v63 = vld [vmem:[%s10551_s2 + $0x10] sm:$0xff]  }
 0xb79   : > { %6848 = vmatpush3.bf16.msra.mxu1 %v7220_v63 }
 0xb7a   : > { %v5492_v13 = vmul.f32 %v5485_v24, %v5436_v49  ;;  %v7221_v49 = vld [vmem:[%s10551_s2 + $0x8] sm:$0xff]   ;;  %6849 = vmatprep.subr.bf16.mxu1 %v10537_v19 }
 0xb7c   : > { %v7612_v11 = vpop.eup %7611  ;;  %5499 = vst.msk [vmem:[#allocation2 + $0x20] sm:$0xff] %vm1858_vm5, %v5492_v13 }
 0xb7d   : > { %v7614_v2 = vpop.eup %7613  ;;  %v5486_v35 = vadd.f32 1.0, %v7612_v11  ;;  %6850 = vmatpush3.bf16.msra.mxu1 %v7221_v49  ;;  %v6475_v49 = vld [vmem:[%s10554_s18] ss:$0 sm:$0xff]  ;;  %s10560_s18 = sld [smem:[#allocation22_spill]] }
 0xb7e   : > { %v5487_v55 = vadd.f32 1.0, %v7614_v2  ;;  %6851 = vmatprep.subr.bf16.mxu1 %v10537_v19 }
 0xb7f   : > { %v5493_v48 = vmul.f32 %v5486_v35, %v5437_v47 }
 0xb80   : > { %v5494_v39 = vmul.f32 %v5487_v55, %v5438_v54 }
 0xb81   : > { %5500 = vst.msk [vmem:[#allocation2 + $0x28] sm:$0xff] %vm1858_vm5, %v5493_v48 }
 0xb82   : > { %5501 = vst.msk [vmem:[#allocation2 + $0x30] sm:$0x1] %vm5332_vm10, %v5494_v39 }
 0xb83   : > { %v5509_v20 = vld [vmem:[#allocation2 + $0x12] ss:$2 sm:$0xff] }
 0xb84   : > { %v7159_v26 = vpack.i.bf16 %v5509_v20, %v5508_v21 }
 0xb88   : > { %v5507_v60 = vld [vmem:[#allocation2 + $0x21] ss:$2 sm:$0xff]  ;;  %v5504_v4 = vld [vmem:[#allocation2 + $0x20] ss:$2 sm:$0xff] }
 0xb89   : > { %5518 = vrot.lane.b32.xlu1 %v5507_v60, %s7709_s11  ;;  %v5510_v0 = vld [vmem:[#allocation2 + $0x22] ss:$2 sm:$0xff]  ;;  %v6473_v60 = vld [vmem:[%s10552_s12] ss:$0 sm:$0xff]  ;;  %s10558_s12 = sld [smem:[#allocation20_spill]] }
 0xb8a   : > { %5530 = vrot.lane.b32.xlu0 %v5510_v0, %s7710_s23  ;;  %v6474_v0 = vld [vmem:[%s10553_s7] ss:$0 sm:$0xff]  ;;  %s10559_s7 = sld [smem:[#allocation21_spill]] }
 0xb8d   : > { %7160 = vrot.lane.b32.xlu1 %v7159_v26, %s7710_s23 }
 0xbe3   : > { %v7156_v57 = vpop.permute.xlu0 %7155 }
 0xbe4   : > { %v7158_v32 = vunpack.i.h.bf16 %v7156_v57  ;;  %v7157_v5 = vunpack.i.l.bf16 %v7156_v57 }
 0xbe6   : > { %v5536_v1 = vsel %vm1858_vm5, %v5503_v25, %v7158_v32  ;;  %v5535_v62 = vsel %vm1858_vm5, %v5502_v29, %v7157_v5 }
 0xbfb   : > { %v5519_v51 = vpop.permute.xlu1 %5518 }
 0xbfc   : > { %v5531_v16 = vpop.permute.xlu0 %5530  ;;  %v5537_v23 = vsel %vm1858_vm5, %v5504_v4, %v5519_v51 }
 0xbfd   : > { %v5540_v18 = vsel %vm3497_vm7, %v5537_v23, %v5531_v16 }
 0xbfe   : > { %v5554_v27 = vpack.c.bf16 %v5540_v18, %v5540_v18 }
 0xbff   : > { %v7161_v45 = vpop.permute.xlu1 %7160 }
 0xc00   : > { %v7163_v30 = vunpack.i.h.bf16 %v7161_v45  ;;  %v7162_v53 = vunpack.i.l.bf16 %v7161_v45 }
 0xc02   : > { %v5539_v34 = vsel %vm3497_vm7, %v5536_v1, %v7163_v30  ;;  %v5538_v6 = vsel %vm3497_vm7, %v5535_v62, %v7162_v53 }
 0xc03   : > { %v5553_v46 = vpack.c.bf16 %v5539_v34, %v5538_v6 }
 0xc05   : > { %6841 = vmatprep.mubr.msk.bf16.mxu0 %vm3591_vm8, %v5553_v46 }
 0xc06   : > { %6842 = vmatmul.mubr.msk.bf16.vlgmr.msra.gmra.mxu0 %vm3591_vm8, %v5554_v27 }
 0xc07   : > { %6889 = vmatprep.mubr.msk.bf16.mxu0 %vm7707_vm1, %v10537_v19 }
 0xcc6   : > { %v6843_v37 = vpop.f32.mrf.mxu0 }
 0xcc7   : > { %v5647_v50 = vadd.f32 %v6843_v37, %v6464_v38 }
 0xcc8   : > { %v5638_v10 = vpop.f32.mrf.mxu0 }
 0xcc9   : > { %v5639_v22 = vadd.f32 %v6464_v38, %v5638_v10  ;;  %v5660_v52 = vsel %vm1858_vm5, %v5647_v50, 0.0 }
 0xcca   : > { %v6844_v33 = vpop.f32.mrf.mxu0 }
 0xccb   : > { %v5654_v14 = vsel %vm1858_vm5, %v5639_v22, 0.0 }
 0xccc   : > { %v5641_v59 = vpop.f32.mrf.mxu0  ;;  %5655 = vadd.xlane.f32.xlu1 %v5654_v14 }
 0xccd   : > { %v5642_v28 = vadd.f32 %v6464_v38, %v5641_v59 }
 0xccf   : > { %v5657_v36 = vsel %vm1858_vm5, %v5642_v28, 0.0 }
 0xcd0   : > { %5658 = vadd.xlane.f32.xlu0 %v5657_v36 }
 0xcd4   : > { %5661 = vadd.xlane.f32.xlu0 %v5660_v52 }
 0xd55   : > { %v5656_v40 = vpop.xlane.xlu1 %5655 }
 0xd56   : > { %v5663_v41 = vmul.f32 0.03125, %v5656_v40 }
 0xd58   : > { %v5666_v3 = vsub.f32 %v5639_v22, %v5663_v41 }
 0xd59   : > { %v5659_v44 = vpop.xlane.xlu0 %5658 }
 0xd5a   : > { %v5664_v42 = vmul.f32 0.03125, %v5659_v44  ;;  %v5669_v58 = vmul.f32 %v5666_v3, %v5666_v3 }
 0xd5c   : > { %v5667_v56 = vsub.f32 %v5642_v28, %v5664_v42  ;;  %v5672_v8 = vsel %vm1858_vm5, %v5669_v58, 0.0  ;;  %v7222_v58 = vld [vmem:[%s10551_s2] sm:$0xff]  }
 0xd5d   : > { %v5662_v7 = vpop.xlane.xlu0 %5661  ;;  %5673 = vadd.xlane.f32.xlu1 %v5672_v8  ;;  %6852 = vmatpush3.bf16.msra.mxu1 %v7222_v58 }
 0xd5e   : > { %v5665_v17 = vmul.f32 0.03125, %v5662_v7  ;;  %v5670_v15 = vmul.f32 %v5667_v56, %v5667_v56  ;;  %6857 = vmatprep.subr.bf16.mxu1 %v10537_v19 }
 0xd60   : > { %v5668_v9 = vsub.f32 %v5647_v50, %v5665_v17  ;;  %v5675_v12 = vsel %vm1858_vm5, %v5670_v15, 0.0 }
 0xd61   : > { %5676 = vadd.xlane.f32.xlu0 %v5675_v12 }
 0xd62   : > { %v5671_v61 = vmul.f32 %v5668_v9, %v5668_v9 }
 0xd64   : > { %v5678_v31 = vsel %vm1858_vm5, %v5671_v61, 0.0 }
 0xd65   : > { %5679 = vadd.xlane.f32.xlu1 %v5678_v31 }
 0xde6   : > { %v5674_v24 = vpop.xlane.xlu1 %5673 }
 0xde7   : > { %v5681_v13 = vmul.f32 0.03125, %v5674_v24 }
 0xde9   : > { %v5684_v11 = vadd.f32 1e-05, %v5681_v13 }
 0xdea   : > { %v5677_v2 = vpop.xlane.xlu0 %5676 }
 0xdeb   : > { %7615 = vrsqrt.f32 %v5684_v11  ;;  %v5682_v47 = vmul.f32 0.03125, %v5677_v2 }
 0xded   : > { %v5685_v35 = vadd.f32 1e-05, %v5682_v47 }
 0xdee   : > { %v5680_v54 = vpop.xlane.xlu1 %5679 }
 0xdef   : > { %7617 = vrsqrt.f32 %v5685_v35  ;;  %v5683_v55 = vmul.f32 0.03125, %v5680_v54 }
 0xdf1   : > { %v5686_v48 = vadd.f32 1e-05, %v5683_v55 }
 0xdf3   : > { %7619 = vrsqrt.f32 %v5686_v48 }
 0xdf8   : > { %v7616_v39 = vpop.eup %7615 }
 0xdf9   : > { %v5690_v20 = vmul.f32 %v7616_v39, %v5666_v3 }
 0xdfb   : > { %v5699_v21 = vmul.f32 %v6473_v60, %v5690_v20 }
 0xdfc   : > { %v7618_v26 = vpop.eup %7617 }
 0xdfd   : > { %v5708_v57 = vadd.f32 %v6474_v0, %v5699_v21  ;;  %v5691_v51 = vmul.f32 %v7618_v26, %v5667_v56 }
 0xdff   : > { %v5714_v32 = vmul.f32 0.044715, %v5708_v57  ;;  %v5700_v5 = vmul.f32 %v6473_v60, %v5691_v51  ;;  %v5711_v14 = vmul.f32 0.5, %v5708_v57 }
 0xe00   : > { %v7620_v4 = vpop.eup %7619 }
 0xe01   : > { %v5717_v16 = vmul.f32 %v5714_v32, %v5708_v57  ;;  %v5709_v23 = vadd.f32 %v6474_v0, %v5700_v5  ;;  %v5692_v45 = vmul.f32 %v7620_v4, %v5668_v9  ;;  %v7223_v5 = vld [vmem:[%s10555_s26 + $0x18] sm:$0xff]   ;;  %v7224_v4 = vld [vmem:[%s10555_s26 + $0x10] sm:$0xff]  }
 0xe03   : > { %v5720_v25 = vmul.f32 %v5717_v16, %v5708_v57  ;;  %v5715_v29 = vmul.f32 0.044715, %v5709_v23  ;;  %v5701_v30 = vmul.f32 %v6473_v60, %v5692_v45  ;;  %v5712_v36 = vmul.f32 0.5, %v5709_v23  ;;  %v7225_v16 = vld [vmem:[%s10555_s26 + $0x8] sm:$0xff]  }
 0xe05   : > { %v5723_v53 = vadd.f32 %v5720_v25, %v5708_v57  ;;  %v5718_v1 = vmul.f32 %v5715_v29, %v5709_v23  ;;  %v5710_v62 = vadd.f32 %v6474_v0, %v5701_v30 }
 0xe07   : > { %v5726_v18 = vmul.f32 0.7978846, %v5723_v53  ;;  %v5721_v34 = vmul.f32 %v5718_v1, %v5709_v23  ;;  %v5716_v6 = vmul.f32 0.044715, %v5710_v62  ;;  %v5713_v3 = vmul.f32 0.5, %v5710_v62 }
 0xe09   : > { %7621 = vtanh.f32 %v5726_v18  ;;  %v5724_v46 = vadd.f32 %v5721_v34, %v5709_v23  ;;  %v5719_v27 = vmul.f32 %v5716_v6, %v5710_v62  ;;  %v6482_v34 = vld [vmem:[%s10557_s5] ss:$0 sm:$0xff]  ;;  %s10562_s5 = sld [smem:[#allocation23_spill]] }
 0xe0b   : > { %v5727_v37 = vmul.f32 0.7978846, %v5724_v46  ;;  %v5722_v38 = vmul.f32 %v5719_v27, %v5710_v62 }
 0xe0d   : > { %7623 = vtanh.f32 %v5727_v37  ;;  %v5725_v10 = vadd.f32 %v5722_v38, %v5710_v62  ;;  %v6481_v62 = vld [vmem:[%s10556_s28] ss:$0 sm:$0xff]  ;;  %s10561_s28 = sld [smem:[#allocation25_spill]] }
 0xe0f   : > { %v5728_v22 = vmul.f32 0.7978846, %v5725_v10 }
 0xe11   : > { %7625 = vtanh.f32 %v5728_v22 }
 0xe16   : > { %v7622_v33 = vpop.eup %7621 }
 0xe17   : > { %v5732_v59 = vadd.f32 1.0, %v7622_v33 }
 0xe19   : > { %v5735_v28 = vmul.f32 %v5732_v59, %v5711_v14 }
 0xe1a   : > { %v7624_v50 = vpop.eup %7623 }
 0xe1b   : > { %5738 = vst.msk [vmem:[#allocation2] sm:$0xff] %vm1858_vm5, %v5735_v28  ;;  %v5733_v52 = vadd.f32 1.0, %v7624_v50 }
 0xe1d   : > { %v5736_v40 = vmul.f32 %v5733_v52, %v5712_v36 }
 0xe1e   : > { %v7626_v41 = vpop.eup %7625 }
 0xe1f   : > { %5739 = vst.msk [vmem:[#allocation2 + $0x8] sm:$0xff] %vm1858_vm5, %v5736_v40  ;;  %v5734_v44 = vadd.f32 1.0, %v7626_v41 }
 0xe21   : > { %v5737_v42 = vmul.f32 %v5734_v44, %v5713_v3 }
 0xe23   : > { %5740 = vst.msk [vmem:[#allocation2 + $0x10] sm:$0xff] %vm1858_vm5, %v5737_v42 }
 0xe26   : > { %v5743_v56 = vld [vmem:[#allocation2 + $0x1] ss:$2 sm:$0xff]  ;;  %v5741_v12 = vld [vmem:[#allocation2] ss:$2 sm:$0xff] }
 0xe2a   : > { %v5744_v8 = vld [vmem:[#allocation2 + $0x11] ss:$2 sm:$0xf]  ;;  %v5742_v61 = vld [vmem:[#allocation2 + $0x10] ss:$2 sm:$0xf] }
 0xe2b   : > { %v7164_v7 = vpack.i.bf16 %v5744_v8, %v5743_v56 }
 0xe2d   : > { %7165 = vrot.lane.b32.xlu0 %v7164_v7, %s7709_s11 }
 0xe9f   : > { %v7166_v17 = vpop.permute.xlu0 %7165 }
 0xea0   : > { %v7168_v15 = vunpack.i.h.bf16 %v7166_v17  ;;  %v7167_v9 = vunpack.i.l.bf16 %v7166_v17  ;;  %v7226_v17 = vld [vmem:[%s10555_s26] sm:$0xff]  }
 0xea2   : > { %v5753_v31 = vsel %vm1858_vm5, %v5741_v12, %v7167_v9  ;;  %v5754_v43 = vsel %vm1858_vm5, %v5742_v61, %v7168_v15 }
 0xea3   : > { %v5763_v63 = vpack.c.bf16 %v5754_v43, %v5753_v31 }
 0xea5   : > { %6854 = vmatmul.mubr.msk.bf16.vlgmr.msra.gmra.mxu1 %vm3497_vm7, %v5763_v63  ;;  %v6483_v63 = vld [vmem:[%s10558_s12] ss:$0 sm:$0xff]  ;;  %s10563_s12 = sld [smem:[#allocation24_spill]] }
 0xea6   : > { %6865 = vmatprep.mubr.msk.bf16.mxu1 %vm7707_vm1, %v10537_v19  ;;  %6858 = vmatpush3.bf16.msra.mxu1 %v7223_v5 }
 0xea7   : > { %6859 = vmatprep.subr.bf16.mxu1 %v10537_v19 }
 0xeaa   : > { %6860 = vmatpush3.bf16.msra.mxu1 %v7224_v4 }
 0xeab   : > { %6861 = vmatprep.subr.bf16.mxu1 %v10537_v19 }
 0xeae   : > { %6862 = vmatpush3.bf16.msra.mxu1 %v7225_v16 }
 0xeaf   : > { %6863 = vmatprep.subr.bf16.mxu1 %v10537_v19 }
 0xeb2   : > { %6864 = vmatpush3.bf16.msra.mxu1 %v7226_v17  ;;  %v6493_v17 = vld [vmem:[%s7884_s10] ss:$0 sm:$0xff] }
 0xeb3   : > { %6869 = vmatprep.subr.bf16.mxu1 %v10537_v19 }
 0xf65   : > { %v5832_v24 = vpop.f32.mrf.mxu1 }
 0xf66   : > { %v5833_v13 = vadd.f32 %v6475_v49, %v5832_v24 }
 0xf67   : > { %v6855_v11 = vpop.f32.mrf.mxu1 }
 0xf68   : > { %v5841_v2 = vsel %vm1858_vm5, %v5833_v13, 0.0 }
 0xf69   : > { %5842 = vadd.xlane.f32.xlu1 %v5841_v2  ;;  %v5835_v47 = vpop.f32.mrf.mxu1 }
 0xf6a   : > { %v5836_v35 = vadd.f32 %v6475_v49, %v5835_v47 }
 0xf6b   : > { %v6856_v54 = vpop.f32.mrf.mxu1 }
 0xf6c   : > { %v5845_v55 = vsel %vm5844_vm11, %v5836_v35, 0.0 }
 0xf6d   : > { %5846 = vadd.xlane.f32.xlu1 %v5845_v55 }
 0xff2   : > { %v5843_v48 = vpop.xlane.xlu1 %5842 }
 0xff3   : > { %v5848_v39 = vmul.f32 0.03125, %v5843_v48 }
 0xff5   : > { %v5850_v60 = vsub.f32 %v5833_v13, %v5848_v39 }
 0xff6   : > { %v5847_v20 = vpop.xlane.xlu1 %5846 }
 0xff7   : > { %v5849_v0 = vmul.f32 0.03125, %v5847_v20  ;;  %v5852_v21 = vmul.f32 %v5850_v60, %v5850_v60 }
 0xff9   : > { %v5851_v26 = vsub.f32 %v5836_v35, %v5849_v0  ;;  %v5854_v57 = vsel %vm1858_vm5, %v5852_v21, 0.0 }
 0xffa   : > { %5855 = vadd.xlane.f32.xlu1 %v5854_v57 }
 0xffb   : > { %v5853_v51 = vmul.f32 %v5851_v26, %v5851_v26 }
 0xffd   : > { %v5857_v32 = vsel %vm5844_vm11, %v5853_v51, 0.0  ;;  %v6490_v51 = vld [vmem:[%s10560_s18] ss:$0 sm:$0xff] }
 0xffe   : > { %5858 = vadd.xlane.f32.xlu1 %v5857_v32 }
0x1083   : > { %v5856_v23 = vpop.xlane.xlu1 %5855 }
0x1084   : > { %v5860_v45 = vmul.f32 0.03125, %v5856_v23 }
0x1086   : > { %v5862_v25 = vadd.f32 1e-05, %v5860_v45 }
0x1087   : > { %v5859_v29 = vpop.xlane.xlu1 %5858 }
0x1088   : > { %7627 = vrsqrt.f32 %v5862_v25  ;;  %v5861_v30 = vmul.f32 0.03125, %v5859_v29 }
0x108a   : > { %v5863_v53 = vadd.f32 1e-05, %v5861_v30 }
0x108c   : > { %7629 = vrsqrt.f32 %v5863_v53 }
0x1095   : > { %v7628_v1 = vpop.eup %7627 }
0x1096   : > { %v5866_v18 = vmul.f32 %v7628_v1, %v5850_v60 }
0x1098   : > { %v5874_v6 = vmul.f32 %v6481_v62, %v5866_v18 }
0x1099   : > { %v7630_v46 = vpop.eup %7629 }
0x109a   : > { %v5882_v27 = vadd.f32 %v6482_v34, %v5874_v6  ;;  %v5867_v37 = vmul.f32 %v7630_v46, %v5851_v26  ;;  %v6489_v26 = vld [vmem:[%s10559_s7] ss:$0 sm:$0xff]  ;;  %s6131_s7 = sld [smem:[#allocation5 + %s7908_s0]]  ;;  %s6358_s0 = sshll.u32 %s7917_s1, 2 }
0x109c   : > { %v5886_v38 = vmul.f32 0.044715, %v5882_v27  ;;  %v5875_v10 = vmul.f32 %v6481_v62, %v5867_v37  ;;  %v5884_v44 = vmul.f32 0.5, %v5882_v27  ;;  %v7227_v37 = vld [vmem:[%s10561_s28 + $0x8] sm:$0xff]  }
0x109e   : > { %v5888_v22 = vmul.f32 %v5886_v38, %v5882_v27  ;;  %v5883_v33 = vadd.f32 %v6482_v34, %v5875_v10  ;;  %v7228_v38 = vld [vmem:[%s10561_s28] sm:$0xff]  }
0x10a0   : > { %v5890_v14 = vmul.f32 %v5888_v22, %v5882_v27  ;;  %v5887_v59 = vmul.f32 0.044715, %v5883_v33  ;;  %v5885_v8 = vmul.f32 0.5, %v5883_v33 }
0x10a2   : > { %v5892_v28 = vadd.f32 %v5890_v14, %v5882_v27  ;;  %v5889_v50 = vmul.f32 %v5887_v59, %v5883_v33  ;;  %v6491_v59 = vld [vmem:[%s10562_s5] ss:$0 sm:$0xff] }
0x10a4   : > { %v5894_v36 = vmul.f32 0.7978846, %v5892_v28  ;;  %v5891_v52 = vmul.f32 %v5889_v50, %v5883_v33  ;;  %v6492_v50 = vld [vmem:[%s10563_s12] ss:$0 sm:$0xff] }
0x10a6   : > { %7631 = vtanh.f32 %v5894_v36  ;;  %v5893_v40 = vadd.f32 %v5891_v52, %v5883_v33 }
0x10a8   : > { %v5895_v41 = vmul.f32 0.7978846, %v5893_v40 }
0x10aa   : > { %7633 = vtanh.f32 %v5895_v41  ;;  %v7229_v41 = vld [vmem:[%s7889_s16 + $0x28] sm:$0xff]  }
0x10ab   : > { %6878 = vmatpush3.bf16.msra.mxu0 %v7229_v41 }
0x10ac   : > { %6879 = vmatprep.subr.bf16.mxu0 %v10537_v19 }
0x10b3   : > { %v7632_v3 = vpop.eup %7631 }
0x10b4   : > { %v5898_v42 = vadd.f32 1.0, %v7632_v3  ;;  %v7230_v3 = vld [vmem:[%s7889_s16 + $0x20] sm:$0xff]  }
0x10b5   : > { %6880 = vmatpush3.bf16.msra.mxu0 %v7230_v3 }
0x10b6   : > { %v5900_v58 = vmul.f32 %v5898_v42, %v5884_v44  ;;  %v7231_v44 = vld [vmem:[%s7889_s16 + $0x18] sm:$0xff]   ;;  %6881 = vmatprep.subr.bf16.mxu0 %v10537_v19  ;;  %v7232_v42 = vld [vmem:[%s7889_s16 + $0x10] sm:$0xff]  }
0x10b7   : > { %v7634_v56 = vpop.eup %7633 }
0x10b8   : > { %5902 = vst.msk [vmem:[#allocation2] sm:$0xff] %vm1858_vm5, %v5900_v58  ;;  %v5899_v7 = vadd.f32 1.0, %v7634_v56  ;;  %v7233_v58 = vld [vmem:[%s7889_s16 + $0x8] sm:$0xff]   ;;  %v6129_v56 = vlaneseq }
0x10b9   : > { %6882 = vmatpush3.bf16.msra.mxu0 %v7231_v44 }
0x10ba   : > { %v5901_v15 = vmul.f32 %v5899_v7, %v5885_v8  ;;  %6883 = vmatprep.subr.bf16.mxu0 %v10537_v19  ;;  %v6130_v8 = vshrl.u32 %v6129_v56, 7  ;;  %v6132_v7 = vstv %s6131_s7 }
0x10bc   : > { %5903 = vst.msk [vmem:[#allocation2 + $0x8] sm:$0xf] %vm5844_vm11, %v5901_v15  ;;  %vm6133_vm13 = vcmp.lt.s32.totalorder %v6130_v8, %v6132_v7 }
0x10bd   : > { %6884 = vmatpush3.bf16.msra.mxu0 %v7232_v42 }
0x10be   : > { %6885 = vmatprep.subr.bf16.mxu0 %v10537_v19 }
0x10c1   : > { %6886 = vmatpush3.bf16.msra.mxu0 %v7233_v58 }
0x10c2   : > { %6887 = vmatprep.subr.bf16.mxu0 %v10537_v19 }
0x10c3   : > { %v5905_v9 = vld [vmem:[#allocation2 + $0x1] ss:$2 sm:$0x3f]  ;;  %v5904_v61 = vld [vmem:[#allocation2] ss:$2 sm:$0x3f] }
0x10c4   : > { %5907 = vrot.lane.b32.xlu1 %v5905_v9, %s7709_s11 }
0x1136   : > { %v5908_v12 = vpop.permute.xlu1 %5907 }
0x1137   : > { %v5910_v31 = vsel %vm1858_vm5, %v5904_v61, %v5908_v12  ;;  %v7234_v12 = vld [vmem:[%s7889_s16] sm:$0xff]  }
0x1138   : > { %v5919_v43 = vpack.c.bf16 %v5910_v31, %v5910_v31  ;;  %6888 = vmatpush3.bf16.msra.mxu0 %v7234_v12 }
0x113a   : > { %6866 = vmatmul.mubr.msk.bf16.vlgmr.msra.gmra.mxu1 %vm3497_vm7, %v5919_v43 }
0x113b   : > { %6873 = vmatprep.mubr.msk.bf16.mxu1 %vm7707_vm1, %v10537_v19  ;;  %6870 = vmatpush3.bf16.msra.mxu1 %v7227_v37 }
0x113c   : > { %6871 = vmatprep.subr.bf16.mxu1 %v10537_v19 }
0x113f   : > { %6872 = vmatpush3.bf16.msra.mxu1 %v7228_v38 }
0x11fa   : > { %v5988_v49 = vpop.f32.mrf.mxu1 }
0x11fb   : > { %v5989_v24 = vadd.f32 %v6483_v63, %v5988_v49 }
0x11fc   : > { %v6867_v13 = vpop.f32.mrf.mxu1 }
0x11fd   : > { %v5997_v11 = vsel %vm5996_vm12, %v5989_v24, 0.0 }
0x11fe   : > { %5998 = vadd.xlane.f32.xlu0 %v5997_v11  ;;  %v5991_v2 = vpop.f32.mrf.mxu1 }
0x1200   : > { %v6868_v47 = vpop.f32.mrf.mxu1 }
0x1287   : > { %v5999_v35 = vpop.xlane.xlu0 %5998 }
0x1288   : > { %v6000_v54 = vmul.f32 0.03125, %v5999_v35 }
0x128a   : > { %v6001_v55 = vsub.f32 %v5989_v24, %v6000_v54  ;;  %v6497_v54 = vld [vmem:[%s7895_s22] ss:$0 sm:$0xff] }
0x128c   : > { %v6002_v48 = vmul.f32 %v6001_v55, %v6001_v55 }
0x128e   : > { %v6003_v39 = vsel %vm5996_vm12, %v6002_v48, 0.0 }
0x128f   : > { %6004 = vadd.xlane.f32.xlu1 %v6003_v39 }
0x1318   : > { %v6005_v60 = vpop.xlane.xlu1 %6004 }
0x1319   : > { %v6006_v20 = vmul.f32 0.03125, %v6005_v60 }
0x131b   : > { %v6007_v0 = vadd.f32 1e-05, %v6006_v20 }
0x131d   : > { %7635 = vrsqrt.f32 %v6007_v0 }
0x132a   : > { %v7636_v21 = vpop.eup %7635 }
0x132b   : > { %v6009_v57 = vmul.f32 %v7636_v21, %v6001_v55 }
0x132d   : > { %v6016_v32 = vmul.f32 %v6489_v26, %v6009_v57 }
0x132f   : > { %v6023_v5 = vadd.f32 %v6490_v51, %v6016_v32 }
0x1331   : > { %v6025_v4 = vmul.f32 0.044715, %v6023_v5  ;;  %v6024_v30 = vmul.f32 0.5, %v6023_v5 }
0x1333   : > { %v6026_v16 = vmul.f32 %v6025_v4, %v6023_v5 }
0x1335   : > { %v6027_v23 = vmul.f32 %v6026_v16, %v6023_v5 }
0x1337   : > { %v6028_v45 = vadd.f32 %v6027_v23, %v6023_v5 }
0x1339   : > { %v6029_v25 = vmul.f32 0.7978846, %v6028_v45 }
0x133b   : > { %7637 = vtanh.f32 %v6029_v25 }
0x1348   : > { %v7638_v29 = vpop.eup %7637 }
0x1349   : > { %v6031_v53 = vadd.f32 1.0, %v7638_v29 }
0x134b   : > { %v6032_v1 = vmul.f32 %v6031_v53, %v6024_v30 }
0x134d   : > { %v6035_v62 = vsel %vm5996_vm12, %v6032_v1, 0.0 }
0x134e   : > { %6036 = vadd.xlane.f32.xlu0 %v6035_v62 }
0x13d7   : > { %v6037_v18 = vpop.xlane.xlu0 %6036 }
0x13d8   : > { %v6038_v34 = vmul.f32 0.03125, %v6037_v18 }
0x13da   : > { %v6039_v6 = vsub.f32 %v6032_v1, %v6038_v34 }
0x13dc   : > { %v6040_v46 = vmul.f32 %v6039_v6, %v6039_v6 }
0x13de   : > { %v6041_v27 = vsel %vm5996_vm12, %v6040_v46, 0.0 }
0x13df   : > { %6042 = vadd.xlane.f32.xlu0 %v6041_v27 }
0x1468   : > { %v6043_v10 = vpop.xlane.xlu0 %6042 }
0x1469   : > { %v6044_v22 = vmul.f32 0.03125, %v6043_v10 }
0x146b   : > { %v6045_v33 = vadd.f32 1e-05, %v6044_v22 }
0x146d   : > { %7639 = vrsqrt.f32 %v6045_v33 }
0x147a   : > { %v7640_v14 = vpop.eup %7639 }
0x147b   : > { %v6047_v28 = vmul.f32 %v7640_v14, %v6039_v6 }
0x147d   : > { %v6054_v36 = vmul.f32 %v6491_v59, %v6047_v28 }
0x147f   : > { %v6061_v52 = vadd.f32 %v6492_v50, %v6054_v36 }
0x1481   : > { %v6066_v40 = vpack.c.bf16 %v6061_v52, %v6061_v52 }
0x1483   : > { %6874 = vmatmul.mubr.msk.bf16.vlgmr.msra.gmra.mxu1 %vm1858_vm5, %v6066_v40 }
0x1543   : > { %v6123_v15 = vpop.f32.mrf.mxu1 }
0x1544   : > { %v6124_v9 = vadd.f32 %v6493_v17, %v6123_v15 }
0x1545   : > { %v6875_v61 = vpop.f32.mrf.mxu1 }
0x1546   : > { %v6136_v31 = vsel %vm6133_vm13, %v6124_v9, 0.0 }
0x1547   : > { %6138 = vst.msk [vmem:[#allocation3 + $0x1] sm:$0x3f] %vm5996_vm12, %v6136_v31  ;;  %v6126_v43 = vpop.f32.mrf.mxu1 }
0x1549   : > { %v6876_v63 = vpop.f32.mrf.mxu1 }
0x154e   : > { %v6141_v49 = vld [vmem:[#allocation3 + $0x2] sm:$0x3f] }
0x154f   : > { %v6140_v24 = vld [vmem:[#allocation3 + $0x1] sm:$0x3f]  ;;  %6147 = vrot.lane.b32.xlu1 %v6141_v49, %s7710_s23 }
0x1550   : > { %6143 = vrot.lane.b32.xlu0 %v6140_v24, %s7709_s11  ;;  %v6139_v11 = vld [vmem:[#allocation3] sm:$0x3f]  ;;  %s1076_s11 = scalar_lea.vmem %s7900_s4, %s6358_s0 }
0x15c1   : > { %v6148_v19 = vpop.permute.xlu1 %6147 }
0x15c2   : > { %v6144_v13 = vpop.permute.xlu0 %6143 }
0x15c3   : > { %v6150_v2 = vsel %vm1858_vm5, %v6139_v11, %v6144_v13 }
0x15c4   : > { %v6151_v47 = vsel %vm3497_vm7, %v6150_v2, %v6148_v19 }
0x15c5   : > { %v6164_v35 = vpack.c.bf16 %v6151_v47, %v6151_v47 }
0x15c7   : > { %6890 = vmatmul.mubr.msk.bf16.vlgmr.msra.gmra.mxu0 %vm3591_vm8, %v6164_v35 }
0x1687   : > { %v6245_v55 = vpop.f32.mrf.mxu0 }
0x1688   : > { %v6246_v48 = vadd.f32 %v6497_v54, %v6245_v55 }
0x1689   : > { %v6891_v39 = vpop.f32.mrf.mxu0 }
0x168a   : > { %v6252_v60 = vmul.f32 0.044715, %v6246_v48  ;;  %v6251_v5 = vmul.f32 0.5, %v6246_v48 }
0x168b   : > { %v6248_v20 = vpop.f32.mrf.mxu0 }
0x168c   : > { %v6253_v0 = vmul.f32 %v6252_v60, %v6246_v48 }
0x168d   : > { %v6892_v21 = vpop.f32.mrf.mxu0 }
0x168e   : > { %v6254_v26 = vmul.f32 %v6253_v0, %v6246_v48 }
0x1690   : > { %v6255_v57 = vadd.f32 %v6254_v26, %v6246_v48 }
0x1692   : > { %v6256_v51 = vmul.f32 0.7978846, %v6255_v57 }
0x1694   : > { %7641 = vtanh.f32 %v6256_v51 }
0x16a1   : > { %v7642_v32 = vpop.eup %7641 }
0x16a2   : > { %v6258_v4 = vadd.f32 1.0, %v7642_v32 }
0x16a4   : > { %v6259_v16 = vmul.f32 %v6258_v4, %v6251_v5 }
0x16a6   : > { %v6260_v23 = vadd.f32 %v6259_v16, %v6136_v31 }
0x16a8   : > { %v6261_v45 = vpack.c.bf16 %v6260_v23, %v6260_v23 }
0x16aa   : > { %6262 = vst.msk [vmem:[%s1076_s11] sm:$0x7] %vm4784_vm9, %v6261_v45 }
0x16ab PF: > { %s89_s20 = sadd.s32 1, %s7667_s20  }
0x16ac   : > { %p86_p9 = scmp.ge.s32.totalorder %s89_s20, 4  }
0x16ae   :  { %88 = sbr.rel (!%p86_p9) target bundleno = 68 (0x44), region = 300 }

</bundles_post_ra>
